<compile_context>
chip_gen: v5e
topology: v5e:2x2
jax: 0.10.0
libtpu: 0.0.40
codegen_flags: <defaults>
</compile_context>

<pallas_src>
import functools

import jax
import jax.numpy as jnp
from jax.experimental import pallas as pl
from jax.experimental.pallas import tpu as pltpu


def _resblock_kernel(H, W, x_ref, w1_ref, b1_ref, w2b_ref, b2b_ref, o_ref,
                     y1pad_ref, sh_ref):
    """One batch block (block_n images) per grid step.

    x_ref    : (Nb, H+2, W+2, Cin)  zero-padded NHWC input block
    w1_ref   : (9*Cin,  Cout)  bf16 conv1 im2col weights (row = (ky*3+kx)*Cin+ci)
    w2b_ref  : (9*Cout+Cin, Cout) bf16 conv2 im2col weights with the 1x1 bypass
               weights stacked underneath; both pre-scaled by the 1/4 pool factor
    b1_ref   : (1, Cout) f32   conv1 bias (pre-ReLU)
    b2b_ref  : (1, Cout) f32   combined post-pool bias (b2 + bb)
    o_ref    : (Nb, Ho*Wo, Cout) output block
    y1pad_ref: VMEM (Nb, H+2, W+2, Cout) scratch (zero-padded ReLU output)
    sh_ref   : VMEM (Nb*Ho*W, Cout) scratch (H-pooled pre-pool sum)
    """
    Nb = x_ref.shape[0]
    Cin = x_ref.shape[-1]
    Cout = o_ref.shape[-1]
    Hp, Wp = H + 2, W + 2
    Ho, Wo = H // 2, W // 2
    R = Nb * H * W  # rows of every full-resolution matmul
    taps = [(ky, kx) for ky in range(3) for kx in range(3)]

    def tap(ref, ky, kx, c):
        # (Nb, H, W, c) shifted window, flattened to rows ordered (n, h, w).
        return ref[:, pl.ds(ky, H), pl.ds(kx, W), :].reshape(R, c)

    # ---- conv1: 3x3, stride 1, pad 1 -> one MXU matmul, then bias + ReLU ----
    parts1 = [tap(x_ref, ky, kx, Cin) for ky, kx in taps]
    p1 = jnp.concatenate(parts1, axis=1).astype(jnp.bfloat16)          # (R, 9*Cin)
    y1 = jnp.dot(p1, w1_ref[...], preferred_element_type=jnp.float32)  # (R, Cout)
    y1 = jnp.maximum(y1 + b1_ref[...], 0.0)

    # ---- build the zero-padded ReLU map with aligned stores only ----
    # W padding is concatenated in registers; then 3 full-width, sublane-aligned
    # stores cover the whole scratch (no redundant full-buffer zeroing, no
    # masked stores at a +1 sublane offset).
    zcol = jnp.zeros((Nb * H, 1, Cout), jnp.float32)
    y1_wpad = jnp.concatenate([zcol, y1.reshape(Nb * H, W, Cout), zcol], axis=1)
    y1pad_ref[:, pl.ds(1, H), :, :] = y1_wpad.reshape(Nb, H, Wp, Cout)
    zrow = jnp.zeros((Nb, 1, Wp, Cout), jnp.float32)
    y1pad_ref[:, pl.ds(0, 1), :, :] = zrow
    y1pad_ref[:, pl.ds(Hp - 1, 1), :, :] = zrow

    # ---- conv2 (3x3) + 1x1 bypass fused into a single MXU matmul ----
    # The bypass operand is the centre tap of x, already materialized above.
    parts2 = [tap(y1pad_ref, ky, kx, Cout) for ky, kx in taps]
    parts2.append(parts1[4])                                           # (R, Cin)
    p2 = jnp.concatenate(parts2, axis=1).astype(jnp.bfloat16)          # (R, 9*Cout+Cin)
    # w2b is pre-scaled by 1/4, so s is already the per-pixel pooled contribution.
    s = jnp.dot(p2, w2b_ref[...], preferred_element_type=jnp.float32)  # (R, Cout)

    # ---- shared 2x2 average pool of s (rows ordered (n, h, w)) ----
    # H direction: rows h=2ho and h=2ho+1 -> leading-dim reshape + aligned slices.
    s3 = s.reshape(Nb * Ho, 2 * W, Cout)
    sh_ref[...] = (s3[:, :W, :] + s3[:, W:, :]).reshape(Nb * Ho * W, Cout)
    # W direction: stride-2 sublane reads (even / odd columns; W is even).
    half = Nb * Ho * Wo
    pooled = (sh_ref[pl.ds(0, half, stride=2), :] +
              sh_ref[pl.ds(1, half, stride=2), :])                     # (half, Cout)

    out = pooled + b2b_ref[...]
    o_ref[...] = out.reshape(Nb, Ho * Wo, Cout).astype(o_ref.dtype)


def first_resblock_discriminator(x_nchw, params, *, block_n=None):
    """x_nchw: (N, Cin, H, W) float32 -> (N, Cout, H//2, W//2) float32."""
    N, Cin, H, W = x_nchw.shape
    Cout = params["b1"].shape[0]
    assert H % 2 == 0 and W % 2 == 0, "2x2 average pool needs even H, W"
    if block_n is None:
        block_n = next(b for b in (8, 4, 2, 1) if N % b == 0)
    assert N % block_n == 0
    Ho, Wo = H // 2, W // 2
    Hp, Wp = H + 2, W + 2

    # NCHW -> NHWC, zero-pad spatial dims by 1 for the 3x3 convs.
    x_nhwc = jnp.transpose(x_nchw, (0, 2, 3, 1)).astype(jnp.float32)
    x_pad = jnp.pad(x_nhwc, ((0, 0), (1, 1), (1, 1), (0, 0)))

    # OIHW conv weights -> im2col matmul weights (9*Ci, Co), row = (ky*3+kx)*Ci+ci.
    def to_mat(w):
        return jnp.transpose(w, (2, 3, 1, 0)).reshape(-1, w.shape[0])

    w1 = to_mat(params["w1"]).astype(jnp.bfloat16)
    # conv2 and the 1x1 bypass share one matmul (bypass commutes with the pool);
    # the 1/4 pool scale (exact power of two) is folded into the weights.
    w2m = to_mat(params["w2"])
    wbm = jnp.transpose(params["wb"][:, :, 0, 0], (1, 0))
    w2b = (0.25 * jnp.concatenate([w2m, wbm], axis=0)).astype(jnp.bfloat16)
    b1 = params["b1"].reshape(1, Cout).astype(jnp.float32)
    b2b = (params["b2"] + params["bb"]).reshape(1, Cout).astype(jnp.float32)

    kernel = functools.partial(_resblock_kernel, H, W)
    out = pl.pallas_call(
        kernel,
        out_shape=jax.ShapeDtypeStruct((N, Ho * Wo, Cout), jnp.float32),
        grid_spec=pltpu.PrefetchScalarGridSpec(
            num_scalar_prefetch=0,
            grid=(N // block_n,),
            in_specs=[
                pl.BlockSpec((block_n, Hp, Wp, Cin), lambda n: (n, 0, 0, 0)),
                pl.BlockSpec((9 * Cin, Cout), lambda n: (0, 0)),
                pl.BlockSpec((1, Cout), lambda n: (0, 0)),
                pl.BlockSpec((9 * Cout + Cin, Cout), lambda n: (0, 0)),
                pl.BlockSpec((1, Cout), lambda n: (0, 0)),
            ],
            out_specs=pl.BlockSpec((block_n, Ho * Wo, Cout), lambda n: (n, 0, 0)),
            scratch_shapes=[
                pltpu.VMEM((block_n, Hp, Wp, Cout), jnp.float32),
                pltpu.VMEM((block_n * Ho * W, Cout), jnp.float32),
            ],
        ),
        compiler_params=pltpu.CompilerParams(
            dimension_semantics=("parallel",),
            vmem_limit_bytes=32 * 1024 * 1024,
        ),
    )(x_pad, w1, b1, w2b, b2b)

    # (N, Ho*Wo, Cout) -> NCHW to match the PyTorch module's output convention.
    return jnp.transpose(out.reshape(N, Ho, Wo, Cout), (0, 3, 1, 2))


# ---------------- parameter construction (deterministic, synthetic) -------------

def xavier_uniform(key, shape, gain):
    # shape is OIHW: (Cout, Cin, kh, kw)
    fan_out = shape[0] * shape[2] * shape[3]
    fan_in = shape[1] * shape[2] * shape[3]
    a = gain * (6.0 / (fan_in + fan_out)) ** 0.5
    return jax.random.uniform(key, shape, jnp.float32, -a, a)


def spectral_normalize(w, key, n_power_iterations=1):
    # Mirrors SpectralNorm's power iteration (plain-JAX parameter preprocessing,
    # not part of the kernel).
    cout = w.shape[0]
    wm = w.reshape(cout, -1)
    u = jax.random.normal(key, (cout,), jnp.float32)
    u = u / (jnp.linalg.norm(u) + 1e-12)
    v = None
    for _ in range(n_power_iterations):
        v = wm.T @ u
        v = v / (jnp.linalg.norm(v) + 1e-12)
        u = wm @ v
        u = u / (jnp.linalg.norm(u) + 1e-12)
    sigma = u @ (wm @ v)
    return w / sigma


# ---------------- pure-JAX reference (for correctness check) --------------------

def ref_forward(x, w1, b1, w2, b2, wb, bb):
    def conv(x, w, b, pad):
        y = jax.lax.conv_general_dilated(
            x, w, (1, 1), [(pad, pad), (pad, pad)],
            dimension_numbers=("NCHW", "OIHW", "NCHW"))
        return y + b[None, :, None, None]

    def pool(x):
        return jax.lax.reduce_window(
            x, 0.0, jax.lax.add, (1, 1, 2, 2), (1, 1, 2, 2), "VALID") * 0.25

    main = pool(conv(jax.nn.relu(conv(x, w1, b1, 1)), w2, b2, 1))
    byp = conv(pool(x), wb, bb, 0)
    return main + byp


if __name__ == "__main__":
    key = jax.random.PRNGKey(0)
    kx, k1, k2, k3, kb1, kb2, kb3, ku1, ku2, ku3 = jax.random.split(key, 10)

    N, Cin, Cout, H, W = 4, 4, 8, 16, 16
    x = jax.random.normal(kx, (N, Cin, H, W), jnp.float32)

    # Spectrally-normalized conv weights (what SpectralNorm feeds the convs).
    w1 = spectral_normalize(xavier_uniform(k1, (Cout, Cin, 3, 3), 1.0), ku1)
    w2 = spectral_normalize(xavier_uniform(k2, (Cout, Cout, 3, 3), 1.0), ku2)
    wb = spectral_normalize(xavier_uniform(k3, (Cout, Cin, 1, 1), 2.0 ** 0.5), ku3)
    b1 = 0.1 * jax.random.normal(kb1, (Cout,), jnp.float32)
    b2 = 0.1 * jax.random.normal(kb2, (Cout,), jnp.float32)
    bb = 0.1 * jax.random.normal(kb3, (Cout,), jnp.float32)

    params = dict(w1=w1, b1=b1, w2=w2, b2=b2, wb=wb, bb=bb)

    out = first_resblock_discriminator(x, params, block_n=2)
    out = jax.block_until_ready(out)

    ref = ref_forward(x, w1, b1, w2, b2, wb, bb)
    assert out.shape == (N, Cout, H // 2, W // 2), out.shape
    # bf16 MXU operands with f32 accumulation: allow a slightly looser tolerance.
    err = float(jnp.max(jnp.abs(out - ref)))
    assert err < 2e-2, err

    print("KERNEL_OK")
</pallas_src>

<mosaic_0001>
module attributes {stable_mosaic.version = 11 : i64} {
  func.func @_resblock_kernel(%arg0: i32, %arg1: memref<2x18x18x4xf32, #tpu.memory_space<vmem>>, %arg2: memref<36x8xbf16, #tpu.memory_space<vmem>>, %arg3: memref<1x8xf32, #tpu.memory_space<vmem>>, %arg4: memref<76x8xbf16, #tpu.memory_space<vmem>>, %arg5: memref<1x8xf32, #tpu.memory_space<vmem>>, %arg6: memref<2x64x8xf32, #tpu.memory_space<vmem>>, %arg7: memref<2x18x18x8xf32, #tpu.memory_space<vmem>>, %arg8: memref<256x8xf32, #tpu.memory_space<vmem>>) attributes {dimension_semantics = [#tpu.dimension_semantics<parallel>], iteration_bounds = array<i64: 2>, scalar_prefetch = 0 : i64, scratch_operands = 2 : i64, tpu.core_type = #tpu.core_type<tc>, window_params = [{transform_indices = @transform_0, window_bounds = array<i64: 2, 18, 18, 4>}, {pipeline_mode = #tpu.pipeline_mode<synchronous>, transform_indices = @transform_1, window_bounds = array<i64: 36, 8>}, {pipeline_mode = #tpu.pipeline_mode<synchronous>, transform_indices = @transform_2, window_bounds = array<i64: 1, 8>}, {pipeline_mode = #tpu.pipeline_mode<synchronous>, transform_indices = @transform_3, window_bounds = array<i64: 76, 8>}, {pipeline_mode = #tpu.pipeline_mode<synchronous>, transform_indices = @transform_4, window_bounds = array<i64: 1, 8>}, {transform_indices = @transform_5, window_bounds = array<i64: 2, 64, 8>}]} {
    %c0 = arith.constant 0 : index
    %c0_0 = arith.constant 0 : index
    %c0_1 = arith.constant 0 : index
    %c0_2 = arith.constant 0 : index
    %0 = vector.load %arg1[%c0, %c0_0, %c0_1, %c0_2] : memref<2x18x18x4xf32, #tpu.memory_space<vmem>>, vector<2x16x16x4xf32>
    %1 = vector.shape_cast %0 : vector<2x16x16x4xf32> to vector<512x4xf32>
    %c0_3 = arith.constant 0 : index
    %c0_4 = arith.constant 0 : index
    %c1 = arith.constant 1 : index
    %c0_5 = arith.constant 0 : index
    %2 = vector.load %arg1[%c0_3, %c0_4, %c1, %c0_5] : memref<2x18x18x4xf32, #tpu.memory_space<vmem>>, vector<2x16x16x4xf32>
    %3 = vector.shape_cast %2 : vector<2x16x16x4xf32> to vector<512x4xf32>
    %c0_6 = arith.constant 0 : index
    %c0_7 = arith.constant 0 : index
    %c2 = arith.constant 2 : index
    %c0_8 = arith.constant 0 : index
    %4 = vector.load %arg1[%c0_6, %c0_7, %c2, %c0_8] : memref<2x18x18x4xf32, #tpu.memory_space<vmem>>, vector<2x16x16x4xf32>
    %5 = vector.shape_cast %4 : vector<2x16x16x4xf32> to vector<512x4xf32>
    %c0_9 = arith.constant 0 : index
    %c1_10 = arith.constant 1 : index
    %c0_11 = arith.constant 0 : index
    %c0_12 = arith.constant 0 : index
    %6 = vector.load %arg1[%c0_9, %c1_10, %c0_11, %c0_12] : memref<2x18x18x4xf32, #tpu.memory_space<vmem>>, vector<2x16x16x4xf32>
    %7 = vector.shape_cast %6 : vector<2x16x16x4xf32> to vector<512x4xf32>
    %c0_13 = arith.constant 0 : index
    %c1_14 = arith.constant 1 : index
    %c1_15 = arith.constant 1 : index
    %c0_16 = arith.constant 0 : index
    %8 = vector.load %arg1[%c0_13, %c1_14, %c1_15, %c0_16] : memref<2x18x18x4xf32, #tpu.memory_space<vmem>>, vector<2x16x16x4xf32>
    %9 = vector.shape_cast %8 : vector<2x16x16x4xf32> to vector<512x4xf32>
    %c0_17 = arith.constant 0 : index
    %c1_18 = arith.constant 1 : index
    %c2_19 = arith.constant 2 : index
    %c0_20 = arith.constant 0 : index
    %10 = vector.load %arg1[%c0_17, %c1_18, %c2_19, %c0_20] : memref<2x18x18x4xf32, #tpu.memory_space<vmem>>, vector<2x16x16x4xf32>
    %11 = vector.shape_cast %10 : vector<2x16x16x4xf32> to vector<512x4xf32>
    %c0_21 = arith.constant 0 : index
    %c2_22 = arith.constant 2 : index
    %c0_23 = arith.constant 0 : index
    %c0_24 = arith.constant 0 : index
    %12 = vector.load %arg1[%c0_21, %c2_22, %c0_23, %c0_24] : memref<2x18x18x4xf32, #tpu.memory_space<vmem>>, vector<2x16x16x4xf32>
    %13 = vector.shape_cast %12 : vector<2x16x16x4xf32> to vector<512x4xf32>
    %c0_25 = arith.constant 0 : index
    %c2_26 = arith.constant 2 : index
    %c1_27 = arith.constant 1 : index
    %c0_28 = arith.constant 0 : index
    %14 = vector.load %arg1[%c0_25, %c2_26, %c1_27, %c0_28] : memref<2x18x18x4xf32, #tpu.memory_space<vmem>>, vector<2x16x16x4xf32>
    %15 = vector.shape_cast %14 : vector<2x16x16x4xf32> to vector<512x4xf32>
    %c0_29 = arith.constant 0 : index
    %c2_30 = arith.constant 2 : index
    %c2_31 = arith.constant 2 : index
    %c0_32 = arith.constant 0 : index
    %16 = vector.load %arg1[%c0_29, %c2_30, %c2_31, %c0_32] : memref<2x18x18x4xf32, #tpu.memory_space<vmem>>, vector<2x16x16x4xf32>
    %17 = vector.shape_cast %16 : vector<2x16x16x4xf32> to vector<512x4xf32>
    %18 = tpu.concatenate %1, %3, %5, %7, %9, %11, %13, %15, %17 in 1 : vector<512x4xf32>, vector<512x4xf32>, vector<512x4xf32>, vector<512x4xf32>, vector<512x4xf32>, vector<512x4xf32>, vector<512x4xf32>, vector<512x4xf32>, vector<512x4xf32> -> vector<512x36xf32>
    %19 = arith.truncf %18 : vector<512x36xf32> to vector<512x36xbf16>
    %c0_33 = arith.constant 0 : index
    %c0_34 = arith.constant 0 : index
    %20 = vector.load %arg2[%c0_33, %c0_34] : memref<36x8xbf16, #tpu.memory_space<vmem>>, vector<36x8xbf16>
    %cst = arith.constant dense<0.000000e+00> : vector<512x8xf32>
    %21 = tpu.matmul %19, %20, %cst {dimension_numbers = #tpu.dot_dimension_numbers<[1], [0], [0], [1], [0, 0, 1, 1], [], []>} : vector<512x36xbf16>, vector<36x8xbf16>, vector<512x8xf32> -> vector<512x8xf32>
    %c0_35 = arith.constant 0 : index
    %c0_36 = arith.constant 0 : index
    %22 = vector.load %arg3[%c0_35, %c0_36] : memref<1x8xf32, #tpu.memory_space<vmem>>, vector<1x8xf32>
    %23 = vector.broadcast %22 : vector<1x8xf32> to vector<512x8xf32>
    %24 = arith.addf %21, %23 : vector<512x8xf32>
    %cst_37 = arith.constant 0.000000e+00 : f32
    %25 = vector.broadcast %cst_37 : f32 to vector<512x8xf32>
    %26 = arith.maximumf %24, %25 : vector<512x8xf32>
    %cst_38 = arith.constant 0.000000e+00 : f32
    %27 = vector.broadcast %cst_38 : f32 to vector<32x1x8xf32>
    %28 = vector.shape_cast %26 : vector<512x8xf32> to vector<32x16x8xf32>
    %29 = tpu.concatenate %27, %28, %27 in 1 : vector<32x1x8xf32>, vector<32x16x8xf32>, vector<32x1x8xf32> -> vector<32x18x8xf32>
    %30 = vector.shape_cast %29 : vector<32x18x8xf32> to vector<2x16x18x8xf32>
    %c0_39 = arith.constant 0 : index
    %c1_40 = arith.constant 1 : index
    %c0_41 = arith.constant 0 : index
    %c0_42 = arith.constant 0 : index
    %31 = vector.load %arg7[%c0_39, %c1_40, %c0_41, %c0_42] : memref<2x18x18x8xf32, #tpu.memory_space<vmem>>, vector<2x16x18x8xf32>
    tpu.vector_store %arg7[%c0_39, %c1_40, %c0_41, %c0_42], %30 {strides = array<i32>} : memref<2x18x18x8xf32, #tpu.memory_space<vmem>>, vector<2x16x18x8xf32>,
    %cst_43 = arith.constant 0.000000e+00 : f32
    %32 = vector.broadcast %cst_43 : f32 to vector<2x1x18x8xf32>
    %c0_44 = arith.constant 0 : index
    %c0_45 = arith.constant 0 : index
    %c0_46 = arith.constant 0 : index
    %c0_47 = arith.constant 0 : index
    %33 = vector.load %arg7[%c0_44, %c0_45, %c0_46, %c0_47] : memref<2x18x18x8xf32, #tpu.memory_space<vmem>>, vector<2x1x18x8xf32>
    tpu.vector_store %arg7[%c0_44, %c0_45, %c0_46, %c0_47], %32 {strides = array<i32>} : memref<2x18x18x8xf32, #tpu.memory_space<vmem>>, vector<2x1x18x8xf32>,
    %c0_48 = arith.constant 0 : index
    %c17 = arith.constant 17 : index
    %c0_49 = arith.constant 0 : index
    %c0_50 = arith.constant 0 : index
    %34 = vector.load %arg7[%c0_48, %c17, %c0_49, %c0_50] : memref<2x18x18x8xf32, #tpu.memory_space<vmem>>, vector<2x1x18x8xf32>
    tpu.vector_store %arg7[%c0_48, %c17, %c0_49, %c0_50], %32 {strides = array<i32>} : memref<2x18x18x8xf32, #tpu.memory_space<vmem>>, vector<2x1x18x8xf32>,
    %c0_51 = arith.constant 0 : index
    %c0_52 = arith.constant 0 : index
    %c0_53 = arith.constant 0 : index
    %c0_54 = arith.constant 0 : index
    %35 = vector.load %arg7[%c0_51, %c0_52, %c0_53, %c0_54] : memref<2x18x18x8xf32, #tpu.memory_space<vmem>>, vector<2x16x16x8xf32>
    %36 = vector.shape_cast %35 : vector<2x16x16x8xf32> to vector<512x8xf32>
    %c0_55 = arith.constant 0 : index
    %c0_56 = arith.constant 0 : index
    %c1_57 = arith.constant 1 : index
    %c0_58 = arith.constant 0 : index
    %37 = vector.load %arg7[%c0_55, %c0_56, %c1_57, %c0_58] : memref<2x18x18x8xf32, #tpu.memory_space<vmem>>, vector<2x16x16x8xf32>
    %38 = vector.shape_cast %37 : vector<2x16x16x8xf32> to vector<512x8xf32>
    %c0_59 = arith.constant 0 : index
    %c0_60 = arith.constant 0 : index
    %c2_61 = arith.constant 2 : index
    %c0_62 = arith.constant 0 : index
    %39 = vector.load %arg7[%c0_59, %c0_60, %c2_61, %c0_62] : memref<2x18x18x8xf32, #tpu.memory_space<vmem>>, vector<2x16x16x8xf32>
    %40 = vector.shape_cast %39 : vector<2x16x16x8xf32> to vector<512x8xf32>
    %c0_63 = arith.constant 0 : index
    %c1_64 = arith.constant 1 : index
    %c0_65 = arith.constant 0 : index
    %c0_66 = arith.constant 0 : index
    %41 = vector.load %arg7[%c0_63, %c1_64, %c0_65, %c0_66] : memref<2x18x18x8xf32, #tpu.memory_space<vmem>>, vector<2x16x16x8xf32>
    %42 = vector.shape_cast %41 : vector<2x16x16x8xf32> to vector<512x8xf32>
    %c0_67 = arith.constant 0 : index
    %c1_68 = arith.constant 1 : index
    %c1_69 = arith.constant 1 : index
    %c0_70 = arith.constant 0 : index
    %43 = vector.load %arg7[%c0_67, %c1_68, %c1_69, %c0_70] : memref<2x18x18x8xf32, #tpu.memory_space<vmem>>, vector<2x16x16x8xf32>
    %44 = vector.shape_cast %43 : vector<2x16x16x8xf32> to vector<512x8xf32>
    %c0_71 = arith.constant 0 : index
    %c1_72 = arith.constant 1 : index
    %c2_73 = arith.constant 2 : index
    %c0_74 = arith.constant 0 : index
    %45 = vector.load %arg7[%c0_71, %c1_72, %c2_73, %c0_74] : memref<2x18x18x8xf32, #tpu.memory_space<vmem>>, vector<2x16x16x8xf32>
    %46 = vector.shape_cast %45 : vector<2x16x16x8xf32> to vector<512x8xf32>
    %c0_75 = arith.constant 0 : index
    %c2_76 = arith.constant 2 : index
    %c0_77 = arith.constant 0 : index
    %c0_78 = arith.constant 0 : index
    %47 = vector.load %arg7[%c0_75, %c2_76, %c0_77, %c0_78] : memref<2x18x18x8xf32, #tpu.memory_space<vmem>>, vector<2x16x16x8xf32>
    %48 = vector.shape_cast %47 : vector<2x16x16x8xf32> to vector<512x8xf32>
    %c0_79 = arith.constant 0 : index
    %c2_80 = arith.constant 2 : index
    %c1_81 = arith.constant 1 : index
    %c0_82 = arith.constant 0 : index
    %49 = vector.load %arg7[%c0_79, %c2_80, %c1_81, %c0_82] : memref<2x18x18x8xf32, #tpu.memory_space<vmem>>, vector<2x16x16x8xf32>
    %50 = vector.shape_cast %49 : vector<2x16x16x8xf32> to vector<512x8xf32>
    %c0_83 = arith.constant 0 : index
    %c2_84 = arith.constant 2 : index
    %c2_85 = arith.constant 2 : index
    %c0_86 = arith.constant 0 : index
    %51 = vector.load %arg7[%c0_83, %c2_84, %c2_85, %c0_86] : memref<2x18x18x8xf32, #tpu.memory_space<vmem>>, vector<2x16x16x8xf32>
    %52 = vector.shape_cast %51 : vector<2x16x16x8xf32> to vector<512x8xf32>
    %53 = tpu.concatenate %36, %38, %40, %42, %44, %46, %48, %50, %52, %9 in 1 : vector<512x8xf32>, vector<512x8xf32>, vector<512x8xf32>, vector<512x8xf32>, vector<512x8xf32>, vector<512x8xf32>, vector<512x8xf32>, vector<512x8xf32>, vector<512x8xf32>, vector<512x4xf32> -> vector<512x76xf32>
    %54 = arith.truncf %53 : vector<512x76xf32> to vector<512x76xbf16>
    %c0_87 = arith.constant 0 : index
    %c0_88 = arith.constant 0 : index
    %55 = vector.load %arg4[%c0_87, %c0_88] : memref<76x8xbf16, #tpu.memory_space<vmem>>, vector<76x8xbf16>
    %cst_89 = arith.constant dense<0.000000e+00> : vector<512x8xf32>
    %56 = tpu.matmul %54, %55, %cst_89 {dimension_numbers = #tpu.dot_dimension_numbers<[1], [0], [0], [1], [0, 0, 1, 1], [], []>} : vector<512x76xbf16>, vector<76x8xbf16>, vector<512x8xf32> -> vector<512x8xf32>
    %57 = vector.shape_cast %56 : vector<512x8xf32> to vector<16x32x8xf32>
    %58 = vector.extract_strided_slice %57 {offsets = [0, 0, 0], sizes = [16, 16, 8], strides = [1, 1, 1]} : vector<16x32x8xf32> to vector<16x16x8xf32>
    %59 = vector.extract_strided_slice %57 {offsets = [0, 16, 0], sizes = [16, 16, 8], strides = [1, 1, 1]} : vector<16x32x8xf32> to vector<16x16x8xf32>
    %60 = arith.addf %58, %59 : vector<16x16x8xf32>
    %61 = vector.shape_cast %60 : vector<16x16x8xf32> to vector<256x8xf32>
    %c0_90 = arith.constant 0 : index
    %c0_91 = arith.constant 0 : index
    %62 = vector.load %arg8[%c0_90, %c0_91] : memref<256x8xf32, #tpu.memory_space<vmem>>, vector<256x8xf32>
    tpu.vector_store %arg8[%c0_90, %c0_91], %61 {strides = array<i32>} : memref<256x8xf32, #tpu.memory_space<vmem>>, vector<256x8xf32>,
    %c0_92 = arith.constant 0 : index
    %c0_93 = arith.constant 0 : index
    %63 = tpu.strided_load %arg8[%c0_92, %c0_93] {strides = array<i32: 2, 1>} : memref<256x8xf32, #tpu.memory_space<vmem>>, vector<128x8xf32>
    %c1_94 = arith.constant 1 : index
    %c0_95 = arith.constant 0 : index
    %64 = tpu.strided_load %arg8[%c1_94, %c0_95] {strides = array<i32: 2, 1>} : memref<256x8xf32, #tpu.memory_space<vmem>>, vector<128x8xf32>
    %65 = arith.addf %63, %64 : vector<128x8xf32>
    %c0_96 = arith.constant 0 : index
    %c0_97 = arith.constant 0 : index
    %66 = vector.load %arg5[%c0_96, %c0_97] : memref<1x8xf32, #tpu.memory_space<vmem>>, vector<1x8xf32>
    %67 = vector.broadcast %66 : vector<1x8xf32> to vector<128x8xf32>
    %68 = arith.addf %65, %67 : vector<128x8xf32>
    %69 = vector.shape_cast %68 : vector<128x8xf32> to vector<2x64x8xf32>
    %c0_98 = arith.constant 0 : index
    %c0_99 = arith.constant 0 : index
    %c0_100 = arith.constant 0 : index
    %70 = vector.load %arg6[%c0_98, %c0_99, %c0_100] : memref<2x64x8xf32, #tpu.memory_space<vmem>>, vector<2x64x8xf32>
    tpu.vector_store %arg6[%c0_98, %c0_99, %c0_100], %69 {strides = array<i32>} : memref<2x64x8xf32, #tpu.memory_space<vmem>>, vector<2x64x8xf32>,
    return
  }
  func.func @transform_0(%arg0: i32) -> (i32, i32, i32, i32) {
    %c0_i32 = arith.constant 0 : i32
    %c0_i32_0 = arith.constant 0 : i32
    %c0_i32_1 = arith.constant 0 : i32
    %c0_i32_2 = arith.constant 0 : i32
    return %arg0, %c0_i32, %c0_i32_0, %c0_i32_1 : i32, i32, i32, i32
  }
  func.func @transform_1(%arg0: i32) -> (i32, i32) {
    %c0_i32 = arith.constant 0 : i32
    %c0_i32_0 = arith.constant 0 : i32
    %c0_i32_1 = arith.constant 0 : i32
    return %c0_i32, %c0_i32_0 : i32, i32
  }
  func.func @transform_2(%arg0: i32) -> (i32, i32) {
    %c0_i32 = arith.constant 0 : i32
    %c0_i32_0 = arith.constant 0 : i32
    %c0_i32_1 = arith.constant 0 : i32
    return %c0_i32, %c0_i32_0 : i32, i32
  }
  func.func @transform_3(%arg0: i32) -> (i32, i32) {
    %c0_i32 = arith.constant 0 : i32
    %c0_i32_0 = arith.constant 0 : i32
    %c0_i32_1 = arith.constant 0 : i32
    return %c0_i32, %c0_i32_0 : i32, i32
  }
  func.func @transform_4(%arg0: i32) -> (i32, i32) {
    %c0_i32 = arith.constant 0 : i32
    %c0_i32_0 = arith.constant 0 : i32
    %c0_i32_1 = arith.constant 0 : i32
    return %c0_i32, %c0_i32_0 : i32, i32
  }
  func.func @transform_5(%arg0: i32) -> (i32, i32, i32) {
    %c0_i32 = arith.constant 0 : i32
    %c0_i32_0 = arith.constant 0 : i32
    %c0_i32_1 = arith.constant 0 : i32
    return %arg0, %c0_i32, %c0_i32_0 : i32, i32, i32
  }
}

</mosaic_0001>

<bundles_post_ra>
// kernel: tpu_custom_call.1
= control target key start
LH: loop header
LB: loop body
LE: loop exit
PB: predicated region body
PF: predicated region fallthrough
CT: control target
= control target key end

     0   :  { %s11590_s18 = smov 0   ;;  %s18881_s0 = inlined_call_operand.vmem [shape: f32[4,18,18,4], index: 0, kind: input, shape index: {}]   ;;  %s18882_s1 = inlined_call_operand.vmem [shape: bf16[36,8], index: 1, kind: input, shape index: {}]   ;;  %s18883_s2 = inlined_call_operand.vmem [shape: f32[1,8], index: 2, kind: input, shape index: {}]   ;;  %s18884_s3 = inlined_call_operand.vmem [shape: bf16[76,8], index: 3, kind: input, shape index: {}]   ;;  %s18885_s4 = inlined_call_operand.vmem [shape: f32[1,8], index: 4, kind: input, shape index: {}]   ;;  %s18886_s5 = inlined_call_operand.vmem [shape: f32[4,64,8], index: 5, kind: output, shape index: {}]  }
   0x1 LB: > { %s8178_s19 = sadd.s32 4294967295, %s11544_s18   ;;  %p8182_p0 = scmp.ge.s32.totalorder %s11544_s18, 1  ;;  %s11544_s18 = sphi %s11590_s18, %s15_s18  }
   0x2   : > { %p189_p1 = scmp.lt.s32.totalorder %s11544_s18, 3 }
   0x4   : > { %p190_p2 = pnand %p8182_p0, %p189_p1 }
   0x6   : > { %193 = sbr.rel (%p190_p2) target bundleno = 2242 (0x8c2), region = 40 }
   0xb   : > { %s8183_s20 = sshll.u32 %s8178_s19, 1  ;;  %s11546_s25 = smov 4   ;;  %vm2860_vm0 = vcmask 31744   ;;  %vm2925_vm1 = vcmask 64512   ;;  %vm2990_vm2 = vcmask 97280   ;;  %vm3055_vm3 = vcmask 130048  }
   0xc   : > { %p220_p3 = scmp.lt.s32.totalorder %s8183_s20, 3  ;;  %s11547_s26 = smov 8   ;;  %vm3533_vm4 = vcmask 1041408   ;;  %vm3120_vm5 = vcmask 162816   ;;  %vm3185_vm6 = vcmask 195584   ;;  %vm3315_vm7 = vcmask 261120  }
   0xd   : > { %s11548_s27 = smov 12   ;;  %s11549_s28 = smov 16   ;;  %vm3250_vm8 = vcmask 228352   ;;  %vm3436_vm9 = vcmask 293888   ;;  %vm3834_vm10 = vcmask 1040384   ;;  %vm4094_vm11 = vcmask 58368  }
   0xe   : > { %s20700_s20 = smov (!%p220_p3, %s8183_s20), 3  ;;  %s11550_s29 = smov 20   ;;  %vm7275_vm12 = vcmask 326656   ;;  %vm7340_vm13 = vcmask 392192   ;;  %vm7405_vm14 = vcmask 457728   ;;  %vm7768_vm15 = vcmask 1045504  }
   0xf   : > { %s8682_s21 = smul.u32 432, %s20700_s20  ;;  %s11551_s30 = smov 24  }
  0x10   : > { %s11552_s6 = smov 28   ;;  %s11553_s7 = smov 32  }
  0x11   : > { %s11604_s24 = scalar_lea.vmem %s18881_s0, %s8682_s21  ;;  %s11555_s19 = smov 40  }
  0x12   : > { %v306_v0 = vld [vmem:[%s11604_s24 + $0x61] sm:$0xff]  ;;  %v307_v1 = vld [vmem:[%s11604_s24 + $0x69] sm:$0xff]  ;;  %v302_v2 = vld [vmem:[%s11604_s24 + $0x31] sm:$0xff]  ;;  %s11556_s21 = smov 48   ;;  %s11557_s22 = smov 56  }
  0x13   : > { %v8725_v3 = vpack.i.bf16 %v307_v1, %v306_v0  ;;  %v303_v4 = vld [vmem:[%s11604_s24 + $0x39] sm:$0xff]  ;;  %v298_v5 = vld [vmem:[%s11604_s24 + $0x1] sm:$0xff]  ;;  %v299_v6 = vld [vmem:[%s11604_s24 + $0x9] sm:$0xff]  ;;  %s11558_s23 = smov 64   ;;  %s8666_s12 = sshll.u32 %s20700_s20, 6 }
  0x14   : > { %v8715_v7 = vpack.i.bf16 %v303_v4, %v302_v2  ;;  %v8705_v8 = vpack.i.bf16 %v299_v6, %v298_v5  ;;  %v308_v9 = vld [vmem:[%s11604_s24 + $0x79] sm:$0xff]  ;;  %v309_v10 = vld [vmem:[%s11604_s24 + $0x81] sm:$0xff]  ;;  %v304_v11 = vld [vmem:[%s11604_s24 + $0x49] sm:$0xff]  ;;  %s18731_s16 = scalar_lea.vmem %s18886_s5, %s8666_s12 }
  0x15   : > { %8726 = vrot.lane.b32.xlu2 %v8725_v3, %s11546_s25  ;;  %v305_v12 = vld [vmem:[%s11604_s24 + $0x51] sm:$0xff]  ;;  %v300_v13 = vld [vmem:[%s11604_s24 + $0x19] sm:$0xff]  ;;  %v301_v14 = vld [vmem:[%s11604_s24 + $0x21] sm:$0xff]  ;;  %v8730_v15 = vpack.i.bf16 %v309_v10, %v308_v9 }
  0x16   : > { %8716 = vrot.lane.b32.xlu1 %v8715_v7, %s11546_s25  ;;  %8706 = vrot.lane.b32.xlu0 %v8705_v8, %s11546_s25  ;;  %v8720_v16 = vpack.i.bf16 %v305_v12, %v304_v11  ;;  %v8710_v17 = vpack.i.bf16 %v301_v14, %v300_v13  ;;  %v314_v18 = vld [vmem:[%s11604_s24 + $0xc1] sm:$0xff]  ;;  %v315_v19 = vld [vmem:[%s11604_s24 + $0xc9] sm:$0xff] }
  0x17   : > { %v312_v20 = vld [vmem:[%s11604_s24 + $0xa9] sm:$0xff]  ;;  %v313_v21 = vld [vmem:[%s11604_s24 + $0xb1] sm:$0xff]  ;;  %v311_v23 = vld [vmem:[%s11604_s24 + $0x99] sm:$0xff]  ;;  %v8745_v24 = vpack.i.bf16 %v315_v19, %v314_v18 }
  0x18   : > { %v310_v22 = vld [vmem:[%s11604_s24 + $0x91] sm:$0xff]  ;;  %v8740_v25 = vpack.i.bf16 %v313_v21, %v312_v20  ;;  %v320_v27 = vld [vmem:[%s11604_s24 + $0x109] sm:$0xff]  ;;  %v319_v30 = vld [vmem:[%s11604_s24 + $0xf9] sm:$0xff] }
  0x19   : > { %v8735_v26 = vpack.i.bf16 %v311_v23, %v310_v22  ;;  %v321_v28 = vld [vmem:[%s11604_s24 + $0x111] sm:$0xff]  ;;  %v316_v31 = vld [vmem:[%s11604_s24 + $0xd9] sm:$0xff]  ;;  %v317_v32 = vld [vmem:[%s11604_s24 + $0xe1] sm:$0xff] }
  0x1a   : > { %v318_v29 = vld [vmem:[%s11604_s24 + $0xf1] sm:$0xff]  ;;  %v8760_v33 = vpack.i.bf16 %v321_v28, %v320_v27  ;;  %v8750_v35 = vpack.i.bf16 %v317_v32, %v316_v31  ;;  %v327_v37 = vld [vmem:[%s11604_s24 + $0x159] sm:$0xff]  ;;  %v325_v39 = vld [vmem:[%s11604_s24 + $0x141] sm:$0xff] }
  0x1b   : > { %v8755_v34 = vpack.i.bf16 %v319_v30, %v318_v29  ;;  %v326_v36 = vld [vmem:[%s11604_s24 + $0x151] sm:$0xff]  ;;  %v324_v38 = vld [vmem:[%s11604_s24 + $0x139] sm:$0xff]  ;;  %v322_v40 = vld [vmem:[%s11604_s24 + $0x121] sm:$0xff] }
  0x1c   : > { %v323_v41 = vld [vmem:[%s11604_s24 + $0x129] sm:$0xff]  ;;  %v8775_v42 = vpack.i.bf16 %v327_v37, %v326_v36  ;;  %v8770_v43 = vpack.i.bf16 %v325_v39, %v324_v38  ;;  %v333_v46 = vld [vmem:[%s11604_s24 + $0x1d1] sm:$0xff]  ;;  %v331_v48 = vld [vmem:[%s11604_s24 + $0x1b9] sm:$0xff] }
  0x1d   : > { %8731 = vrot.lane.b32.xlu2 %v8730_v15, %s11546_s25  ;;  %v8765_v44 = vpack.i.bf16 %v323_v41, %v322_v40  ;;  %v332_v45 = vld [vmem:[%s11604_s24 + $0x1c9] sm:$0xff]  ;;  %v330_v47 = vld [vmem:[%s11604_s24 + $0x1b1] sm:$0xff]  ;;  %v339_v55 = vld [vmem:[%s11604_s24 + $0x219] sm:$0xff] }
  0x1e   : > { %8721 = vrot.lane.b32.xlu1 %v8720_v16, %s11546_s25  ;;  %8711 = vrot.lane.b32.xlu0 %v8710_v17, %s11546_s25  ;;  %v328_v49 = vld [vmem:[%s11604_s24 + $0x169] sm:$0xff]  ;;  %v329_v50 = vld [vmem:[%s11604_s24 + $0x171] sm:$0xff]  ;;  %v8790_v51 = vpack.i.bf16 %v333_v46, %v332_v45  ;;  %v8785_v52 = vpack.i.bf16 %v331_v48, %v330_v47 }
  0x1f   : > { %v8780_v53 = vpack.i.bf16 %v329_v50, %v328_v49  ;;  %v338_v54 = vld [vmem:[%s11604_s24 + $0x211] sm:$0xff]  ;;  %v336_v56 = vld [vmem:[%s11604_s24 + $0x1f9] sm:$0xff]  ;;  %v337_v57 = vld [vmem:[%s11604_s24 + $0x201] sm:$0xff] }
  0x20   : > { %v334_v58 = vld [vmem:[%s11604_s24 + $0x1e1] sm:$0xff]  ;;  %v335_v59 = vld [vmem:[%s11604_s24 + $0x1e9] sm:$0xff]  ;;  %v8805_v60 = vpack.i.bf16 %v339_v55, %v338_v54  ;;  %v8800_v61 = vpack.i.bf16 %v337_v57, %v336_v56  ;;  %v344_v63 = vld [vmem:[%s11604_s24 + $0x259] sm:$0xff] }
  0x21   : > { %v8795_v62 = vpack.i.bf16 %v335_v59, %v334_v58  ;;  %v345_v0 = vld [vmem:[%s11604_s24 + $0x261] sm:$0xff]  ;;  %v343_v2 = vld [vmem:[%s11604_s24 + $0x249] sm:$0xff]  ;;  %v341_v4 = vld [vmem:[%s11604_s24 + $0x231] sm:$0xff] }
  0x22   : > { %v342_v1 = vld [vmem:[%s11604_s24 + $0x241] sm:$0xff]  ;;  %v340_v3 = vld [vmem:[%s11604_s24 + $0x229] sm:$0xff]  ;;  %v8820_v5 = vpack.i.bf16 %v345_v0, %v344_v63  ;;  %v349_v11 = vld [vmem:[%s11604_s24 + $0x291] sm:$0xff] }
  0x23   : > { %v8815_v6 = vpack.i.bf16 %v343_v2, %v342_v1  ;;  %v8810_v7 = vpack.i.bf16 %v341_v4, %v340_v3  ;;  %v350_v8 = vld [vmem:[%s11604_s24 + $0x2a1] sm:$0xff]  ;;  %v351_v9 = vld [vmem:[%s11604_s24 + $0x2a9] sm:$0xff]  ;;  %v346_v12 = vld [vmem:[%s11604_s24 + $0x271] sm:$0xff] }
  0x24   : > { %v348_v10 = vld [vmem:[%s11604_s24 + $0x289] sm:$0xff]  ;;  %v347_v13 = vld [vmem:[%s11604_s24 + $0x279] sm:$0xff]  ;;  %v8835_v14 = vpack.i.bf16 %v351_v9, %v350_v8  ;;  %v357_v18 = vld [vmem:[%s11604_s24 + $0x2f1] sm:$0xff] }
  0x25   : > { %8746 = vrot.lane.b32.xlu2 %v8745_v24, %s11546_s25  ;;  %v8830_v15 = vpack.i.bf16 %v349_v11, %v348_v10  ;;  %v8825_v16 = vpack.i.bf16 %v347_v13, %v346_v12  ;;  %v356_v17 = vld [vmem:[%s11604_s24 + $0x2e9] sm:$0xff]  ;;  %v354_v19 = vld [vmem:[%s11604_s24 + $0x2d1] sm:$0xff]  ;;  %v355_v20 = vld [vmem:[%s11604_s24 + $0x2d9] sm:$0xff] }
  0x26   : > { %8741 = vrot.lane.b32.xlu1 %v8740_v25, %s11546_s25  ;;  %8736 = vrot.lane.b32.xlu0 %v8735_v26, %s11546_s25  ;;  %v352_v21 = vld [vmem:[%s11604_s24 + $0x2b9] sm:$0xff]  ;;  %v353_v22 = vld [vmem:[%s11604_s24 + $0x2c1] sm:$0xff]  ;;  %v8850_v23 = vpack.i.bf16 %v357_v18, %v356_v17  ;;  %v8845_v24 = vpack.i.bf16 %v355_v20, %v354_v19 }
  0x27   : > { %v8840_v25 = vpack.i.bf16 %v353_v22, %v352_v21  ;;  %v362_v26 = vld [vmem:[%s11604_s24 + $0x2] sm:$0xff]  ;;  %v363_v27 = vld [vmem:[%s11604_s24 + $0xa] sm:$0xff]  ;;  %v360_v28 = vld [vmem:[%s11604_s24 + $0x319] sm:$0xff] }
  0x28   : > { %v361_v29 = vld [vmem:[%s11604_s24 + $0x321] sm:$0xff]  ;;  %v359_v31 = vld [vmem:[%s11604_s24 + $0x309] sm:$0xff]  ;;  %v8865_v32 = vpack.i.bf16 %v363_v27, %v362_v26  ;;  %v369_v36 = vld [vmem:[%s11604_s24 + $0x52] sm:$0xff] }
  0x29   : > { %v358_v30 = vld [vmem:[%s11604_s24 + $0x301] sm:$0xff]  ;;  %v366_v37 = vld [vmem:[%s11604_s24 + $0x32] sm:$0xff]  ;;  %v371_v50 = vld [vmem:[%s11604_s24 + $0x6a] sm:$0xff] }
  0x2a   : > { %v367_v38 = vld [vmem:[%s11604_s24 + $0x3a] sm:$0xff]  ;;  %v365_v40 = vld [vmem:[%s11604_s24 + $0x22] sm:$0xff]  ;;  %v379_v58 = vld [vmem:[%s11604_s24 + $0xca] sm:$0xff] }
  0x2b   : > { %v364_v39 = vld [vmem:[%s11604_s24 + $0x1a] sm:$0xff]  ;;  %v373_v48 = vld [vmem:[%s11604_s24 + $0x82] sm:$0xff]  ;;  %v376_v59 = vld [vmem:[%s11604_s24 + $0xaa] sm:$0xff] }
  0x2c   : > { %v375_v45 = vld [vmem:[%s11604_s24 + $0x9a] sm:$0xff]  ;;  %v370_v49 = vld [vmem:[%s11604_s24 + $0x62] sm:$0xff]  ;;  %v387_v1 = vld [vmem:[%s11604_s24 + $0x12a] sm:$0xff] }
  0x2d   : > { %8761 = vrot.lane.b32.xlu2 %v8760_v33, %s11546_s25  ;;  %v8860_v33 = vpack.i.bf16 %v361_v29, %v360_v28  ;;  %v372_v46 = vld [vmem:[%s11604_s24 + $0x7a] sm:$0xff]  ;;  %v381_v55 = vld [vmem:[%s11604_s24 + $0xe2] sm:$0xff]  ;;  %v384_v2 = vld [vmem:[%s11604_s24 + $0x10a] sm:$0xff] }
  0x2e   : > { %8756 = vrot.lane.b32.xlu1 %v8755_v34, %s11546_s25  ;;  %8751 = vrot.lane.b32.xlu0 %v8750_v35, %s11546_s25  ;;  %v8855_v34 = vpack.i.bf16 %v359_v31, %v358_v30  ;;  %v368_v35 = vld [vmem:[%s11604_s24 + $0x4a] sm:$0xff]  ;;  %v380_v54 = vld [vmem:[%s11604_s24 + $0xda] sm:$0xff] }
  0x2f   : > { %v8880_v41 = vpack.i.bf16 %v369_v36, %v368_v35  ;;  %v378_v56 = vld [vmem:[%s11604_s24 + $0xc2] sm:$0xff]  ;;  %v385_v4 = vld [vmem:[%s11604_s24 + $0x112] sm:$0xff]  ;;  %v392_v10 = vld [vmem:[%s11604_s24 + $0x16a] sm:$0xff] }
  0x30   : > { %v386_v0 = vld [vmem:[%s11604_s24 + $0x122] sm:$0xff]  ;;  %v8920_v8 = vpack.i.bf16 %v385_v4, %v384_v2  ;;  %v393_v11 = vld [vmem:[%s11604_s24 + $0x172] sm:$0xff]  ;;  %v395_v28 = vld [vmem:[%s11604_s24 + $0x1ba] sm:$0xff] }
  0x31   : > { %v390_v12 = vld [vmem:[%s11604_s24 + $0x152] sm:$0xff]  ;;  %v8940_v19 = vpack.i.bf16 %v393_v11, %v392_v10  ;;  %v398_v22 = vld [vmem:[%s11604_s24 + $0x1e2] sm:$0xff]  ;;  %v423_v10 = vld [vmem:[%s11604_s24 + $0x30a] sm:$0xff] }
  0x32   : > { %v397_v26 = vld [vmem:[%s11604_s24 + $0x1d2] sm:$0xff]  ;;  %v420_v11 = vld [vmem:[%s11604_s24 + $0x2ea] sm:$0xff] }
  0x33   : > { %v394_v27 = vld [vmem:[%s11604_s24 + $0x1b2] sm:$0xff] }
  0x34   : > { %v405_v35 = vld [vmem:[%s11604_s24 + $0x232] sm:$0xff] }
  0x35   : > { %8776 = vrot.lane.b32.xlu2 %v8775_v42, %s11546_s25  ;;  %v8875_v42 = vpack.i.bf16 %v367_v38, %v366_v37  ;;  %v402_v36 = vld [vmem:[%s11604_s24 + $0x212] sm:$0xff]  ;;  %v403_v38 = vld [vmem:[%s11604_s24 + $0x21a] sm:$0xff] }
  0x36   : > { %8771 = vrot.lane.b32.xlu1 %v8770_v43, %s11546_s25  ;;  %8766 = vrot.lane.b32.xlu0 %v8765_v44, %s11546_s25  ;;  %v8870_v43 = vpack.i.bf16 %v365_v40, %v364_v39  ;;  %v374_v44 = vld [vmem:[%s11604_s24 + $0x92] sm:$0xff]  ;;  %v400_v39 = vld [vmem:[%s11604_s24 + $0x1fa] sm:$0xff] }
  0x37   : > { %v401_v40 = vld [vmem:[%s11604_s24 + $0x202] sm:$0xff]  ;;  %v413_v2 = vld [vmem:[%s11604_s24 + $0x292] sm:$0xff] }
  0x3d   : > { %8791 = vrot.lane.b32.xlu2 %v8790_v51, %s11546_s25  ;;  %v8895_v51 = vpack.i.bf16 %v375_v45, %v374_v44  ;;  %v8965_v44 = vpack.i.bf16 %v403_v38, %v402_v36  ;;  %v8960_v45 = vpack.i.bf16 %v401_v40, %v400_v39 }
  0x3e   : > { %8786 = vrot.lane.b32.xlu1 %v8785_v52, %s11546_s25  ;;  %8781 = vrot.lane.b32.xlu0 %v8780_v53, %s11546_s25  ;;  %v8890_v52 = vpack.i.bf16 %v373_v48, %v372_v46  ;;  %v8885_v53 = vpack.i.bf16 %v371_v50, %v370_v49  ;;  %v410_v46 = vld [vmem:[%s11604_s24 + $0x272] sm:$0xff]  ;;  %v411_v48 = vld [vmem:[%s11604_s24 + $0x27a] sm:$0xff] }
  0x3f   : > { %v408_v49 = vld [vmem:[%s11604_s24 + $0x25a] sm:$0xff] }
  0x45   : > { %8806 = vrot.lane.b32.xlu2 %v8805_v60, %s11546_s25  ;;  %v377_v60 = vld [vmem:[%s11604_s24 + $0xb2] sm:$0xff] }
  0x46   : > { %8801 = vrot.lane.b32.xlu1 %v8800_v61, %s11546_s25  ;;  %8796 = vrot.lane.b32.xlu0 %v8795_v62, %s11546_s25  ;;  %v8910_v61 = vpack.i.bf16 %v381_v55, %v380_v54  ;;  %v8905_v62 = vpack.i.bf16 %v379_v58, %v378_v56  ;;  %v8900_v63 = vpack.i.bf16 %v377_v60, %v376_v59  ;;  %v416_v60 = vld [vmem:[%s11604_s24 + $0x2ba] sm:$0xff] }
  0x47   : > { %v8985_v56 = vpack.i.bf16 %v411_v48, %v410_v46 }
  0x4d   : > { %8821 = vrot.lane.b32.xlu2 %v8820_v5, %s11546_s25  ;;  %v382_v5 = vld [vmem:[%s11604_s24 + $0xf2] sm:$0xff] }
  0x4e   : > { %8816 = vrot.lane.b32.xlu1 %v8815_v6, %s11546_s25  ;;  %8811 = vrot.lane.b32.xlu0 %v8810_v7, %s11546_s25  ;;  %v383_v6 = vld [vmem:[%s11604_s24 + $0xfa] sm:$0xff]  ;;  %v8925_v7 = vpack.i.bf16 %v387_v1, %v386_v0  ;;  %v415_v0 = vld [vmem:[%s11604_s24 + $0x2aa] sm:$0xff] }
  0x4f   : > { %v8915_v9 = vpack.i.bf16 %v383_v6, %v382_v5  ;;  %v412_v1 = vld [vmem:[%s11604_s24 + $0x28a] sm:$0xff] }
  0x55   : > { %8836 = vrot.lane.b32.xlu2 %v8835_v14, %s11546_s25  ;;  %v391_v14 = vld [vmem:[%s11604_s24 + $0x15a] sm:$0xff] }
  0x56   : > { %8831 = vrot.lane.b32.xlu1 %v8830_v15, %s11546_s25  ;;  %8826 = vrot.lane.b32.xlu0 %v8825_v16, %s11546_s25  ;;  %v388_v15 = vld [vmem:[%s11604_s24 + $0x13a] sm:$0xff]  ;;  %v389_v16 = vld [vmem:[%s11604_s24 + $0x142] sm:$0xff]  ;;  %v8935_v20 = vpack.i.bf16 %v391_v14, %v390_v12 }
  0x57   : > { %v8930_v21 = vpack.i.bf16 %v389_v16, %v388_v15  ;;  %v421_v14 = vld [vmem:[%s11604_s24 + $0x2f2] sm:$0xff]  ;;  %v419_v16 = vld [vmem:[%s11604_s24 + $0x2da] sm:$0xff] }
  0x58   : > { %v418_v15 = vld [vmem:[%s11604_s24 + $0x2d2] sm:$0xff] }
  0x5d   : > { %8851 = vrot.lane.b32.xlu2 %v8850_v23, %s11546_s25  ;;  %v399_v23 = vld [vmem:[%s11604_s24 + $0x1ea] sm:$0xff] }
  0x5e   : > { %8846 = vrot.lane.b32.xlu1 %v8845_v24, %s11546_s25  ;;  %8841 = vrot.lane.b32.xlu0 %v8840_v25, %s11546_s25  ;;  %v396_v24 = vld [vmem:[%s11604_s24 + $0x1ca] sm:$0xff]  ;;  %v8955_v31 = vpack.i.bf16 %v399_v23, %v398_v22  ;;  %v9010_v22 = vpack.i.bf16 %v421_v14, %v420_v11  ;;  %v9005_v23 = vpack.i.bf16 %v419_v16, %v418_v15 }
  0x5f   : > { %v256_v14 = vld [vmem:[%s11604_s24 + $0x108] sm:$0xff]  ;;  %v257_v15 = vld [vmem:[%s11604_s24 + $0x110] sm:$0xff] }
  0x60   : > { %v254_v16 = vld [vmem:[%s11604_s24 + $0xf0] sm:$0xff] }
  0x65   : > { %8866 = vrot.lane.b32.xlu2 %v8865_v32, %s11547_s26  ;;  %v8950_v32 = vpack.i.bf16 %v397_v26, %v396_v24  ;;  %v424_v26 = vld [vmem:[%s11604_s24 + $0x31a] sm:$0xff] }
  0x66   : > { %8861 = vrot.lane.b32.xlu1 %v8860_v33, %s11546_s25  ;;  %8856 = vrot.lane.b32.xlu0 %v8855_v34, %s11546_s25  ;;  %v8945_v33 = vpack.i.bf16 %v395_v28, %v394_v27  ;;  %v404_v34 = vld [vmem:[%s11604_s24 + $0x22a] sm:$0xff]  ;;  %v425_v27 = vld [vmem:[%s11604_s24 + $0x322] sm:$0xff] }
  0x67   : > { %v238_v28 = vld [vmem:[%s11604_s24 + $0x30] sm:$0xff]  ;;  %v9020_v39 = vpack.i.bf16 %v425_v27, %v424_v26  ;;  %v252_v26 = vld [vmem:[%s11604_s24 + $0xd8] sm:$0xff]  ;;  %v253_v27 = vld [vmem:[%s11604_s24 + $0xe0] sm:$0xff] }
  0x6d   : > { %8881 = vrot.lane.b32.xlu2 %v8880_v41, %s11547_s26 }
  0x6e   : > { %8876 = vrot.lane.b32.xlu1 %v8875_v42, %s11547_s26  ;;  %8871 = vrot.lane.b32.xlu0 %v8870_v43, %s11547_s26  ;;  %v8970_v43 = vpack.i.bf16 %v405_v35, %v404_v34  ;;  %v236_v34 = vld [vmem:[%s11604_s24 + $0x18] sm:$0xff]  ;;  %v237_v35 = vld [vmem:[%s11604_s24 + $0x20] sm:$0xff] }
  0x6f   : > { %v11717_v47 = vpop.permute.xlu2 %8726  ;;  %v9025_v38 = vpack.i.bf16 %v237_v35, %v236_v34  ;;  %v9065_v34 = vpack.i.bf16 %v253_v27, %v252_v26  ;;  %v275_v26 = vld [vmem:[%s11604_s24 + $0x218] sm:$0xff] }
  0x70   : > { %v272_v27 = vld [vmem:[%s11604_s24 + $0x1f8] sm:$0xff] }
  0x75   : > { %8896 = vrot.lane.b32.xlu2 %v8895_v51, %s11547_s26  ;;  %v409_v51 = vld [vmem:[%s11604_s24 + $0x262] sm:$0xff] }
  0x76   : > { %8891 = vrot.lane.b32.xlu1 %v8890_v52, %s11547_s26  ;;  %8886 = vrot.lane.b32.xlu0 %v8885_v53, %s11547_s26  ;;  %v406_v52 = vld [vmem:[%s11604_s24 + $0x242] sm:$0xff]  ;;  %v407_v53 = vld [vmem:[%s11604_s24 + $0x24a] sm:$0xff]  ;;  %v8980_v58 = vpack.i.bf16 %v409_v51, %v408_v49 }
  0x77   : > { %v11728_v57 = vpop.permute.xlu2 %8731  ;;  %v8975_v59 = vpack.i.bf16 %v407_v53, %v406_v52  ;;  %v243_v49 = vld [vmem:[%s11604_s24 + $0x68] sm:$0xff]  ;;  %v241_v52 = vld [vmem:[%s11604_s24 + $0x50] sm:$0xff] }
  0x78   : > { %v240_v51 = vld [vmem:[%s11604_s24 + $0x48] sm:$0xff] }
  0x7d   : > { %8911 = vrot.lane.b32.xlu2 %v8910_v61, %s11547_s26  ;;  %v417_v61 = vld [vmem:[%s11604_s24 + $0x2c2] sm:$0xff] }
  0x7e   : > { %8906 = vrot.lane.b32.xlu1 %v8905_v62, %s11547_s26  ;;  %8901 = vrot.lane.b32.xlu0 %v8900_v63, %s11547_s26  ;;  %v414_v62 = vld [vmem:[%s11604_s24 + $0x2a2] sm:$0xff]  ;;  %v9000_v6 = vpack.i.bf16 %v417_v61, %v416_v60 }
  0x7f   : > { %v11739_v3 = vpop.permute.xlu2 %8746  ;;  %v250_v60 = vld [vmem:[%s11604_s24 + $0xc0] sm:$0xff]  ;;  %v251_v61 = vld [vmem:[%s11604_s24 + $0xc8] sm:$0xff] }
  0x85   : > { %8926 = vrot.lane.b32.xlu2 %v8925_v7, %s11547_s26  ;;  %v8995_v7 = vpack.i.bf16 %v415_v0, %v414_v62  ;;  %v248_v62 = vld [vmem:[%s11604_s24 + $0xa8] sm:$0xff] }
  0x86   : > { %8921 = vrot.lane.b32.xlu1 %v8920_v8, %s11547_s26  ;;  %8916 = vrot.lane.b32.xlu0 %v8915_v9, %s11547_s26  ;;  %v8990_v8 = vpack.i.bf16 %v413_v2, %v412_v1  ;;  %v422_v9 = vld [vmem:[%s11604_s24 + $0x302] sm:$0xff]  ;;  %v249_v2 = vld [vmem:[%s11604_s24 + $0xb0] sm:$0xff] }
  0x87   : > { %v11750_v13 = vpop.permute.xlu2 %8761 }
  0x88   : > { %v11755_v17 = vpop.permute.xlu1 %8716  ;;  %v11757_v18 = vpop.permute.xlu0 %8706 }
  0x8d   : > { %8941 = vrot.lane.b32.xlu2 %v8940_v19, %s11547_s26 }
  0x8e   : > { %8936 = vrot.lane.b32.xlu1 %v8935_v20, %s11547_s26  ;;  %8931 = vrot.lane.b32.xlu0 %v8930_v21, %s11547_s26  ;;  %v9015_v21 = vpack.i.bf16 %v423_v10, %v422_v9  ;;  %v9055_v9 = vpack.i.bf16 %v249_v2, %v248_v62  ;;  %v268_v62 = vld [vmem:[%s11604_s24 + $0x1c8] sm:$0xff]  ;;  %v269_v2 = vld [vmem:[%s11604_s24 + $0x1d0] sm:$0xff] }
  0x8f   : > { %v11765_v25 = vpop.permute.xlu2 %8776 }
  0x90   : > { %v11770_v29 = vpop.permute.xlu1 %8721  ;;  %v11772_v30 = vpop.permute.xlu0 %8711 }
  0x95   : > { %8956 = vrot.lane.b32.xlu2 %v8955_v31, %s11547_s26  ;;  %v239_v31 = vld [vmem:[%s11604_s24 + $0x38] sm:$0xff] }
  0x96   : > { %8951 = vrot.lane.b32.xlu1 %v8950_v32, %s11547_s26  ;;  %8946 = vrot.lane.b32.xlu0 %v8945_v33, %s11547_s26  ;;  %v9030_v36 = vpack.i.bf16 %v239_v31, %v238_v28  ;;  %v9075_v28 = vpack.i.bf16 %v257_v15, %v256_v14 }
  0x97   : > { %v11780_v37 = vpop.permute.xlu2 %8791 }
  0x98   : > { %v11785_v41 = vpop.permute.xlu1 %8741  ;;  %v11787_v42 = vpop.permute.xlu0 %8736 }
  0x9d   : > { %8971 = vrot.lane.b32.xlu2 %v8970_v43, %s11547_s26  ;;  %v242_v43 = vld [vmem:[%s11604_s24 + $0x60] sm:$0xff] }
  0x9e   : > { %8966 = vrot.lane.b32.xlu1 %v8965_v44, %s11547_s26  ;;  %8961 = vrot.lane.b32.xlu0 %v8960_v45, %s11547_s26  ;;  %v244_v44 = vld [vmem:[%s11604_s24 + $0x78] sm:$0xff]  ;;  %v245_v45 = vld [vmem:[%s11604_s24 + $0x80] sm:$0xff] }
  0x9f   : > { %v11795_v50 = vpop.permute.xlu2 %8806  ;;  %v9045_v53 = vpack.i.bf16 %v245_v45, %v244_v44  ;;  %v261_v45 = vld [vmem:[%s11604_s24 + $0x140] sm:$0xff] }
  0xa0   : > { %v11800_v54 = vpop.permute.xlu1 %8756  ;;  %v11802_v55 = vpop.permute.xlu0 %8751 }
  0xa5   : > { %8986 = vrot.lane.b32.xlu2 %v8985_v56, %s11547_s26  ;;  %v9040_v56 = vpack.i.bf16 %v243_v49, %v242_v43  ;;  %v258_v49 = vld [vmem:[%s11604_s24 + $0x120] sm:$0xff] }
  0xa6   : > { %8981 = vrot.lane.b32.xlu1 %v8980_v58, %s11547_s26  ;;  %8976 = vrot.lane.b32.xlu0 %v8975_v59, %s11547_s26  ;;  %v9035_v58 = vpack.i.bf16 %v241_v52, %v240_v51  ;;  %v259_v51 = vld [vmem:[%s11604_s24 + $0x128] sm:$0xff] }
  0xa7   : > { %v11810_v63 = vpop.permute.xlu2 %8821 }
  0xa8   : > { %v11815_v4 = vpop.permute.xlu1 %8771  ;;  %v11817_v5 = vpop.permute.xlu0 %8766 }
  0xad   : > { %9001 = vrot.lane.b32.xlu2 %v9000_v6, %s11547_s26  ;;  %v246_v6 = vld [vmem:[%s11604_s24 + $0x90] sm:$0xff] }
  0xae   : > { %8996 = vrot.lane.b32.xlu1 %v8995_v7, %s11547_s26  ;;  %8991 = vrot.lane.b32.xlu0 %v8990_v8, %s11547_s26  ;;  %v247_v7 = vld [vmem:[%s11604_s24 + $0x98] sm:$0xff]  ;;  %v9060_v8 = vpack.i.bf16 %v251_v61, %v250_v60  ;;  %v8218_v60 = vld [vmem:[%s11604_s24 + $0x180] sm:$0xff] }
  0xaf   : > { %v11825_v12 = vpop.permute.xlu2 %8836  ;;  %v9050_v10 = vpack.i.bf16 %v247_v7, %v246_v6  ;;  %v8219_v61 = vld [vmem:[%s11604_s24 + $0x188] sm:$0xff] }
  0xb0   : > { %v11830_v19 = vpop.permute.xlu1 %8786  ;;  %v11832_v20 = vpop.permute.xlu0 %8781  ;;  %v9100_v14 = vpack.i.bf16 %v8219_v61, %v8218_v60 }
  0xb1   : > { %19338 = vst [vmem:[#allocation4_spill] sm:$0xff] %v11830_v19  ;;  %v8261_v19 = vld [vmem:[%s11604_s24 + $0x81] sm:$0xff] }
  0xb5   : > { %9016 = vrot.lane.b32.xlu2 %v9015_v21, %s11547_s26 }
  0xb6   : > { %9011 = vrot.lane.b32.xlu1 %v9010_v22, %s11547_s26  ;;  %9006 = vrot.lane.b32.xlu0 %v9005_v23, %s11547_s26  ;;  %v255_v23 = vld [vmem:[%s11604_s24 + $0xf8] sm:$0xff] }
  0xb7   : > { %v11837_v24 = vpop.permute.xlu2 %8851  ;;  %v9070_v31 = vpack.i.bf16 %v255_v23, %v254_v16  ;;  %v274_v23 = vld [vmem:[%s11604_s24 + $0x210] sm:$0xff] }
  0xb8   : > { %v11843_v32 = vpop.permute.xlu1 %8801  ;;  %v11845_v33 = vpop.permute.xlu0 %8796 }
  0xbd   : > { %9031 = vrot.lane.b32.xlu2 %v9030_v36, %s11548_s27  ;;  %v262_v36 = vld [vmem:[%s11604_s24 + $0x150] sm:$0xff] }
  0xbe   : > { %9026 = vrot.lane.b32.xlu1 %v9025_v38, %s11548_s27  ;;  %9021 = vrot.lane.b32.xlu0 %v9020_v39, %s11547_s26  ;;  %v263_v38 = vld [vmem:[%s11604_s24 + $0x158] sm:$0xff] }
  0xbf   : > { %v11852_v40 = vpop.permute.xlu2 %8866  ;;  %v260_v39 = vld [vmem:[%s11604_s24 + $0x138] sm:$0xff]  ;;  %v9090_v52 = vpack.i.bf16 %v263_v38, %v262_v36  ;;  %v270_v36 = vld [vmem:[%s11604_s24 + $0x1e0] sm:$0xff]  ;;  %v271_v38 = vld [vmem:[%s11604_s24 + $0x1e8] sm:$0xff] }
  0xc0   : > { %v11857_v46 = vpop.permute.xlu1 %8816  ;;  %v11859_v48 = vpop.permute.xlu0 %8811 }
  0xc5   : > { %9046 = vrot.lane.b32.xlu2 %v9045_v53, %s11548_s27  ;;  %v9085_v53 = vpack.i.bf16 %v261_v45, %v260_v39  ;;  %v9120_v39 = vpack.i.bf16 %v275_v26, %v274_v23  ;;  %v8257_v23 = vld [vmem:[%s11604_s24 + $0x51] sm:$0xff] }
  0xc6   : > { %9041 = vrot.lane.b32.xlu1 %v9040_v56, %s11548_s27  ;;  %9036 = vrot.lane.b32.xlu0 %v9035_v58, %s11548_s27  ;;  %v9080_v56 = vpack.i.bf16 %v259_v51, %v258_v49  ;;  %v9110_v49 = vpack.i.bf16 %v271_v38, %v270_v36  ;;  %v8252_v38 = vld [vmem:[%s11604_s24 + $0x19] sm:$0xff] }
  0xc7   : > { %v11867_v59 = vpop.permute.xlu2 %8881 }
  0xc8   : > { %v11872_v0 = vpop.permute.xlu1 %8831  ;;  %v11874_v1 = vpop.permute.xlu0 %8826 }
  0xcd   : > { %9061 = vrot.lane.b32.xlu2 %v9060_v8, %s11548_s27  ;;  %v264_v8 = vld [vmem:[%s11604_s24 + $0x168] sm:$0xff] }
  0xce   : > { %9056 = vrot.lane.b32.xlu1 %v9055_v9, %s11548_s27  ;;  %9051 = vrot.lane.b32.xlu0 %v9050_v10, %s11548_s27  ;;  %v265_v9 = vld [vmem:[%s11604_s24 + $0x170] sm:$0xff]  ;;  %v9105_v10 = vpack.i.bf16 %v269_v2, %v268_v62  ;;  %v279_v62 = vld [vmem:[%s11604_s24 + $0x248] sm:$0xff] }
  0xcf   : > { %v11882_v11 = vpop.permute.xlu2 %8896  ;;  %v9095_v15 = vpack.i.bf16 %v265_v9, %v264_v8  ;;  %v276_v2 = vld [vmem:[%s11604_s24 + $0x228] sm:$0xff]  ;;  %v277_v8 = vld [vmem:[%s11604_s24 + $0x230] sm:$0xff] }
  0xd0   : > { %v11887_v21 = vpop.permute.xlu1 %8846  ;;  %v11889_v22 = vpop.permute.xlu0 %8841 }
  0xd5   : > { %9076 = vrot.lane.b32.xlu2 %v9075_v28, %s11548_s27 }
  0xd6   : > { %9071 = vrot.lane.b32.xlu1 %v9070_v31, %s11548_s27  ;;  %9066 = vrot.lane.b32.xlu0 %v9065_v34, %s11548_s27  ;;  %v273_v34 = vld [vmem:[%s11604_s24 + $0x200] sm:$0xff] }
  0xd7   : > { %v11897_v35 = vpop.permute.xlu2 %8911  ;;  %v9115_v45 = vpack.i.bf16 %v273_v34, %v272_v27  ;;  %v8254_v27 = vld [vmem:[%s11604_s24 + $0x31] sm:$0xff]  ;;  %v8255_v34 = vld [vmem:[%s11604_s24 + $0x39] sm:$0xff] }
  0xd8   : > { %v11902_v43 = vpop.permute.xlu1 %8861  ;;  %v11904_v44 = vpop.permute.xlu0 %8856  ;;  %v11961_v36 = vpack.i.bf16 %v8255_v34, %v8254_v27  ;;  %v8262_v27 = vld [vmem:[%s11604_s24 + $0x91] sm:$0xff]  ;;  %v8263_v34 = vld [vmem:[%s11604_s24 + $0x99] sm:$0xff] }
  0xda   : > { %19346 = vst [vmem:[#allocation12_spill] sm:$0xff] %v11961_v36 }
  0xdd   : > { %9091 = vrot.lane.b32.xlu2 %v9090_v52, %s11548_s27  ;;  %v280_v52 = vld [vmem:[%s11604_s24 + $0x258] sm:$0xff] }
  0xde   : > { %9086 = vrot.lane.b32.xlu1 %v9085_v53, %s11548_s27  ;;  %9081 = vrot.lane.b32.xlu0 %v9080_v56, %s11548_s27  ;;  %v281_v53 = vld [vmem:[%s11604_s24 + $0x260] sm:$0xff] }
  0xdf   : > { %v11912_v58 = vpop.permute.xlu2 %8926  ;;  %v278_v56 = vld [vmem:[%s11604_s24 + $0x240] sm:$0xff]  ;;  %v9135_v9 = vpack.i.bf16 %v281_v53, %v280_v52  ;;  %v287_v53 = vld [vmem:[%s11604_s24 + $0x2a8] sm:$0xff] }
  0xe0   : > { %v11918_v6 = vpop.permute.xlu1 %8876  ;;  %v11920_v7 = vpop.permute.xlu0 %8871  ;;  %v286_v52 = vld [vmem:[%s11604_s24 + $0x2a0] sm:$0xff] }
  0xe5   : > { %9106 = vrot.lane.b32.xlu2 %v9105_v10, %s11548_s27  ;;  %v9130_v10 = vpack.i.bf16 %v279_v62, %v278_v56  ;;  %v284_v56 = vld [vmem:[%s11604_s24 + $0x288] sm:$0xff] }
  0xe6   : > { %9101 = vrot.lane.b32.xlu1 %v9100_v14, %s11548_s27  ;;  %9096 = vrot.lane.b32.xlu0 %v9095_v15, %s11548_s27  ;;  %v9125_v14 = vpack.i.bf16 %v277_v8, %v276_v2  ;;  %v8256_v15 = vld [vmem:[%s11604_s24 + $0x49] sm:$0xff] }
  0xe7   : > { %v11927_v16 = vpop.permute.xlu2 %8941  ;;  %v11956_v26 = vpack.i.bf16 %v8257_v23, %v8256_v15  ;;  %v285_v8 = vld [vmem:[%s11604_s24 + $0x290] sm:$0xff]  ;;  %v9150_v15 = vpack.i.bf16 %v287_v53, %v286_v52 }
  0xe8   : > { %19339 = vst [vmem:[#allocation5_spill] sm:$0xff] %v11927_v16  ;;  %v11932_v28 = vpop.permute.xlu1 %8891  ;;  %v11934_v31 = vpop.permute.xlu0 %8886  ;;  %v8259_v52 = vld [vmem:[%s11604_s24 + $0x69] sm:$0xff]  ;;  %v8271_v16 = vld [vmem:[%s11604_s24 + $0xf9] sm:$0xff] }
  0xe9   : > { %19340 = vst [vmem:[#allocation6_spill] sm:$0xff] %v11932_v28  ;;  %v8273_v28 = vld [vmem:[%s11604_s24 + $0x111] sm:$0xff] }
  0xea   : > { %19341 = vst [vmem:[#allocation7_spill] sm:$0xff] %v11934_v31  ;;  %v8274_v31 = vld [vmem:[%s11604_s24 + $0x121] sm:$0xff] }
  0xeb   : > { %19345 = vst [vmem:[#allocation11_spill] sm:$0xff] %v11956_v26 }
  0xed   : > { %9121 = vrot.lane.b32.xlu2 %v9120_v39, %s11548_s27  ;;  %v8253_v39 = vld [vmem:[%s11604_s24 + $0x21] sm:$0xff] }
  0xee   : > { %9116 = vrot.lane.b32.xlu1 %v9115_v45, %s11548_s27  ;;  %9111 = vrot.lane.b32.xlu0 %v9110_v49, %s11548_s27  ;;  %v11967_v45 = vpack.i.bf16 %v8253_v39, %v8252_v38  ;;  %v11983_v38 = vpack.i.bf16 %v8263_v34, %v8262_v27  ;;  %v8260_v39 = vld [vmem:[%s11604_s24 + $0x79] sm:$0xff] }
  0xef   : > { %v11942_v51 = vpop.permute.xlu2 %8956  ;;  %v291_v27 = vld [vmem:[%s11604_s24 + $0x2d8] sm:$0xff]  ;;  %v289_v34 = vld [vmem:[%s11604_s24 + $0x2c0] sm:$0xff] }
  0xf0   : > { %19342 = vst [vmem:[#allocation8_spill] sm:$0xff] %v11942_v51  ;;  %v11947_v60 = vpop.permute.xlu1 %8906  ;;  %v11949_v61 = vpop.permute.xlu0 %8901  ;;  %v8265_v51 = vld [vmem:[%s11604_s24 + $0xb1] sm:$0xff] }
  0xf1   : > { %19343 = vst [vmem:[#allocation9_spill] sm:$0xff] %v11947_v60  ;;  %v8264_v60 = vld [vmem:[%s11604_s24 + $0xa9] sm:$0xff] }
  0xf2   : > { %19344 = vst [vmem:[#allocation10_spill] sm:$0xff] %v11949_v61  ;;  %v8266_v61 = vld [vmem:[%s11604_s24 + $0xc1] sm:$0xff] }
  0xf3   : > { %19347 = vst [vmem:[#allocation13_spill] sm:$0xff] %v11967_v45 }
  0xf4   : > { %19351 = vst [vmem:[#allocation17_spill] sm:$0xff] %v11983_v38 }
  0xf5   : > { %9136 = vrot.lane.b32.xlu2 %v9135_v9, %s11548_s27  ;;  %v282_v9 = vld [vmem:[%s11604_s24 + $0x270] sm:$0xff] }
  0xf6   : > { %9131 = vrot.lane.b32.xlu1 %v9130_v10, %s11548_s27  ;;  %9126 = vrot.lane.b32.xlu0 %v9125_v14, %s11548_s27  ;;  %v283_v10 = vld [vmem:[%s11604_s24 + $0x278] sm:$0xff]  ;;  %v9145_v14 = vpack.i.bf16 %v285_v8, %v284_v56  ;;  %v292_v8 = vld [vmem:[%s11604_s24 + $0x2e8] sm:$0xff] }
  0xf7   : > { %v11969_v49 = vpop.permute.xlu2 %8971  ;;  %v9140_v23 = vpack.i.bf16 %v283_v10, %v282_v9  ;;  %v293_v9 = vld [vmem:[%s11604_s24 + $0x2f0] sm:$0xff] }
  0xf8   : > { %19348 = vst [vmem:[#allocation14_spill] sm:$0xff] %v11969_v49  ;;  %v11974_v62 = vpop.permute.xlu1 %8921  ;;  %v11976_v2 = vpop.permute.xlu0 %8916  ;;  %v290_v10 = vld [vmem:[%s11604_s24 + $0x2d0] sm:$0xff] }
  0xf9   : > { %19349 = vst [vmem:[#allocation15_spill] sm:$0xff] %v11974_v62  ;;  %v8258_v62 = vld [vmem:[%s11604_s24 + $0x61] sm:$0xff] }
  0xfa   : > { %19350 = vst [vmem:[#allocation16_spill] sm:$0xff] %v11976_v2  ;;  %v11988_v2 = vpack.i.bf16 %v8261_v19, %v8260_v39  ;;  %v11994_v53 = vpack.i.bf16 %v8259_v52, %v8258_v62  ;;  %v9165_v62 = vpack.i.bf16 %v293_v9, %v292_v8  ;;  %v8268_v52 = vld [vmem:[%s11604_s24 + $0xd9] sm:$0xff]  ;;  %v8250_v8 = vld [vmem:[%s11604_s24 + $0x330] sm:$0xff]  ;;  %v12023_v9 = vpack.i.bf16 %v8265_v51, %v8264_v60 }
  0xfb   : > { %v8275_v51 = vld [vmem:[%s11604_s24 + $0x129] sm:$0xff] }
  0xfc   : > { %19352 = vst [vmem:[#allocation18_spill] sm:$0xff] %v11988_v2  ;;  %v12037_v60 = vpack.i.bf16 %v8275_v51, %v8274_v31 }
  0xfd   : > { %9151 = vrot.lane.b32.xlu2 %v9150_v15, %s11548_s27  ;;  %19353 = vst [vmem:[#allocation19_spill] sm:$0xff] %v11994_v53 }
  0xfe   : > { %9146 = vrot.lane.b32.xlu1 %v9145_v14, %s11548_s27  ;;  %9141 = vrot.lane.b32.xlu0 %v9140_v23, %s11548_s27  ;;  %v288_v14 = vld [vmem:[%s11604_s24 + $0x2b8] sm:$0xff]  ;;  %v9160_v23 = vpack.i.bf16 %v291_v27, %v290_v10  ;;  %19359 = vst [vmem:[#allocation25_spill] sm:$0xff] %v12023_v9 }
  0xff   : > { %v11996_v56 = vpop.permute.xlu2 %8986  ;;  %v9155_v39 = vpack.i.bf16 %v289_v34, %v288_v14  ;;  %v296_v27 = vld [vmem:[%s11604_s24 + $0x318] sm:$0xff]  ;;  %v297_v14 = vld [vmem:[%s11604_s24 + $0x320] sm:$0xff]  ;;  %19363 = vst [vmem:[#allocation29_spill] sm:$0xff] %v12037_v60 }
 0x100   : > { %19354 = vst [vmem:[#allocation20_spill] sm:$0xff] %v11996_v56  ;;  %v12001_v19 = vpop.permute.xlu1 %8936  ;;  %v12003_v15 = vpop.permute.xlu0 %8931  ;;  %v8269_v56 = vld [vmem:[%s11604_s24 + $0xe1] sm:$0xff] }
 0x101   : > { %19355 = vst [vmem:[#allocation21_spill] sm:$0xff] %v12001_v19  ;;  %v12010_v49 = vpack.i.bf16 %v8269_v56, %v8268_v52  ;;  %v8267_v19 = vld [vmem:[%s11604_s24 + $0xc9] sm:$0xff]  ;;  %v8251_v56 = vld [vmem:[%s11604_s24 + $0x338] sm:$0xff]  ;;  %v294_v34 = vld [vmem:[%s11604_s24 + $0x300] sm:$0xff] }
 0x102   : > { %19356 = vst [vmem:[#allocation22_spill] sm:$0xff] %v12003_v15  ;;  %v12015_v15 = vpack.i.bf16 %v8267_v19, %v8266_v61 }
 0x103   : > { %19357 = vst [vmem:[#allocation23_spill] sm:$0xff] %v12010_v49 }
 0x104   : > { %19358 = vst [vmem:[#allocation24_spill] sm:$0xff] %v12015_v15 }
 0x105   : > { %9166 = vrot.lane.b32.xlu2 %v9165_v62, %s11548_s27  ;;  %v295_v62 = vld [vmem:[%s11604_s24 + $0x308] sm:$0xff] }
 0x106   : > { %9161 = vrot.lane.b32.xlu1 %v9160_v23, %s11548_s27  ;;  %9156 = vrot.lane.b32.xlu0 %v9155_v39, %s11548_s27  ;;  %v9180_v23 = vpack.i.bf16 %v8251_v56, %v8250_v8  ;;  %v9175_v39 = vpack.i.bf16 %v297_v14, %v296_v27  ;;  %v9170_v52 = vpack.i.bf16 %v295_v62, %v294_v34  ;;  %v8280_v14 = vld [vmem:[%s11604_s24 + $0x169] sm:$0xff]  ;;  %v8278_v34 = vld [vmem:[%s11604_s24 + $0x151] sm:$0xff] }
 0x107   : > { %v12025_v10 = vpop.permute.xlu2 %9001  ;;  %v8279_v62 = vld [vmem:[%s11604_s24 + $0x159] sm:$0xff] }
 0x108   : > { %19360 = vst [vmem:[#allocation26_spill] sm:$0xff] %v12025_v10  ;;  %v12028_v61 = vpop.permute.xlu1 %8951  ;;  %v12030_v19 = vpop.permute.xlu0 %8946  ;;  %v8272_v10 = vld [vmem:[%s11604_s24 + $0x109] sm:$0xff] }
 0x109   : > { %19361 = vst [vmem:[#allocation27_spill] sm:$0xff] %v12028_v61  ;;  %v12042_v61 = vpack.i.bf16 %v8273_v28, %v8272_v10  ;;  %v8281_v28 = vld [vmem:[%s11604_s24 + $0x171] sm:$0xff] }
 0x10a   : > { %19362 = vst [vmem:[#allocation28_spill] sm:$0xff] %v12030_v19  ;;  %v8270_v19 = vld [vmem:[%s11604_s24 + $0xf1] sm:$0xff]  ;;  %v12058_v10 = vpack.i.bf16 %v8281_v28, %v8280_v14  ;;  %v8286_v28 = vld [vmem:[%s11604_s24 + $0x1e1] sm:$0xff] }
 0x10b   : > { %19364 = vst [vmem:[#allocation30_spill] sm:$0xff] %v12042_v61  ;;  %v12048_v8 = vpack.i.bf16 %v8271_v16, %v8270_v19  ;;  %v12064_v16 = vpack.i.bf16 %v8279_v62, %v8278_v34  ;;  %v8276_v19 = vld [vmem:[%s11604_s24 + $0x139] sm:$0xff]  ;;  %v8287_v34 = vld [vmem:[%s11604_s24 + $0x1e9] sm:$0xff] }
 0x10c   : > { %19369 = vst [vmem:[#allocation35_spill] sm:$0xff] %v12058_v10  ;;  %v12082_v62 = vpack.i.bf16 %v8287_v34, %v8286_v28 }
 0x10d   : > { %9181 = vrot.lane.b32.xlu2 %v9180_v23, %s11548_s27  ;;  %19365 = vst [vmem:[#allocation31_spill] sm:$0xff] %v12048_v8  ;;  %v8277_v23 = vld [vmem:[%s11604_s24 + $0x141] sm:$0xff] }
 0x10e   : > { %9176 = vrot.lane.b32.xlu1 %v9175_v39, %s11548_s27  ;;  %9171 = vrot.lane.b32.xlu0 %v9170_v52, %s11548_s27  ;;  %19370 = vst [vmem:[#allocation36_spill] sm:$0xff] %v12064_v16  ;;  %v12072_v39 = vpack.i.bf16 %v8277_v23, %v8276_v19  ;;  %v8282_v23 = vld [vmem:[%s11604_s24 + $0x181] sm:$0xff] }
 0x10f   : > { %v12050_v31 = vpop.permute.xlu2 %9016  ;;  %19375 = vst [vmem:[#allocation41_spill] sm:$0xff] %v12082_v62 }
 0x110   : > { %19366 = vst [vmem:[#allocation32_spill] sm:$0xff] %v12050_v31  ;;  %v12052_v56 = vpop.permute.xlu1 %8966  ;;  %v12054_v27 = vpop.permute.xlu0 %8961  ;;  %v8739_v31 = vunpack.i.h.bf16 %v11787_v42 }
 0x111   : > { %19367 = vst [vmem:[#allocation33_spill] sm:$0xff] %v12052_v56  ;;  %v8743_v56 = vunpack.i.l.bf16 %v11785_v41 }
 0x112   : > { %19368 = vst [vmem:[#allocation34_spill] sm:$0xff] %v12054_v27  ;;  %v8744_v27 = vunpack.i.h.bf16 %v11785_v41 }
 0x113   : > { %19371 = vst [vmem:[#allocation37_spill] sm:$0xff] %v12072_v39 }
 0x115   : > { %9196 = vrot.lane.b32.xlu2 %v11956_v26, %s11549_s28  ;;  %v8284_v26 = vld [vmem:[%s11604_s24 + $0x1c9] sm:$0xff] }
 0x116   : > { %9191 = vrot.lane.b32.xlu1 %v11961_v36, %s11549_s28  ;;  %9186 = vrot.lane.b32.xlu0 %v11967_v45, %s11549_s28  ;;  %v8285_v36 = vld [vmem:[%s11604_s24 + $0x1d1] sm:$0xff]  ;;  %v8283_v45 = vld [vmem:[%s11604_s24 + $0x189] sm:$0xff] }
 0x117   : > { %v12074_v52 = vpop.permute.xlu2 %9031  ;;  %v12088_v19 = vpack.i.bf16 %v8285_v36, %v8284_v26  ;;  %v12096_v28 = vpack.i.bf16 %v8283_v45, %v8282_v23  ;;  %v8292_v26 = vld [vmem:[%s11604_s24 + $0x229] sm:$0xff]  ;;  %v8293_v36 = vld [vmem:[%s11604_s24 + $0x231] sm:$0xff]  ;;  %v8288_v23 = vld [vmem:[%s11604_s24 + $0x1f9] sm:$0xff] }
 0x118   : > { %19372 = vst [vmem:[#allocation38_spill] sm:$0xff] %v12074_v52  ;;  %v12076_v51 = vpop.permute.xlu1 %8981  ;;  %v12078_v14 = vpop.permute.xlu0 %8976  ;;  %v8290_v52 = vld [vmem:[%s11604_s24 + $0x211] sm:$0xff] }
 0x119   : > { %19373 = vst [vmem:[#allocation39_spill] sm:$0xff] %v12076_v51 }
 0x11a   : > { %19374 = vst [vmem:[#allocation40_spill] sm:$0xff] %v12078_v14 }
 0x11b   : > { %19376 = vst [vmem:[#allocation42_spill] sm:$0xff] %v12088_v19 }
 0x11c   : > { %19377 = vst [vmem:[#allocation43_spill] sm:$0xff] %v12096_v28 }
 0x11d   : > { %9211 = vrot.lane.b32.xlu2 %v11983_v38, %s11549_s28  ;;  %v12106_v38 = vpack.i.bf16 %v8293_v36, %v8292_v26 }
 0x11e   : > { %9206 = vrot.lane.b32.xlu1 %v11988_v2, %s11549_s28  ;;  %9201 = vrot.lane.b32.xlu0 %v11994_v53, %s11549_s28  ;;  %v8291_v2 = vld [vmem:[%s11604_s24 + $0x219] sm:$0xff]  ;;  %v8289_v53 = vld [vmem:[%s11604_s24 + $0x201] sm:$0xff] }
 0x11f   : > { %v12098_v34 = vpop.permute.xlu2 %9046  ;;  %19381 = vst [vmem:[#allocation47_spill] sm:$0xff] %v12106_v38  ;;  %v12112_v45 = vpack.i.bf16 %v8291_v2, %v8290_v52  ;;  %v12120_v26 = vpack.i.bf16 %v8289_v53, %v8288_v23  ;;  %v8298_v2 = vld [vmem:[%s11604_s24 + $0x271] sm:$0xff]  ;;  %v8299_v52 = vld [vmem:[%s11604_s24 + $0x279] sm:$0xff]  ;;  %v8294_v23 = vld [vmem:[%s11604_s24 + $0x241] sm:$0xff] }
 0x120   : > { %19378 = vst [vmem:[#allocation44_spill] sm:$0xff] %v12098_v34  ;;  %v12100_v14 = vpop.permute.xlu1 %8996  ;;  %v12102_v51 = vpop.permute.xlu0 %8991  ;;  %v8296_v34 = vld [vmem:[%s11604_s24 + $0x259] sm:$0xff] }
 0x121   : > { %19379 = vst [vmem:[#allocation45_spill] sm:$0xff] %v12100_v14 }
 0x122   : > { %19380 = vst [vmem:[#allocation46_spill] sm:$0xff] %v12102_v51 }
 0x123   : > { %19382 = vst [vmem:[#allocation48_spill] sm:$0xff] %v12112_v45 }
 0x124   : > { %19383 = vst [vmem:[#allocation49_spill] sm:$0xff] %v12120_v26 }
 0x125   : > { %9226 = vrot.lane.b32.xlu2 %v12010_v49, %s11549_s28  ;;  %v12130_v49 = vpack.i.bf16 %v8299_v52, %v8298_v2 }
 0x126   : > { %9221 = vrot.lane.b32.xlu1 %v12015_v15, %s11549_s28  ;;  %9216 = vrot.lane.b32.xlu0 %v12023_v9, %s11549_s28  ;;  %v8297_v15 = vld [vmem:[%s11604_s24 + $0x261] sm:$0xff]  ;;  %v8295_v9 = vld [vmem:[%s11604_s24 + $0x249] sm:$0xff] }
 0x127   : > { %v12122_v36 = vpop.permute.xlu2 %9061  ;;  %19387 = vst [vmem:[#allocation53_spill] sm:$0xff] %v12130_v49  ;;  %v12136_v53 = vpack.i.bf16 %v8297_v15, %v8296_v34  ;;  %v12144_v2 = vpack.i.bf16 %v8295_v9, %v8294_v23  ;;  %v8304_v15 = vld [vmem:[%s11604_s24 + $0x2b9] sm:$0xff]  ;;  %v8305_v34 = vld [vmem:[%s11604_s24 + $0x2c1] sm:$0xff]  ;;  %v8300_v23 = vld [vmem:[%s11604_s24 + $0x289] sm:$0xff] }
 0x128   : > { %19384 = vst [vmem:[#allocation50_spill] sm:$0xff] %v12122_v36  ;;  %v12124_v51 = vpop.permute.xlu1 %9011  ;;  %v12126_v14 = vpop.permute.xlu0 %9006  ;;  %v8302_v36 = vld [vmem:[%s11604_s24 + $0x2a1] sm:$0xff] }
 0x129   : > { %19385 = vst [vmem:[#allocation51_spill] sm:$0xff] %v12124_v51 }
 0x12a   : > { %19386 = vst [vmem:[#allocation52_spill] sm:$0xff] %v12126_v14 }
 0x12b   : > { %19388 = vst [vmem:[#allocation54_spill] sm:$0xff] %v12136_v53 }
 0x12c   : > { %19389 = vst [vmem:[#allocation55_spill] sm:$0xff] %v12144_v2 }
 0x12d   : > { %9241 = vrot.lane.b32.xlu2 %v12037_v60, %s11549_s28  ;;  %v12154_v60 = vpack.i.bf16 %v8305_v34, %v8304_v15 }
 0x12e   : > { %9236 = vrot.lane.b32.xlu1 %v12042_v61, %s11549_s28  ;;  %9231 = vrot.lane.b32.xlu0 %v12048_v8, %s11549_s28  ;;  %v8303_v61 = vld [vmem:[%s11604_s24 + $0x2a9] sm:$0xff]  ;;  %v8301_v8 = vld [vmem:[%s11604_s24 + $0x291] sm:$0xff] }
 0x12f   : > { %v12146_v52 = vpop.permute.xlu2 %9076  ;;  %19393 = vst [vmem:[#allocation59_spill] sm:$0xff] %v12154_v60  ;;  %v12160_v9 = vpack.i.bf16 %v8303_v61, %v8302_v36  ;;  %v12168_v15 = vpack.i.bf16 %v8301_v8, %v8300_v23  ;;  %v8310_v61 = vld [vmem:[%s11604_s24 + $0x301] sm:$0xff]  ;;  %v8311_v36 = vld [vmem:[%s11604_s24 + $0x309] sm:$0xff]  ;;  %v8306_v23 = vld [vmem:[%s11604_s24 + $0x2d1] sm:$0xff] }
 0x130   : > { %19390 = vst [vmem:[#allocation56_spill] sm:$0xff] %v12146_v52  ;;  %v12148_v14 = vpop.permute.xlu1 %9026  ;;  %v12150_v51 = vpop.permute.xlu0 %9021  ;;  %v8308_v52 = vld [vmem:[%s11604_s24 + $0x2e9] sm:$0xff] }
 0x131   : > { %19391 = vst [vmem:[#allocation57_spill] sm:$0xff] %v12148_v14 }
 0x132   : > { %19392 = vst [vmem:[#allocation58_spill] sm:$0xff] %v12150_v51 }
 0x133   : > { %19394 = vst [vmem:[#allocation60_spill] sm:$0xff] %v12160_v9 }
 0x134   : > { %19395 = vst [vmem:[#allocation61_spill] sm:$0xff] %v12168_v15 }
 0x135   : > { %9256 = vrot.lane.b32.xlu2 %v12058_v10, %s11549_s28  ;;  %v12178_v10 = vpack.i.bf16 %v8311_v36, %v8310_v61 }
 0x136   : > { %9251 = vrot.lane.b32.xlu1 %v12064_v16, %s11549_s28  ;;  %9246 = vrot.lane.b32.xlu0 %v12072_v39, %s11549_s28  ;;  %v8309_v16 = vld [vmem:[%s11604_s24 + $0x2f1] sm:$0xff]  ;;  %v8307_v39 = vld [vmem:[%s11604_s24 + $0x2d9] sm:$0xff] }
 0x137   : > { %v12170_v34 = vpop.permute.xlu2 %9091  ;;  %19399 = vst [vmem:[#allocation65_spill] sm:$0xff] %v12178_v10  ;;  %v12184_v8 = vpack.i.bf16 %v8309_v16, %v8308_v52  ;;  %v8312_v52 = vld [vmem:[%s11604_s24 + $0x319] sm:$0xff] }
 0x138   : > { %19396 = vst [vmem:[#allocation62_spill] sm:$0xff] %v12170_v34  ;;  %v12172_v51 = vpop.permute.xlu1 %9041  ;;  %v12174_v14 = vpop.permute.xlu0 %9036  ;;  %v8314_v34 = vld [vmem:[%s11604_s24 + $0x331] sm:$0xff] }
 0x139   : > { %19397 = vst [vmem:[#allocation63_spill] sm:$0xff] %v12172_v51 }
 0x13a   : > { %19398 = vst [vmem:[#allocation64_spill] sm:$0xff] %v12174_v14  ;;  %v12192_v14 = vpack.i.bf16 %v8307_v39, %v8306_v23 }
 0x13b   : > { %19400 = vst [vmem:[#allocation66_spill] sm:$0xff] %v12184_v8 }
 0x13c   : > { %19401 = vst [vmem:[#allocation67_spill] sm:$0xff] %v12192_v14 }
 0x13d   : > { %9271 = vrot.lane.b32.xlu2 %v12082_v62, %s11549_s28  ;;  %v8315_v62 = vld [vmem:[%s11604_s24 + $0x339] sm:$0xff] }
 0x13e   : > { %9266 = vrot.lane.b32.xlu1 %v12088_v19, %s11549_s28  ;;  %9261 = vrot.lane.b32.xlu0 %v12096_v28, %s11549_s28  ;;  %v12204_v16 = vpack.i.bf16 %v8315_v62, %v8314_v34  ;;  %v8313_v19 = vld [vmem:[%s11604_s24 + $0x321] sm:$0xff] }
 0x13f   : > { %v12194_v61 = vpop.permute.xlu2 %9106  ;;  %v12212_v39 = vpack.i.bf16 %v8313_v19, %v8312_v52 }
 0x140   : > { %19402 = vst [vmem:[#allocation68_spill] sm:$0xff] %v12194_v61  ;;  %v12196_v36 = vpop.permute.xlu1 %9056  ;;  %v12198_v51 = vpop.permute.xlu0 %9051 }
 0x141   : > { %19403 = vst [vmem:[#allocation69_spill] sm:$0xff] %v12196_v36 }
 0x142   : > { %19404 = vst [vmem:[#allocation70_spill] sm:$0xff] %v12198_v51  ;;  %v8714_v51 = vunpack.i.h.bf16 %v11772_v30 }
 0x143   : > { %19405 = vst [vmem:[#allocation71_spill] sm:$0xff] %v12204_v16 }
 0x144   : > { %19406 = vst [vmem:[#allocation72_spill] sm:$0xff] %v12212_v39 }
 0x145   : > { %9286 = vrot.lane.b32.xlu2 %v12106_v38, %s11549_s28 }
 0x146   : > { %9281 = vrot.lane.b32.xlu1 %v12112_v45, %s11549_s28  ;;  %9276 = vrot.lane.b32.xlu0 %v12120_v26, %s11549_s28 }
 0x147   : > { %v12214_v23 = vpop.permute.xlu2 %9121 }
 0x148   : > { %19407 = vst [vmem:[#allocation73_spill] sm:$0xff] %v12214_v23  ;;  %v12216_v28 = vpop.permute.xlu1 %9071  ;;  %v12218_v61 = vpop.permute.xlu0 %9066  ;;  %v8723_v23 = vunpack.i.l.bf16 %v11770_v29 }
 0x149   : > { %19408 = vst [vmem:[#allocation74_spill] sm:$0xff] %v12216_v28  ;;  %v8463_v28 = vld [vmem:[%s11604_s24 + $0x111] sm:$0xff] }
 0x14a   : > { %19409 = vst [vmem:[#allocation75_spill] sm:$0xff] %v12218_v61  ;;  %v11428_v61 = vld [vmem:[%s11604_s24 + $0x68] sm:$0xff] }
 0x14d   : > { %9301 = vrot.lane.b32.xlu2 %v12130_v49, %s11549_s28 }
 0x14e   : > { %9296 = vrot.lane.b32.xlu1 %v12136_v53, %s11549_s28  ;;  %9291 = vrot.lane.b32.xlu0 %v12144_v2, %s11549_s28 }
 0x14f   : > { %v12226_v62 = vpop.permute.xlu2 %9136 }
 0x150   : > { %19410 = vst [vmem:[#allocation76_spill] sm:$0xff] %v12226_v62  ;;  %v12228_v19 = vpop.permute.xlu1 %9086  ;;  %v12230_v34 = vpop.permute.xlu0 %9081  ;;  %v8457_v62 = vld [vmem:[%s11604_s24 + $0xc9] sm:$0xff] }
 0x151   : > { %19411 = vst [vmem:[#allocation77_spill] sm:$0xff] %v12228_v19  ;;  %v8456_v19 = vld [vmem:[%s11604_s24 + $0xc1] sm:$0xff] }
 0x152   : > { %19412 = vst [vmem:[#allocation78_spill] sm:$0xff] %v12230_v34  ;;  %v8459_v34 = vld [vmem:[%s11604_s24 + $0xe1] sm:$0xff] }
 0x155   : > { %9316 = vrot.lane.b32.xlu2 %v12154_v60, %s11549_s28  ;;  %v8316_v60 = vld [vmem:[%s11604_s24 + $0x1a] sm:$0xff] }
 0x156   : > { %9311 = vrot.lane.b32.xlu1 %v12160_v9, %s11549_s28  ;;  %9306 = vrot.lane.b32.xlu0 %v12168_v15, %s11549_s28  ;;  %v8317_v9 = vld [vmem:[%s11604_s24 + $0x22] sm:$0xff] }
 0x157   : > { %v12238_v52 = vpop.permute.xlu2 %9151  ;;  %v9345_v45 = vpack.i.bf16 %v8317_v9, %v8316_v60  ;;  %v8318_v60 = vld [vmem:[%s11604_s24 + $0x32] sm:$0xff] }
 0x158   : > { %19413 = vst [vmem:[#allocation79_spill] sm:$0xff] %v12238_v52  ;;  %v12240_v49 = vpop.permute.xlu1 %9101  ;;  %v12242_v38 = vpop.permute.xlu0 %9096 }
 0x159   : > { %19414 = vst [vmem:[#allocation80_spill] sm:$0xff] %v12240_v49  ;;  %v8326_v49 = vld [vmem:[%s11604_s24 + $0x92] sm:$0xff] }
 0x15a   : > { %19415 = vst [vmem:[#allocation81_spill] sm:$0xff] %v12242_v38 }
 0x15d   : > { %9331 = vrot.lane.b32.xlu2 %v12178_v10, %s11549_s28  ;;  %v8322_v10 = vld [vmem:[%s11604_s24 + $0x62] sm:$0xff] }
 0x15e   : > { %9326 = vrot.lane.b32.xlu1 %v12184_v8, %s11549_s28  ;;  %9321 = vrot.lane.b32.xlu0 %v12192_v14, %s11549_s28  ;;  %v8323_v8 = vld [vmem:[%s11604_s24 + $0x6a] sm:$0xff] }
 0x15f   : > { %v12252_v15 = vpop.permute.xlu2 %9166  ;;  %v8320_v14 = vld [vmem:[%s11604_s24 + $0x4a] sm:$0xff] }
 0x160   : > { %19416 = vst [vmem:[#allocation82_spill] sm:$0xff] %v12252_v15  ;;  %v12254_v53 = vpop.permute.xlu1 %9116  ;;  %v12256_v2 = vpop.permute.xlu0 %9111 }
 0x161   : > { %19417 = vst [vmem:[#allocation83_spill] sm:$0xff] %v12254_v53 }
 0x162   : > { %19418 = vst [vmem:[#allocation84_spill] sm:$0xff] %v12256_v2  ;;  %v8321_v2 = vld [vmem:[%s11604_s24 + $0x52] sm:$0xff] }
 0x163   : > { %v9355_v15 = vpack.i.bf16 %v8321_v2, %v8320_v14  ;;  %v8325_v14 = vld [vmem:[%s11604_s24 + $0x82] sm:$0xff] }
 0x165   : > { %9346 = vrot.lane.b32.xlu2 %v9345_v45, %s11550_s29  ;;  %v8319_v45 = vld [vmem:[%s11604_s24 + $0x3a] sm:$0xff] }
 0x166   : > { %9341 = vrot.lane.b32.xlu1 %v12204_v16, %s11549_s28  ;;  %9336 = vrot.lane.b32.xlu0 %v12212_v39, %s11549_s28  ;;  %v9360_v16 = vpack.i.bf16 %v8323_v8, %v8322_v10  ;;  %v9350_v38 = vpack.i.bf16 %v8319_v45, %v8318_v60  ;;  %v8328_v39 = vld [vmem:[%s11604_s24 + $0xaa] sm:$0xff]  ;;  %v8324_v10 = vld [vmem:[%s11604_s24 + $0x7a] sm:$0xff] }
 0x167   : > { %v12266_v26 = vpop.permute.xlu2 %9181  ;;  %v9365_v60 = vpack.i.bf16 %v8325_v14, %v8324_v10  ;;  %v8335_v45 = vld [vmem:[%s11604_s24 + $0xfa] sm:$0xff] }
 0x168   : > { %19419 = vst [vmem:[#allocation85_spill] sm:$0xff] %v12266_v26  ;;  %v12271_v9 = vpop.permute.xlu1 %9131  ;;  %v12273_v53 = vpop.permute.xlu0 %9126  ;;  %v8329_v26 = vld [vmem:[%s11604_s24 + $0xb2] sm:$0xff] }
 0x169   : > { %19420 = vst [vmem:[#allocation86_spill] sm:$0xff] %v12271_v9  ;;  %v8327_v9 = vld [vmem:[%s11604_s24 + $0x9a] sm:$0xff] }
 0x16a   : > { %19421 = vst [vmem:[#allocation87_spill] sm:$0xff] %v12273_v53 }
 0x16d   : > { %9361 = vrot.lane.b32.xlu2 %v9360_v16, %s11550_s29  ;;  %v9375_v16 = vpack.i.bf16 %v8329_v26, %v8328_v39  ;;  %v8330_v26 = vld [vmem:[%s11604_s24 + $0xc2] sm:$0xff] }
 0x16e   : > { %9356 = vrot.lane.b32.xlu1 %v9355_v15, %s11550_s29  ;;  %9351 = vrot.lane.b32.xlu0 %v9350_v38, %s11550_s29  ;;  %v9370_v15 = vpack.i.bf16 %v8327_v9, %v8326_v49  ;;  %v8334_v38 = vld [vmem:[%s11604_s24 + $0xf2] sm:$0xff]  ;;  %v8331_v49 = vld [vmem:[%s11604_s24 + $0xca] sm:$0xff] }
 0x16f   : > { %v12281_v52 = vpop.permute.xlu2 %9196  ;;  %v9390_v10 = vpack.i.bf16 %v8335_v45, %v8334_v38  ;;  %v8336_v38 = vld [vmem:[%s11604_s24 + $0x10a] sm:$0xff] }
 0x170   : > { %19422 = vst [vmem:[#allocation88_spill] sm:$0xff] %v12281_v52  ;;  %v12286_v2 = vpop.permute.xlu1 %9146  ;;  %v12288_v8 = vpop.permute.xlu0 %9141  ;;  %v8332_v52 = vld [vmem:[%s11604_s24 + $0xda] sm:$0xff] }
 0x171   : > { %19423 = vst [vmem:[#allocation89_spill] sm:$0xff] %v12286_v2  ;;  %v8333_v2 = vld [vmem:[%s11604_s24 + $0xe2] sm:$0xff] }
 0x172   : > { %19424 = vst [vmem:[#allocation90_spill] sm:$0xff] %v12288_v8  ;;  %v9385_v14 = vpack.i.bf16 %v8333_v2, %v8332_v52  ;;  %v8337_v52 = vld [vmem:[%s11604_s24 + $0x112] sm:$0xff] }
 0x175   : > { %9376 = vrot.lane.b32.xlu2 %v9375_v16, %s11550_s29  ;;  %v9380_v16 = vpack.i.bf16 %v8331_v49, %v8330_v26 }
 0x176   : > { %9371 = vrot.lane.b32.xlu1 %v9370_v15, %s11550_s29  ;;  %9366 = vrot.lane.b32.xlu0 %v9365_v60, %s11550_s29  ;;  %v8340_v15 = vld [vmem:[%s11604_s24 + $0x13a] sm:$0xff]  ;;  %v8341_v60 = vld [vmem:[%s11604_s24 + $0x142] sm:$0xff] }
 0x177   : > { %v12296_v53 = vpop.permute.xlu2 %9211  ;;  %v9405_v26 = vpack.i.bf16 %v8341_v60, %v8340_v15  ;;  %v8342_v15 = vld [vmem:[%s11604_s24 + $0x152] sm:$0xff] }
 0x178   : > { %19425 = vst [vmem:[#allocation91_spill] sm:$0xff] %v12296_v53  ;;  %v12301_v39 = vpop.permute.xlu1 %9161  ;;  %v12303_v9 = vpop.permute.xlu0 %9156  ;;  %v8338_v53 = vld [vmem:[%s11604_s24 + $0x122] sm:$0xff] }
 0x179   : > { %19426 = vst [vmem:[#allocation92_spill] sm:$0xff] %v12301_v39  ;;  %v8339_v39 = vld [vmem:[%s11604_s24 + $0x12a] sm:$0xff] }
 0x17a   : > { %19427 = vst [vmem:[#allocation93_spill] sm:$0xff] %v12303_v9  ;;  %v9400_v49 = vpack.i.bf16 %v8339_v39, %v8338_v53  ;;  %v8343_v53 = vld [vmem:[%s11604_s24 + $0x15a] sm:$0xff] }
 0x17d   : > { %9391 = vrot.lane.b32.xlu2 %v9390_v10, %s11550_s29  ;;  %v9395_v10 = vpack.i.bf16 %v8337_v52, %v8336_v38 }
 0x17e   : > { %9386 = vrot.lane.b32.xlu1 %v9385_v14, %s11550_s29  ;;  %9381 = vrot.lane.b32.xlu0 %v9380_v16, %s11550_s29  ;;  %v8346_v14 = vld [vmem:[%s11604_s24 + $0x182] sm:$0xff]  ;;  %v8347_v16 = vld [vmem:[%s11604_s24 + $0x18a] sm:$0xff] }
 0x17f   : > { %v12311_v8 = vpop.permute.xlu2 %9226  ;;  %v9420_v38 = vpack.i.bf16 %v8347_v16, %v8346_v14  ;;  %v8348_v14 = vld [vmem:[%s11604_s24 + $0x1ca] sm:$0xff] }
 0x180   : > { %19428 = vst [vmem:[#allocation94_spill] sm:$0xff] %v12311_v8  ;;  %v12316_v2 = vpop.permute.xlu1 %9176  ;;  %v12318_v45 = vpop.permute.xlu0 %9171  ;;  %v8344_v8 = vld [vmem:[%s11604_s24 + $0x16a] sm:$0xff] }
 0x181   : > { %19429 = vst [vmem:[#allocation95_spill] sm:$0xff] %v12316_v2  ;;  %v8345_v2 = vld [vmem:[%s11604_s24 + $0x172] sm:$0xff] }
 0x182   : > { %19430 = vst [vmem:[#allocation96_spill] sm:$0xff] %v12318_v45  ;;  %v9415_v52 = vpack.i.bf16 %v8345_v2, %v8344_v8  ;;  %v8349_v8 = vld [vmem:[%s11604_s24 + $0x1d2] sm:$0xff] }
 0x185   : > { %9406 = vrot.lane.b32.xlu2 %v9405_v26, %s11550_s29  ;;  %v9410_v26 = vpack.i.bf16 %v8343_v53, %v8342_v15 }
 0x186   : > { %9401 = vrot.lane.b32.xlu1 %v9400_v49, %s11550_s29  ;;  %9396 = vrot.lane.b32.xlu0 %v9395_v10, %s11550_s29  ;;  %v8352_v49 = vld [vmem:[%s11604_s24 + $0x1fa] sm:$0xff]  ;;  %v8353_v10 = vld [vmem:[%s11604_s24 + $0x202] sm:$0xff] }
 0x187   : > { %v12326_v9 = vpop.permute.xlu2 %9241  ;;  %v9435_v15 = vpack.i.bf16 %v8353_v10, %v8352_v49  ;;  %v8354_v49 = vld [vmem:[%s11604_s24 + $0x212] sm:$0xff] }
 0x188   : > { %19431 = vst [vmem:[#allocation97_spill] sm:$0xff] %v12326_v9  ;;  %v12331_v39 = vpop.permute.xlu1 %9191  ;;  %v12333_v60 = vpop.permute.xlu0 %9186  ;;  %v8350_v9 = vld [vmem:[%s11604_s24 + $0x1e2] sm:$0xff] }
 0x189   : > { %19432 = vst [vmem:[#allocation98_spill] sm:$0xff] %v12331_v39  ;;  %v8351_v39 = vld [vmem:[%s11604_s24 + $0x1ea] sm:$0xff] }
 0x18a   : > { %19433 = vst [vmem:[#allocation99_spill] sm:$0xff] %v12333_v60  ;;  %v9430_v53 = vpack.i.bf16 %v8351_v39, %v8350_v9  ;;  %v8355_v9 = vld [vmem:[%s11604_s24 + $0x21a] sm:$0xff] }
 0x18d   : > { %9421 = vrot.lane.b32.xlu2 %v9420_v38, %s11550_s29  ;;  %v9425_v38 = vpack.i.bf16 %v8349_v8, %v8348_v14 }
 0x18e   : > { %9416 = vrot.lane.b32.xlu1 %v9415_v52, %s11550_s29  ;;  %9411 = vrot.lane.b32.xlu0 %v9410_v26, %s11550_s29  ;;  %v8358_v52 = vld [vmem:[%s11604_s24 + $0x242] sm:$0xff]  ;;  %v8359_v26 = vld [vmem:[%s11604_s24 + $0x24a] sm:$0xff] }
 0x18f   : > { %v12341_v45 = vpop.permute.xlu2 %9256  ;;  %v9450_v14 = vpack.i.bf16 %v8359_v26, %v8358_v52  ;;  %v8360_v52 = vld [vmem:[%s11604_s24 + $0x25a] sm:$0xff] }
 0x190   : > { %19434 = vst [vmem:[#allocation100_spill] sm:$0xff] %v12341_v45  ;;  %v12346_v2 = vpop.permute.xlu1 %9206  ;;  %v12348_v16 = vpop.permute.xlu0 %9201  ;;  %v8356_v45 = vld [vmem:[%s11604_s24 + $0x22a] sm:$0xff] }
 0x191   : > { %19435 = vst [vmem:[#allocation101_spill] sm:$0xff] %v12346_v2  ;;  %v8357_v2 = vld [vmem:[%s11604_s24 + $0x232] sm:$0xff] }
 0x192   : > { %19436 = vst [vmem:[#allocation102_spill] sm:$0xff] %v12348_v16  ;;  %v9445_v8 = vpack.i.bf16 %v8357_v2, %v8356_v45  ;;  %v8361_v45 = vld [vmem:[%s11604_s24 + $0x262] sm:$0xff] }
 0x195   : > { %9436 = vrot.lane.b32.xlu2 %v9435_v15, %s11550_s29  ;;  %v9440_v15 = vpack.i.bf16 %v8355_v9, %v8354_v49 }
 0x196   : > { %9431 = vrot.lane.b32.xlu1 %v9430_v53, %s11550_s29  ;;  %9426 = vrot.lane.b32.xlu0 %v9425_v38, %s11550_s29  ;;  %v8364_v53 = vld [vmem:[%s11604_s24 + $0x28a] sm:$0xff]  ;;  %v8365_v38 = vld [vmem:[%s11604_s24 + $0x292] sm:$0xff] }
 0x197   : > { %v12356_v60 = vpop.permute.xlu2 %9271  ;;  %v9465_v49 = vpack.i.bf16 %v8365_v38, %v8364_v53  ;;  %v8366_v53 = vld [vmem:[%s11604_s24 + $0x2a2] sm:$0xff] }
 0x198   : > { %19437 = vst [vmem:[#allocation103_spill] sm:$0xff] %v12356_v60  ;;  %v12361_v39 = vpop.permute.xlu1 %9221  ;;  %v12363_v10 = vpop.permute.xlu0 %9216  ;;  %v8362_v60 = vld [vmem:[%s11604_s24 + $0x272] sm:$0xff] }
 0x199   : > { %19438 = vst [vmem:[#allocation104_spill] sm:$0xff] %v12361_v39  ;;  %v8363_v39 = vld [vmem:[%s11604_s24 + $0x27a] sm:$0xff] }
 0x19a   : > { %19439 = vst [vmem:[#allocation105_spill] sm:$0xff] %v12363_v10  ;;  %v9460_v9 = vpack.i.bf16 %v8363_v39, %v8362_v60  ;;  %v8367_v60 = vld [vmem:[%s11604_s24 + $0x2aa] sm:$0xff] }
 0x19d   : > { %9451 = vrot.lane.b32.xlu2 %v9450_v14, %s11550_s29  ;;  %v9455_v14 = vpack.i.bf16 %v8361_v45, %v8360_v52 }
 0x19e   : > { %9446 = vrot.lane.b32.xlu1 %v9445_v8, %s11550_s29  ;;  %9441 = vrot.lane.b32.xlu0 %v9440_v15, %s11550_s29  ;;  %v8370_v8 = vld [vmem:[%s11604_s24 + $0x2d2] sm:$0xff]  ;;  %v8371_v15 = vld [vmem:[%s11604_s24 + $0x2da] sm:$0xff] }
 0x19f   : > { %v12371_v16 = vpop.permute.xlu2 %9286  ;;  %v9480_v52 = vpack.i.bf16 %v8371_v15, %v8370_v8  ;;  %v8372_v8 = vld [vmem:[%s11604_s24 + $0x2ea] sm:$0xff] }
 0x1a0   : > { %19440 = vst [vmem:[#allocation106_spill] sm:$0xff] %v12371_v16  ;;  %v12376_v2 = vpop.permute.xlu1 %9236  ;;  %v12378_v26 = vpop.permute.xlu0 %9231  ;;  %v8368_v16 = vld [vmem:[%s11604_s24 + $0x2ba] sm:$0xff] }
 0x1a1   : > { %19441 = vst [vmem:[#allocation107_spill] sm:$0xff] %v12376_v2  ;;  %v8369_v2 = vld [vmem:[%s11604_s24 + $0x2c2] sm:$0xff] }
 0x1a2   : > { %19442 = vst [vmem:[#allocation108_spill] sm:$0xff] %v12378_v26  ;;  %v9475_v45 = vpack.i.bf16 %v8369_v2, %v8368_v16  ;;  %v8373_v16 = vld [vmem:[%s11604_s24 + $0x2f2] sm:$0xff] }
 0x1a5   : > { %9466 = vrot.lane.b32.xlu2 %v9465_v49, %s11550_s29  ;;  %v9470_v49 = vpack.i.bf16 %v8367_v60, %v8366_v53 }
 0x1a6   : > { %9461 = vrot.lane.b32.xlu1 %v9460_v9, %s11550_s29  ;;  %9456 = vrot.lane.b32.xlu0 %v9455_v14, %s11550_s29  ;;  %v8376_v9 = vld [vmem:[%s11604_s24 + $0x31a] sm:$0xff]  ;;  %v8377_v14 = vld [vmem:[%s11604_s24 + $0x322] sm:$0xff] }
 0x1a7   : > { %v12386_v10 = vpop.permute.xlu2 %9301  ;;  %v9495_v53 = vpack.i.bf16 %v8377_v14, %v8376_v9 }
 0x1a8   : > { %19443 = vst [vmem:[#allocation109_spill] sm:$0xff] %v12386_v10  ;;  %v12391_v39 = vpop.permute.xlu1 %9251  ;;  %v12393_v38 = vpop.permute.xlu0 %9246  ;;  %v8374_v10 = vld [vmem:[%s11604_s24 + $0x302] sm:$0xff] }
 0x1a9   : > { %19444 = vst [vmem:[#allocation110_spill] sm:$0xff] %v12391_v39  ;;  %v8375_v39 = vld [vmem:[%s11604_s24 + $0x30a] sm:$0xff] }
 0x1aa   : > { %19445 = vst [vmem:[#allocation111_spill] sm:$0xff] %v12393_v38  ;;  %v9490_v60 = vpack.i.bf16 %v8375_v39, %v8374_v10  ;;  %v8379_v10 = vld [vmem:[%s11604_s24 + $0x33a] sm:$0xff] }
 0x1ad   : > { %9481 = vrot.lane.b32.xlu2 %v9480_v52, %s11550_s29  ;;  %v9485_v52 = vpack.i.bf16 %v8373_v16, %v8372_v8 }
 0x1ae   : > { %9476 = vrot.lane.b32.xlu1 %v9475_v45, %s11550_s29  ;;  %9471 = vrot.lane.b32.xlu0 %v9470_v49, %s11550_s29  ;;  %v8382_v45 = vld [vmem:[%s11604_s24 + $0x48] sm:$0xff]  ;;  %v8383_v49 = vld [vmem:[%s11604_s24 + $0x50] sm:$0xff] }
 0x1af   : > { %v12401_v26 = vpop.permute.xlu2 %9316  ;;  %v9510_v14 = vpack.i.bf16 %v8383_v49, %v8382_v45 }
 0x1b0   : > { %19446 = vst [vmem:[#allocation112_spill] sm:$0xff] %v12401_v26  ;;  %v12406_v2 = vpop.permute.xlu1 %9266  ;;  %v12408_v15 = vpop.permute.xlu0 %9261  ;;  %v8380_v26 = vld [vmem:[%s11604_s24 + $0x30] sm:$0xff] }
 0x1b1   : > { %19447 = vst [vmem:[#allocation113_spill] sm:$0xff] %v12406_v2  ;;  %v8381_v2 = vld [vmem:[%s11604_s24 + $0x38] sm:$0xff] }
 0x1b2   : > { %19448 = vst [vmem:[#allocation114_spill] sm:$0xff] %v12408_v15  ;;  %v8378_v15 = vld [vmem:[%s11604_s24 + $0x332] sm:$0xff]  ;;  %v9505_v8 = vpack.i.bf16 %v8381_v2, %v8380_v26  ;;  %v8384_v26 = vld [vmem:[%s11604_s24 + $0x60] sm:$0xff]  ;;  %v8385_v2 = vld [vmem:[%s11604_s24 + $0x68] sm:$0xff] }
 0x1b3   : > { %v9500_v16 = vpack.i.bf16 %v8379_v10, %v8378_v15 }
 0x1b5   : > { %9496 = vrot.lane.b32.xlu2 %v9495_v53, %s11550_s29  ;;  %v8388_v53 = vld [vmem:[%s11604_s24 + $0x90] sm:$0xff] }
 0x1b6   : > { %9491 = vrot.lane.b32.xlu1 %v9490_v60, %s11550_s29  ;;  %9486 = vrot.lane.b32.xlu0 %v9485_v52, %s11550_s29  ;;  %v8389_v60 = vld [vmem:[%s11604_s24 + $0x98] sm:$0xff] }
 0x1b7   : > { %v12416_v38 = vpop.permute.xlu2 %9331  ;;  %v8386_v52 = vld [vmem:[%s11604_s24 + $0x78] sm:$0xff]  ;;  %v9525_v49 = vpack.i.bf16 %v8389_v60, %v8388_v53  ;;  %v8390_v53 = vld [vmem:[%s11604_s24 + $0xa8] sm:$0xff] }
 0x1b8   : > { %19449 = vst [vmem:[#allocation115_spill] sm:$0xff] %v12416_v38  ;;  %v12421_v39 = vpop.permute.xlu1 %9281  ;;  %v12423_v9 = vpop.permute.xlu0 %9276 }
 0x1b9   : > { %19450 = vst [vmem:[#allocation116_spill] sm:$0xff] %v12421_v39 }
 0x1ba   : > { %19451 = vst [vmem:[#allocation117_spill] sm:$0xff] %v12423_v9  ;;  %v8387_v9 = vld [vmem:[%s11604_s24 + $0x80] sm:$0xff] }
 0x1bb   : > { %v9520_v10 = vpack.i.bf16 %v8387_v9, %v8386_v52  ;;  %v8391_v9 = vld [vmem:[%s11604_s24 + $0xb0] sm:$0xff] }
 0x1bd   : > { %9511 = vrot.lane.b32.xlu2 %v9510_v14, %s11551_s30  ;;  %v9515_v14 = vpack.i.bf16 %v8385_v2, %v8384_v26 }
 0x1be   : > { %9506 = vrot.lane.b32.xlu1 %v9505_v8, %s11551_s30  ;;  %9501 = vrot.lane.b32.xlu0 %v9500_v16, %s11550_s29  ;;  %v8394_v8 = vld [vmem:[%s11604_s24 + $0xd8] sm:$0xff]  ;;  %v8395_v16 = vld [vmem:[%s11604_s24 + $0xe0] sm:$0xff] }
 0x1bf   : > { %v12431_v38 = vpop.permute.xlu2 %9346  ;;  %v9540_v26 = vpack.i.bf16 %v8395_v16, %v8394_v8  ;;  %v8396_v8 = vld [vmem:[%s11604_s24 + $0xf0] sm:$0xff] }
 0x1c0   : > { %19452 = vst [vmem:[#allocation118_spill] sm:$0xff] %v12431_v38  ;;  %v12436_v15 = vpop.permute.xlu1 %9296  ;;  %v12438_v45 = vpop.permute.xlu0 %9291  ;;  %v8392_v38 = vld [vmem:[%s11604_s24 + $0xc0] sm:$0xff] }
 0x1c1   : > { %19453 = vst [vmem:[#allocation119_spill] sm:$0xff] %v12436_v15  ;;  %v8393_v15 = vld [vmem:[%s11604_s24 + $0xc8] sm:$0xff] }
 0x1c2   : > { %19454 = vst [vmem:[#allocation120_spill] sm:$0xff] %v12438_v45  ;;  %v9535_v2 = vpack.i.bf16 %v8393_v15, %v8392_v38  ;;  %v8397_v38 = vld [vmem:[%s11604_s24 + $0xf8] sm:$0xff] }
 0x1c5   : > { %9526 = vrot.lane.b32.xlu2 %v9525_v49, %s11551_s30  ;;  %v9530_v49 = vpack.i.bf16 %v8391_v9, %v8390_v53 }
 0x1c6   : > { %9521 = vrot.lane.b32.xlu1 %v9520_v10, %s11551_s30  ;;  %9516 = vrot.lane.b32.xlu0 %v9515_v14, %s11551_s30  ;;  %v8400_v10 = vld [vmem:[%s11604_s24 + $0x120] sm:$0xff]  ;;  %v8401_v14 = vld [vmem:[%s11604_s24 + $0x128] sm:$0xff] }
 0x1c7   : > { %v12446_v39 = vpop.permute.xlu2 %9361  ;;  %v9555_v53 = vpack.i.bf16 %v8401_v14, %v8400_v10  ;;  %v8402_v10 = vld [vmem:[%s11604_s24 + $0x138] sm:$0xff] }
 0x1c8   : > { %19455 = vst [vmem:[#allocation121_spill] sm:$0xff] %v12446_v39  ;;  %v12451_v60 = vpop.permute.xlu1 %9311  ;;  %v12453_v52 = vpop.permute.xlu0 %9306  ;;  %v8398_v39 = vld [vmem:[%s11604_s24 + $0x108] sm:$0xff] }
 0x1c9   : > { %19456 = vst [vmem:[#allocation122_spill] sm:$0xff] %v12451_v60  ;;  %v8399_v60 = vld [vmem:[%s11604_s24 + $0x110] sm:$0xff] }
 0x1ca   : > { %19457 = vst [vmem:[#allocation123_spill] sm:$0xff] %v12453_v52  ;;  %v9550_v9 = vpack.i.bf16 %v8399_v60, %v8398_v39  ;;  %v8403_v39 = vld [vmem:[%s11604_s24 + $0x140] sm:$0xff] }
 0x1cd   : > { %9541 = vrot.lane.b32.xlu2 %v9540_v26, %s11551_s30  ;;  %v9545_v26 = vpack.i.bf16 %v8397_v38, %v8396_v8 }
 0x1ce   : > { %9536 = vrot.lane.b32.xlu1 %v9535_v2, %s11551_s30  ;;  %9531 = vrot.lane.b32.xlu0 %v9530_v49, %s11551_s30  ;;  %v8406_v2 = vld [vmem:[%s11604_s24 + $0x168] sm:$0xff]  ;;  %v8407_v49 = vld [vmem:[%s11604_s24 + $0x170] sm:$0xff] }
 0x1cf   : > { %v12461_v45 = vpop.permute.xlu2 %9376  ;;  %v9570_v8 = vpack.i.bf16 %v8407_v49, %v8406_v2  ;;  %v8408_v2 = vld [vmem:[%s11604_s24 + $0x180] sm:$0xff] }
 0x1d0   : > { %19458 = vst [vmem:[#allocation124_spill] sm:$0xff] %v12461_v45  ;;  %v12466_v15 = vpop.permute.xlu1 %9326  ;;  %v12468_v16 = vpop.permute.xlu0 %9321  ;;  %v8404_v45 = vld [vmem:[%s11604_s24 + $0x150] sm:$0xff] }
 0x1d1   : > { %19459 = vst [vmem:[#allocation125_spill] sm:$0xff] %v12466_v15  ;;  %v8405_v15 = vld [vmem:[%s11604_s24 + $0x158] sm:$0xff] }
 0x1d2   : > { %19460 = vst [vmem:[#allocation126_spill] sm:$0xff] %v12468_v16  ;;  %v9565_v38 = vpack.i.bf16 %v8405_v15, %v8404_v45  ;;  %v8409_v45 = vld [vmem:[%s11604_s24 + $0x188] sm:$0xff] }
 0x1d5   : > { %9556 = vrot.lane.b32.xlu2 %v9555_v53, %s11551_s30  ;;  %v9560_v53 = vpack.i.bf16 %v8403_v39, %v8402_v10 }
 0x1d6   : > { %9551 = vrot.lane.b32.xlu1 %v9550_v9, %s11551_s30  ;;  %9546 = vrot.lane.b32.xlu0 %v9545_v26, %s11551_s30  ;;  %v8412_v9 = vld [vmem:[%s11604_s24 + $0x1e0] sm:$0xff]  ;;  %v8413_v26 = vld [vmem:[%s11604_s24 + $0x1e8] sm:$0xff] }
 0x1d7   : > { %v12476_v52 = vpop.permute.xlu2 %9391  ;;  %v9585_v10 = vpack.i.bf16 %v8413_v26, %v8412_v9  ;;  %v8414_v9 = vld [vmem:[%s11604_s24 + $0x1f8] sm:$0xff] }
 0x1d8   : > { %19461 = vst [vmem:[#allocation127_spill] sm:$0xff] %v12476_v52  ;;  %v12481_v60 = vpop.permute.xlu1 %9341  ;;  %v12483_v14 = vpop.permute.xlu0 %9336  ;;  %v8410_v52 = vld [vmem:[%s11604_s24 + $0x198] sm:$0xff] }
 0x1d9   : > { %19462 = vst [vmem:[#allocation128_spill] sm:$0xff] %v12481_v60  ;;  %v8411_v60 = vld [vmem:[%s11604_s24 + $0x1a0] sm:$0xff] }
 0x1da   : > { %19463 = vst [vmem:[#allocation129_spill] sm:$0xff] %v12483_v14  ;;  %v9580_v39 = vpack.i.bf16 %v8411_v60, %v8410_v52  ;;  %v8415_v52 = vld [vmem:[%s11604_s24 + $0x200] sm:$0xff] }
 0x1dd   : > { %9571 = vrot.lane.b32.xlu2 %v9570_v8, %s11551_s30  ;;  %v9575_v8 = vpack.i.bf16 %v8409_v45, %v8408_v2 }
 0x1de   : > { %9566 = vrot.lane.b32.xlu1 %v9565_v38, %s11551_s30  ;;  %9561 = vrot.lane.b32.xlu0 %v9560_v53, %s11551_s30  ;;  %v8418_v38 = vld [vmem:[%s11604_s24 + $0x228] sm:$0xff]  ;;  %v8419_v53 = vld [vmem:[%s11604_s24 + $0x230] sm:$0xff] }
 0x1df   : > { %v12491_v16 = vpop.permute.xlu2 %9406  ;;  %v9600_v2 = vpack.i.bf16 %v8419_v53, %v8418_v38  ;;  %v8420_v38 = vld [vmem:[%s11604_s24 + $0x240] sm:$0xff] }
 0x1e0   : > { %19464 = vst [vmem:[#allocation130_spill] sm:$0xff] %v12491_v16  ;;  %v12496_v15 = vpop.permute.xlu1 %9356  ;;  %v12498_v49 = vpop.permute.xlu0 %9351  ;;  %v8416_v16 = vld [vmem:[%s11604_s24 + $0x210] sm:$0xff] }
 0x1e1   : > { %19465 = vst [vmem:[#allocation131_spill] sm:$0xff] %v12496_v15  ;;  %v8417_v15 = vld [vmem:[%s11604_s24 + $0x218] sm:$0xff] }
 0x1e2   : > { %19466 = vst [vmem:[#allocation132_spill] sm:$0xff] %v12498_v49  ;;  %v9595_v45 = vpack.i.bf16 %v8417_v15, %v8416_v16  ;;  %v8421_v16 = vld [vmem:[%s11604_s24 + $0x248] sm:$0xff] }
 0x1e5   : > { %9586 = vrot.lane.b32.xlu2 %v9585_v10, %s11551_s30  ;;  %v9590_v10 = vpack.i.bf16 %v8415_v52, %v8414_v9 }
 0x1e6   : > { %9581 = vrot.lane.b32.xlu1 %v9580_v39, %s11551_s30  ;;  %9576 = vrot.lane.b32.xlu0 %v9575_v8, %s11551_s30  ;;  %v8424_v39 = vld [vmem:[%s11604_s24 + $0x270] sm:$0xff]  ;;  %v8425_v8 = vld [vmem:[%s11604_s24 + $0x278] sm:$0xff] }
 0x1e7   : > { %v12506_v14 = vpop.permute.xlu2 %9421  ;;  %v9615_v9 = vpack.i.bf16 %v8425_v8, %v8424_v39  ;;  %v8426_v39 = vld [vmem:[%s11604_s24 + $0x288] sm:$0xff] }
 0x1e8   : > { %19467 = vst [vmem:[#allocation133_spill] sm:$0xff] %v12506_v14  ;;  %v12511_v60 = vpop.permute.xlu1 %9371  ;;  %v12513_v26 = vpop.permute.xlu0 %9366  ;;  %v8422_v14 = vld [vmem:[%s11604_s24 + $0x258] sm:$0xff] }
 0x1e9   : > { %19468 = vst [vmem:[#allocation134_spill] sm:$0xff] %v12511_v60  ;;  %v8423_v60 = vld [vmem:[%s11604_s24 + $0x260] sm:$0xff] }
 0x1ea   : > { %19469 = vst [vmem:[#allocation135_spill] sm:$0xff] %v12513_v26  ;;  %v9610_v52 = vpack.i.bf16 %v8423_v60, %v8422_v14  ;;  %v8427_v14 = vld [vmem:[%s11604_s24 + $0x290] sm:$0xff] }
 0x1ed   : > { %9601 = vrot.lane.b32.xlu2 %v9600_v2, %s11551_s30  ;;  %v9605_v2 = vpack.i.bf16 %v8421_v16, %v8420_v38 }
 0x1ee   : > { %9596 = vrot.lane.b32.xlu1 %v9595_v45, %s11551_s30  ;;  %9591 = vrot.lane.b32.xlu0 %v9590_v10, %s11551_s30  ;;  %v8430_v45 = vld [vmem:[%s11604_s24 + $0x2b8] sm:$0xff]  ;;  %v8431_v10 = vld [vmem:[%s11604_s24 + $0x2c0] sm:$0xff] }
 0x1ef   : > { %v12521_v49 = vpop.permute.xlu2 %9436  ;;  %v9630_v38 = vpack.i.bf16 %v8431_v10, %v8430_v45  ;;  %v8432_v45 = vld [vmem:[%s11604_s24 + $0x2d0] sm:$0xff] }
 0x1f0   : > { %19470 = vst [vmem:[#allocation136_spill] sm:$0xff] %v12521_v49  ;;  %v12526_v15 = vpop.permute.xlu1 %9386  ;;  %v12528_v53 = vpop.permute.xlu0 %9381  ;;  %v8428_v49 = vld [vmem:[%s11604_s24 + $0x2a0] sm:$0xff] }
 0x1f1   : > { %19471 = vst [vmem:[#allocation137_spill] sm:$0xff] %v12526_v15  ;;  %v8429_v15 = vld [vmem:[%s11604_s24 + $0x2a8] sm:$0xff] }
 0x1f2   : > { %19472 = vst [vmem:[#allocation138_spill] sm:$0xff] %v12528_v53  ;;  %v9625_v16 = vpack.i.bf16 %v8429_v15, %v8428_v49  ;;  %v8433_v49 = vld [vmem:[%s11604_s24 + $0x2d8] sm:$0xff] }
 0x1f5   : > { %9616 = vrot.lane.b32.xlu2 %v9615_v9, %s11551_s30  ;;  %v9620_v9 = vpack.i.bf16 %v8427_v14, %v8426_v39 }
 0x1f6   : > { %9611 = vrot.lane.b32.xlu1 %v9610_v52, %s11551_s30  ;;  %9606 = vrot.lane.b32.xlu0 %v9605_v2, %s11551_s30  ;;  %v8436_v52 = vld [vmem:[%s11604_s24 + $0x300] sm:$0xff]  ;;  %v8437_v2 = vld [vmem:[%s11604_s24 + $0x308] sm:$0xff] }
 0x1f7   : > { %v12536_v26 = vpop.permute.xlu2 %9451  ;;  %v9645_v39 = vpack.i.bf16 %v8437_v2, %v8436_v52  ;;  %v8438_v52 = vld [vmem:[%s11604_s24 + $0x318] sm:$0xff] }
 0x1f8   : > { %19473 = vst [vmem:[#allocation139_spill] sm:$0xff] %v12536_v26  ;;  %v12541_v60 = vpop.permute.xlu1 %9401  ;;  %v12543_v8 = vpop.permute.xlu0 %9396  ;;  %v8434_v26 = vld [vmem:[%s11604_s24 + $0x2e8] sm:$0xff] }
 0x1f9   : > { %19474 = vst [vmem:[#allocation140_spill] sm:$0xff] %v12541_v60  ;;  %v8435_v60 = vld [vmem:[%s11604_s24 + $0x2f0] sm:$0xff] }
 0x1fa   : > { %19475 = vst [vmem:[#allocation141_spill] sm:$0xff] %v12543_v8  ;;  %v9640_v14 = vpack.i.bf16 %v8435_v60, %v8434_v26  ;;  %v8439_v26 = vld [vmem:[%s11604_s24 + $0x320] sm:$0xff] }
 0x1fd   : > { %9631 = vrot.lane.b32.xlu2 %v9630_v38, %s11551_s30  ;;  %v9635_v38 = vpack.i.bf16 %v8433_v49, %v8432_v45 }
 0x1fe   : > { %9626 = vrot.lane.b32.xlu1 %v9625_v16, %s11551_s30  ;;  %9621 = vrot.lane.b32.xlu0 %v9620_v9, %s11551_s30  ;;  %v8442_v16 = vld [vmem:[%s11604_s24 + $0x348] sm:$0xff]  ;;  %v8443_v9 = vld [vmem:[%s11604_s24 + $0x350] sm:$0xff] }
 0x1ff   : > { %v12551_v53 = vpop.permute.xlu2 %9466  ;;  %v9660_v45 = vpack.i.bf16 %v8443_v9, %v8442_v16 }
 0x200   : > { %19476 = vst [vmem:[#allocation142_spill] sm:$0xff] %v12551_v53  ;;  %v12556_v15 = vpop.permute.xlu1 %9416  ;;  %v12558_v10 = vpop.permute.xlu0 %9411  ;;  %v8440_v53 = vld [vmem:[%s11604_s24 + $0x330] sm:$0xff] }
 0x201   : > { %19477 = vst [vmem:[#allocation143_spill] sm:$0xff] %v12556_v15  ;;  %v8441_v15 = vld [vmem:[%s11604_s24 + $0x338] sm:$0xff] }
 0x202   : > { %19478 = vst [vmem:[#allocation144_spill] sm:$0xff] %v12558_v10  ;;  %v9655_v49 = vpack.i.bf16 %v8441_v15, %v8440_v53  ;;  %v8445_v53 = vld [vmem:[%s11604_s24 + $0x39] sm:$0xff] }
 0x205   : > { %9646 = vrot.lane.b32.xlu2 %v9645_v39, %s11551_s30  ;;  %v9650_v39 = vpack.i.bf16 %v8439_v26, %v8438_v52 }
 0x206   : > { %9641 = vrot.lane.b32.xlu1 %v9640_v14, %s11551_s30  ;;  %9636 = vrot.lane.b32.xlu0 %v9635_v38, %s11551_s30  ;;  %v8448_v14 = vld [vmem:[%s11604_s24 + $0x61] sm:$0xff]  ;;  %v8449_v38 = vld [vmem:[%s11604_s24 + $0x69] sm:$0xff] }
 0x207   : > { %v12566_v8 = vpop.permute.xlu2 %9481  ;;  %v9675_v9 = vpack.i.bf16 %v8449_v38, %v8448_v14 }
 0x208   : > { %19479 = vst [vmem:[#allocation145_spill] sm:$0xff] %v12566_v8  ;;  %v12571_v60 = vpop.permute.xlu1 %9431  ;;  %v12573_v2 = vpop.permute.xlu0 %9426  ;;  %v8446_v8 = vld [vmem:[%s11604_s24 + $0x49] sm:$0xff] }
 0x209   : > { %19480 = vst [vmem:[#allocation146_spill] sm:$0xff] %v12571_v60  ;;  %v8447_v60 = vld [vmem:[%s11604_s24 + $0x51] sm:$0xff] }
 0x20a   : > { %19481 = vst [vmem:[#allocation147_spill] sm:$0xff] %v12573_v2  ;;  %v8444_v2 = vld [vmem:[%s11604_s24 + $0x31] sm:$0xff]  ;;  %v9670_v52 = vpack.i.bf16 %v8447_v60, %v8446_v8  ;;  %v8450_v8 = vld [vmem:[%s11604_s24 + $0x79] sm:$0xff]  ;;  %v8451_v60 = vld [vmem:[%s11604_s24 + $0x81] sm:$0xff] }
 0x20b   : > { %v9665_v26 = vpack.i.bf16 %v8445_v53, %v8444_v2 }
 0x20d   : > { %9661 = vrot.lane.b32.xlu2 %v9660_v45, %s11551_s30  ;;  %v8454_v45 = vld [vmem:[%s11604_s24 + $0xa9] sm:$0xff] }
 0x20e   : > { %9656 = vrot.lane.b32.xlu1 %v9655_v49, %s11551_s30  ;;  %9651 = vrot.lane.b32.xlu0 %v9650_v39, %s11551_s30  ;;  %v8455_v49 = vld [vmem:[%s11604_s24 + $0xb1] sm:$0xff] }
 0x20f   : > { %v12581_v10 = vpop.permute.xlu2 %9496  ;;  %v8452_v39 = vld [vmem:[%s11604_s24 + $0x91] sm:$0xff]  ;;  %v9690_v38 = vpack.i.bf16 %v8455_v49, %v8454_v45  ;;  %v8729_v45 = vunpack.i.h.bf16 %v11717_v47  ;;  %v8733_v49 = vunpack.i.l.bf16 %v11728_v57 }
 0x210   : > { %19482 = vst [vmem:[#allocation148_spill] sm:$0xff] %v12581_v10  ;;  %v12586_v15 = vpop.permute.xlu1 %9446  ;;  %v12588_v16 = vpop.permute.xlu0 %9441 }
 0x211   : > { %19483 = vst [vmem:[#allocation149_spill] sm:$0xff] %v12586_v15 }
 0x212   : > { %19484 = vst [vmem:[#allocation150_spill] sm:$0xff] %v12588_v16  ;;  %v8453_v16 = vld [vmem:[%s11604_s24 + $0x99] sm:$0xff] }
 0x213   : > { %v9685_v53 = vpack.i.bf16 %v8453_v16, %v8452_v39  ;;  %v8728_v16 = vunpack.i.l.bf16 %v11717_v47  ;;  %v8763_v47 = vunpack.i.l.bf16 %v11750_v13 }
 0x215   : > { %9676 = vrot.lane.b32.xlu2 %v9675_v9, %s11552_s6  ;;  %v9680_v9 = vpack.i.bf16 %v8451_v60, %v8450_v8  ;;  %v8734_v60 = vunpack.i.h.bf16 %v11728_v57 }
 0x216   : > { %9671 = vrot.lane.b32.xlu1 %v9670_v52, %s11552_s6  ;;  %9666 = vrot.lane.b32.xlu0 %v9665_v26, %s11552_s6  ;;  %v8460_v52 = vld [vmem:[%s11604_s24 + $0xf1] sm:$0xff]  ;;  %v8461_v26 = vld [vmem:[%s11604_s24 + $0xf9] sm:$0xff] }
 0x217   : > { %v12596_v10 = vpop.permute.xlu2 %9511 }
 0x218   : > { %19485 = vst [vmem:[#allocation151_spill] sm:$0xff] %v12596_v10  ;;  %v12601_v2 = vpop.permute.xlu1 %9461  ;;  %v12603_v14 = vpop.permute.xlu0 %9456  ;;  %v8458_v10 = vld [vmem:[%s11604_s24 + $0xd9] sm:$0xff] }
 0x219   : > { %19486 = vst [vmem:[#allocation152_spill] sm:$0xff] %v12601_v2  ;;  %v9695_v2 = vpack.i.bf16 %v8457_v62, %v8456_v19  ;;  %v11431_v19 = vld [vmem:[%s11604_s24 + $0xc0] sm:$0xff] }
 0x21a   : > { %19487 = vst [vmem:[#allocation153_spill] sm:$0xff] %v12603_v14  ;;  %v8764_v14 = vunpack.i.h.bf16 %v11750_v13  ;;  %v11430_v13 = vld [vmem:[%s11604_s24 + $0x80] sm:$0xff] }
 0x21b   : > { %v12643_v62 = vsel %vm2860_vm0, %v11430_v13, %v8734_v60  ;;  %v11434_v60 = vld [vmem:[%s11604_s24 + $0x110] sm:$0xff] }
 0x21d   : > { %9691 = vrot.lane.b32.xlu2 %v9690_v38, %s11552_s6  ;;  %v8749_v38 = vunpack.i.h.bf16 %v11739_v3 }
 0x21e   : > { %9686 = vrot.lane.b32.xlu1 %v9685_v53, %s11552_s6  ;;  %9681 = vrot.lane.b32.xlu0 %v9680_v9, %s11552_s6  ;;  %v8748_v53 = vunpack.i.l.bf16 %v11739_v3  ;;  %v9705_v9 = vpack.i.bf16 %v8461_v26, %v8460_v52  ;;  %v12635_v3 = vsel %vm2860_vm0, %v11428_v61, %v8729_v45  ;;  %v11429_v52 = vld [vmem:[%s11604_s24 + $0x78] sm:$0xff]  ;;  %v8719_v61 = vunpack.i.h.bf16 %v11755_v17 }
 0x21f   : > { %v12611_v15 = vpop.permute.xlu2 %9526  ;;  %v12639_v26 = vsel %vm2860_vm0, %v11429_v52, %v8733_v49  ;;  %v8466_v45 = vld [vmem:[%s11604_s24 + $0x139] sm:$0xff]  ;;  %v11433_v49 = vld [vmem:[%s11604_s24 + $0x108] sm:$0xff] }
 0x220   : > { %19488 = vst [vmem:[#allocation154_spill] sm:$0xff] %v12611_v15  ;;  %v12619_v39 = vpop.permute.xlu1 %9476  ;;  %v12621_v8 = vpop.permute.xlu0 %9471  ;;  %v9700_v15 = vpack.i.bf16 %v8459_v34, %v8458_v10  ;;  %v12647_v34 = vsel %vm2860_vm0, %v11431_v19, %v8748_v53  ;;  %v11432_v10 = vld [vmem:[%s11604_s24 + $0xc8] sm:$0xff]  ;;  %v12662_v53 = vsel %vm2860_vm0, %v11434_v60, %v8764_v14  ;;  %v8779_v19 = vunpack.i.h.bf16 %v11765_v25 }
 0x221   : > { %19489 = vst [vmem:[#allocation155_spill] sm:$0xff] %v12619_v39  ;;  %v8718_v39 = vunpack.i.l.bf16 %v11755_v17  ;;  %v8708_v17 = vunpack.i.l.bf16 %v11757_v18  ;;  %v8464_v52 = vld [vmem:[%s11604_s24 + $0x121] sm:$0xff]  ;;  %v8778_v14 = vunpack.i.l.bf16 %v11765_v25  ;;  %v8465_v60 = vld [vmem:[%s11604_s24 + $0x129] sm:$0xff] }
 0x222   : > { %19490 = vst [vmem:[#allocation156_spill] sm:$0xff] %v12621_v8  ;;  %v11427_v8 = vld [vmem:[%s11604_s24 + $0x60] sm:$0xff] }
 0x223   : > { %v12631_v57 = vsel %vm2860_vm0, %v11427_v8, %v8728_v16  ;;  %v12651_v16 = vsel %vm2860_vm0, %v11432_v10, %v8749_v38  ;;  %v12658_v8 = vsel %vm2860_vm0, %v11433_v49, %v8763_v47  ;;  %19492 = vst [vmem:[#allocation158_spill] sm:$0xff] %v12662_v53  ;;  %v8709_v38 = vunpack.i.h.bf16 %v11757_v18  ;;  %v11435_v47 = vld [vmem:[%s11604_s24 + $0x30] sm:$0xff] }
 0x224   : > { %19491 = vst [vmem:[#allocation157_spill] sm:$0xff] %v12658_v8  ;;  %v12672_v13 = vsel %vm2860_vm0, %v11435_v47, %v8718_v39  ;;  %v8724_v10 = vunpack.i.h.bf16 %v11770_v29  ;;  %v8462_v18 = vld [vmem:[%s11604_s24 + $0x109] sm:$0xff]  ;;  %v8713_v39 = vunpack.i.l.bf16 %v11772_v30  ;;  %v8794_v47 = vunpack.i.h.bf16 %v11780_v37  ;;  %v11436_v8 = vld [vmem:[%s11604_s24 + $0x38] sm:$0xff] }
 0x225   : > { %9706 = vrot.lane.b32.xlu2 %v9705_v9, %s11552_s6  ;;  %v8467_v9 = vld [vmem:[%s11604_s24 + $0x141] sm:$0xff]  ;;  %v8738_v30 = vunpack.i.l.bf16 %v11787_v42  ;;  %v9715_v53 = vpack.i.bf16 %v8465_v60, %v8464_v52  ;;  %v11438_v42 = vld [vmem:[%s11604_s24 + $0x158] sm:$0xff] }
 0x226   : > { %9701 = vrot.lane.b32.xlu1 %v9700_v15, %s11552_s6  ;;  %9696 = vrot.lane.b32.xlu0 %v9695_v2, %s11552_s6  ;;  %v234_v15 = vld [vmem:[%s11604_s24] sm:$0xff]  ;;  %v235_v2 = vld [vmem:[%s11604_s24 + $0x8] sm:$0xff]  ;;  %v9720_v29 = vpack.i.bf16 %v8467_v9, %v8466_v45 }
 0x227   : > { %v12677_v49 = vpop.permute.xlu2 %9541  ;;  %v12705_v41 = vsel %vm2860_vm0, %v235_v2, %v8709_v38  ;;  %v11437_v45 = vld [vmem:[%s11604_s24 + $0x150] sm:$0xff]  ;;  %v11439_v52 = vld [vmem:[%s11604_s24 + $0x48] sm:$0xff]  ;;  %v11442_v60 = vld [vmem:[%s11604_s24 + $0x20] sm:$0xff] }
 0x228   : > { %19493 = vst [vmem:[#allocation159_spill] sm:$0xff] %v12677_v49  ;;  %v12688_v25 = vpop.permute.xlu1 %9491  ;;  %v12690_v36 = vpop.permute.xlu0 %9486  ;;  %v8793_v49 = vunpack.i.l.bf16 %v11780_v37  ;;  %v12702_v37 = vsel %vm2860_vm0, %v234_v15, %v8708_v17  ;;  %v12709_v9 = vsel %vm2860_vm0, %v11437_v45, %v8778_v14  ;;  %v11441_v17 = vld [vmem:[%s11604_s24 + $0x18] sm:$0xff] }
 0x229   : > { %19494 = vst [vmem:[#allocation160_spill] sm:$0xff] %v12688_v25  ;;  %v9710_v25 = vpack.i.bf16 %v8463_v28, %v8462_v18  ;;  %v12713_v28 = vsel %vm2860_vm0, %v11438_v42, %v8779_v19  ;;  %v12725_v14 = vsel %vm2860_vm0, %v11441_v17, %v8713_v39  ;;  %v12729_v19 = vsel %vm2860_vm0, %v11442_v60, %v8714_v51  ;;  %v11443_v18 = vld [vmem:[%s11604_s24 + $0x1c8] sm:$0xff]  ;;  %v11446_v51 = vld [vmem:[%s11604_s24 + $0xb0] sm:$0xff] }
 0x22a   : > { %19495 = vst [vmem:[#allocation161_spill] sm:$0xff] %v12690_v36  ;;  %v12699_v36 = vsel %vm2860_vm0, %v11436_v8, %v8719_v61  ;;  %v12717_v61 = vsel %vm2860_vm0, %v11439_v52, %v8723_v23  ;;  %v11440_v8 = vld [vmem:[%s11604_s24 + $0x50] sm:$0xff]  ;;  %v12733_v15 = vsel %vm2860_vm0, %v11443_v18, %v8793_v49  ;;  %v8472_v39 = vld [vmem:[%s11604_s24 + $0x181] sm:$0xff]  ;;  %v12747_v42 = vsel %vm2860_vm0, %v11446_v51, %v8744_v27 }
 0x22b   : > { %19496 = vst [vmem:[#allocation162_spill] sm:$0xff] %v12709_v9  ;;  %v12721_v38 = vsel %vm2860_vm0, %v11440_v8, %v8724_v10  ;;  %v11444_v23 = vld [vmem:[%s11604_s24 + $0x1d0] sm:$0xff]  ;;  %v11445_v10 = vld [vmem:[%s11604_s24 + $0xa8] sm:$0xff]  ;;  %v8809_v17 = vunpack.i.h.bf16 %v11795_v50  ;;  %v8808_v27 = vunpack.i.l.bf16 %v11795_v50  ;;  %v8759_v60 = vunpack.i.h.bf16 %v11800_v54 }
 0x22c   : > { %19497 = vst [vmem:[#allocation163_spill] sm:$0xff] %v12713_v28  ;;  %v12737_v2 = vsel %vm2860_vm0, %v11444_v23, %v8794_v47  ;;  %v12741_v45 = vsel %vm2860_vm0, %v11445_v10, %v8743_v56  ;;  %v11447_v49 = vld [vmem:[%s11604_s24 + $0x90] sm:$0xff]  ;;  %v11448_v47 = vld [vmem:[%s11604_s24 + $0x98] sm:$0xff]  ;;  %v8758_v18 = vunpack.i.l.bf16 %v11800_v54  ;;  %v8824_v51 = vunpack.i.h.bf16 %v11810_v63 }
 0x22d   : > { %19498 = vst [vmem:[#allocation164_spill] sm:$0xff] %v12733_v15  ;;  %9721 = vrot.lane.b32.xlu2 %v9720_v29, %s11552_s6  ;;  %v12751_v52 = vsel %vm2860_vm0, %v11447_v49, %v8738_v30  ;;  %v12755_v8 = vsel %vm2860_vm0, %v11448_v47, %v8739_v31  ;;  %v8473_v56 = vld [vmem:[%s11604_s24 + $0x189] sm:$0xff]  ;;  %v8471_v23 = vld [vmem:[%s11604_s24 + $0x171] sm:$0xff]  ;;  %v8469_v31 = vld [vmem:[%s11604_s24 + $0x159] sm:$0xff]  ;;  %v8823_v49 = vunpack.i.l.bf16 %v11810_v63  ;;  %v8774_v54 = vunpack.i.h.bf16 %v11815_v4 }
 0x22e   : > { %19499 = vst [vmem:[#allocation165_spill] sm:$0xff] %v12737_v2  ;;  %9716 = vrot.lane.b32.xlu1 %v9715_v53, %s11552_s6  ;;  %9711 = vrot.lane.b32.xlu0 %v9710_v25, %s11552_s6  ;;  %v8470_v29 = vld [vmem:[%s11604_s24 + $0x169] sm:$0xff]  ;;  %v8468_v10 = vld [vmem:[%s11604_s24 + $0x151] sm:$0xff]  ;;  %v8754_v53 = vunpack.i.h.bf16 %v11802_v55  ;;  %v8753_v25 = vunpack.i.l.bf16 %v11802_v55  ;;  %v8768_v2 = vunpack.i.l.bf16 %v11817_v5  ;;  %v9735_v15 = vpack.i.bf16 %v8473_v56, %v8472_v39 }
 0x22f   : > { %19500 = vst [vmem:[#allocation166_spill] sm:$0xff] %v12747_v42  ;;  %v12765_v30 = vpop.permute.xlu2 %9556  ;;  %v8769_v55 = vunpack.i.h.bf16 %v11817_v5  ;;  %v8838_v28 = vunpack.i.l.bf16 %v11825_v12  ;;  %v9730_v63 = vpack.i.bf16 %v8471_v23, %v8470_v29  ;;  %v11451_v39 = vld [vmem:[%s11604_s24 + $0xf0] sm:$0xff]  ;;  %v8839_v56 = vunpack.i.h.bf16 %v11825_v12  ;;  %v11452_v29 = vld [vmem:[%s11604_s24 + $0xf8] sm:$0xff]  ;;  %v11456_v12 = vld [vmem:[%s11604_s24 + $0x260] sm:$0xff] }
 0x230   : > { %19501 = vst [vmem:[#allocation167_spill] sm:$0xff] %v12765_v30  ;;  %v12774_v50 = vpop.permute.xlu1 %9506  ;;  %v12776_v47 = vpop.permute.xlu0 %9501  ;;  %v8773_v30 = vunpack.i.l.bf16 %v11815_v4  ;;  %v11450_v4 = vld [vmem:[%s11604_s24 + $0x218] sm:$0xff]  ;;  %v12793_v5 = vsel %vm2860_vm0, %v11451_v39, %v8758_v18  ;;  %v12798_v23 = vsel %vm2860_vm0, %v11452_v29, %v8759_v60 }
 0x231   : > { %19502 = vst [vmem:[#allocation168_spill] sm:$0xff] %v12774_v50  ;;  %v9725_v50 = vpack.i.bf16 %v8469_v31, %v8468_v10  ;;  %v12789_v42 = vsel %vm2860_vm0, %v11450_v4, %v8809_v17  ;;  %v11454_v17 = vld [vmem:[%s11604_s24 + $0xe0] sm:$0xff]  ;;  %v11455_v18 = vld [vmem:[%s11604_s24 + $0x258] sm:$0xff]  ;;  %v12814_v4 = vsel %vm2860_vm0, %v11456_v12, %v8824_v51  ;;  %v11460_v51 = vld [vmem:[%s11604_s24 + $0x128] sm:$0xff]  ;;  %v8783_v12 = vunpack.i.l.bf16 %v11832_v20 }
 0x232   : > { %19503 = vst [vmem:[#allocation169_spill] sm:$0xff] %v12776_v47  ;;  %v11449_v47 = vld [vmem:[%s11604_s24 + $0x210] sm:$0xff]  ;;  %v12806_v31 = vsel %vm2860_vm0, %v11454_v17, %v8754_v53  ;;  %v11457_v60 = vld [vmem:[%s11604_s24 + $0x138] sm:$0xff]  ;;  %v11459_v53 = vld [vmem:[%s11604_s24 + $0x120] sm:$0xff]  ;;  %v12832_v17 = vsel %vm2860_vm0, %v11460_v51, %v8769_v55 }
 0x233   : > { %v12785_v9 = vsel %vm2860_vm0, %v11449_v47, %v8808_v27  ;;  %19505 = vst [vmem:[#allocation171_spill] sm:$0xff] %v12789_v42  ;;  %v11453_v27 = vld [vmem:[%s11604_s24 + $0xd8] sm:$0xff]  ;;  %v12810_v47 = vsel %vm2860_vm0, %v11455_v18, %v8823_v49  ;;  %v12818_v39 = vsel %vm2860_vm0, %v11457_v60, %v8773_v30  ;;  %v11461_v30 = vld [vmem:[%s11604_s24 + $0x2a0] sm:$0xff]  ;;  %v11462_v60 = vld [vmem:[%s11604_s24 + $0x2a8] sm:$0xff]  ;;  %v8814_v42 = vunpack.i.h.bf16 %v11859_v48 }
 0x234   : > { %19504 = vst [vmem:[#allocation170_spill] sm:$0xff] %v12785_v9  ;;  %v12802_v10 = vsel %vm2860_vm0, %v11453_v27, %v8753_v25  ;;  %v11458_v25 = vld [vmem:[%s11604_s24 + $0x140] sm:$0xff]  ;;  %v12826_v27 = vsel %vm2860_vm0, %v11459_v53, %v8768_v2  ;;  %v12836_v18 = vsel %vm2860_vm0, %v11461_v30, %v8838_v28  ;;  %v12846_v55 = vsel %vm2860_vm0, %v11462_v60, %v8839_v56  ;;  %v8477_v30 = vld [vmem:[%s11604_s24 + $0x1e9] sm:$0xff] }
 0x235   : > { %19506 = vst [vmem:[#allocation172_spill] sm:$0xff] %v12810_v47  ;;  %v12822_v29 = vsel %vm2860_vm0, %v11458_v25, %v8774_v54  ;;  %9736 = vrot.lane.b32.xlu2 %v9735_v15, %s11552_s6  ;;  %v8478_v49 = vld [vmem:[%s11604_s24 + $0x1f9] sm:$0xff]  ;;  %v8784_v54 = vunpack.i.h.bf16 %v11832_v20  ;;  %v8479_v15 = vld [vmem:[%s11604_s24 + $0x201] sm:$0xff]  ;;  %v8854_v25 = vunpack.i.h.bf16 %v11837_v24  ;;  %v8853_v53 = vunpack.i.l.bf16 %v11837_v24 }
 0x236   : > { %19507 = vst [vmem:[#allocation173_spill] sm:$0xff] %v12814_v4  ;;  %9731 = vrot.lane.b32.xlu1 %v9730_v63, %s11552_s6  ;;  %9726 = vrot.lane.b32.xlu0 %v9725_v50, %s11552_s6  ;;  %v8476_v2 = vld [vmem:[%s11604_s24 + $0x1e1] sm:$0xff]  ;;  %v8804_v28 = vunpack.i.h.bf16 %v11843_v32  ;;  %v8474_v20 = vld [vmem:[%s11604_s24 + $0x199] sm:$0xff]  ;;  %v8803_v50 = vunpack.i.l.bf16 %v11843_v32  ;;  %v8798_v56 = vunpack.i.l.bf16 %v11845_v33  ;;  %v8869_v60 = vunpack.i.h.bf16 %v11852_v40 }
 0x237   : > { %19508 = vst [vmem:[#allocation174_spill] sm:$0xff] %v12818_v39  ;;  %v12851_v51 = vpop.permute.xlu2 %9571  ;;  %v8475_v63 = vld [vmem:[%s11604_s24 + $0x1a1] sm:$0xff]  ;;  %v8819_v4 = vunpack.i.h.bf16 %v11857_v46  ;;  %v8818_v32 = vunpack.i.l.bf16 %v11857_v46  ;;  %v9750_v47 = vpack.i.bf16 %v8479_v15, %v8478_v49  ;;  %v9745_v9 = vpack.i.bf16 %v8477_v30, %v8476_v2  ;;  %v11466_v15 = vld [vmem:[%s11604_s24 + $0x2f0] sm:$0xff]  ;;  %v11467_v2 = vld [vmem:[%s11604_s24 + $0x1f8] sm:$0xff] }
 0x238   : > { %19509 = vst [vmem:[#allocation175_spill] sm:$0xff] %v12822_v29  ;;  %v12862_v24 = vpop.permute.xlu0 %9516  ;;  %v9740_v29 = vpack.i.bf16 %v8475_v63, %v8474_v20  ;;  %v11465_v46 = vld [vmem:[%s11604_s24 + $0x2e8] sm:$0xff]  ;;  %v12887_v30 = vsel %vm2860_vm0, %v11467_v2, %v8803_v50  ;;  %v8883_v20 = vunpack.i.l.bf16 %v11867_v59 }
 0x239   : > { %19510 = vst [vmem:[#allocation176_spill] sm:$0xff] %v12836_v18  ;;  %v8799_v18 = vunpack.i.h.bf16 %v11845_v33  ;;  %v8813_v33 = vunpack.i.l.bf16 %v11859_v48  ;;  %v12879_v49 = vsel %vm2860_vm0, %v11465_v46, %v8853_v53  ;;  %v12883_v48 = vsel %vm2860_vm0, %v11466_v15, %v8854_v25  ;;  %v11470_v63 = vld [vmem:[%s11604_s24 + $0x1e8] sm:$0xff] }
 0x23a   : > { %19511 = vst [vmem:[#allocation177_spill] sm:$0xff] %v12846_v55  ;;  %v12860_v55 = vpop.permute.xlu1 %9521  ;;  %v8484_v46 = vld [vmem:[%s11604_s24 + $0x241] sm:$0xff]  ;;  %v8482_v2 = vld [vmem:[%s11604_s24 + $0x229] sm:$0xff] }
 0x23b   : > { %19512 = vst [vmem:[#allocation178_spill] sm:$0xff] %v12851_v51  ;;  %v8868_v51 = vunpack.i.l.bf16 %v11852_v40  ;;  %v11464_v40 = vld [vmem:[%s11604_s24 + $0x170] sm:$0xff]  ;;  %v12900_v25 = vsel %vm2860_vm0, %v11470_v63, %v8799_v18  ;;  %v11472_v15 = vld [vmem:[%s11604_s24 + $0x248] sm:$0xff] }
 0x23c   : > { %19513 = vst [vmem:[#allocation179_spill] sm:$0xff] %v12860_v55  ;;  %v11463_v55 = vld [vmem:[%s11604_s24 + $0x168] sm:$0xff]  ;;  %v12875_v39 = vsel %vm2860_vm0, %v11464_v40, %v8784_v54  ;;  %v11471_v40 = vld [vmem:[%s11604_s24 + $0x240] sm:$0xff]  ;;  %v12918_v18 = vsel %vm2860_vm0, %v11472_v15, %v8819_v4  ;;  %v8834_v4 = vunpack.i.h.bf16 %v11872_v0  ;;  %v8898_v15 = vunpack.i.l.bf16 %v11882_v11 }
 0x23d   : > { %19514 = vst [vmem:[#allocation180_spill] sm:$0xff] %v12862_v24  ;;  %v12871_v24 = vsel %vm2860_vm0, %v11463_v55, %v8783_v12  ;;  %v11468_v12 = vld [vmem:[%s11604_s24 + $0x200] sm:$0xff]  ;;  %v12904_v50 = vsel %vm2925_vm1, %v12702_v37, %v8868_v51  ;;  %9751 = vrot.lane.b32.xlu2 %v9750_v47, %s11552_s6  ;;  %v11473_v37 = vld [vmem:[%s11604_s24 + $0x228] sm:$0xff] }
 0x23e   : > { %v12891_v54 = vsel %vm2860_vm0, %v11468_v12, %v8804_v28  ;;  %v11469_v55 = vld [vmem:[%s11604_s24 + $0x1e0] sm:$0xff]  ;;  %19515 = vst [vmem:[#allocation181_spill] sm:$0xff] %v12904_v50  ;;  %v12908_v28 = vsel %vm2925_vm1, %v12705_v41, %v8869_v60  ;;  %v12922_v51 = vsel %vm2860_vm0, %v11473_v37, %v8813_v33  ;;  %v11474_v41 = vld [vmem:[%s11604_s24 + $0x230] sm:$0xff]  ;;  %9746 = vrot.lane.b32.xlu1 %v9745_v9, %s11552_s6  ;;  %v8833_v12 = vunpack.i.l.bf16 %v11872_v0  ;;  %v11475_v50 = vld [vmem:[%s11604_s24 + $0x288] sm:$0xff] }
 0x23f   : > { %v12895_v53 = vsel %vm2860_vm0, %v11469_v55, %v8798_v56  ;;  %19516 = vst [vmem:[#allocation182_spill] sm:$0xff] %v12908_v28  ;;  %v12912_v56 = vsel %vm2860_vm0, %v11471_v40, %v8818_v32  ;;  %v12926_v60 = vsel %vm2860_vm0, %v11474_v41, %v8814_v42  ;;  %v8884_v32 = vunpack.i.h.bf16 %v11867_v59  ;;  %9741 = vrot.lane.b32.xlu0 %v9740_v29, %s11552_s6  ;;  %v8485_v47 = vld [vmem:[%s11604_s24 + $0x249] sm:$0xff]  ;;  %v12937_v63 = vpop.permute.xlu2 %9586  ;;  %v8483_v42 = vld [vmem:[%s11604_s24 + $0x231] sm:$0xff]  ;;  %v8481_v59 = vld [vmem:[%s11604_s24 + $0x219] sm:$0xff] }
 0x240   : > { %v8829_v55 = vunpack.i.h.bf16 %v11874_v1  ;;  %v8828_v33 = vunpack.i.l.bf16 %v11874_v1  ;;  %19517 = vst [vmem:[#allocation183_spill] sm:$0xff] %v12937_v63  ;;  %v8480_v40 = vld [vmem:[%s11604_s24 + $0x211] sm:$0xff]  ;;  %v12944_v9 = vsel %vm2925_vm1, %v12717_v61, %v8883_v20  ;;  %v8899_v29 = vunpack.i.h.bf16 %v11882_v11  ;;  %v12951_v1 = vpop.permute.xlu0 %9531 }
 0x241   : > { %19518 = vst [vmem:[#allocation184_spill] sm:$0xff] %v12944_v9  ;;  %v8849_v0 = vunpack.i.h.bf16 %v11887_v21  ;;  %v8848_v41 = vunpack.i.l.bf16 %v11887_v21  ;;  %v8844_v63 = vunpack.i.h.bf16 %v11889_v22  ;;  %v8843_v61 = vunpack.i.l.bf16 %v11889_v22 }
 0x242   : > { %v12949_v37 = vpop.permute.xlu1 %9536  ;;  %19520 = vst [vmem:[#allocation186_spill] sm:$0xff] %v12951_v1  ;;  %v9765_v20 = vpack.i.bf16 %v8485_v47, %v8484_v46  ;;  %v12958_v9 = vsel %vm2925_vm1, %v12721_v38, %v8884_v32  ;;  %v8913_v11 = vunpack.i.l.bf16 %v11897_v35  ;;  %v9760_v28 = vpack.i.bf16 %v8483_v42, %v8482_v2  ;;  %v11476_v1 = vld [vmem:[%s11604_s24 + $0x290] sm:$0xff]  ;;  %v11478_v2 = vld [vmem:[%s11604_s24 + $0x278] sm:$0xff] }
 0x243   : > { %19519 = vst [vmem:[#allocation185_spill] sm:$0xff] %v12949_v37  ;;  %v9755_v37 = vpack.i.bf16 %v8481_v59, %v8480_v40  ;;  %v12963_v21 = vsel %vm2860_vm0, %v11475_v50, %v8833_v12  ;;  %v12967_v22 = vsel %vm2860_vm0, %v11476_v1, %v8834_v4  ;;  %v8914_v46 = vunpack.i.h.bf16 %v11897_v35  ;;  %v11477_v32 = vld [vmem:[%s11604_s24 + $0x270] sm:$0xff] }
 0x244   : > { %19521 = vst [vmem:[#allocation187_spill] sm:$0xff] %v12958_v9  ;;  %v8863_v38 = vunpack.i.l.bf16 %v11902_v43  ;;  %v12973_v47 = vsel %vm2860_vm0, %v11477_v32, %v8828_v33  ;;  %v12977_v42 = vsel %vm2860_vm0, %v11478_v2, %v8829_v55  ;;  %v12981_v50 = vsel %vm2925_vm1, %v12751_v52, %v8898_v15  ;;  %v11479_v35 = vld [vmem:[%s11604_s24 + $0x2d0] sm:$0xff]  ;;  %v11480_v33 = vld [vmem:[%s11604_s24 + $0x2d8] sm:$0xff]  ;;  %v11482_v52 = vld [vmem:[%s11604_s24 + $0x2c0] sm:$0xff] }
 0x245   : > { %19522 = vst [vmem:[#allocation188_spill] sm:$0xff] %v12981_v50  ;;  %v12985_v4 = vsel %vm2925_vm1, %v12755_v8, %v8899_v29  ;;  %v12989_v12 = vsel %vm2860_vm0, %v11479_v35, %v8848_v41  ;;  %v12993_v40 = vsel %vm2860_vm0, %v11480_v33, %v8849_v0  ;;  %v11481_v55 = vld [vmem:[%s11604_s24 + $0x2b8] sm:$0xff]  ;;  %v13001_v15 = vsel %vm2860_vm0, %v11482_v52, %v8844_v63  ;;  %v8490_v8 = vld [vmem:[%s11604_s24 + $0x289] sm:$0xff] }
 0x246   : > { %19523 = vst [vmem:[#allocation189_spill] sm:$0xff] %v12985_v4  ;;  %v12997_v59 = vsel %vm2860_vm0, %v11481_v55, %v8843_v61  ;;  %9766 = vrot.lane.b32.xlu2 %v9765_v20, %s11552_s6  ;;  %v13007_v29 = vsel %vm2925_vm1, %v12802_v10, %v8913_v11  ;;  %v8864_v0 = vunpack.i.h.bf16 %v11902_v43  ;;  %v8859_v1 = vunpack.i.h.bf16 %v11904_v44  ;;  %9761 = vrot.lane.b32.xlu1 %v9760_v28, %s11552_s6  ;;  %v8491_v63 = vld [vmem:[%s11604_s24 + $0x291] sm:$0xff]  ;;  %v8486_v28 = vld [vmem:[%s11604_s24 + $0x259] sm:$0xff] }
 0x247   : > { %19524 = vst [vmem:[#allocation190_spill] sm:$0xff] %v12989_v12  ;;  %v8858_v41 = vunpack.i.l.bf16 %v11904_v44  ;;  %9756 = vrot.lane.b32.xlu0 %v9755_v37, %s11552_s6  ;;  %v8488_v61 = vld [vmem:[%s11604_s24 + $0x271] sm:$0xff]  ;;  %v13018_v20 = vsel %vm2925_vm1, %v12806_v31, %v8914_v46  ;;  %v8929_v43 = vunpack.i.h.bf16 %v11912_v58  ;;  %v8928_v11 = vunpack.i.l.bf16 %v11912_v58  ;;  %v13026_v2 = vpop.permute.xlu2 %9601  ;;  %v8489_v44 = vld [vmem:[%s11604_s24 + $0x279] sm:$0xff]  ;;  %v8487_v37 = vld [vmem:[%s11604_s24 + $0x261] sm:$0xff] }
 0x248   : > { %19525 = vst [vmem:[#allocation191_spill] sm:$0xff] %v12993_v40  ;;  %v11483_v32 = vld [vmem:[%s11604_s24 + $0x318] sm:$0xff]  ;;  %v8879_v35 = vunpack.i.h.bf16 %v11918_v6  ;;  %v8878_v31 = vunpack.i.l.bf16 %v11918_v6  ;;  %v8874_v46 = vunpack.i.h.bf16 %v11920_v7  ;;  %v13037_v55 = vpop.permute.xlu0 %9546  ;;  %v19532_v58 = vld [vmem:[#allocation5_spill] sm:$0xff]  ;;  %v9775_v50 = vpack.i.bf16 %v8489_v44, %v8488_v61  ;;  %v11484_v40 = vld [vmem:[%s11604_s24 + $0x320] sm:$0xff] }
 0x249   : > { %19526 = vst [vmem:[#allocation192_spill] sm:$0xff] %v13007_v29  ;;  %v13022_v10 = vsel %vm2860_vm0, %v11483_v32, %v8863_v38  ;;  %v8873_v38 = vunpack.i.l.bf16 %v11920_v7  ;;  %v8944_v52 = vunpack.i.h.bf16 %v19532_v58  ;;  %v8943_v32 = vunpack.i.l.bf16 %v19532_v58  ;;  %v19534_v4 = vld [vmem:[#allocation7_spill] sm:$0xff]  ;;  %v11486_v12 = vld [vmem:[%s11604_s24 + $0x308] sm:$0xff] }
 0x24a   : > { %19527 = vst [vmem:[#allocation193_spill] sm:$0xff] %v13018_v20  ;;  %v13035_v33 = vpop.permute.xlu1 %9551  ;;  %v9780_v20 = vpack.i.bf16 %v8491_v63, %v8490_v8  ;;  %v8888_v6 = vunpack.i.l.bf16 %v19534_v4  ;;  %v9770_v9 = vpack.i.bf16 %v8487_v37, %v8486_v28  ;;  %v13046_v7 = vsel %vm2860_vm0, %v11484_v40, %v8864_v0  ;;  %v19540_v28 = vld [vmem:[#allocation14_spill] sm:$0xff] }
 0x24b   : > { %19528 = vst [vmem:[#allocation194_spill] sm:$0xff] %v13022_v10  ;;  %v19533_v10 = vld [vmem:[#allocation6_spill] sm:$0xff]  ;;  %v13054_v58 = vsel %vm2860_vm0, %v11486_v12, %v8859_v1  ;;  %v8889_v8 = vunpack.i.h.bf16 %v19534_v4  ;;  %v13059_v63 = vsel %vm2925_vm1, %v12826_v27, %v8928_v11  ;;  %v13063_v40 = vsel %vm2925_vm1, %v12832_v17, %v8929_v43  ;;  %v8494_v1 = vld [vmem:[%s11604_s24 + $0x2b9] sm:$0xff]  ;;  %v8492_v43 = vld [vmem:[%s11604_s24 + $0x2a1] sm:$0xff] }
 0x24c   : > { %19529 = vst [vmem:[#allocation195_spill] sm:$0xff] %v13026_v2  ;;  %v8894_v2 = vunpack.i.h.bf16 %v19533_v10  ;;  %v8893_v29 = vunpack.i.l.bf16 %v19533_v10  ;;  %v13067_v0 = vsel %vm2925_vm1, %v12672_v13, %v8878_v31  ;;  %v13071_v12 = vsel %vm2925_vm1, %v12699_v36, %v8879_v35  ;;  %v8496_v36 = vld [vmem:[%s11604_s24 + $0x2d1] sm:$0xff]  ;;  %v8493_v11 = vld [vmem:[%s11604_s24 + $0x2a9] sm:$0xff] }
 0x24d   : > { %19530 = vst [vmem:[#allocation196_spill] sm:$0xff] %v13035_v33  ;;  %v11485_v33 = vld [vmem:[%s11604_s24 + $0x300] sm:$0xff]  ;;  %v13075_v4 = vsel %vm2925_vm1, %v12725_v14, %v8873_v38  ;;  %v13079_v27 = vsel %vm2925_vm1, %v12729_v19, %v8874_v46  ;;  %v13083_v17 = vsel %vm2925_vm1, %v12871_v24, %v8943_v32  ;;  %v13087_v13 = vsel %vm2925_vm1, %v12875_v39, %v8944_v52  ;;  %v19543_v46 = vld [vmem:[#allocation15_spill] sm:$0xff] }
 0x24e   : > { %19531 = vst [vmem:[#allocation197_spill] sm:$0xff] %v13037_v55  ;;  %v13050_v55 = vsel %vm2860_vm0, %v11485_v33, %v8858_v41  ;;  %9781 = vrot.lane.b32.xlu2 %v9780_v20, %s11552_s6  ;;  %v13093_v14 = vsel %vm2925_vm1, %v12639_v26, %v8893_v29  ;;  %v13097_v19 = vsel %vm2925_vm1, %v12643_v62, %v8894_v2  ;;  %v8497_v39 = vld [vmem:[%s11604_s24 + $0x2d9] sm:$0xff]  ;;  %v19537_v62 = vld [vmem:[#allocation9_spill] sm:$0xff]  ;;  %v8973_v31 = vunpack.i.l.bf16 %v19540_v28 }
 0x24f   : > { %19535 = vst [vmem:[#allocation5_spill] sm:$0xff] %v13046_v7  ;;  %v13101_v24 = vsel %vm2925_vm1, %v12631_v57, %v8888_v6  ;;  %9776 = vrot.lane.b32.xlu1 %v9775_v50, %s11552_s6  ;;  %9771 = vrot.lane.b32.xlu0 %v9770_v9, %s11552_s6  ;;  %v13109_v41 = vsel %vm2925_vm1, %v12635_v3, %v8889_v8  ;;  %v19536_v26 = vld [vmem:[#allocation8_spill] sm:$0xff]  ;;  %v8909_v20 = vunpack.i.h.bf16 %v19537_v62  ;;  %v13114_v10 = vpop.permute.xlu2 %9616  ;;  %v8908_v50 = vunpack.i.l.bf16 %v19537_v62  ;;  %v19539_v9 = vld [vmem:[#allocation10_spill] sm:$0xff] }
 0x250   : > { %v8959_v29 = vunpack.i.h.bf16 %v19536_v26  ;;  %v8958_v61 = vunpack.i.l.bf16 %v19536_v26  ;;  %19538 = vst [vmem:[#allocation6_spill] sm:$0xff] %v13114_v10  ;;  %v8495_v57 = vld [vmem:[%s11604_s24 + $0x2c1] sm:$0xff]  ;;  %v8904_v2 = vunpack.i.h.bf16 %v19539_v9  ;;  %v8903_v44 = vunpack.i.l.bf16 %v19539_v9  ;;  %v13125_v35 = vpop.permute.xlu0 %9561 }
 0x251   : > { %v8974_v3 = vunpack.i.h.bf16 %v19540_v28  ;;  %19542 = vst [vmem:[#allocation8_spill] sm:$0xff] %v13125_v35  ;;  %v8924_v38 = vunpack.i.h.bf16 %v19543_v46  ;;  %v8923_v33 = vunpack.i.l.bf16 %v19543_v46  ;;  %v9795_v52 = vpack.i.bf16 %v8497_v39, %v8496_v36  ;;  %v19544_v32 = vld [vmem:[#allocation16_spill] sm:$0xff] }
 0x252   : > { %v13123_v37 = vpop.permute.xlu1 %9566  ;;  %v8919_v6 = vunpack.i.h.bf16 %v19544_v32  ;;  %v8918_v8 = vunpack.i.l.bf16 %v19544_v32  ;;  %v9790_v26 = vpack.i.bf16 %v8495_v57, %v8494_v1  ;;  %v9785_v62 = vpack.i.bf16 %v8493_v11, %v8492_v43  ;;  %v19545_v28 = vld [vmem:[#allocation20_spill] sm:$0xff]  ;;  %v19546_v1 = vld [vmem:[#allocation166_spill] sm:$0xff]  ;;  %v19551_v43 = vld [vmem:[#allocation21_spill] sm:$0xff] }
 0x253   : > { %19541 = vst [vmem:[#allocation7_spill] sm:$0xff] %v13123_v37  ;;  %v13134_v9 = vsel %vm2925_vm1, %v12895_v53, %v8958_v61  ;;  %v13138_v7 = vsel %vm2925_vm1, %v12900_v25, %v8959_v29  ;;  %v8989_v10 = vunpack.i.h.bf16 %v19545_v28  ;;  %v8988_v46 = vunpack.i.l.bf16 %v19545_v28  ;;  %v8502_v57 = vld [vmem:[%s11604_s24 + $0x319] sm:$0xff]  ;;  %v8498_v32 = vld [vmem:[%s11604_s24 + $0x2e9] sm:$0xff] }
 0x254   : > { %v13144_v36 = vsel %vm2925_vm1, %v12647_v34, %v8908_v50  ;;  %v13148_v39 = vsel %vm2925_vm1, %v12651_v16, %v8909_v20  ;;  %v13152_v53 = vsel %vm2925_vm1, %v12741_v45, %v8903_v44  ;;  %v13156_v25 = vsel %vm2925_vm1, %v19546_v1, %v8904_v2  ;;  %v19549_v16 = vld [vmem:[#allocation157_spill] sm:$0xff]  ;;  %v19550_v20 = vld [vmem:[#allocation158_spill] sm:$0xff]  ;;  %v19557_v28 = vld [vmem:[#allocation27_spill] sm:$0xff] }
 0x255   : > { %v13160_v29 = vsel %vm2925_vm1, %v12922_v51, %v8973_v31  ;;  %v13164_v34 = vsel %vm2925_vm1, %v12926_v60, %v8974_v3  ;;  %v13168_v61 = vsel %vm2925_vm1, %v19549_v16, %v8923_v33  ;;  %v13172_v45 = vsel %vm2925_vm1, %v19550_v20, %v8924_v38  ;;  %v8503_v2 = vld [vmem:[%s11604_s24 + $0x321] sm:$0xff]  ;;  %v19562_v37 = vld [vmem:[#allocation34_spill] sm:$0xff] }
 0x256   : > { %19547 = vst [vmem:[#allocation9_spill] sm:$0xff] %v13160_v29  ;;  %9796 = vrot.lane.b32.xlu2 %v9795_v52, %s11552_s6  ;;  %v13178_v51 = vsel %vm2925_vm1, %v12793_v5, %v8918_v8  ;;  %v13182_v60 = vsel %vm2925_vm1, %v12798_v23, %v8919_v6  ;;  %v8939_v11 = vunpack.i.h.bf16 %v19551_v43  ;;  %v8938_v50 = vunpack.i.l.bf16 %v19551_v43  ;;  %v8500_v44 = vld [vmem:[%s11604_s24 + $0x301] sm:$0xff]  ;;  %v19554_v23 = vld [vmem:[#allocation22_spill] sm:$0xff] }
 0x257   : > { %19548 = vst [vmem:[#allocation10_spill] sm:$0xff] %v13164_v34  ;;  %9791 = vrot.lane.b32.xlu1 %v9790_v26, %s11552_s6  ;;  %9786 = vrot.lane.b32.xlu0 %v9785_v62, %s11552_s6  ;;  %v13192_v3 = vsel %vm2925_vm1, %v12973_v47, %v8988_v46  ;;  %v13196_v5 = vsel %vm2925_vm1, %v12977_v42, %v8989_v10  ;;  %v8934_v31 = vunpack.i.h.bf16 %v19554_v23  ;;  %v8933_v38 = vunpack.i.l.bf16 %v19554_v23  ;;  %v13200_v33 = vpop.permute.xlu2 %9631  ;;  %v8501_v52 = vld [vmem:[%s11604_s24 + $0x309] sm:$0xff]  ;;  %v8499_v6 = vld [vmem:[%s11604_s24 + $0x2f1] sm:$0xff]  ;;  %v19560_v10 = vld [vmem:[#allocation32_spill] sm:$0xff] }
 0x258   : > { %19552 = vst [vmem:[#allocation14_spill] sm:$0xff] %v13192_v3  ;;  %v19556_v8 = vld [vmem:[#allocation26_spill] sm:$0xff]  ;;  %v8954_v47 = vunpack.i.h.bf16 %v19557_v28  ;;  %v8953_v46 = vunpack.i.l.bf16 %v19557_v28  ;;  %v13211_v42 = vpop.permute.xlu0 %9576  ;;  %v9019_v16 = vunpack.i.h.bf16 %v19560_v10  ;;  %v9018_v20 = vunpack.i.l.bf16 %v19560_v10  ;;  %v19561_v43 = vld [vmem:[#allocation33_spill] sm:$0xff] }
 0x259   : > { %19553 = vst [vmem:[#allocation15_spill] sm:$0xff] %v13196_v5  ;;  %v9004_v26 = vunpack.i.h.bf16 %v19556_v8  ;;  %v9003_v62 = vunpack.i.l.bf16 %v19556_v8  ;;  %v8969_v23 = vunpack.i.h.bf16 %v19561_v43  ;;  %v8968_v35 = vunpack.i.l.bf16 %v19561_v43  ;;  %v19563_v34 = vld [vmem:[#allocation162_spill] sm:$0xff] }
 0x25a   : > { %19555 = vst [vmem:[#allocation16_spill] sm:$0xff] %v13200_v33  ;;  %v13209_v1 = vpop.permute.xlu1 %9581  ;;  %v9810_v33 = vpack.i.bf16 %v8503_v2, %v8502_v57  ;;  %v8963_v5 = vunpack.i.l.bf16 %v19562_v37  ;;  %v9805_v8 = vpack.i.bf16 %v8501_v52, %v8500_v44  ;;  %v9800_v3 = vpack.i.bf16 %v8499_v6, %v8498_v32  ;;  %v19565_v29 = vld [vmem:[#allocation174_spill] sm:$0xff]  ;;  %v19566_v2 = vld [vmem:[#allocation175_spill] sm:$0xff] }
 0x25b   : > { %19558 = vst [vmem:[#allocation20_spill] sm:$0xff] %v13209_v1  ;;  %v13220_v28 = vsel %vm2925_vm1, %v19563_v34, %v8938_v50  ;;  %v19564_v1 = vld [vmem:[#allocation163_spill] sm:$0xff]  ;;  %v13228_v10 = vsel %vm2925_vm1, %v19565_v29, %v8933_v38  ;;  %v8964_v57 = vunpack.i.h.bf16 %v19562_v37  ;;  %v13233_v43 = vsel %vm2925_vm1, %v19566_v2, %v8934_v31  ;;  %v19570_v29 = vld [vmem:[#allocation164_spill] sm:$0xff]  ;;  %v19571_v37 = vld [vmem:[#allocation165_spill] sm:$0xff] }
 0x25c   : > { %19559 = vst [vmem:[#allocation166_spill] sm:$0xff] %v13211_v42  ;;  %v13224_v42 = vsel %vm2925_vm1, %v19564_v1, %v8939_v11  ;;  %v13237_v44 = vsel %vm2925_vm1, %v12997_v59, %v9003_v62  ;;  %v13241_v34 = vsel %vm2925_vm1, %v13001_v15, %v9004_v26  ;;  %v19569_v11 = vld [vmem:[#allocation38_spill] sm:$0xff]  ;;  %v13246_v38 = vsel %vm2925_vm1, %v19570_v29, %v8953_v46  ;;  %v19576_v26 = vld [vmem:[#allocation171_spill] sm:$0xff]  ;;  %v19582_v29 = vld [vmem:[#allocation44_spill] sm:$0xff] }
 0x25d   : > { %19567 = vst [vmem:[#allocation157_spill] sm:$0xff] %v13237_v44  ;;  %v9033_v50 = vunpack.i.l.bf16 %v19569_v11  ;;  %v13250_v31 = vsel %vm2925_vm1, %v19571_v37, %v8954_v47  ;;  %v13254_v52 = vsel %vm2925_vm1, %v13050_v55, %v9018_v20  ;;  %v13258_v59 = vsel %vm2925_vm1, %v13054_v58, %v9019_v16  ;;  %v8508_v15 = vld [vmem:[%s11604_s24 + $0x32] sm:$0xff]  ;;  %v8506_v47 = vld [vmem:[%s11604_s24 + $0x349] sm:$0xff]  ;;  %v19579_v20 = vld [vmem:[#allocation40_spill] sm:$0xff] }
 0x25e   : > { %19568 = vst [vmem:[#allocation158_spill] sm:$0xff] %v13241_v34  ;;  %9811 = vrot.lane.b32.xlu2 %v9810_v33, %s11552_s6  ;;  %v19574_v32 = vld [vmem:[#allocation170_spill] sm:$0xff]  ;;  %v13268_v62 = vsel %vm2925_vm1, %v19576_v26, %v8969_v23  ;;  %v13272_v55 = vsel %vm2925_vm1, %v12887_v30, %v8963_v5  ;;  %v9034_v58 = vunpack.i.h.bf16 %v19569_v11  ;;  %v8509_v33 = vld [vmem:[%s11604_s24 + $0x3a] sm:$0xff]  ;;  %v8979_v23 = vunpack.i.h.bf16 %v19579_v20  ;;  %v19585_v26 = vld [vmem:[#allocation45_spill] sm:$0xff] }
 0x25f   : > { %19572 = vst [vmem:[#allocation21_spill] sm:$0xff] %v13254_v52  ;;  %v13264_v6 = vsel %vm2925_vm1, %v19574_v32, %v8968_v35  ;;  %9806 = vrot.lane.b32.xlu1 %v9805_v8, %s11552_s6  ;;  %9801 = vrot.lane.b32.xlu0 %v9800_v3, %s11552_s6  ;;  %v13281_v35 = vsel %vm2925_vm1, %v12891_v54, %v8964_v57  ;;  %v19578_v46 = vld [vmem:[#allocation39_spill] sm:$0xff]  ;;  %v13286_v30 = vpop.permute.xlu2 %9646  ;;  %v8978_v8 = vunpack.i.l.bf16 %v19579_v20  ;;  %v9049_v54 = vunpack.i.h.bf16 %v19582_v29 }
 0x260   : > { %19573 = vst [vmem:[#allocation22_spill] sm:$0xff] %v13258_v59  ;;  %v8984_v1 = vunpack.i.h.bf16 %v19578_v46  ;;  %v8983_v16 = vunpack.i.l.bf16 %v19578_v46  ;;  %v8507_v5 = vld [vmem:[%s11604_s24 + $0x351] sm:$0xff]  ;;  %v8505_v11 = vld [vmem:[%s11604_s24 + $0x339] sm:$0xff]  ;;  %v13293_v3 = vsel %vm2990_vm2, %v13075_v4, %v9033_v50  ;;  %v9048_v57 = vunpack.i.l.bf16 %v19582_v29  ;;  %v13300_v32 = vpop.permute.xlu0 %9591 }
 0x261   : > { %19575 = vst [vmem:[#allocation26_spill] sm:$0xff] %v13264_v6  ;;  %v8504_v2 = vld [vmem:[%s11604_s24 + $0x331] sm:$0xff]  ;;  %v8999_v46 = vunpack.i.h.bf16 %v19585_v26  ;;  %v9825_v34 = vpack.i.bf16 %v8509_v33, %v8508_v15  ;;  %v13307_v4 = vsel %vm2990_vm2, %v13079_v27, %v9034_v58  ;;  %v9820_v20 = vpack.i.bf16 %v8507_v5, %v8506_v47  ;;  %v19590_v15 = vld [vmem:[#allocation173_spill] sm:$0xff] }
 0x262   : > { %19577 = vst [vmem:[#allocation27_spill] sm:$0xff] %v13268_v62  ;;  %v13298_v37 = vpop.permute.xlu1 %9596  ;;  %v19586_v59 = vld [vmem:[#allocation46_spill] sm:$0xff]  ;;  %v9815_v29 = vpack.i.bf16 %v8505_v11, %v8504_v2  ;;  %v19589_v62 = vld [vmem:[#allocation51_spill] sm:$0xff]  ;;  %v13319_v33 = vsel %vm2925_vm1, %v19590_v15, %v8984_v1  ;;  %v13323_v27 = vsel %vm2925_vm1, %v12912_v56, %v8978_v8  ;;  %v13331_v58 = vsel %vm2990_vm2, %v13101_v24, %v9048_v57  ;;  %v19593_v1 = vld [vmem:[#allocation176_spill] sm:$0xff] }
 0x263   : > { %19580 = vst [vmem:[#allocation32_spill] sm:$0xff] %v13286_v30  ;;  %v8998_v30 = vunpack.i.l.bf16 %v19585_v26  ;;  %v8993_v52 = vunpack.i.l.bf16 %v19586_v59  ;;  %v8994_v50 = vunpack.i.h.bf16 %v19586_v59  ;;  %v9013_v6 = vunpack.i.l.bf16 %v19589_v62  ;;  %v19594_v56 = vld [vmem:[#allocation177_spill] sm:$0xff]  ;;  %v8514_v24 = vld [vmem:[%s11604_s24 + $0x7a] sm:$0xff] }
 0x264   : > { %19581 = vst [vmem:[#allocation33_spill] sm:$0xff] %v13293_v3  ;;  %v19587_v3 = vld [vmem:[#allocation172_spill] sm:$0xff]  ;;  %v13327_v59 = vsel %vm2925_vm1, %v12918_v18, %v8979_v23  ;;  %v13335_v47 = vsel %vm2990_vm2, %v13109_v41, %v9049_v54  ;;  %v13343_v5 = vsel %vm2925_vm1, %v19594_v56, %v8999_v46  ;;  %v9014_v23 = vunpack.i.h.bf16 %v19589_v62  ;;  %v8513_v57 = vld [vmem:[%s11604_s24 + $0x6a] sm:$0xff]  ;;  %v8511_v46 = vld [vmem:[%s11604_s24 + $0x52] sm:$0xff] }
 0x265   : > { %19583 = vst [vmem:[#allocation34_spill] sm:$0xff] %v13298_v37  ;;  %v13312_v37 = vsel %vm2925_vm1, %v19587_v3, %v8983_v16  ;;  %v13339_v16 = vsel %vm2925_vm1, %v19593_v1, %v8998_v30  ;;  %v13347_v18 = vsel %vm2925_vm1, %v12963_v21, %v8993_v52  ;;  %v13353_v41 = vsel %vm2925_vm1, %v12967_v22, %v8994_v50  ;;  %v19595_v30 = vld [vmem:[#allocation52_spill] sm:$0xff] }
 0x266   : > { %19584 = vst [vmem:[#allocation162_spill] sm:$0xff] %v13300_v32  ;;  %v19588_v32 = vld [vmem:[#allocation50_spill] sm:$0xff]  ;;  %9826 = vrot.lane.b32.xlu2 %v9825_v34, %s11553_s7  ;;  %v9009_v2 = vunpack.i.h.bf16 %v19595_v30  ;;  %v9008_v11 = vunpack.i.l.bf16 %v19595_v30  ;;  %v8515_v21 = vld [vmem:[%s11604_s24 + $0x82] sm:$0xff]  ;;  %v13372_v62 = vsel %vm2925_vm1, %v12879_v49, %v9013_v6  ;;  %v19604_v6 = vld [vmem:[#allocation63_spill] sm:$0xff] }
 0x267   : > { %v9064_v44 = vunpack.i.h.bf16 %v19588_v32  ;;  %v9063_v26 = vunpack.i.l.bf16 %v19588_v32  ;;  %19591 = vst [vmem:[#allocation163_spill] sm:$0xff] %v13331_v58  ;;  %9821 = vrot.lane.b32.xlu1 %v9820_v20, %s11552_s6  ;;  %9816 = vrot.lane.b32.xlu0 %v9815_v29, %s11552_s6  ;;  %v8512_v52 = vld [vmem:[%s11604_s24 + $0x62] sm:$0xff]  ;;  %v13375_v54 = vpop.permute.xlu2 %9661  ;;  %v8510_v32 = vld [vmem:[%s11604_s24 + $0x4a] sm:$0xff]  ;;  %v9044_v1 = vunpack.i.h.bf16 %v19604_v6  ;;  %v9043_v56 = vunpack.i.l.bf16 %v19604_v6 }
 0x268   : > { %19592 = vst [vmem:[#allocation174_spill] sm:$0xff] %v13335_v47  ;;  %v19598_v3 = vld [vmem:[#allocation56_spill] sm:$0xff]  ;;  %v19600_v20 = vld [vmem:[#allocation57_spill] sm:$0xff]  ;;  %v13386_v15 = vpop.permute.xlu0 %9606  ;;  %v9840_v30 = vpack.i.bf16 %v8515_v21, %v8514_v24  ;;  %v13395_v47 = vsel %vm2925_vm1, %v12883_v48, %v9014_v23 }
 0x269   : > { %v13364_v34 = vsel %vm2990_vm2, %v13152_v53, %v9063_v26  ;;  %v13368_v22 = vsel %vm2990_vm2, %v13156_v25, %v9064_v44  ;;  %v9079_v8 = vunpack.i.h.bf16 %v19598_v3  ;;  %19599 = vst [vmem:[#allocation164_spill] sm:$0xff] %v13375_v54  ;;  %v9078_v50 = vunpack.i.l.bf16 %v19598_v3  ;;  %v19601_v26 = vld [vmem:[#allocation62_spill] sm:$0xff]  ;;  %v19605_v54 = vld [vmem:[#allocation64_spill] sm:$0xff]  ;;  %v19611_v48 = vld [vmem:[#allocation181_spill] sm:$0xff] }
 0x26a   : > { %19596 = vst [vmem:[#allocation175_spill] sm:$0xff] %v13364_v34  ;;  %v9029_v53 = vunpack.i.h.bf16 %v19600_v20  ;;  %v9028_v29 = vunpack.i.l.bf16 %v19600_v20  ;;  %v9094_v25 = vunpack.i.h.bf16 %v19601_v26  ;;  %v13384_v44 = vpop.permute.xlu1 %9611  ;;  %v9093_v49 = vunpack.i.l.bf16 %v19601_v26  ;;  %v19607_v26 = vld [vmem:[#allocation191_spill] sm:$0xff]  ;;  %v19628_v24 = vld [vmem:[#allocation76_spill] sm:$0xff] }
 0x26b   : > { %19597 = vst [vmem:[#allocation38_spill] sm:$0xff] %v13368_v22  ;;  %v9039_v22 = vunpack.i.h.bf16 %v19605_v54  ;;  %v9038_v3 = vunpack.i.l.bf16 %v19605_v54  ;;  %v9835_v34 = vpack.i.bf16 %v8513_v57, %v8512_v52  ;;  %v9830_v20 = vpack.i.bf16 %v8511_v46, %v8510_v32  ;;  %v8520_v46 = vld [vmem:[%s11604_s24 + $0xc2] sm:$0xff] }
 0x26c   : > { %19602 = vst [vmem:[#allocation165_spill] sm:$0xff] %v13384_v44  ;;  %v19606_v44 = vld [vmem:[#allocation190_spill] sm:$0xff]  ;;  %v13403_v58 = vsel %vm2925_vm1, %v19607_v26, %v9009_v2  ;;  %v13408_v54 = vsel %vm2990_vm2, %v13178_v51, %v9078_v50  ;;  %v13412_v52 = vsel %vm2990_vm2, %v13182_v60, %v9079_v8  ;;  %v13416_v23 = vsel %vm2990_vm2, %v19611_v48, %v9028_v29  ;;  %v19616_v60 = vld [vmem:[#allocation184_spill] sm:$0xff]  ;;  %v19618_v50 = vld [vmem:[#allocation187_spill] sm:$0xff] }
 0x26d   : > { %19603 = vst [vmem:[#allocation170_spill] sm:$0xff] %v13386_v15  ;;  %v13399_v15 = vsel %vm2925_vm1, %v19606_v44, %v9008_v11  ;;  %v19612_v2 = vld [vmem:[#allocation182_spill] sm:$0xff]  ;;  %v13425_v51 = vsel %vm2990_vm2, %v13228_v10, %v9093_v49  ;;  %v13429_v32 = vsel %vm2990_vm2, %v13233_v43, %v9094_v25  ;;  %v13433_v8 = vsel %vm2990_vm2, %v19616_v60, %v9043_v56  ;;  %v19620_v29 = vld [vmem:[#allocation69_spill] sm:$0xff]  ;;  %v8517_v48 = vld [vmem:[%s11604_s24 + $0x9a] sm:$0xff] }
 0x26e   : > { %19609 = vst [vmem:[#allocation171_spill] sm:$0xff] %v13408_v54  ;;  %v13421_v57 = vsel %vm2990_vm2, %v19612_v2, %v9029_v53  ;;  %9841 = vrot.lane.b32.xlu2 %v9840_v30, %s11553_s7  ;;  %v13439_v53 = vsel %vm2990_vm2, %v19618_v50, %v9044_v1  ;;  %v13443_v10 = vsel %vm2990_vm2, %v13067_v0, %v9038_v3  ;;  %v9059_v25 = vunpack.i.h.bf16 %v19620_v29  ;;  %v8521_v44 = vld [vmem:[%s11604_s24 + $0xca] sm:$0xff]  ;;  %v19625_v50 = vld [vmem:[#allocation75_spill] sm:$0xff] }
 0x26f   : > { %19610 = vst [vmem:[#allocation39_spill] sm:$0xff] %v13412_v52  ;;  %v13447_v43 = vsel %vm2990_vm2, %v13071_v12, %v9039_v22  ;;  %9836 = vrot.lane.b32.xlu1 %v9835_v34, %s11553_s7  ;;  %9831 = vrot.lane.b32.xlu0 %v9830_v20, %s11553_s7  ;;  %v8518_v49 = vld [vmem:[%s11604_s24 + $0xaa] sm:$0xff]  ;;  %v9058_v6 = vunpack.i.l.bf16 %v19620_v29  ;;  %v13458_v26 = vpop.permute.xlu2 %9676  ;;  %v8519_v12 = vld [vmem:[%s11604_s24 + $0xb2] sm:$0xff]  ;;  %v9069_v21 = vunpack.i.h.bf16 %v19625_v50 }
 0x270   : > { %19613 = vst [vmem:[#allocation40_spill] sm:$0xff] %v13421_v57  ;;  %v19621_v1 = vld [vmem:[#allocation70_spill] sm:$0xff]  ;;  %v19622_v0 = vld [vmem:[#allocation73_spill] sm:$0xff]  ;;  %v13469_v11 = vpop.permute.xlu0 %9621 }
 0x271   : > { %19614 = vst [vmem:[#allocation44_spill] sm:$0xff] %v13425_v51  ;;  %v9054_v56 = vunpack.i.h.bf16 %v19621_v1  ;;  %v9053_v30 = vunpack.i.l.bf16 %v19621_v1  ;;  %v9124_v3 = vunpack.i.h.bf16 %v19622_v0  ;;  %v8516_v22 = vld [vmem:[%s11604_s24 + $0x92] sm:$0xff]  ;;  %v9123_v2 = vunpack.i.l.bf16 %v19622_v0  ;;  %v19629_v52 = vld [vmem:[#allocation77_spill] sm:$0xff] }
 0x272   : > { %19615 = vst [vmem:[#allocation45_spill] sm:$0xff] %v13429_v32  ;;  %v19624_v34 = vld [vmem:[#allocation74_spill] sm:$0xff]  ;;  %v13467_v29 = vpop.permute.xlu1 %9626  ;;  %v9068_v1 = vunpack.i.l.bf16 %v19625_v50  ;;  %v9139_v32 = vunpack.i.h.bf16 %v19628_v24  ;;  %v9855_v51 = vpack.i.bf16 %v8521_v44, %v8520_v46  ;;  %v9089_v54 = vunpack.i.h.bf16 %v19629_v52  ;;  %v19632_v46 = vld [vmem:[#allocation192_spill] sm:$0xff] }
 0x273   : > { %19617 = vst [vmem:[#allocation46_spill] sm:$0xff] %v13433_v8  ;;  %v9074_v60 = vunpack.i.h.bf16 %v19624_v34  ;;  %v9073_v20 = vunpack.i.l.bf16 %v19624_v34  ;;  %v9088_v0 = vunpack.i.l.bf16 %v19629_v52  ;;  %v9845_v34 = vpack.i.bf16 %v8517_v48, %v8516_v22  ;;  %v19630_v8 = vld [vmem:[#allocation188_spill] sm:$0xff] }
 0x274   : > { %19619 = vst [vmem:[#allocation172_spill] sm:$0xff] %v13439_v53  ;;  %v9850_v53 = vpack.i.bf16 %v8519_v12, %v8518_v49  ;;  %v13478_v57 = vsel %vm2990_vm2, %v19630_v8, %v9058_v6  ;;  %v13486_v50 = vsel %vm2990_vm2, %v13093_v14, %v9053_v30  ;;  %v13494_v52 = vsel %vm2990_vm2, %v13272_v55, %v9123_v2  ;;  %v19633_v14 = vld [vmem:[#allocation193_spill] sm:$0xff]  ;;  %v19635_v49 = vld [vmem:[#allocation78_spill] sm:$0xff] }
 0x275   : > { %19623 = vst [vmem:[#allocation50_spill] sm:$0xff] %v13458_v26  ;;  %v9138_v26 = vunpack.i.l.bf16 %v19628_v24  ;;  %v13490_v24 = vsel %vm2990_vm2, %v13097_v19, %v9054_v56  ;;  %v13498_v8 = vsel %vm2990_vm2, %v13281_v35, %v9124_v3  ;;  %v13506_v44 = vsel %vm2990_vm2, %v19633_v14, %v9074_v60  ;;  %v8526_v56 = vld [vmem:[%s11604_s24 + $0x10a] sm:$0xff]  ;;  %v8524_v30 = vld [vmem:[%s11604_s24 + $0xf2] sm:$0xff]  ;;  %v8523_v48 = vld [vmem:[%s11604_s24 + $0xe2] sm:$0xff] }
 0x276   : > { %19626 = vst [vmem:[#allocation51_spill] sm:$0xff] %v13467_v29  ;;  %v19631_v29 = vld [vmem:[#allocation189_spill] sm:$0xff]  ;;  %v13510_v19 = vsel %vm2990_vm2, %v13144_v36, %v9068_v1  ;;  %v13514_v55 = vsel %vm2990_vm2, %v13148_v39, %v9069_v21  ;;  %v9084_v6 = vunpack.i.h.bf16 %v19635_v49  ;;  %9856 = vrot.lane.b32.xlu2 %v9855_v51, %s11553_s7  ;;  %v13525_v36 = vsel %vm2990_vm2, %v13327_v59, %v9139_v32  ;;  %v8527_v51 = vld [vmem:[%s11604_s24 + $0x112] sm:$0xff]  ;;  %v19638_v32 = vld [vmem:[#allocation80_spill] sm:$0xff] }
 0x277   : > { %19627 = vst [vmem:[#allocation173_spill] sm:$0xff] %v13469_v11  ;;  %v13482_v11 = vsel %vm2990_vm2, %v19631_v29, %v9059_v25  ;;  %v13502_v25 = vsel %vm2990_vm2, %v19632_v46, %v9073_v20  ;;  %v13518_v35 = vsel %vm2990_vm2, %v13323_v27, %v9138_v26  ;;  %v13529_v39 = vsel %vm2990_vm2, %v13059_v63, %v9088_v0  ;;  %v19637_v3 = vld [vmem:[#allocation79_spill] sm:$0xff]  ;;  %v13544_v22 = vpop.permute.xlu2 %9691  ;;  %v19640_v2 = vld [vmem:[#allocation81_spill] sm:$0xff]  ;;  %v19641_v20 = vld [vmem:[#allocation82_spill] sm:$0xff] }
 0x278   : > { %19634 = vst [vmem:[#allocation176_spill] sm:$0xff] %v13518_v35  ;;  %v13533_v27 = vsel %vm2990_vm2, %v13063_v40, %v9089_v54  ;;  %v9083_v21 = vunpack.i.l.bf16 %v19635_v49  ;;  %9851 = vrot.lane.b32.xlu1 %v9850_v53, %s11553_s7  ;;  %9846 = vrot.lane.b32.xlu0 %v9845_v34, %s11553_s7  ;;  %v9154_v26 = vunpack.i.h.bf16 %v19637_v3  ;;  %v9153_v59 = vunpack.i.l.bf16 %v19637_v3  ;;  %v8525_v40 = vld [vmem:[%s11604_s24 + $0xfa] sm:$0xff]  ;;  %v13555_v34 = vpop.permute.xlu0 %9636 }
 0x279   : > { %19636 = vst [vmem:[#allocation177_spill] sm:$0xff] %v13525_v36  ;;  %v9104_v12 = vunpack.i.h.bf16 %v19638_v32  ;;  %v9103_v63 = vunpack.i.l.bf16 %v19638_v32  ;;  %v8522_v54 = vld [vmem:[%s11604_s24 + $0xda] sm:$0xff]  ;;  %v9099_v60 = vunpack.i.h.bf16 %v19640_v2  ;;  %v9098_v53 = vunpack.i.l.bf16 %v19640_v2 }
 0x27a   : > { %19639 = vst [vmem:[#allocation52_spill] sm:$0xff] %v13544_v22  ;;  %v9169_v29 = vunpack.i.h.bf16 %v19641_v20  ;;  %v9168_v1 = vunpack.i.l.bf16 %v19641_v20  ;;  %v13553_v0 = vpop.permute.xlu1 %9641  ;;  %v19644_v46 = vld [vmem:[#allocation83_spill] sm:$0xff]  ;;  %v19645_v3 = vld [vmem:[#allocation84_spill] sm:$0xff]  ;;  %v9870_v22 = vpack.i.bf16 %v8527_v51, %v8526_v56  ;;  %v13562_v36 = vsel %vm2990_vm2, %v13168_v61, %v9083_v21 }
 0x27b   : > { %19642 = vst [vmem:[#allocation56_spill] sm:$0xff] %v13553_v0  ;;  %v9119_v14 = vunpack.i.h.bf16 %v19644_v46  ;;  %v9118_v49 = vunpack.i.l.bf16 %v19644_v46  ;;  %v9113_v32 = vunpack.i.l.bf16 %v19645_v3  ;;  %v9114_v2 = vunpack.i.h.bf16 %v19645_v3  ;;  %v19660_v0 = vld [vmem:[#allocation9_spill] sm:$0xff] }
 0x27c   : > { %19643 = vst [vmem:[#allocation57_spill] sm:$0xff] %v13555_v34  ;;  %v9865_v20 = vpack.i.bf16 %v8525_v40, %v8524_v30  ;;  %v9860_v35 = vpack.i.bf16 %v8523_v48, %v8522_v54  ;;  %v13567_v34 = vsel %vm2990_vm2, %v13172_v45, %v9084_v6  ;;  %v13571_v46 = vsel %vm2990_vm2, %v13347_v18, %v9153_v59  ;;  %v8531_v48 = vld [vmem:[%s11604_s24 + $0x142] sm:$0xff] }
 0x27d   : > { %v13575_v56 = vsel %vm2990_vm2, %v13353_v41, %v9154_v26  ;;  %v13579_v61 = vsel %vm2990_vm2, %v13083_v17, %v9103_v63  ;;  %v13583_v21 = vsel %vm2990_vm2, %v13087_v13, %v9104_v12  ;;  %v13587_v45 = vsel %vm2990_vm2, %v13220_v28, %v9098_v53  ;;  %v8530_v26 = vld [vmem:[%s11604_s24 + $0x13a] sm:$0xff]  ;;  %v8529_v53 = vld [vmem:[%s11604_s24 + $0x12a] sm:$0xff] }
 0x27e   : > { %19646 = vst [vmem:[#allocation62_spill] sm:$0xff] %v13575_v56  ;;  %v13591_v18 = vsel %vm2990_vm2, %v13224_v42, %v9099_v60  ;;  %v13595_v41 = vsel %vm2990_vm2, %v13399_v15, %v9168_v1  ;;  %v13599_v17 = vsel %vm2990_vm2, %v13403_v58, %v9169_v29  ;;  %v13603_v13 = vsel %vm2990_vm2, %v13134_v9, %v9118_v49  ;;  %v8532_v15 = vld [vmem:[%s11604_s24 + $0x152] sm:$0xff]  ;;  %v8528_v60 = vld [vmem:[%s11604_s24 + $0x122] sm:$0xff] }
 0x27f   : > { %19647 = vst [vmem:[#allocation63_spill] sm:$0xff] %v13595_v41  ;;  %v13607_v28 = vsel %vm2990_vm2, %v13138_v7, %v9119_v14  ;;  %v13611_v42 = vsel %vm2990_vm2, %v13246_v38, %v9113_v32  ;;  %9871 = vrot.lane.b32.xlu2 %v9870_v22, %s11553_s7  ;;  %v13617_v58 = vsel %vm2990_vm2, %v13250_v31, %v9114_v2  ;;  %v19650_v7 = vld [vmem:[#allocation86_spill] sm:$0xff]  ;;  %v8533_v38 = vld [vmem:[%s11604_s24 + $0x15a] sm:$0xff]  ;;  %v13630_v54 = vpop.permute.xlu2 %9706  ;;  %v19654_v1 = vld [vmem:[#allocation89_spill] sm:$0xff] }
 0x280   : > { %19648 = vst [vmem:[#allocation64_spill] sm:$0xff] %v13599_v17  ;;  %v9134_v30 = vunpack.i.h.bf16 %v19650_v7  ;;  %9866 = vrot.lane.b32.xlu1 %v9865_v20, %s11553_s7  ;;  %9861 = vrot.lane.b32.xlu0 %v9860_v35, %s11553_s7  ;;  %v9133_v59 = vunpack.i.l.bf16 %v19650_v7  ;;  %v19651_v12 = vld [vmem:[#allocation87_spill] sm:$0xff]  ;;  %v19652_v31 = vld [vmem:[#allocation88_spill] sm:$0xff]  ;;  %v9149_v14 = vunpack.i.h.bf16 %v19654_v1  ;;  %v9148_v35 = vunpack.i.l.bf16 %v19654_v1  ;;  %v19655_v49 = vld [vmem:[#allocation90_spill] sm:$0xff]  ;;  %v13641_v2 = vpop.permute.xlu0 %9651 }
 0x281   : > { %v9129_v63 = vunpack.i.h.bf16 %v19651_v12  ;;  %v9128_v22 = vunpack.i.l.bf16 %v19651_v12  ;;  %v9199_v40 = vunpack.i.h.bf16 %v19652_v31  ;;  %19653 = vst [vmem:[#allocation190_spill] sm:$0xff] %v13630_v54  ;;  %v9198_v29 = vunpack.i.l.bf16 %v19652_v31  ;;  %v19658_v7 = vld [vmem:[#allocation91_spill] sm:$0xff]  ;;  %v19659_v9 = vld [vmem:[#allocation92_spill] sm:$0xff] }
 0x282   : > { %v9144_v3 = vunpack.i.h.bf16 %v19655_v49  ;;  %v13639_v32 = vpop.permute.xlu1 %9656  ;;  %19657 = vst [vmem:[#allocation181_spill] sm:$0xff] %v13641_v2  ;;  %v9143_v20 = vunpack.i.l.bf16 %v19655_v49  ;;  %v9214_v12 = vunpack.i.h.bf16 %v19658_v7  ;;  %v9213_v6 = vunpack.i.l.bf16 %v19658_v7  ;;  %v19662_v49 = vld [vmem:[#allocation26_spill] sm:$0xff]  ;;  %v19664_v7 = vld [vmem:[#allocation27_spill] sm:$0xff] }
 0x283   : > { %19656 = vst [vmem:[#allocation191_spill] sm:$0xff] %v13639_v32  ;;  %v9885_v51 = vpack.i.bf16 %v8533_v38, %v8532_v15  ;;  %v9164_v17 = vunpack.i.h.bf16 %v19659_v9  ;;  %v9163_v31 = vunpack.i.l.bf16 %v19659_v9  ;;  %v9880_v41 = vpack.i.bf16 %v8531_v48, %v8530_v26  ;;  %v19661_v32 = vld [vmem:[#allocation10_spill] sm:$0xff]  ;;  %v19663_v15 = vld [vmem:[#allocation93_spill] sm:$0xff] }
 0x284   : > { %v9875_v1 = vpack.i.bf16 %v8529_v53, %v8528_v60  ;;  %v13650_v54 = vsel %vm2990_vm2, %v19660_v0, %v9133_v59  ;;  %v13654_v2 = vsel %vm2990_vm2, %v19661_v32, %v9134_v30  ;;  %v13658_v56 = vsel %vm2990_vm2, %v19662_v49, %v9128_v22  ;;  %v19667_v30 = vld [vmem:[#allocation14_spill] sm:$0xff]  ;;  %v19668_v22 = vld [vmem:[#allocation15_spill] sm:$0xff] }
 0x285   : > { %v9158_v38 = vunpack.i.l.bf16 %v19663_v15  ;;  %v13663_v9 = vsel %vm2990_vm2, %v19664_v7, %v9129_v63  ;;  %v13667_v26 = vsel %vm3055_vm3, %v13443_v10, %v9198_v29  ;;  %v13671_v0 = vsel %vm3055_vm3, %v13447_v43, %v9199_v40  ;;  %v8538_v40 = vld [vmem:[%s11604_s24 + $0x19a] sm:$0xff]  ;;  %v8535_v49 = vld [vmem:[%s11604_s24 + $0x172] sm:$0xff] }
 0x286   : > { %19665 = vst [vmem:[#allocation182_spill] sm:$0xff] %v13667_v26  ;;  %v13675_v59 = vsel %vm2990_vm2, %v19667_v30, %v9148_v35  ;;  %v13679_v48 = vsel %vm2990_vm2, %v19668_v22, %v9149_v14  ;;  %v13683_v63 = vsel %vm2990_vm2, %v13312_v37, %v9143_v20  ;;  %v13687_v10 = vsel %vm2990_vm2, %v13319_v33, %v9144_v3  ;;  %v19671_v37 = vld [vmem:[#allocation157_spill] sm:$0xff]  ;;  %v19672_v33 = vld [vmem:[#allocation158_spill] sm:$0xff]  ;;  %v19675_v32 = vld [vmem:[#allocation95_spill] sm:$0xff] }
 0x287   : > { %19666 = vst [vmem:[#allocation184_spill] sm:$0xff] %v13671_v0  ;;  %v13691_v43 = vsel %vm3055_vm3, %v13486_v50, %v9213_v6  ;;  %9886 = vrot.lane.b32.xlu2 %v9885_v51, %s11553_s7  ;;  %v13697_v60 = vsel %vm3055_vm3, %v13490_v24, %v9214_v12  ;;  %v13701_v53 = vsel %vm2990_vm2, %v19671_v37, %v9163_v31  ;;  %v9159_v50 = vunpack.i.h.bf16 %v19663_v15  ;;  %v8539_v6 = vld [vmem:[%s11604_s24 + $0x1a2] sm:$0xff]  ;;  %v19674_v14 = vld [vmem:[#allocation94_spill] sm:$0xff] }
 0x288   : > { %19669 = vst [vmem:[#allocation187_spill] sm:$0xff] %v13691_v43  ;;  %v13705_v29 = vsel %vm2990_vm2, %v19672_v33, %v9164_v17  ;;  %9881 = vrot.lane.b32.xlu1 %v9880_v41, %s11553_s7  ;;  %9876 = vrot.lane.b32.xlu0 %v9875_v1, %s11553_s7  ;;  %v8536_v51 = vld [vmem:[%s11604_s24 + $0x182] sm:$0xff]  ;;  %v13714_v24 = vsel %vm2990_vm2, %v13339_v16, %v9158_v38  ;;  %v9229_v35 = vunpack.i.h.bf16 %v19674_v14  ;;  %v9228_v3 = vunpack.i.l.bf16 %v19674_v14  ;;  %v13719_v17 = vpop.permute.xlu2 %9721  ;;  %v8537_v12 = vld [vmem:[%s11604_s24 + $0x18a] sm:$0xff]  ;;  %v13730_v22 = vpop.permute.xlu0 %9666  ;;  %v19682_v43 = vld [vmem:[#allocation99_spill] sm:$0xff] }
 0x289   : > { %19670 = vst [vmem:[#allocation69_spill] sm:$0xff] %v13697_v60  ;;  %v9179_v20 = vunpack.i.h.bf16 %v19675_v32  ;;  %v8534_v31 = vld [vmem:[%s11604_s24 + $0x16a] sm:$0xff]  ;;  %v9178_v41 = vunpack.i.l.bf16 %v19675_v32  ;;  %v19677_v1 = vld [vmem:[#allocation96_spill] sm:$0xff]  ;;  %v9900_v60 = vpack.i.bf16 %v8539_v6, %v8538_v40  ;;  %v9189_v0 = vunpack.i.h.bf16 %v19682_v43 }
 0x28a   : > { %19673 = vst [vmem:[#allocation70_spill] sm:$0xff] %v13705_v29  ;;  %v9174_v15 = vunpack.i.h.bf16 %v19677_v1  ;;  %v9173_v7 = vunpack.i.l.bf16 %v19677_v1  ;;  %v19678_v30 = vld [vmem:[#allocation97_spill] sm:$0xff]  ;;  %v13728_v38 = vpop.permute.xlu1 %9671  ;;  %v19681_v33 = vld [vmem:[#allocation98_spill] sm:$0xff]  ;;  %v9188_v32 = vunpack.i.l.bf16 %v19682_v43  ;;  %v9895_v26 = vpack.i.bf16 %v8537_v12, %v8536_v51  ;;  %v19685_v40 = vld [vmem:[#allocation100_spill] sm:$0xff] }
 0x28b   : > { %19676 = vst [vmem:[#allocation73_spill] sm:$0xff] %v13719_v17  ;;  %v9244_v16 = vunpack.i.h.bf16 %v19678_v30  ;;  %v9243_v37 = vunpack.i.l.bf16 %v19678_v30  ;;  %v9194_v14 = vunpack.i.h.bf16 %v19681_v33  ;;  %v9193_v17 = vunpack.i.l.bf16 %v19681_v33  ;;  %v19686_v33 = vld [vmem:[#allocation21_spill] sm:$0xff]  ;;  %v19687_v51 = vld [vmem:[#allocation22_spill] sm:$0xff] }
 0x28c   : > { %19679 = vst [vmem:[#allocation74_spill] sm:$0xff] %v13728_v38  ;;  %v9890_v1 = vpack.i.bf16 %v8535_v49, %v8534_v31  ;;  %v13739_v29 = vsel %vm2990_vm2, %v13343_v5, %v9159_v50  ;;  %v13743_v38 = vsel %vm3055_vm3, %v13510_v19, %v9228_v3  ;;  %v13747_v30 = vsel %vm3055_vm3, %v13514_v55, %v9229_v35  ;;  %v19690_v3 = vld [vmem:[#allocation33_spill] sm:$0xff] }
 0x28d   : > { %19680 = vst [vmem:[#allocation75_spill] sm:$0xff] %v13730_v22  ;;  %v9258_v6 = vunpack.i.l.bf16 %v19685_v40  ;;  %v13752_v43 = vsel %vm2990_vm2, %v19686_v33, %v9178_v41  ;;  %v13756_v12 = vsel %vm2990_vm2, %v19687_v51, %v9179_v20  ;;  %v13760_v5 = vsel %vm2990_vm2, %v13372_v62, %v9173_v7  ;;  %v8544_v62 = vld [vmem:[%s11604_s24 + $0x212] sm:$0xff]  ;;  %v8542_v41 = vld [vmem:[%s11604_s24 + $0x1fa] sm:$0xff] }
 0x28e   : > { %19683 = vst [vmem:[#allocation76_spill] sm:$0xff] %v13743_v38  ;;  %v9259_v19 = vunpack.i.h.bf16 %v19685_v40  ;;  %v13765_v55 = vsel %vm2990_vm2, %v13395_v47, %v9174_v15  ;;  %v13769_v50 = vsel %vm3055_vm3, %v13562_v36, %v9243_v37  ;;  %v13773_v35 = vsel %vm3055_vm3, %v13567_v34, %v9244_v16  ;;  %v19691_v34 = vld [vmem:[#allocation40_spill] sm:$0xff]  ;;  %v19702_v22 = vld [vmem:[#allocation163_spill] sm:$0xff] }
 0x28f   : > { %19684 = vst [vmem:[#allocation77_spill] sm:$0xff] %v13747_v30  ;;  %v13777_v20 = vsel %vm3055_vm3, %v19690_v3, %v9193_v17  ;;  %9901 = vrot.lane.b32.xlu2 %v9900_v60, %s11553_s7  ;;  %v13783_v47 = vsel %vm3055_vm3, %v13307_v4, %v9194_v14  ;;  %v13787_v36 = vsel %vm3055_vm3, %v13416_v23, %v9188_v32  ;;  %v19692_v17 = vld [vmem:[#allocation101_spill] sm:$0xff]  ;;  %v8545_v60 = vld [vmem:[%s11604_s24 + $0x21a] sm:$0xff]  ;;  %v19694_v23 = vld [vmem:[#allocation102_spill] sm:$0xff] }
 0x290   : > { %19688 = vst [vmem:[#allocation188_spill] sm:$0xff] %v13769_v50  ;;  %v13791_v31 = vsel %vm3055_vm3, %v19691_v34, %v9189_v0  ;;  %v9208_v49 = vunpack.i.l.bf16 %v19692_v17  ;;  %9896 = vrot.lane.b32.xlu1 %v9895_v26, %s11553_s7  ;;  %9891 = vrot.lane.b32.xlu0 %v9890_v1, %s11553_s7  ;;  %v13800_v4 = vsel %vm3055_vm3, %v13587_v45, %v9258_v6  ;;  %v9209_v15 = vunpack.i.h.bf16 %v19692_v17  ;;  %v13805_v0 = vpop.permute.xlu2 %9736  ;;  %v8543_v37 = vld [vmem:[%s11604_s24 + $0x202] sm:$0xff]  ;;  %v8541_v32 = vld [vmem:[%s11604_s24 + $0x1ea] sm:$0xff]  ;;  %v19697_v1 = vld [vmem:[#allocation103_spill] sm:$0xff]  ;;  %v13819_v3 = vpop.permute.xlu0 %9681 }
 0x291   : > { %19689 = vst [vmem:[#allocation189_spill] sm:$0xff] %v13773_v35  ;;  %v9204_v7 = vunpack.i.h.bf16 %v19694_v23  ;;  %v9203_v16 = vunpack.i.l.bf16 %v19694_v23  ;;  %v8540_v14 = vld [vmem:[%s11604_s24 + $0x1e2] sm:$0xff]  ;;  %v13812_v26 = vsel %vm3055_vm3, %v13591_v18, %v9259_v19  ;;  %v9274_v40 = vunpack.i.h.bf16 %v19697_v1  ;;  %v19703_v19 = vld [vmem:[#allocation106_spill] sm:$0xff] }
 0x292   : > { %19693 = vst [vmem:[#allocation192_spill] sm:$0xff] %v13800_v4  ;;  %v9273_v45 = vunpack.i.l.bf16 %v19697_v1  ;;  %v19698_v6 = vld [vmem:[#allocation104_spill] sm:$0xff]  ;;  %v13817_v51 = vpop.permute.xlu1 %9686  ;;  %v19701_v17 = vld [vmem:[#allocation105_spill] sm:$0xff]  ;;  %v9915_v4 = vpack.i.bf16 %v8545_v60, %v8544_v62  ;;  %v13826_v18 = vsel %vm3055_vm3, %v19702_v22, %v9208_v49  ;;  %v9910_v1 = vpack.i.bf16 %v8543_v37, %v8542_v41  ;;  %v19704_v50 = vld [vmem:[#allocation174_spill] sm:$0xff] }
 0x293   : > { %19695 = vst [vmem:[#allocation193_spill] sm:$0xff] %v13805_v0  ;;  %v9223_v33 = vunpack.i.l.bf16 %v19698_v6  ;;  %v9224_v34 = vunpack.i.h.bf16 %v19698_v6  ;;  %v9219_v23 = vunpack.i.h.bf16 %v19701_v17  ;;  %v9218_v0 = vunpack.i.l.bf16 %v19701_v17  ;;  %v19706_v62 = vld [vmem:[#allocation107_spill] sm:$0xff]  ;;  %v19707_v30 = vld [vmem:[#allocation172_spill] sm:$0xff] }
 0x294   : > { %19696 = vst [vmem:[#allocation78_spill] sm:$0xff] %v13812_v26  ;;  %v9288_v26 = vunpack.i.l.bf16 %v19703_v19  ;;  %v9905_v35 = vpack.i.bf16 %v8541_v32, %v8540_v14  ;;  %v9289_v17 = vunpack.i.h.bf16 %v19703_v19  ;;  %v9238_v60 = vunpack.i.l.bf16 %v19706_v62  ;;  %v19710_v41 = vld [vmem:[#allocation175_spill] sm:$0xff]  ;;  %v3416_v14 = vld [vmem:[%s18882_s1 + $0x10] sm:$0x3] }
 0x295   : > { %19699 = vst [vmem:[#allocation79_spill] sm:$0xff] %v13817_v51  ;;  %v13831_v51 = vsel %vm3055_vm3, %v19704_v50, %v9209_v15  ;;  %v13841_v22 = vsel %vm3055_vm3, %v19707_v30, %v9204_v7  ;;  %v13845_v49 = vsel %vm3055_vm3, %v13611_v42, %v9273_v45  ;;  %v13849_v50 = vsel %vm3055_vm3, %v13617_v58, %v9274_v40  ;;  %v8550_v58 = vld [vmem:[%s11604_s24 + $0x25a] sm:$0xff]  ;;  %v8548_v40 = vld [vmem:[%s11604_s24 + $0x242] sm:$0xff] }
 0x296   : > { %19700 = vst [vmem:[#allocation80_spill] sm:$0xff] %v13819_v3  ;;  %v19705_v3 = vld [vmem:[#allocation46_spill] sm:$0xff]  ;;  %v13853_v15 = vsel %vm3055_vm3, %v19710_v41, %v9223_v33  ;;  %v13861_v30 = vsel %vm3055_vm3, %v13478_v57, %v9218_v0  ;;  %v13865_v42 = vsel %vm3055_vm3, %v13482_v11, %v9219_v23  ;;  %v9239_v7 = vunpack.i.h.bf16 %v19706_v62  ;;  %v19715_v0 = vld [vmem:[#allocation108_spill] sm:$0xff] }
 0x297   : > { %v13835_v6 = vsel %vm3055_vm3, %v19705_v3, %v9203_v16  ;;  %19708 = vst [vmem:[#allocation81_spill] sm:$0xff] %v13845_v49  ;;  %v19712_v16 = vld [vmem:[#allocation38_spill] sm:$0xff]  ;;  %9916 = vrot.lane.b32.xlu2 %v9915_v4, %s11553_s7  ;;  %v13875_v57 = vsel %vm3055_vm3, %v13658_v56, %v9288_v26  ;;  %v9234_v32 = vunpack.i.h.bf16 %v19715_v0  ;;  %v9233_v11 = vunpack.i.l.bf16 %v19715_v0  ;;  %v8551_v4 = vld [vmem:[%s11604_s24 + $0x262] sm:$0xff]  ;;  %v19717_v3 = vld [vmem:[#allocation171_spill] sm:$0xff] }
 0x298   : > { %19709 = vst [vmem:[#allocation82_spill] sm:$0xff] %v13849_v50  ;;  %v13857_v37 = vsel %vm3055_vm3, %v19712_v16, %v9224_v34  ;;  %9911 = vrot.lane.b32.xlu1 %v9910_v1, %s11553_s7  ;;  %9906 = vrot.lane.b32.xlu0 %v9905_v35, %s11553_s7  ;;  %v3430_v45 = vunpack.c.l.b16 %v3416_v14  ;;  %v13885_v33 = vsel %vm3055_vm3, %v13663_v9, %v9289_v17  ;;  %v19719_v56 = vld [vmem:[#allocation109_spill] sm:$0xff]  ;;  %v13893_v19 = vpop.permute.xlu2 %9751  ;;  %v8547_v35 = vld [vmem:[%s11604_s24 + $0x232] sm:$0xff] }
 0x299   : > { %19711 = vst [vmem:[#allocation83_spill] sm:$0xff] %v13853_v15  ;;  %v13889_v34 = vsel %vm3055_vm3, %v19717_v3, %v9238_v60  ;;  %v9304_v26 = vunpack.i.h.bf16 %v19719_v56  ;;  %v9303_v23 = vunpack.i.l.bf16 %v19719_v56  ;;  %v8549_v1 = vld [vmem:[%s11604_s24 + $0x24a] sm:$0xff]  ;;  %v19722_v0 = vld [vmem:[#allocation111_spill] sm:$0xff]  ;;  %v9930_v50 = vpack.i.bf16 %v8551_v4, %v8550_v58 }
 0x29a   : > { %19713 = vst [vmem:[#allocation84_spill] sm:$0xff] %v13857_v37  ;;  %v8546_v62 = vld [vmem:[%s11604_s24 + $0x22a] sm:$0xff]  ;;  %v9249_v9 = vunpack.i.h.bf16 %v19722_v0  ;;  %v13901_v17 = vpop.permute.xlu1 %9701  ;;  %v3433_v60 = vpack.c.b16 %v3430_v45, %v3430_v45  ;;  %v9248_v3 = vunpack.i.l.bf16 %v19722_v0  ;;  %v9925_v37 = vpack.i.bf16 %v8549_v1, %v8548_v40 }
 0x29b   : > { %19714 = vst [vmem:[#allocation86_spill] sm:$0xff] %v13875_v57  ;;  %v19721_v41 = vld [vmem:[#allocation110_spill] sm:$0xff]  ;;  %v19724_v57 = vld [vmem:[#allocation112_spill] sm:$0xff]  ;;  %v9920_v15 = vpack.i.bf16 %v8547_v35, %v8546_v62  ;;  %v13915_v45 = vsel %vm3055_vm3, %v13502_v25, %v9233_v11  ;;  %v13920_v58 = vsel %vm3055_vm3, %v13506_v44, %v9234_v32  ;;  %v13928_v4 = vsel %vm3055_vm3, %v13687_v10, %v9304_v26  ;;  %v19729_v44 = vld [vmem:[#allocation45_spill] sm:$0xff] }
 0x29c   : > { %19716 = vst [vmem:[#allocation87_spill] sm:$0xff] %v13885_v33  ;;  %v9254_v16 = vunpack.i.h.bf16 %v19721_v41  ;;  %v9253_v14 = vunpack.i.l.bf16 %v19721_v41  ;;  %v13903_v33 = vpop.permute.xlu0 %9696  ;;  %v9319_v56 = vunpack.i.h.bf16 %v19724_v57  ;;  %v19725_v49 = vld [vmem:[#allocation114_spill] sm:$0xff]  ;;  %v19726_v41 = vld [vmem:[#allocation39_spill] sm:$0xff]  ;;  %v19728_v25 = vld [vmem:[#allocation44_spill] sm:$0xff]  ;;  %v13945_v10 = vsel %vm3055_vm3, %v13533_v27, %v9249_v9 }
 0x29d   : > { %19718 = vst [vmem:[#allocation88_spill] sm:$0xff] %v13889_v34  ;;  %v9263_v34 = vunpack.i.l.bf16 %v19725_v49  ;;  %v13911_v38 = vsel %vm3055_vm3, %v19726_v41, %v9239_v7  ;;  %v9264_v0 = vunpack.i.h.bf16 %v19725_v49  ;;  %v19727_v7 = vld [vmem:[#allocation115_spill] sm:$0xff]  ;;  %v8556_v11 = vld [vmem:[%s11604_s24 + $0x2a2] sm:$0xff]  ;;  %v8554_v1 = vld [vmem:[%s11604_s24 + $0x28a] sm:$0xff] }
 0x29e   : > { %19720 = vst [vmem:[#allocation89_spill] sm:$0xff] %v13893_v19  ;;  %v9318_v19 = vunpack.i.l.bf16 %v19724_v57  ;;  %v13924_v57 = vsel %vm3055_vm3, %v13683_v63, %v9303_v23  ;;  %v9333_v40 = vunpack.i.l.bf16 %v19727_v7  ;;  %v13933_v49 = vsel %vm3055_vm3, %v19728_v25, %v9253_v14  ;;  %v8668_v26 = vld [vmem:[%s18882_s1 + $0x8] sm:$0xff]  ;;  %v8553_v14 = vld [vmem:[%s11604_s24 + $0x27a] sm:$0xff] }
 0x29f   : > { %19723 = vst [vmem:[#allocation90_spill] sm:$0xff] %v13901_v17  ;;  %v3535_v17 = vsel %vm3533_vm4, %v3433_v60, 0  ;;  %v13937_v32 = vsel %vm3055_vm3, %v19729_v44, %v9254_v16  ;;  %v13941_v63 = vsel %vm3055_vm3, %v13529_v39, %v9248_v3  ;;  %9931 = vrot.lane.b32.xlu2 %v9930_v50, %s11553_s7  ;;  %v13958_v39 = vsel %vm3055_vm3, %v13739_v29, %v9319_v56  ;;  %v8557_v50 = vld [vmem:[%s11604_s24 + $0x2aa] sm:$0xff]  ;;  %v19739_v44 = vld [vmem:[#allocation120_spill] sm:$0xff] }
 0x2a0   : > { %3542 = vmatpush.bf16.msra.mxu0 %v3535_v17  ;;  %8674 = vmatpush.bf16.msra.mxu3 %v3535_v17  ;;  %v13954_v23 = vsel %vm3055_vm3, %v13714_v24, %v9318_v19  ;;  %19731 = vst [vmem:[#allocation92_spill] sm:$0xff] %v13958_v39  ;;  %v13962_v27 = vsel %vm3055_vm3, %v13579_v61, %v9263_v34  ;;  %v9334_v24 = vunpack.i.h.bf16 %v19727_v7  ;;  %v19732_v19 = vld [vmem:[#allocation116_spill] sm:$0xff]  ;;  %v13975_v16 = vpop.permute.xlu2 %9766  ;;  %v8555_v61 = vld [vmem:[%s11604_s24 + $0x292] sm:$0xff] }
 0x2a1   : > { %19730 = vst [vmem:[#allocation91_spill] sm:$0xff] %v13954_v23  ;;  %9926 = vrot.lane.b32.xlu1 %v9925_v37, %s11553_s7  ;;  %9921 = vrot.lane.b32.xlu0 %v9920_v15, %s11553_s7  ;;  %v13970_v62 = vsel %vm3055_vm3, %v13583_v21, %v9264_v0  ;;  %v9284_v29 = vunpack.i.h.bf16 %v19732_v19  ;;  %v9283_v35 = vunpack.i.l.bf16 %v19732_v19  ;;  %v8552_v34 = vld [vmem:[%s11604_s24 + $0x272] sm:$0xff]  ;;  %v13982_v15 = vsel %vm3055_vm3, %v13760_v5, %v9333_v40  ;;  %v19735_v37 = vld [vmem:[#allocation117_spill] sm:$0xff]  ;;  %v8667_v40 = vld [vmem:[%s18882_s1] sm:$0xff] }
 0x2a2   : > { %19733 = vst [vmem:[#allocation9_spill] sm:$0xff] %v13975_v16  ;;  %v9279_v9 = vunpack.i.h.bf16 %v19735_v37  ;;  %v9278_v21 = vunpack.i.l.bf16 %v19735_v37  ;;  %v19736_v17 = vld [vmem:[#allocation118_spill] sm:$0xff]  ;;  %v13987_v3 = vpop.permute.xlu1 %9716  ;;  %v19738_v0 = vld [vmem:[#allocation119_spill] sm:$0xff]  ;;  %v9945_v5 = vpack.i.bf16 %v8557_v50, %v8556_v11  ;;  %v9294_v19 = vunpack.i.h.bf16 %v19739_v44 }
 0x2a3   : > { %19734 = vst [vmem:[#allocation10_spill] sm:$0xff] %v13982_v15  ;;  %v9349_v60 = vunpack.i.h.bf16 %v19736_v17  ;;  %v9348_v41 = vunpack.i.l.bf16 %v19736_v17  ;;  %v9299_v7 = vunpack.i.h.bf16 %v19738_v0  ;;  %v9298_v25 = vunpack.i.l.bf16 %v19738_v0  ;;  %v19741_v17 = vld [vmem:[#allocation121_spill] sm:$0xff]  ;;  %v19742_v11 = vld [vmem:[#allocation122_spill] sm:$0xff] }
 0x2a4   : > { %19737 = vst [vmem:[#allocation26_spill] sm:$0xff] %v13987_v3  ;;  %v13989_v56 = vpop.permute.xlu0 %9711  ;;  %3543 = vmatpush.bf16.msra.mxu0 %v8668_v26  ;;  %8675 = vmatpush.bf16.msra.mxu3 %v8668_v26  ;;  %v9293_v37 = vunpack.i.l.bf16 %v19739_v44  ;;  %v9940_v15 = vpack.i.bf16 %v8555_v61, %v8554_v1  ;;  %v9935_v39 = vpack.i.bf16 %v8553_v14, %v8552_v34  ;;  %v9364_v23 = vunpack.i.h.bf16 %v19741_v17  ;;  %v19745_v61 = vld [vmem:[#allocation177_spill] sm:$0xff]  ;;  %v19747_v34 = vld [vmem:[#allocation123_spill] sm:$0xff] }
 0x2a5   : > { %v14001_v26 = vsel %vm3055_vm3, %v13765_v55, %v9334_v24  ;;  %v9363_v0 = vunpack.i.l.bf16 %v19741_v17  ;;  %v9313_v50 = vunpack.i.l.bf16 %v19742_v11  ;;  %v14008_v16 = vsel %vm3055_vm3, %v13494_v52, %v9283_v35  ;;  %v8562_v35 = vld [vmem:[%s11604_s24 + $0x2ea] sm:$0xff] }
 0x2a6   : > { %19740 = vst [vmem:[#allocation93_spill] sm:$0xff] %v14001_v26  ;;  %v14012_v44 = vsel %vm3055_vm3, %v13498_v8, %v9284_v29  ;;  %v14016_v1 = vsel %vm3055_vm3, %v13603_v13, %v9278_v21  ;;  %v9314_v55 = vunpack.i.h.bf16 %v19742_v11  ;;  %v14021_v24 = vsel %vm3055_vm3, %v13607_v28, %v9279_v9  ;;  %v19743_v13 = vld [vmem:[#allocation176_spill] sm:$0xff]  ;;  %v8563_v9 = vld [vmem:[%s11604_s24 + $0x2f2] sm:$0xff] }
 0x2a7   : > { %v14025_v52 = vsel %vm3120_vm5, %v13787_v36, %v9348_v41  ;;  %v14029_v8 = vsel %vm3120_vm5, %v13791_v31, %v9349_v60  ;;  %v14033_v29 = vsel %vm3055_vm3, %v19743_v13, %v9298_v25  ;;  %9946 = vrot.lane.b32.xlu2 %v9945_v5, %s11553_s7  ;;  %v14039_v28 = vsel %vm3055_vm3, %v19745_v61, %v9299_v7  ;;  %v8560_v21 = vld [vmem:[%s11604_s24 + $0x2d2] sm:$0xff]  ;;  %v8559_v25 = vld [vmem:[%s11604_s24 + $0x2c2] sm:$0xff] }
 0x2a8   : > { %3544 = vmatpush.bf16.msra.mxu0 %v8667_v40  ;;  %8676 = vmatpush.bf16.msra.mxu3 %v8667_v40  ;;  %19744 = vst [vmem:[#allocation27_spill] sm:$0xff] %v14033_v29  ;;  %v14043_v36 = vsel %vm3055_vm3, %v13650_v54, %v9293_v37  ;;  %v14047_v31 = vsel %vm3055_vm3, %v13654_v2, %v9294_v19  ;;  %v9309_v14 = vunpack.i.h.bf16 %v19747_v34  ;;  %v9308_v41 = vunpack.i.l.bf16 %v19747_v34  ;;  %v14067_v7 = vpop.permute.xlu2 %9781  ;;  %v19750_v5 = vld [vmem:[#allocation62_spill] sm:$0xff]  ;;  %v19755_v11 = vld [vmem:[#allocation127_spill] sm:$0xff]  ;;  %v19756_v34 = vld [vmem:[#allocation129_spill] sm:$0xff] }
 0x2a9   : > { %19746 = vst [vmem:[#allocation14_spill] sm:$0xff] %v14039_v28  ;;  %9941 = vrot.lane.b32.xlu1 %v9940_v15, %s11553_s7  ;;  %9936 = vrot.lane.b32.xlu0 %v9935_v39, %s11553_s7  ;;  %v14056_v60 = vsel %vm3120_vm5, %v13835_v6, %v9363_v0  ;;  %v14060_v54 = vsel %vm3120_vm5, %v13841_v22, %v9364_v23  ;;  %v8561_v15 = vld [vmem:[%s11604_s24 + $0x2da] sm:$0xff]  ;;  %v19753_v23 = vld [vmem:[#allocation126_spill] sm:$0xff]  ;;  %v9393_v13 = vunpack.i.l.bf16 %v19755_v11 }
 0x2aa   : > { %v14064_v2 = vsel %vm3055_vm3, %v13571_v46, %v9313_v50  ;;  %19749 = vst [vmem:[#allocation157_spill] sm:$0xff] %v14067_v7  ;;  %v8558_v39 = vld [vmem:[%s11604_s24 + $0x2ba] sm:$0xff]  ;;  %v14074_v40 = vsel %vm3055_vm3, %v19750_v5, %v9314_v55  ;;  %v9324_v37 = vunpack.i.h.bf16 %v19753_v23  ;;  %v14079_v17 = vpop.permute.xlu1 %9731  ;;  %v9323_v0 = vunpack.i.l.bf16 %v19753_v23 }
 0x2ab   : > { %19748 = vst [vmem:[#allocation15_spill] sm:$0xff] %v14064_v2  ;;  %v19752_v6 = vld [vmem:[#allocation124_spill] sm:$0xff]  ;;  %v9394_v50 = vunpack.i.h.bf16 %v19755_v11  ;;  %v9960_v61 = vpack.i.bf16 %v8563_v9, %v8562_v35  ;;  %v9339_v55 = vunpack.i.h.bf16 %v19756_v34  ;;  %v9338_v5 = vunpack.i.l.bf16 %v19756_v34  ;;  %v19757_v2 = vld [vmem:[#allocation130_spill] sm:$0xff]  ;;  %v19758_v28 = vld [vmem:[#allocation131_spill] sm:$0xff] }
 0x2ac   : > { %19751 = vst [vmem:[#allocation158_spill] sm:$0xff] %v14074_v40  ;;  %v9379_v19 = vunpack.i.h.bf16 %v19752_v6  ;;  %v9378_v22 = vunpack.i.l.bf16 %v19752_v6  ;;  %v14081_v46 = vpop.permute.xlu0 %9726  ;;  %v9955_v26 = vpack.i.bf16 %v8561_v15, %v8560_v21  ;;  %v9950_v6 = vpack.i.bf16 %v8559_v25, %v8558_v39  ;;  %v19760_v15 = vld [vmem:[#allocation70_spill] sm:$0xff]  ;;  %v19761_v25 = vld [vmem:[#allocation132_spill] sm:$0xff] }
 0x2ad   : > { %19754 = vst [vmem:[#allocation94_spill] sm:$0xff] %v14079_v17  ;;  %v14090_v40 = vsel %vm3055_vm3, %v13675_v59, %v9308_v41  ;;  %v9409_v7 = vunpack.i.h.bf16 %v19757_v2  ;;  %v9408_v23 = vunpack.i.l.bf16 %v19757_v2  ;;  %v9358_v29 = vunpack.i.l.bf16 %v19758_v28  ;;  %v19771_v17 = vld [vmem:[#allocation137_spill] sm:$0xff] }
 0x2ae   : > { %v14097_v35 = vsel %vm3055_vm3, %v13679_v48, %v9309_v14  ;;  %v14101_v9 = vsel %vm3120_vm5, %v13861_v30, %v9378_v22  ;;  %v14105_v59 = vsel %vm3120_vm5, %v13865_v42, %v9379_v19  ;;  %v14110_v2 = vsel %vm3055_vm3, %v13701_v53, %v9323_v0  ;;  %v8568_v42 = vld [vmem:[%s11604_s24 + $0x332] sm:$0xff]  ;;  %v8566_v22 = vld [vmem:[%s11604_s24 + $0x31a] sm:$0xff] }
 0x2af   : > { %v14114_v48 = vsel %vm3055_vm3, %v19760_v15, %v9324_v37  ;;  %v14118_v14 = vsel %vm3120_vm5, %v13915_v45, %v9393_v13  ;;  %v14122_v30 = vsel %vm3120_vm5, %v13920_v58, %v9394_v50  ;;  %9961 = vrot.lane.b32.xlu2 %v9960_v61, %s11553_s7  ;;  %v14128_v53 = vsel %vm3055_vm3, %v13752_v43, %v9338_v5  ;;  %v8569_v58 = vld [vmem:[%s11604_s24 + $0x33a] sm:$0xff]  ;;  %v8564_v50 = vld [vmem:[%s11604_s24 + $0x302] sm:$0xff]  ;;  %v8565_v13 = vld [vmem:[%s11604_s24 + $0x30a] sm:$0xff] }
 0x2b0   : > { %v14132_v39 = vsel %vm3055_vm3, %v13756_v12, %v9339_v55  ;;  %v9359_v45 = vunpack.i.h.bf16 %v19758_v28  ;;  %v9354_v19 = vunpack.i.h.bf16 %v19761_v25  ;;  %v14142_v37 = vsel %vm3120_vm5, %v13941_v63, %v9408_v23  ;;  %v19764_v12 = vld [vmem:[#allocation182_spill] sm:$0xff]  ;;  %v14153_v11 = vpop.permute.xlu2 %9796  ;;  %v19766_v61 = vld [vmem:[#allocation133_spill] sm:$0xff] }
 0x2b1   : > { %9956 = vrot.lane.b32.xlu1 %v9955_v26, %s11553_s7  ;;  %9951 = vrot.lane.b32.xlu0 %v9950_v6, %s11553_s7  ;;  %19762 = vst [vmem:[#allocation95_spill] sm:$0xff] %v14142_v37  ;;  %v14146_v43 = vsel %vm3120_vm5, %v13945_v10, %v9409_v7  ;;  %v14150_v0 = vsel %vm3120_vm5, %v19764_v12, %v9358_v29  ;;  %v9353_v28 = vunpack.i.l.bf16 %v19761_v25  ;;  %v8567_v26 = vld [vmem:[%s11604_s24 + $0x322] sm:$0xff]  ;;  %v9424_v34 = vunpack.i.h.bf16 %v19766_v61  ;;  %v19767_v55 = vld [vmem:[#allocation134_spill] sm:$0xff]  ;;  %v19769_v29 = vld [vmem:[#allocation135_spill] sm:$0xff] }
 0x2b2   : > { %19763 = vst [vmem:[#allocation96_spill] sm:$0xff] %v14146_v43  ;;  %v9423_v63 = vunpack.i.l.bf16 %v19766_v61  ;;  %v9374_v5 = vunpack.i.h.bf16 %v19767_v55  ;;  %v9373_v10 = vunpack.i.l.bf16 %v19767_v55  ;;  %v14162_v7 = vpop.permute.xlu1 %9746  ;;  %v9369_v23 = vunpack.i.h.bf16 %v19769_v29  ;;  %v19770_v25 = vld [vmem:[#allocation136_spill] sm:$0xff] }
 0x2b3   : > { %19765 = vst [vmem:[#allocation97_spill] sm:$0xff] %v14153_v11  ;;  %v9368_v15 = vunpack.i.l.bf16 %v19769_v29  ;;  %v9439_v12 = vunpack.i.h.bf16 %v19770_v25  ;;  %v9975_v41 = vpack.i.bf16 %v8569_v58, %v8568_v42  ;;  %v9438_v11 = vunpack.i.l.bf16 %v19770_v25  ;;  %v19772_v37 = vld [vmem:[#allocation184_spill] sm:$0xff] }
 0x2b4   : > { %19768 = vst [vmem:[#allocation98_spill] sm:$0xff] %v14162_v7  ;;  %v14164_v6 = vpop.permute.xlu0 %9741  ;;  %v9388_v3 = vunpack.i.l.bf16 %v19771_v17  ;;  %v9970_v61 = vpack.i.bf16 %v8567_v26, %v8566_v22  ;;  %v9965_v43 = vpack.i.bf16 %v8565_v13, %v8564_v50  ;;  %v14173_v55 = vsel %vm3120_vm5, %v19772_v37, %v9359_v45  ;;  %v19774_v45 = vld [vmem:[#allocation187_spill] sm:$0xff]  ;;  %v19776_v26 = vld [vmem:[#allocation69_spill] sm:$0xff] }
 0x2b5   : > { %v14177_v7 = vsel %vm3120_vm5, %v13777_v20, %v9353_v28  ;;  %v14181_v29 = vsel %vm3120_vm5, %v13783_v47, %v9354_v19  ;;  %v9389_v42 = vunpack.i.h.bf16 %v19771_v17  ;;  %v14186_v58 = vsel %vm3120_vm5, %v13962_v27, %v9423_v63  ;;  %v19775_v20 = vld [vmem:[#allocation138_spill] sm:$0xff]  ;;  %v19781_v63 = vld [vmem:[#allocation139_spill] sm:$0xff] }
 0x2b6   : > { %v14190_v22 = vsel %vm3120_vm5, %v13970_v62, %v9424_v34  ;;  %v14194_v37 = vsel %vm3120_vm5, %v19774_v45, %v9373_v10  ;;  %v9383_v28 = vunpack.i.l.bf16 %v19775_v20  ;;  %v14199_v47 = vsel %vm3120_vm5, %v19776_v26, %v9374_v5  ;;  %v19788_v26 = vld [vmem:[#allocation84_spill] sm:$0xff] }
 0x2b7   : > { %19773 = vst [vmem:[#allocation99_spill] sm:$0xff] %v14190_v22  ;;  %v14203_v17 = vsel %vm3120_vm5, %v13826_v18, %v9368_v15  ;;  %v14207_v27 = vsel %vm3120_vm5, %v13831_v51, %v9369_v23  ;;  %v9384_v62 = vunpack.i.h.bf16 %v19775_v20  ;;  %9976 = vrot.lane.b32.xlu2 %v9975_v41, %s11553_s7  ;;  %v14214_v50 = vsel %vm3120_vm5, %v14016_v1, %v9438_v11  ;;  %v19779_v18 = vld [vmem:[#allocation76_spill] sm:$0xff]  ;;  %v19780_v51 = vld [vmem:[#allocation77_spill] sm:$0xff]  ;;  %v8571_v15 = vld [vmem:[%s11604_s24 + $0x352] sm:$0xff] }
 0x2b8   : > { %19777 = vst [vmem:[#allocation100_spill] sm:$0xff] %v14214_v50  ;;  %v14218_v13 = vsel %vm3120_vm5, %v14021_v24, %v9439_v12  ;;  %v14222_v34 = vsel %vm3120_vm5, %v19779_v18, %v9388_v3  ;;  %v14228_v41 = vsel %vm3120_vm5, %v19780_v51, %v9389_v42  ;;  %v9454_v5 = vunpack.i.h.bf16 %v19781_v63  ;;  %v19782_v11 = vld [vmem:[#allocation140_spill] sm:$0xff]  ;;  %v14233_v24 = vpop.permute.xlu2 %9811  ;;  %v8570_v23 = vld [vmem:[%s11604_s24 + $0x34a] sm:$0xff]  ;;  %v19784_v3 = vld [vmem:[#allocation83_spill] sm:$0xff] }
 0x2b9   : > { %19778 = vst [vmem:[#allocation21_spill] sm:$0xff] %v14218_v13  ;;  %9971 = vrot.lane.b32.xlu1 %v9970_v61, %s11553_s7  ;;  %9966 = vrot.lane.b32.xlu0 %v9965_v43, %s11553_s7  ;;  %v9453_v1 = vunpack.i.l.bf16 %v19781_v63  ;;  %v9403_v10 = vunpack.i.l.bf16 %v19782_v11  ;;  %v14239_v25 = vsel %vm3120_vm5, %v19784_v3, %v9383_v28  ;;  %v9404_v43 = vunpack.i.h.bf16 %v19782_v11  ;;  %v19785_v12 = vld [vmem:[#allocation141_spill] sm:$0xff]  ;;  %v19789_v51 = vld [vmem:[#allocation142_spill] sm:$0xff]  ;;  %v19790_v28 = vld [vmem:[#allocation143_spill] sm:$0xff] }
 0x2ba   : > { %19783 = vst [vmem:[#allocation22_spill] sm:$0xff] %v14233_v24  ;;  %v9399_v61 = vunpack.i.h.bf16 %v19785_v12  ;;  %v9398_v42 = vunpack.i.l.bf16 %v19785_v12  ;;  %v14244_v45 = vpop.permute.xlu1 %9761  ;;  %v14250_v18 = vsel %vm3120_vm5, %v19788_v26, %v9384_v62  ;;  %v9469_v63 = vunpack.i.h.bf16 %v19789_v51  ;;  %v19791_v24 = vld [vmem:[#allocation144_spill] sm:$0xff] }
 0x2bb   : > { %19786 = vst [vmem:[#allocation33_spill] sm:$0xff] %v14244_v45  ;;  %v9468_v19 = vunpack.i.l.bf16 %v19789_v51  ;;  %v9419_v3 = vunpack.i.h.bf16 %v19790_v28  ;;  %v9418_v11 = vunpack.i.l.bf16 %v19790_v28  ;;  %v9413_v21 = vunpack.i.l.bf16 %v19791_v24  ;;  %v19792_v26 = vld [vmem:[#allocation188_spill] sm:$0xff] }
 0x2bc   : > { %v14246_v20 = vpop.permute.xlu0 %9756  ;;  %v9980_v12 = vpack.i.bf16 %v8571_v15, %v8570_v23  ;;  %v14259_v45 = vsel %vm3120_vm5, %v14043_v36, %v9453_v1  ;;  %v14263_v62 = vsel %vm3120_vm5, %v14047_v31, %v9454_v5  ;;  %v14267_v13 = vsel %vm3120_vm5, %v19792_v26, %v9403_v10  ;;  %v19793_v51 = vld [vmem:[#allocation168_spill] sm:$0xff]  ;;  %v19797_v10 = vld [vmem:[#allocation75_spill] sm:$0xff] }
 0x2bd   : > { %19787 = vst [vmem:[#allocation40_spill] sm:$0xff] %v14246_v20  ;;  %v9508_v50 = vunpack.i.l.bf16 %v19793_v51  ;;  %v19794_v20 = vld [vmem:[#allocation189_spill] sm:$0xff]  ;;  %v19795_v22 = vld [vmem:[#allocation88_spill] sm:$0xff]  ;;  %v14280_v36 = vsel %vm3120_vm5, %v13911_v38, %v9399_v61  ;;  %v9509_v31 = vunpack.i.h.bf16 %v19793_v51  ;;  %v14285_v5 = vsel %vm3120_vm5, %v14090_v40, %v9468_v19  ;;  %v19800_v61 = vld [vmem:[#allocation78_spill] sm:$0xff] }
 0x2be   : > { %v14272_v28 = vsel %vm3120_vm5, %v19794_v20, %v9404_v43  ;;  %v14276_v23 = vsel %vm3120_vm5, %v19795_v22, %v9398_v42  ;;  %19796 = vst [vmem:[#allocation101_spill] sm:$0xff] %v14285_v5  ;;  %v9414_v1 = vunpack.i.h.bf16 %v19791_v24  ;;  %v9669_v15 = vunpack.i.h.bf16 %v19797_v10  ;;  %v19799_v42 = vld [vmem:[#allocation192_spill] sm:$0xff]  ;;  %v19802_v19 = vld [vmem:[#allocation145_spill] sm:$0xff] }
 0x2bf   : > { %v9668_v43 = vunpack.i.l.bf16 %v19797_v10  ;;  %v14292_v22 = vsel %vm3120_vm5, %v14097_v35, %v9469_v63  ;;  %v14296_v38 = vsel %vm3120_vm5, %v19799_v42, %v9418_v11  ;;  %v14300_v20 = vsel %vm3120_vm5, %v19800_v61, %v9419_v3 }
 0x2c0   : > { %19798 = vst [vmem:[#allocation102_spill] sm:$0xff] %v14292_v22  ;;  %v14304_v40 = vsel %vm3120_vm5, %v13933_v49, %v9413_v21  ;;  %v9484_v24 = vunpack.i.h.bf16 %v19802_v19  ;;  %v9483_v26 = vunpack.i.l.bf16 %v19802_v19  ;;  %v3186_v35 = vsel %vm3185_vm6, %v14025_v52, %v9508_v50  ;;  %v9827_v63 = vpop.permute.xlu2 %9826  ;;  %v19804_v21 = vld [vmem:[#allocation146_spill] sm:$0xff]  ;;  %v19805_v50 = vld [vmem:[#allocation148_spill] sm:$0xff] }
 0x2c1   : > { %19801 = vst [vmem:[#allocation103_spill] sm:$0xff] %v14300_v20  ;;  %9981 = vrot.lane.b32.xlu0 %v9980_v12, %s11553_s7  ;;  %v3187_v11 = vsel %vm3185_vm6, %v14029_v8, %v9509_v31  ;;  %v9829_v3 = vunpack.i.h.bf16 %v9827_v63  ;;  %v9828_v51 = vunpack.i.l.bf16 %v9827_v63  ;;  %v9434_v12 = vunpack.i.h.bf16 %v19804_v21  ;;  %v19806_v63 = vld [vmem:[#allocation149_spill] sm:$0xff] }
 0x2c2   : > { %v14313_v10 = vpop.permute.xlu1 %9776  ;;  %v9433_v42 = vunpack.i.l.bf16 %v19804_v21  ;;  %v3251_v61 = vsel %vm3250_vm8, %v3186_v35, %v9668_v43  ;;  %v3252_v52 = vsel %vm3250_vm8, %v3187_v11, %v9669_v15  ;;  %v9498_v19 = vunpack.i.l.bf16 %v19805_v50  ;;  %v19807_v43 = vld [vmem:[#allocation179_spill] sm:$0xff] }
 0x2c3   : > { %19803 = vst [vmem:[#allocation104_spill] sm:$0xff] %v14313_v10  ;;  %v3316_v22 = vsel %vm3315_vm7, %v3251_v61, %v9828_v51  ;;  %v3317_v8 = vsel %vm3315_vm7, %v3252_v52, %v9829_v3  ;;  %v9499_v31 = vunpack.i.h.bf16 %v19805_v50  ;;  %v9449_v10 = vunpack.i.h.bf16 %v19806_v63  ;;  %v19808_v51 = vld [vmem:[#allocation81_spill] sm:$0xff] }
 0x2c4   : > { %v14315_v49 = vpop.permute.xlu0 %9771  ;;  %v9448_v5 = vunpack.i.l.bf16 %v19806_v63  ;;  %v3380_v20 = vpack.c.bf16 %v3317_v8, %v3316_v22  ;;  %v14329_v21 = vsel %vm3120_vm5, %v13937_v32, %v9414_v1  ;;  %v14333_v15 = vsel %vm3120_vm5, %v14110_v2, %v9483_v26  ;;  %v19809_v22 = vld [vmem:[#allocation80_spill] sm:$0xff]  ;;  %v19810_v2 = vld [vmem:[#allocation82_spill] sm:$0xff] }
 0x2c5   : > { %v9524_v35 = vunpack.i.h.bf16 %v19807_v43  ;;  %v9523_v11 = vunpack.i.l.bf16 %v19807_v43  ;;  %v14339_v3 = vsel %vm3120_vm5, %v14114_v48, %v9484_v24  ;;  %v14343_v61 = vsel %vm3120_vm5, %v19808_v51, %v9433_v42  ;;  %v19812_v48 = vld [vmem:[#allocation150_spill] sm:$0xff]  ;;  %v19818_v43 = vld [vmem:[#allocation151_spill] sm:$0xff] }
 0x2c6   : > { %v9684_v52 = vunpack.i.h.bf16 %v19809_v22  ;;  %v9683_v32 = vunpack.i.l.bf16 %v19809_v22  ;;  %8580 = vmatmul.msk.bf16.vlgmr.msra.gmra.mxu0 %vm3436_vm9, %v3380_v20  ;;  %v14350_v1 = vsel %vm3120_vm5, %v19810_v2, %v9434_v12  ;;  %v14354_v26 = vsel %vm3120_vm5, %v14128_v53, %v9498_v19  ;;  %v19814_v8 = vld [vmem:[#allocation86_spill] sm:$0xff]  ;;  %v19816_v20 = vld [vmem:[#allocation87_spill] sm:$0xff] }
 0x2c7   : > { %19811 = vst [vmem:[#allocation105_spill] sm:$0xff] %v14354_v26  ;;  %v9444_v24 = vunpack.i.h.bf16 %v19812_v48  ;;  %v9443_v50 = vunpack.i.l.bf16 %v19812_v48  ;;  %v14360_v42 = vsel %vm3120_vm5, %v14132_v39, %v9499_v31  ;;  %v14364_v63 = vsel %vm3120_vm5, %v19814_v8, %v9448_v5  ;;  %v19820_v8 = vld [vmem:[#allocation152_spill] sm:$0xff] }
 0x2c8   : > { %19813 = vst [vmem:[#allocation163_spill] sm:$0xff] %v14360_v42  ;;  %v14368_v12 = vsel %vm3120_vm5, %v19816_v20, %v9449_v10  ;;  %v9513_v51 = vunpack.i.l.bf16 %v19818_v43  ;;  %v9842_v53 = vpop.permute.xlu2 %9841  ;;  %v3192_v19 = vsel %vm3185_vm6, %v14056_v60, %v9523_v11  ;;  %v3193_v22 = vsel %vm3185_vm6, %v14060_v54, %v9524_v35  ;;  %v19821_v60 = vld [vmem:[#allocation154_spill] sm:$0xff] }
 0x2c9   : > { %19815 = vst [vmem:[#allocation106_spill] sm:$0xff] %v14364_v63  ;;  %v9844_v2 = vunpack.i.h.bf16 %v9842_v53  ;;  %v9843_v39 = vunpack.i.l.bf16 %v9842_v53  ;;  %v9514_v5 = vunpack.i.h.bf16 %v19818_v43  ;;  %v9463_v10 = vunpack.i.l.bf16 %v19820_v8 }
 0x2ca   : > { %19817 = vst [vmem:[#allocation174_spill] sm:$0xff] %v14368_v12  ;;  %v14375_v31 = vpop.permute.xlu1 %9791  ;;  %v3257_v20 = vsel %vm3250_vm8, %v3192_v19, %v9683_v32  ;;  %v3258_v42 = vsel %vm3250_vm8, %v3193_v22, %v9684_v52  ;;  %v9464_v26 = vunpack.i.h.bf16 %v19820_v8  ;;  %v9528_v11 = vunpack.i.l.bf16 %v19821_v60  ;;  %v19832_v32 = vld [vmem:[#allocation180_spill] sm:$0xff] }
 0x2cb   : > { %19819 = vst [vmem:[#allocation46_spill] sm:$0xff] %v14375_v31  ;;  %v14386_v54 = vsel %vm3315_vm7, %v3257_v20, %v9843_v39  ;;  %v14389_v35 = vsel %vm3315_vm7, %v3258_v42, %v9844_v2  ;;  %v14393_v53 = vsel %vm3120_vm5, %v14008_v16, %v9443_v50  ;;  %v14397_v43 = vsel %vm3120_vm5, %v14012_v44, %v9444_v24  ;;  %v19824_v2 = vld [vmem:[#allocation185_spill] sm:$0xff]  ;;  %v19831_v31 = vld [vmem:[#allocation178_spill] sm:$0xff] }
 0x2cc   : > { %v14377_v48 = vpop.permute.xlu0 %9786  ;;  %19822 = vst [vmem:[#allocation107_spill] sm:$0xff] %v14397_v43  ;;  %v14404_v22 = vsel %vm3185_vm6, %v14177_v7, %v9513_v51  ;;  %v9539_v39 = vunpack.i.h.bf16 %v19824_v2  ;;  %v9538_v16 = vunpack.i.l.bf16 %v19824_v2  ;;  %v14411_v50 = vsel %vm3185_vm6, %v14181_v29, %v9514_v5  ;;  %v19827_v29 = vld [vmem:[#allocation155_spill] sm:$0xff] }
 0x2cd   : > { %v14415_v44 = vsel %vm3120_vm5, %v13924_v57, %v9463_v10  ;;  %v9699_v24 = vunpack.i.h.bf16 %v13903_v33  ;;  %v9698_v8 = vunpack.i.l.bf16 %v13903_v33  ;;  %v14421_v7 = vsel %vm3120_vm5, %v13928_v4, %v9464_v26  ;;  %v19828_v2 = vld [vmem:[#allocation159_spill] sm:$0xff] }
 0x2ce   : > { %19825 = vst [vmem:[#allocation172_spill] sm:$0xff] %v14415_v44  ;;  %v9529_v51 = vunpack.i.h.bf16 %v19821_v60  ;;  %v14426_v20 = vsel %vm3185_vm6, %v14203_v17, %v9528_v11  ;;  %v9544_v52 = vunpack.i.h.bf16 %v19828_v2  ;;  %v9543_v57 = vunpack.i.l.bf16 %v19828_v2  ;;  %v19829_v10 = vld [vmem:[#allocation167_spill] sm:$0xff] }
 0x2cf   : > { %19826 = vst [vmem:[#allocation175_spill] sm:$0xff] %v14421_v7  ;;  %v9559_v42 = vunpack.i.h.bf16 %v19829_v10  ;;  %v9558_v33 = vunpack.i.l.bf16 %v19829_v10  ;;  %v3198_v4 = vsel %vm3185_vm6, %v14101_v9, %v9538_v16  ;;  %v3199_v26 = vsel %vm3185_vm6, %v14105_v59, %v9539_v39  ;;  %v19835_v16 = vld [vmem:[#allocation186_spill] sm:$0xff] }
 0x2d0   : > { %v9857_v19 = vpop.permute.xlu2 %9856  ;;  %v9574_v7 = vunpack.i.h.bf16 %v19831_v31  ;;  %v9573_v2 = vunpack.i.l.bf16 %v19831_v31  ;;  %v3263_v44 = vsel %vm3250_vm8, %v3198_v4, %v9698_v8  ;;  %v3264_v10 = vsel %vm3250_vm8, %v3199_v26, %v9699_v24  ;;  %v19836_v4 = vld [vmem:[#allocation196_spill] sm:$0xff] }
 0x2d1   : > { %v9859_v60 = vunpack.i.h.bf16 %v9857_v19  ;;  %v9858_v17 = vunpack.i.l.bf16 %v9857_v19  ;;  %v9519_v12 = vunpack.i.h.bf16 %v19832_v32  ;;  %v9518_v9 = vunpack.i.l.bf16 %v19832_v32 }
 0x2d2   : > { %v14437_v11 = vpop.permute.xlu1 %9806  ;;  %v14455_v39 = vsel %vm3185_vm6, %v14207_v27, %v9529_v51  ;;  %v9534_v31 = vunpack.i.h.bf16 %v19835_v16  ;;  %v9533_v8 = vunpack.i.l.bf16 %v19835_v16  ;;  %v14463_v32 = vsel %vm3185_vm6, %v14239_v25, %v9543_v57 }
 0x2d3   : > { %19830 = vst [vmem:[#allocation38_spill] sm:$0xff] %v14437_v11  ;;  %v14448_v59 = vsel %vm3315_vm7, %v3263_v44, %v9858_v17  ;;  %v14451_v19 = vsel %vm3315_vm7, %v3264_v10, %v9859_v60  ;;  %v14467_v44 = vsel %vm3185_vm6, %v14250_v18, %v9544_v52  ;;  %v9554_v26 = vunpack.i.h.bf16 %v19836_v4  ;;  %v19839_v10 = vld [vmem:[#allocation7_spill] sm:$0xff] }
 0x2d4   : > { %v14439_v5 = vpop.permute.xlu0 %9801  ;;  %19833 = vst [vmem:[#allocation108_spill] sm:$0xff] %v14448_v59  ;;  %v9553_v27 = vunpack.i.l.bf16 %v19836_v4  ;;  %v14473_v51 = vsel %vm3185_vm6, %v14276_v23, %v9558_v33  ;;  %v14477_v60 = vsel %vm3185_vm6, %v14280_v36, %v9559_v42  ;;  %v9714_v17 = vunpack.i.h.bf16 %v13989_v56 }
 0x2d5   : > { %19834 = vst [vmem:[#allocation171_spill] sm:$0xff] %v14451_v19  ;;  %v9713_v25 = vunpack.i.l.bf16 %v13989_v56  ;;  %v14483_v18 = vsel %vm3185_vm6, %v14304_v40, %v9573_v2  ;;  %v14487_v52 = vsel %vm3185_vm6, %v14329_v21, %v9574_v7  ;;  %v3190_v23 = vsel %vm3185_vm6, %v14150_v0, %v9518_v9  ;;  %v19837_v40 = vld [vmem:[#allocation197_spill] sm:$0xff]  ;;  %v19849_v19 = vld [vmem:[#allocation52_spill] sm:$0xff] }
 0x2d6   : > { %v3191_v57 = vsel %vm3185_vm6, %v14173_v55, %v9519_v12  ;;  %v14495_v36 = vsel %vm3185_vm6, %v14194_v37, %v9533_v8  ;;  %v14499_v56 = vsel %vm3185_vm6, %v14199_v47, %v9534_v31  ;;  %v9549_v42 = vunpack.i.h.bf16 %v19837_v40  ;;  %v19840_v8 = vld [vmem:[#allocation50_spill] sm:$0xff] }
 0x2d7   : > { %v9548_v33 = vunpack.i.l.bf16 %v19837_v40  ;;  %v3204_v7 = vsel %vm3185_vm6, %v14118_v14, %v9553_v27  ;;  %v3205_v0 = vsel %vm3185_vm6, %v14122_v30, %v9554_v26  ;;  %v9569_v47 = vunpack.i.h.bf16 %v19839_v10  ;;  %v19843_v27 = vld [vmem:[#allocation195_spill] sm:$0xff]  ;;  %v19848_v40 = vld [vmem:[#allocation20_spill] sm:$0xff] }
 0x2d8   : > { %v9568_v9 = vunpack.i.l.bf16 %v19839_v10  ;;  %v3269_v16 = vsel %vm3250_vm8, %v3204_v7, %v9713_v25  ;;  %v3270_v31 = vsel %vm3250_vm8, %v3205_v0, %v9714_v17  ;;  %v9679_v4 = vunpack.i.h.bf16 %v19840_v8  ;;  %v19844_v10 = vld [vmem:[#allocation74_spill] sm:$0xff] }
 0x2d9   : > { %v9872_v21 = vpop.permute.xlu2 %9871  ;;  %v9678_v14 = vunpack.i.l.bf16 %v19840_v8  ;;  %v9674_v25 = vunpack.i.h.bf16 %v19844_v10  ;;  %v9673_v17 = vunpack.i.l.bf16 %v19844_v10  ;;  %v14532_v7 = vsel %vm3185_vm6, %v14228_v41, %v9549_v42  ;;  %v19847_v8 = vld [vmem:[#allocation8_spill] sm:$0xff] }
 0x2da   : > { %v9874_v55 = vunpack.i.h.bf16 %v9872_v21  ;;  %v9873_v12 = vunpack.i.l.bf16 %v9872_v21  ;;  %v14507_v2 = vpop.permute.xlu1 %9821  ;;  %v14526_v21 = vsel %vm3185_vm6, %v14222_v34, %v9548_v33  ;;  %v9729_v0 = vunpack.i.h.bf16 %v14081_v46  ;;  %v19846_v34 = vld [vmem:[#allocation96_spill] sm:$0xff] }
 0x2db   : > { %19838 = vst [vmem:[#allocation109_spill] sm:$0xff] %v14507_v2  ;;  %v3211_v33 = vsel %vm3185_vm6, %v19846_v34, %v9569_v47  ;;  %v9564_v24 = vunpack.i.h.bf16 %v19847_v8  ;;  %v9563_v10 = vunpack.i.l.bf16 %v19847_v8  ;;  %v9584_v41 = vunpack.i.h.bf16 %v19848_v40 }
 0x2dc   : > { %v14509_v37 = vpop.permute.xlu0 %9816  ;;  %v14518_v30 = vsel %vm3315_vm7, %v3269_v16, %v9873_v12  ;;  %v14521_v26 = vsel %vm3315_vm7, %v3270_v31, %v9874_v55  ;;  %v9728_v12 = vunpack.i.l.bf16 %v14081_v46  ;;  %v19845_v16 = vld [vmem:[#allocation95_spill] sm:$0xff]  ;;  %v9583_v42 = vunpack.i.l.bf16 %v19848_v40 }
 0x2dd   : > { %19841 = vst [vmem:[#allocation110_spill] sm:$0xff] %v14518_v30  ;;  %v3210_v31 = vsel %vm3185_vm6, %v19845_v16, %v9568_v9  ;;  %v3255_v59 = vsel %vm3250_vm8, %v3190_v23, %v9678_v14  ;;  %v3256_v46 = vsel %vm3250_vm8, %v3191_v57, %v9679_v4  ;;  %v9694_v55 = vunpack.i.h.bf16 %v19849_v19 }
 0x2de   : > { %19842 = vst [vmem:[#allocation111_spill] sm:$0xff] %v14521_v26  ;;  %v9693_v30 = vunpack.i.l.bf16 %v19849_v19  ;;  %v3253_v47 = vsel %vm3250_vm8, %v14404_v22, %v9673_v17  ;;  %v3254_v16 = vsel %vm3250_vm8, %v14411_v50, %v9674_v25  ;;  %v3275_v34 = vsel %vm3250_vm8, %v3210_v31, %v9728_v12  ;;  %v19850_v19 = vld [vmem:[#allocation79_spill] sm:$0xff] }
 0x2df   : > { %v3276_v8 = vsel %vm3250_vm8, %v3211_v33, %v9729_v0  ;;  %v9688_v63 = vunpack.i.l.bf16 %v19850_v19  ;;  %v9744_v43 = vunpack.i.h.bf16 %v14164_v6  ;;  %v9743_v31 = vunpack.i.l.bf16 %v14164_v6 }
 0x2e1   : > { %v9887_v9 = vpop.permute.xlu2 %9886 }
 0x2e2   : > { %v9889_v40 = vunpack.i.h.bf16 %v9887_v9  ;;  %v9888_v26 = vunpack.i.l.bf16 %v9887_v9  ;;  %v9837_v23 = vpop.permute.xlu1 %9836 }
 0x2e3   : > { %v9839_v57 = vunpack.i.h.bf16 %v9837_v23  ;;  %v9838_v4 = vunpack.i.l.bf16 %v9837_v23 }
 0x2e4   : > { %v9832_v14 = vpop.permute.xlu0 %9831  ;;  %v14559_v22 = vsel %vm3315_vm7, %v3275_v34, %v9888_v26  ;;  %v14562_v50 = vsel %vm3315_vm7, %v3276_v8, %v9889_v40  ;;  %v9689_v8 = vunpack.i.h.bf16 %v19850_v19 }
 0x2e5   : > { %v9834_v2 = vunpack.i.h.bf16 %v9832_v14  ;;  %v9833_v11 = vunpack.i.l.bf16 %v9832_v14  ;;  %v14567_v0 = vsel %vm3315_vm7, %v3255_v59, %v9838_v4  ;;  %v14570_v12 = vsel %vm3315_vm7, %v3256_v46, %v9839_v57  ;;  %v19851_v46 = vld [vmem:[#allocation99_spill] sm:$0xff] }
 0x2e6   : > { %v14583_v59 = vsel %vm3185_vm6, %v14272_v28, %v9564_v24  ;;  %v3217_v6 = vsel %vm3185_vm6, %v19851_v46, %v9584_v41  ;;  %v3262_v41 = vsel %vm3250_vm8, %v14499_v56, %v9694_v55 }
 0x2e7   : > { %v3318_v25 = vsel %vm3315_vm7, %v3253_v47, %v9833_v11  ;;  %v3319_v17 = vsel %vm3315_vm7, %v3254_v16, %v9834_v2  ;;  %v14579_v11 = vsel %vm3185_vm6, %v14267_v13, %v9563_v10  ;;  %v3216_v2 = vsel %vm3185_vm6, %v14186_v58, %v9583_v42  ;;  %v19852_v47 = vld [vmem:[#allocation34_spill] sm:$0xff] }
 0x2e8   : > { %v3381_v33 = vpack.c.bf16 %v3319_v17, %v3318_v25  ;;  %v9599_v16 = vunpack.i.h.bf16 %v19852_v47  ;;  %v9598_v34 = vunpack.i.l.bf16 %v19852_v47  ;;  %v3261_v13 = vsel %vm3250_vm8, %v14495_v36, %v9693_v30  ;;  %v19853_v10 = vld [vmem:[#allocation190_spill] sm:$0xff] }
 0x2e9   : > { %v9709_v28 = vunpack.i.h.bf16 %v19853_v10  ;;  %v9708_v24 = vunpack.i.l.bf16 %v19853_v10  ;;  %v9902_v40 = vpop.permute.xlu2 %9901  ;;  %v3259_v58 = vsel %vm3250_vm8, %v14426_v20, %v9688_v63  ;;  %v3281_v42 = vsel %vm3250_vm8, %v3216_v2, %v9743_v31  ;;  %v19855_v10 = vld [vmem:[#allocation166_spill] sm:$0xff] }
 0x2ea   : > { %8581 = vmatmul.msk.bf16.gmra.mxu0 %vm3436_vm9, %v3381_v33  ;;  %v3282_v23 = vsel %vm3250_vm8, %v3217_v6, %v9744_v43  ;;  %v9904_v14 = vunpack.i.h.bf16 %v9902_v40  ;;  %v9903_v57 = vunpack.i.l.bf16 %v9902_v40  ;;  %v9852_v4 = vpop.permute.xlu1 %9851  ;;  %v19854_v33 = vld [vmem:[#allocation40_spill] sm:$0xff]  ;;  %v3260_v20 = vsel %vm3250_vm8, %v14455_v39, %v9689_v8 }
 0x2eb   : > { %v9854_v36 = vunpack.i.h.bf16 %v9852_v4  ;;  %v9853_v30 = vunpack.i.l.bf16 %v9852_v4  ;;  %v9759_v46 = vunpack.i.h.bf16 %v19854_v33  ;;  %v9758_v2 = vunpack.i.l.bf16 %v19854_v33 }
 0x2ec   : > { %v9847_v19 = vpop.permute.xlu0 %9846  ;;  %v14605_v47 = vsel %vm3315_vm7, %v3281_v42, %v9903_v57  ;;  %v14608_v63 = vsel %vm3315_vm7, %v3282_v23, %v9904_v14  ;;  %v19858_v14 = vld [vmem:[#allocation165_spill] sm:$0xff]  ;;  %v3267_v8 = vsel %vm3250_vm8, %v14526_v21, %v9708_v24 }
 0x2ed   : > { %v9849_v25 = vunpack.i.h.bf16 %v9847_v19  ;;  %v9848_v17 = vunpack.i.l.bf16 %v9847_v19  ;;  %v14619_v55 = vsel %vm3315_vm7, %v3261_v13, %v9853_v30  ;;  %v14622_v31 = vsel %vm3315_vm7, %v3262_v41, %v9854_v36  ;;  %v19856_v13 = vld [vmem:[#allocation100_spill] sm:$0xff]  ;;  %v19857_v41 = vld [vmem:[#allocation21_spill] sm:$0xff]  ;;  %v19859_v19 = vld [vmem:[#allocation90_spill] sm:$0xff] }
 0x2ee   : > { %v3222_v42 = vsel %vm3185_vm6, %v19856_v13, %v9598_v34  ;;  %v3223_v23 = vsel %vm3185_vm6, %v19857_v41, %v9599_v16  ;;  %v9614_v57 = vunpack.i.h.bf16 %v19858_v14  ;;  %v9613_v4 = vunpack.i.l.bf16 %v19858_v14 }
 0x2ef   : > { %v14613_v43 = vsel %vm3315_vm7, %v3259_v58, %v9848_v17  ;;  %v14616_v56 = vsel %vm3315_vm7, %v3260_v20, %v9849_v25  ;;  %v9578_v58 = vunpack.i.l.bf16 %v19855_v10  ;;  %v9704_v36 = vunpack.i.h.bf16 %v19859_v19  ;;  %v19860_v25 = vld [vmem:[#allocation73_spill] sm:$0xff] }
 0x2f0   : > { %v9703_v30 = vunpack.i.l.bf16 %v19859_v19  ;;  %v9724_v17 = vunpack.i.h.bf16 %v19860_v25  ;;  %v9723_v33 = vunpack.i.l.bf16 %v19860_v25  ;;  %v3268_v34 = vsel %vm3250_vm8, %v14532_v7, %v9709_v28 }
 0x2f1   : > { %v9917_v20 = vpop.permute.xlu2 %9916  ;;  %v3287_v14 = vsel %vm3250_vm8, %v3222_v42, %v9758_v2  ;;  %v3288_v39 = vsel %vm3250_vm8, %v3223_v23, %v9759_v46  ;;  %v3266_v28 = vsel %vm3250_vm8, %v14467_v44, %v9704_v36  ;;  %v9773_v42 = vunpack.i.l.bf16 %v14315_v49  ;;  %v19861_v23 = vld [vmem:[#allocation51_spill] sm:$0xff] }
 0x2f2   : > { %v9919_v16 = vunpack.i.h.bf16 %v9917_v20  ;;  %v9918_v13 = vunpack.i.l.bf16 %v9917_v20  ;;  %v9867_v41 = vpop.permute.xlu1 %9866  ;;  %v3265_v7 = vsel %vm3250_vm8, %v14463_v32, %v9703_v30  ;;  %v9628_v36 = vunpack.i.l.bf16 %v19861_v23  ;;  %v19862_v30 = vld [vmem:[#allocation26_spill] sm:$0xff] }
 0x2f3   : > { %v9869_v19 = vunpack.i.h.bf16 %v9867_v41  ;;  %v9868_v6 = vunpack.i.l.bf16 %v9867_v41  ;;  %v9719_v20 = vunpack.i.h.bf16 %v19862_v30 }
 0x2f4   : > { %v9862_v9 = vpop.permute.xlu0 %9861  ;;  %v14650_v25 = vsel %vm3315_vm7, %v3287_v14, %v9918_v13  ;;  %v14653_v21 = vsel %vm3315_vm7, %v3288_v39, %v9919_v16  ;;  %v9774_v39 = vunpack.i.h.bf16 %v14315_v49  ;;  %v9629_v49 = vunpack.i.h.bf16 %v19861_v23 }
 0x2f5   : > { %v9864_v40 = vunpack.i.h.bf16 %v9862_v9  ;;  %v9863_v26 = vunpack.i.l.bf16 %v9862_v9  ;;  %v3398_v24 = vpack.c.bf16 %v14653_v21, %v14650_v25  ;;  %v14668_v2 = vsel %vm3315_vm7, %v3267_v8, %v9868_v6 }
 0x2f6   : > { %v14675_v44 = vsel %vm3315_vm7, %v3268_v34, %v9869_v19  ;;  %v3229_v6 = vsel %vm3185_vm6, %v14263_v62, %v9614_v57  ;;  %v9718_v34 = vunpack.i.l.bf16 %v19862_v30  ;;  %v3274_v16 = vsel %vm3250_vm8, %v14583_v59, %v9724_v17 }
 0x2f7   : > { %v14662_v46 = vsel %vm3315_vm7, %v3265_v7, %v9863_v26  ;;  %v14665_v9 = vsel %vm3315_vm7, %v3266_v28, %v9864_v40  ;;  %v3214_v26 = vsel %vm3185_vm6, %v14296_v38, %v9578_v58  ;;  %v3228_v40 = vsel %vm3185_vm6, %v14259_v45, %v9613_v4  ;;  %v19864_v45 = vld [vmem:[#allocation193_spill] sm:$0xff] }
 0x2f8   : > { %v19863_v38 = vpack.c.bf16 %v14570_v12, %v14567_v0  ;;  %v9739_v58 = vunpack.i.h.bf16 %v19864_v45  ;;  %v9738_v62 = vunpack.i.l.bf16 %v19864_v45  ;;  %v3273_v4 = vsel %vm3250_vm8, %v14579_v11, %v9723_v33 }
 0x2f9   : > { %v9932_v57 = vpop.permute.xlu2 %9931  ;;  %v3293_v7 = vsel %vm3250_vm8, %v3228_v40, %v9773_v42  ;;  %v3294_v0 = vsel %vm3250_vm8, %v3229_v6, %v9774_v39  ;;  %v3271_v59 = vsel %vm3250_vm8, %v14473_v51, %v9718_v34  ;;  %v3272_v17 = vsel %vm3250_vm8, %v14477_v60, %v9719_v20  ;;  %v19866_v34 = vld [vmem:[#allocation103_spill] sm:$0xff] }
 0x2fa   : > { %8582 = vmatmul.msk.bf16.gmra.mxu0 %vm3436_vm9, %v19863_v38  ;;  %v9934_v13 = vunpack.i.h.bf16 %v9932_v57  ;;  %v9933_v41 = vunpack.i.l.bf16 %v9932_v57  ;;  %v9882_v14 = vpop.permute.xlu1 %9881  ;;  %v9789_v6 = vunpack.i.h.bf16 %v14377_v48  ;;  %v9788_v45 = vunpack.i.l.bf16 %v14377_v48 }
 0x2fb   : > { %v9884_v12 = vunpack.i.h.bf16 %v9882_v14  ;;  %v9883_v28 = vunpack.i.l.bf16 %v9882_v14  ;;  %v19865_v20 = vunpack.i.h.bf16 %v19855_v10 }
 0x2fc   : > { %v9877_v19 = vpop.permute.xlu0 %9876  ;;  %v14702_v38 = vsel %vm3315_vm7, %v3293_v7, %v9933_v41  ;;  %v14705_v11 = vsel %vm3315_vm7, %v3294_v0, %v9934_v13  ;;  %v19867_v13 = vld [vmem:[#allocation162_spill] sm:$0xff] }
 0x2fd   : > { %v9879_v23 = vunpack.i.h.bf16 %v9877_v19  ;;  %v9878_v30 = vunpack.i.l.bf16 %v9877_v19  ;;  %v14720_v40 = vsel %vm3315_vm7, %v3273_v4, %v9883_v28  ;;  %v14727_v60 = vsel %vm3315_vm7, %v3274_v16, %v9884_v12  ;;  %v19868_v19 = vld [vmem:[#allocation101_spill] sm:$0xff]  ;;  %v19869_v7 = vld [vmem:[#allocation102_spill] sm:$0xff]  ;;  %v19871_v28 = vld [vmem:[#allocation56_spill] sm:$0xff] }
 0x2fe   : > { %v3215_v57 = vsel %vm3185_vm6, %v19866_v34, %v19865_v20  ;;  %v9594_v41 = vunpack.i.h.bf16 %v19867_v13  ;;  %v9593_v4 = vunpack.i.l.bf16 %v19867_v13  ;;  %v3234_v48 = vsel %vm3185_vm6, %v19868_v19, %v9628_v36  ;;  %v19870_v16 = vld [vmem:[#allocation94_spill] sm:$0xff] }
 0x2ff   : > { %v14714_v39 = vsel %vm3315_vm7, %v3271_v59, %v9878_v30  ;;  %v14717_v42 = vsel %vm3315_vm7, %v3272_v17, %v9879_v23  ;;  %v3235_v0 = vsel %vm3185_vm6, %v19869_v7, %v9629_v49  ;;  %v9734_v12 = vunpack.i.h.bf16 %v19870_v16 }
 0x300   : > { %v9733_v10 = vunpack.i.l.bf16 %v19870_v16  ;;  %v9644_v23 = vunpack.i.h.bf16 %v19871_v28  ;;  %v9643_v30 = vunpack.i.l.bf16 %v19871_v28  ;;  %v3279_v59 = vsel %vm3250_vm8, %v3214_v26, %v9738_v62 }
 0x301   : > { %v3280_v17 = vsel %vm3250_vm8, %v3215_v57, %v9739_v58  ;;  %v9947_v20 = vpop.permute.xlu2 %9946  ;;  %v3299_v19 = vsel %vm3250_vm8, %v3234_v48, %v9788_v45  ;;  %v3300_v49 = vsel %vm3250_vm8, %v3235_v0, %v9789_v6  ;;  %v3278_v26 = vsel %vm3250_vm8, %v14487_v52, %v9734_v12 }
 0x302   : > { %v9949_v34 = vunpack.i.h.bf16 %v9947_v20  ;;  %v9948_v13 = vunpack.i.l.bf16 %v9947_v20  ;;  %v9897_v14 = vpop.permute.xlu1 %9896  ;;  %v3277_v28 = vsel %vm3250_vm8, %v14483_v18, %v9733_v10  ;;  %v9478_v52 = vunpack.i.l.bf16 %v19827_v29 }
 0x303   : > { %v9899_v7 = vunpack.i.h.bf16 %v9897_v14  ;;  %v9898_v51 = vunpack.i.l.bf16 %v9897_v14  ;;  %v9604_v0 = vunpack.i.h.bf16 %v19843_v27  ;;  %v19872_v12 = vunpack.i.l.bf16 %v19843_v27 }
 0x304   : > { %v9892_v36 = vpop.permute.xlu0 %9891  ;;  %v14754_v58 = vsel %vm3315_vm7, %v3299_v19, %v9948_v13  ;;  %v14757_v62 = vsel %vm3315_vm7, %v3300_v49, %v9949_v34  ;;  %v9804_v10 = vunpack.i.h.bf16 %v14439_v5  ;;  %v3221_v20 = vsel %vm3185_vm6, %v14350_v1, %v9594_v41  ;;  %v19873_v34 = vld [vmem:[#allocation89_spill] sm:$0xff]  ;;  %v19876_v41 = vld [vmem:[#allocation191_spill] sm:$0xff] }
 0x305   : > { %v9894_v16 = vunpack.i.h.bf16 %v9892_v36  ;;  %v9893_v8 = vunpack.i.l.bf16 %v9892_v36  ;;  %v14760_v45 = vsel %vm3315_vm7, %v3279_v59, %v9898_v51  ;;  %v14763_v6 = vsel %vm3315_vm7, %v3280_v17, %v9899_v7 }
 0x306   : > { %v9803_v59 = vunpack.i.l.bf16 %v14439_v5  ;;  %v3220_v17 = vsel %vm3185_vm6, %v14343_v61, %v9593_v4  ;;  %v9754_v13 = vunpack.i.h.bf16 %v19873_v34  ;;  %v9753_v36 = vunpack.i.l.bf16 %v19873_v34 }
 0x307   : > { %v14766_v57 = vsel %vm3315_vm7, %v3277_v28, %v9893_v8  ;;  %v14769_v18 = vsel %vm3315_vm7, %v3278_v26, %v9894_v16  ;;  %v3224_v8 = vsel %vm3185_vm6, %v14393_v53, %v19872_v12  ;;  %v19874_v27 = vpack.c.bf16 %v14389_v35, %v14386_v54  ;;  %v19875_v53 = vld [vmem:[#allocation170_spill] sm:$0xff] }
 0x308   : > { %v9609_v19 = vunpack.i.h.bf16 %v19875_v53  ;;  %v9608_v49 = vunpack.i.l.bf16 %v19875_v53  ;;  %v3240_v5 = vsel %vm3185_vm6, %v14333_v15, %v9643_v30  ;;  %v3241_v61 = vsel %vm3185_vm6, %v14339_v3, %v9644_v23  ;;  %v19878_v53 = vld [vmem:[#allocation9_spill] sm:$0xff] }
 0x309   : > { %v9962_v1 = vpop.permute.xlu2 %9961  ;;  %v9659_v4 = vunpack.i.h.bf16 %v19876_v41  ;;  %v9658_v7 = vunpack.i.l.bf16 %v19876_v41  ;;  %v3305_v34 = vsel %vm3250_vm8, %v3240_v5, %v9803_v59  ;;  %v3285_v15 = vsel %vm3250_vm8, %v3220_v17, %v9753_v36 }
 0x30a   : > { %8583 = vmatmul.msk.bf16.gmra.mxu0 %vm3436_vm9, %v19874_v27  ;;  %v9964_v16 = vunpack.i.h.bf16 %v9962_v1  ;;  %v9963_v28 = vunpack.i.l.bf16 %v9962_v1  ;;  %v9912_v54 = vpop.permute.xlu1 %9911  ;;  %v3306_v27 = vsel %vm3250_vm8, %v3241_v61, %v9804_v10  ;;  %v3286_v3 = vsel %vm3250_vm8, %v3221_v20, %v9754_v13  ;;  %v19879_v13 = vld [vmem:[#allocation107_spill] sm:$0xff]  ;;  %v19880_v61 = vld [vmem:[#allocation6_spill] sm:$0xff] }
 0x30b   : > { %v9914_v26 = vunpack.i.h.bf16 %v9912_v54  ;;  %v9913_v12 = vunpack.i.l.bf16 %v9912_v54  ;;  %v9769_v1 = vunpack.i.h.bf16 %v19878_v53  ;;  %v9768_v41 = vunpack.i.l.bf16 %v19878_v53 }
 0x30c   : > { %v14803_v35 = vpop.permute.xlu0 %9906  ;;  %v14810_v23 = vsel %vm3315_vm7, %v3305_v34, %v9963_v28  ;;  %v14813_v30 = vsel %vm3315_vm7, %v3306_v27, %v9964_v16  ;;  %v9819_v10 = vunpack.i.h.bf16 %v14509_v37  ;;  %v9818_v17 = vunpack.i.l.bf16 %v14509_v37  ;;  %v19881_v34 = vld [vmem:[#allocation106_spill] sm:$0xff]  ;;  %v19884_v37 = vld [vmem:[#allocation33_spill] sm:$0xff] }
 0x30d   : > { %19877 = vst [vmem:[#allocation112_spill] sm:$0xff] %v14803_v35  ;;  %v3350_v54 = vsel %vm3315_vm7, %v3285_v15, %v9913_v12  ;;  %v3351_v59 = vsel %vm3315_vm7, %v3286_v3, %v9914_v26  ;;  %v3225_v5 = vsel %vm3185_vm6, %v19879_v13, %v9604_v0  ;;  %v9619_v16 = vunpack.i.h.bf16 %v19880_v61  ;;  %v19882_v27 = vld [vmem:[#allocation174_spill] sm:$0xff]  ;;  %v19883_v15 = vld [vmem:[#allocation173_spill] sm:$0xff]  ;;  %v19886_v13 = vld [vmem:[#allocation163_spill] sm:$0xff] }
 0x30e   : > { %v3397_v36 = vpack.c.bf16 %v3351_v59, %v3350_v54  ;;  %v9618_v28 = vunpack.i.l.bf16 %v19880_v61  ;;  %v3226_v12 = vsel %vm3185_vm6, %v19881_v34, %v9608_v49  ;;  %v3227_v26 = vsel %vm3185_vm6, %v19882_v27, %v9609_v19  ;;  %v19885_v59 = vld [vmem:[#allocation105_spill] sm:$0xff] }
 0x30f   : > { %v9624_v3 = vunpack.i.h.bf16 %v19883_v15  ;;  %v9764_v53 = vunpack.i.h.bf16 %v19884_v37  ;;  %v9763_v54 = vunpack.i.l.bf16 %v19884_v37  ;;  %v3246_v0 = vsel %vm3185_vm6, %v19885_v59, %v9658_v7 }
 0x310   : > { %8597 = vmatmul.msk.bf16.vlgmr.msra.gmra.mxu3 %vm3436_vm9, %v3397_v36  ;;  %v3247_v61 = vsel %vm3185_vm6, %v19886_v13, %v9659_v4  ;;  %v3291_v49 = vsel %vm3250_vm8, %v3226_v12, %v9768_v41  ;;  %v3292_v34 = vsel %vm3250_vm8, %v3227_v26, %v9769_v1  ;;  %v3311_v19 = vsel %vm3250_vm8, %v3246_v0, %v9818_v17  ;;  %v19889_v12 = vld [vmem:[#allocation153_spill] sm:$0xff]  ;;  %v19891_v26 = vld [vmem:[#allocation27_spill] sm:$0xff] }
 0x311   : > { %v9977_v51 = vpop.permute.xlu2 %9976  ;;  %v3312_v27 = vsel %vm3250_vm8, %v3247_v61, %v9819_v10  ;;  %v3289_v1 = vsel %vm3250_vm8, %v3224_v8, %v9763_v54  ;;  %v3290_v41 = vsel %vm3250_vm8, %v3225_v5, %v9764_v53  ;;  %v19892_v53 = vunpack.i.h.bf16 %v19889_v12  ;;  %v19893_v54 = vld [vmem:[#allocation14_spill] sm:$0xff] }
 0x312   : > { %v9979_v20 = vunpack.i.h.bf16 %v9977_v51  ;;  %v9978_v48 = vunpack.i.l.bf16 %v9977_v51 }
 0x313   : > { %v9927_v37 = vpop.permute.xlu1 %9926  ;;  %v3166_v0 = vsel %vm3120_vm5, %v19893_v54, %v19892_v53 }
 0x314   : > { %v9922_v14 = vpop.permute.xlu0 %9921  ;;  %v9929_v36 = vunpack.i.h.bf16 %v9927_v37  ;;  %v9928_v33 = vunpack.i.l.bf16 %v9927_v37  ;;  %v14844_v59 = vsel %vm3315_vm7, %v3311_v19, %v9978_v48  ;;  %v14847_v4 = vsel %vm3315_vm7, %v3312_v27, %v9979_v20  ;;  %v19896_v27 = vld [vmem:[#allocation104_spill] sm:$0xff] }
 0x315   : > { %v9924_v32 = vunpack.i.h.bf16 %v9922_v14  ;;  %v9923_v7 = vunpack.i.l.bf16 %v9922_v14  ;;  %19887 = vst [vmem:[#allocation114_spill] sm:$0xff] %v14844_v59  ;;  %v9623_v48 = vunpack.i.l.bf16 %v19883_v15  ;;  %v19894_v15 = vld [vmem:[#allocation156_spill] sm:$0xff]  ;;  %v9779_v37 = vunpack.i.h.bf16 %v19896_v27 }
 0x316   : > { %19888 = vst [vmem:[#allocation39_spill] sm:$0xff] %v14847_v4  ;;  %v14858_v17 = vsel %vm3315_vm7, %v3291_v49, %v9928_v33  ;;  %v14861_v14 = vsel %vm3315_vm7, %v3292_v34, %v9929_v36  ;;  %v9474_v13 = vunpack.i.h.bf16 %v19894_v15  ;;  %v9473_v61 = vunpack.i.l.bf16 %v19894_v15  ;;  %v19895_v49 = vld [vmem:[#allocation157_spill] sm:$0xff]  ;;  %v19901_v15 = vld [vmem:[#allocation16_spill] sm:$0xff] }
 0x317   : > { %v14852_v10 = vsel %vm3315_vm7, %v3289_v1, %v9923_v7  ;;  %v14855_v51 = vsel %vm3315_vm7, %v3290_v41, %v9924_v32  ;;  %v19890_v32 = vunpack.i.l.bf16 %v19889_v12  ;;  %v9784_v34 = vunpack.i.h.bf16 %v19895_v49  ;;  %v19898_v1 = vld [vmem:[#allocation91_spill] sm:$0xff] }
 0x318   : > { %v9783_v19 = vunpack.i.l.bf16 %v19895_v49  ;;  %v9778_v36 = vunpack.i.l.bf16 %v19896_v27  ;;  %v19897_v7 = vpack.c.bf16 %v14616_v56, %v14613_v43  ;;  %v3173_v41 = vsel %vm3120_vm5, %v19898_v1, %v9478_v52  ;;  %v19902_v56 = vld [vmem:[#allocation172_spill] sm:$0xff] }
 0x319   : > { %v3165_v33 = vsel %vm3120_vm5, %v19891_v26, %v19890_v32  ;;  %v19899_v12 = vunpack.i.h.bf16 %v19827_v29  ;;  %v19900_v32 = vld [vmem:[#allocation92_spill] sm:$0xff]  ;;  %v3231_v54 = vsel %vm3185_vm6, %v3166_v0, %v9619_v16  ;;  %v9634_v49 = vunpack.i.h.bf16 %v19901_v15 }
 0x31a   : > { %8584 = vmatmul.msk.bf16.gmra.mxu0 %vm3436_vm9, %v19897_v7  ;;  %v3230_v53 = vsel %vm3185_vm6, %v3165_v33, %v9618_v28  ;;  %v9633_v43 = vunpack.i.l.bf16 %v19901_v15  ;;  %v3232_v27 = vsel %vm3185_vm6, %v19902_v56, %v9623_v48  ;;  %v19903_v7 = vld [vmem:[#allocation175_spill] sm:$0xff]  ;;  %v3296_v16 = vsel %vm3250_vm8, %v3231_v54, %v9779_v37  ;;  %v19904_v56 = vld [vmem:[#allocation57_spill] sm:$0xff]  ;;  %v19907_v54 = vld [vmem:[#allocation160_spill] sm:$0xff] }
 0x31b   : > { %v3174_v26 = vsel %vm3120_vm5, %v19900_v32, %v19899_v12  ;;  %v3233_v5 = vsel %vm3185_vm6, %v19903_v7, %v9624_v3  ;;  %v9942_v52 = vpop.permute.xlu1 %9941  ;;  %v3295_v28 = vsel %vm3250_vm8, %v3230_v53, %v9778_v36  ;;  %v3297_v33 = vsel %vm3250_vm8, %v3232_v27, %v9783_v19  ;;  %v19906_v53 = vld [vmem:[#allocation158_spill] sm:$0xff] }
 0x31c   : > { %v9937_v1 = vpop.permute.xlu0 %9936  ;;  %v9944_v29 = vunpack.i.h.bf16 %v9942_v52  ;;  %v9943_v8 = vunpack.i.l.bf16 %v9942_v52  ;;  %v3298_v0 = vsel %vm3250_vm8, %v3233_v5, %v9784_v34  ;;  %v9639_v36 = vunpack.i.h.bf16 %v19904_v56  ;;  %v19905_v34 = vld [vmem:[#allocation15_spill] sm:$0xff]  ;;  %v19908_v52 = vld [vmem:[#allocation97_spill] sm:$0xff] }
 0x31d   : > { %v9939_v20 = vunpack.i.h.bf16 %v9937_v1  ;;  %v9938_v12 = vunpack.i.l.bf16 %v9937_v1  ;;  %v9638_v37 = vunpack.i.l.bf16 %v19904_v56  ;;  %v9494_v27 = vunpack.i.h.bf16 %v19907_v54 }
 0x31e   : > { %v14915_v3 = vsel %vm3315_vm7, %v3297_v33, %v9943_v8  ;;  %v14918_v15 = vsel %vm3315_vm7, %v3298_v0, %v9944_v29  ;;  %v3172_v8 = vsel %vm3120_vm5, %v19906_v53, %v9474_v13  ;;  %v9493_v7 = vunpack.i.l.bf16 %v19907_v54 }
 0x31f   : > { %v14909_v32 = vsel %vm3315_vm7, %v3295_v28, %v9938_v12  ;;  %v14912_v48 = vsel %vm3315_vm7, %v3296_v16, %v9939_v20  ;;  %v3171_v20 = vsel %vm3120_vm5, %v19905_v34, %v9473_v61  ;;  %v9799_v1 = vunpack.i.h.bf16 %v19908_v52  ;;  %v19909_v12 = vld [vmem:[#allocation46_spill] sm:$0xff]  ;;  %v19910_v61 = vld [vmem:[#allocation161_spill] sm:$0xff]  ;;  %v19911_v34 = vld [vmem:[#allocation32_spill] sm:$0xff] }
 0x320   : > { %v9798_v29 = vunpack.i.l.bf16 %v19908_v52  ;;  %v9794_v28 = vunpack.i.h.bf16 %v19909_v12  ;;  %v9793_v16 = vunpack.i.l.bf16 %v19909_v12  ;;  %8598 = vmatmul.msk.bf16.gmra.mxu3 %vm3436_vm9, %v3398_v24  ;;  %v9489_v33 = vunpack.i.h.bf16 %v19910_v61 }
 0x321   : > { %v9488_v13 = vunpack.i.l.bf16 %v19910_v61  ;;  %v3236_v0 = vsel %vm3185_vm6, %v3171_v20, %v9633_v43  ;;  %v3237_v56 = vsel %vm3185_vm6, %v3172_v8, %v9634_v49  ;;  %v9649_v53 = vunpack.i.h.bf16 %v19911_v34 }
 0x322   : > { %v9648_v54 = vunpack.i.l.bf16 %v19911_v34  ;;  %v3238_v52 = vsel %vm3185_vm6, %v3173_v41, %v9638_v37  ;;  %v3239_v12 = vsel %vm3185_vm6, %v3174_v26, %v9639_v36  ;;  %v3301_v61 = vsel %vm3250_vm8, %v3236_v0, %v9793_v16  ;;  %v19912_v37 = vld [vmem:[#allocation181_spill] sm:$0xff]  ;;  %v19917_v34 = vld [vmem:[#allocation64_spill] sm:$0xff] }
 0x323   : > { %v9957_v5 = vpop.permute.xlu1 %9956  ;;  %v3302_v43 = vsel %vm3250_vm8, %v3237_v56, %v9794_v28  ;;  %v3303_v49 = vsel %vm3250_vm8, %v3238_v52, %v9798_v29  ;;  %v3304_v20 = vsel %vm3250_vm8, %v3239_v12, %v9799_v1  ;;  %v9653_v28 = vunpack.i.l.bf16 %v19912_v37  ;;  %v19913_v1 = vld [vmem:[#allocation125_spill] sm:$0xff]  ;;  %v19918_v12 = vld [vmem:[#allocation128_spill] sm:$0xff] }
 0x324   : > { %v9952_v25 = vpop.permute.xlu0 %9951  ;;  %v9959_v21 = vunpack.i.h.bf16 %v9957_v5  ;;  %v9958_v24 = vunpack.i.l.bf16 %v9957_v5  ;;  %v9654_v5 = vunpack.i.h.bf16 %v19912_v37  ;;  %v19914_v16 = vunpack.i.l.bf16 %v19913_v1 }
 0x325   : > { %v9954_v19 = vunpack.i.h.bf16 %v9952_v25  ;;  %v9953_v59 = vunpack.i.l.bf16 %v9952_v25  ;;  %v19916_v56 = vunpack.i.h.bf16 %v19913_v1  ;;  %v9344_v25 = vunpack.i.h.bf16 %v19918_v12  ;;  %v19922_v1 = vld [vmem:[#allocation10_spill] sm:$0xff] }
 0x326   : > { %v14959_v26 = vsel %vm3315_vm7, %v3303_v49, %v9958_v24  ;;  %v14962_v36 = vsel %vm3315_vm7, %v3304_v20, %v9959_v21  ;;  %v9343_v21 = vunpack.i.l.bf16 %v19918_v12  ;;  %v19919_v24 = vld [vmem:[#allocation22_spill] sm:$0xff] }
 0x327   : > { %v14953_v8 = vsel %vm3315_vm7, %v3301_v61, %v9953_v59  ;;  %v14956_v41 = vsel %vm3315_vm7, %v3302_v43, %v9954_v19  ;;  %v19915_v19 = vld [vmem:[#allocation63_spill] sm:$0xff]  ;;  %v3113_v52 = vsel %vm3055_vm3, %v19917_v34, %v19916_v56  ;;  %v9814_v61 = vunpack.i.h.bf16 %v19919_v24  ;;  %v19920_v49 = vld [vmem:[#allocation38_spill] sm:$0xff]  ;;  %v19923_v56 = vld [vmem:[#allocation93_spill] sm:$0xff] }
 0x328   : > { %v3112_v0 = vsel %vm3055_vm3, %v19915_v19, %v19914_v16  ;;  %v9813_v43 = vunpack.i.l.bf16 %v19919_v24  ;;  %v9809_v20 = vunpack.i.h.bf16 %v19920_v49  ;;  %v9808_v37 = vunpack.i.l.bf16 %v19920_v49 }
 0x329   : > { %v19921_v16 = vpack.c.bf16 %v14622_v31, %v14619_v55  ;;  %v3179_v19 = vsel %vm3120_vm5, %v19922_v1, %v9493_v7  ;;  %v3180_v34 = vsel %vm3120_vm5, %v19923_v56, %v9494_v27  ;;  %v3177_v12 = vsel %vm3120_vm5, %v3112_v0, %v9488_v13  ;;  %v19924_v0 = vld [vmem:[#allocation169_spill] sm:$0xff] }
 0x32a   : > { %v3178_v59 = vsel %vm3120_vm5, %v3113_v52, %v9489_v33  ;;  %v3242_v24 = vsel %vm3185_vm6, %v3177_v12, %v9648_v54  ;;  %v3244_v49 = vsel %vm3185_vm6, %v3179_v19, %v9653_v28  ;;  %v3245_v55 = vsel %vm3185_vm6, %v3180_v34, %v9654_v5  ;;  %v19929_v56 = vld [vmem:[#allocation5_spill] sm:$0xff]  ;;  %v19930_v12 = vld [vmem:[#allocation164_spill] sm:$0xff] }
 0x32b   : > { %8585 = vmatmul.msk.bf16.gmra.mxu0 %vm3436_vm9, %v19921_v16  ;;  %v3243_v29 = vsel %vm3185_vm6, %v3178_v59, %v9649_v53  ;;  %v9972_v31 = vpop.permute.xlu1 %9971  ;;  %v3309_v27 = vsel %vm3250_vm8, %v3244_v49, %v9813_v43  ;;  %v3310_v13 = vsel %vm3250_vm8, %v3245_v55, %v9814_v61  ;;  %v3307_v33 = vsel %vm3250_vm8, %v3242_v24, %v9808_v37  ;;  %v19931_v55 = vld [vmem:[#allocation85_spill] sm:$0xff] }
 0x32c   : > { %v9967_v16 = vpop.permute.xlu0 %9966  ;;  %v9974_v4 = vunpack.i.h.bf16 %v9972_v31  ;;  %v9973_v35 = vunpack.i.l.bf16 %v9972_v31  ;;  %v3308_v54 = vsel %vm3250_vm8, %v3243_v29, %v9809_v20  ;;  %v9504_v52 = vunpack.i.h.bf16 %v19924_v0  ;;  %v19925_v29 = vld [vmem:[#allocation58_spill] sm:$0xff] }
 0x32d   : > { %v9969_v7 = vunpack.i.h.bf16 %v9967_v16  ;;  %v9968_v1 = vunpack.i.l.bf16 %v9967_v16  ;;  %v9503_v61 = vunpack.i.l.bf16 %v19924_v0  ;;  %v19926_v20 = vunpack.i.l.bf16 %v19925_v29 }
 0x32e   : > { %v15003_v53 = vsel %vm3315_vm7, %v3309_v27, %v9973_v35  ;;  %v15006_v28 = vsel %vm3315_vm7, %v3310_v13, %v9974_v4  ;;  %v19927_v4 = vld [vmem:[#allocation194_spill] sm:$0xff]  ;;  %v19928_v19 = vunpack.i.h.bf16 %v19925_v29  ;;  %v9664_v24 = vunpack.i.h.bf16 %v19930_v12  ;;  %v19934_v27 = vld [vmem:[#allocation109_spill] sm:$0xff] }
 0x32f   : > { %v15009_v5 = vsel %vm3315_vm7, %v3307_v33, %v9968_v1  ;;  %v15012_v59 = vsel %vm3315_vm7, %v3308_v54, %v9969_v7  ;;  %v3409_v35 = vpack.c.bf16 %v15006_v28, %v15003_v53  ;;  %v2988_v37 = vsel %vm2925_vm1, %v19927_v4, %v19926_v20 }
 0x330   : > { %v3408_v43 = vpack.c.bf16 %v15012_v59, %v15009_v5  ;;  %v2989_v34 = vsel %vm2925_vm1, %v19929_v56, %v19928_v19  ;;  %v9663_v49 = vunpack.i.l.bf16 %v19930_v12  ;;  %v19932_v31 = vunpack.i.l.bf16 %v19931_v55  ;;  %v19957_v5 = vld [vmem:[#allocation4_spill] sm:$0xff] }
 0x331   : > { %v19933_v7 = vunpack.i.h.bf16 %v19931_v55  ;;  %v9824_v13 = vunpack.i.h.bf16 %v19934_v27  ;;  %v9823_v33 = vunpack.i.l.bf16 %v19934_v27  ;;  %v19935_v54 = vpack.c.bf16 %v14855_v51, %v14852_v10 }
 0x332   : > { %v3053_v16 = vsel %vm2990_vm2, %v2988_v37, %v19932_v31  ;;  %v15069_v31 = vld [vmem:[%s18883_s2] ss:$0 sm:$0xff]  ;;  %v19940_v27 = vpack.c.bf16 %v14665_v9, %v14662_v46  ;;  %v8788_v59 = vunpack.i.l.bf16 %v19957_v5 }
 0x333   : > { %v3054_v1 = vsel %vm2990_vm2, %v2989_v34, %v19933_v7  ;;  %8599 = vmatmul.msk.bf16.gmra.mxu3 %vm3436_vm9, %v19935_v54  ;;  %v3118_v0 = vsel %vm3055_vm3, %v3053_v16, %v9343_v21 }
 0x334   : > { %v3119_v29 = vsel %vm3055_vm3, %v3054_v1, %v9344_v25  ;;  %v3183_v20 = vsel %vm3120_vm5, %v3118_v0, %v9503_v61  ;;  %v9982_v37 = vpop.permute.xlu0 %9981  ;;  %v19937_v61 = vld [vmem:[#allocation108_spill] sm:$0xff]  ;;  %v19941_v0 = vpack.c.bf16 %v14705_v11, %v14702_v38  ;;  %v11554_v11 = vmov 0.0  }
 0x335   : > { %v3184_v4 = vsel %vm3120_vm5, %v3119_v29, %v9504_v52  ;;  %v3248_v19 = vsel %vm3185_vm6, %v3183_v20, %v9663_v49  ;;  %v9984_v34 = vunpack.i.h.bf16 %v9982_v37  ;;  %v9983_v12 = vunpack.i.l.bf16 %v9982_v37  ;;  %v19936_v52 = vld [vmem:[#allocation171_spill] sm:$0xff]  ;;  %4189 = vst.msk [vmem:[#allocation2] sm:$0xff] %vm2925_vm1, %v11554_v11 }
 0x336   : > { %v3249_v56 = vsel %vm3185_vm6, %v3184_v4, %v9664_v24  ;;  %v3313_v55 = vsel %vm3250_vm8, %v3248_v19, %v9823_v33  ;;  %v19938_v49 = vpack.c.bf16 %v19936_v52, %v19937_v61  ;;  %v19939_v24 = vpack.c.bf16 %v14861_v14, %v14858_v17  ;;  %4190 = vst.msk [vmem:[#allocation2 + $0x8] sm:$0xff] %vm2925_vm1, %v11554_v11 }
 0x337   : > { %v3314_v10 = vsel %vm3250_vm8, %v3249_v56, %v9824_v13  ;;  %v15051_v51 = vsel %vm3315_vm7, %v3313_v55, %v9983_v12  ;;  %v19942_v20 = vpack.c.bf16 %v14675_v44, %v14668_v2  ;;  %v19943_v19 = vpack.c.bf16 %v14912_v48, %v14909_v32  ;;  %4191 = vst.msk [vmem:[#allocation2 + $0x10] sm:$0x3] %vm4094_vm11, %v11554_v11  ;;  %v19945_v12 = vld [vmem:[#allocation110_spill] sm:$0xff] }
 0x338   : > { %v15054_v25 = vsel %vm3315_vm7, %v3314_v10, %v9984_v34  ;;  %4192 = vst.msk [vmem:[#allocation2 + $0x1b0] sm:$0xff] %vm2925_vm1, %v11554_v11  ;;  %v19944_v34 = vld [vmem:[#allocation111_spill] sm:$0xff] }
 0x339   : > { %v3411_v21 = vpack.c.bf16 %v15054_v25, %v15051_v51  ;;  %4193 = vst.msk [vmem:[#allocation2 + $0x1b8] sm:$0xff] %vm2925_vm1, %v11554_v11  ;;  %v19946_v55 = vpack.c.bf16 %v19944_v34, %v19945_v12 }
 0x33a   : > { %4194 = vst.msk [vmem:[#allocation2 + $0x1c0] sm:$0x3] %vm4094_vm11, %v11554_v11 }
 0x33b   : > { %8586 = vmatmul.msk.bf16.gmra.mxu0 %vm3436_vm9, %v19938_v49  ;;  %4196 = vst.msk [vmem:[#allocation2 + $0x198] sm:$0xff] %vm2925_vm1, %v11554_v11 }
 0x33c   : > { %4197 = vst.msk [vmem:[#allocation2 + $0x1a0] sm:$0xff] %vm2925_vm1, %v11554_v11 }
 0x33d   : > { %v4266_v56 = vld [vmem:[#allocation2 + $0x1] sm:$0xff]  ;;  %4198 = vst.msk [vmem:[#allocation2 + $0x1a8] sm:$0x3] %vm4094_vm11, %v11554_v11 }
 0x33e   : > { %v4267_v32 = vld [vmem:[#allocation2 + $0x9] sm:$0xff]  ;;  %4199 = vst.msk [vmem:[#allocation2 + $0x348] sm:$0xff] %vm2925_vm1, %v11554_v11 }
 0x33f   : > { %v9985_v10 = vpack.i.bf16 %v4267_v32, %v4266_v56  ;;  %4200 = vst.msk [vmem:[#allocation2 + $0x350] sm:$0xff] %vm2925_vm1, %v11554_v11 }
 0x340   : > { %4201 = vst.msk [vmem:[#allocation2 + $0x358] sm:$0x3] %vm4094_vm11, %v11554_v11 }
 0x341   : > { %9986 = vrot.lane.b32.xlu1 %v9985_v10, %s11547_s26  ;;  %v19951_v10 = vpack.c.bf16 %v14956_v41, %v14953_v8  ;;  %v19952_v41 = vpack.c.bf16 %v14562_v50, %v14559_v22 }
 0x343   : > { %8600 = vmatmul.msk.bf16.gmra.mxu3 %vm3436_vm9, %v19939_v24  ;;  %v3546_v16 = vpop.f32.mrf.mxu0 }
 0x344   : > { %v3547_v7 = vadd.f32 %v15069_v31, %v3546_v16 }
 0x346   : > { %v3706_v1 = vmax.f32 %v3547_v7, 0.0  ;;  %v19947_v7 = vpack.c.bf16 %v14918_v15, %v14915_v3 }
 0x348   : > { %v3835_v13 = vrot.slane %v3706_v1, 7 }
 0x34a   : > { %v4027_v17 = vsel %vm3834_vm10, 0.0, %v3835_v13 }
 0x34b   : > { %8587 = vmatmul.msk.bf16.gmra.mxu0 %vm3436_vm9, %v19940_v27  ;;  %4092 = vst.msk [vmem:[#allocation2 + $0x18] sm:$0xff] %vm2925_vm1, %v4027_v17  ;;  %v3548_v14 = vpop.f32.mrf.mxu0 }
 0x34c   : > { %v3549_v33 = vadd.f32 %v15069_v31, %v3548_v14 }
 0x34e   : > { %v3707_v54 = vmax.f32 %v3549_v33, 0.0 }
 0x350   : > { %v3836_v29 = vrot.slane %v3707_v54, 7  ;;  %v19948_v54 = vpack.c.bf16 %v14717_v42, %v14714_v39 }
 0x352   : > { %v3837_v46 = vsel %vm3834_vm10, %v3835_v13, %v3836_v29  ;;  %v4059_v9 = vsel %vm3834_vm10, %v3836_v29, 0.0 }
 0x353   : > { %8601 = vmatmul.msk.bf16.gmra.mxu3 %vm3436_vm9, %v19941_v0  ;;  %4093 = vst.msk [vmem:[#allocation2 + $0x20] sm:$0xff] %vm2925_vm1, %v3837_v46 }
 0x354   : > { %4095 = vst.msk [vmem:[#allocation2 + $0x28] sm:$0x3] %vm4094_vm11, %v4059_v9 }
 0x35a   : > { %v4268_v4 = vld [vmem:[#allocation2 + $0x19] sm:$0xff] }
 0x35b   : > { %8588 = vmatmul.msk.bf16.gmra.mxu0 %vm3436_vm9, %v19942_v20  ;;  %v4269_v37 = vld [vmem:[#allocation2 + $0x21] sm:$0xff] }
 0x35c   : > { %v9990_v38 = vpack.i.bf16 %v4269_v37, %v4268_v4  ;;  %v19949_v37 = vpack.c.bf16 %v14757_v62, %v14754_v58 }
 0x35e   : > { %9991 = vrot.lane.b32.xlu2 %v9990_v38, %s11547_s26 }
 0x363   : > { %8602 = vmatmul.msk.bf16.gmra.mxu3 %vm3436_vm9, %v19943_v19 }
 0x367   : > { %v3551_v2 = vpop.f32.mrf.mxu0 }
 0x368   : > { %v3552_v44 = vadd.f32 %v15069_v31, %v3551_v2 }
 0x36a   : > { %v3708_v48 = vmax.f32 %v3552_v44, 0.0  ;;  %v19950_v44 = vpack.c.bf16 %v14727_v60, %v14720_v40 }
 0x36b   : > { %8589 = vmatmul.msk.bf16.gmra.mxu0 %vm3436_vm9, %v19946_v55 }
 0x36c   : > { %v3838_v52 = vrot.slane %v3708_v48, 7 }
 0x36e   : > { %v4028_v61 = vsel %vm3834_vm10, 0.0, %v3838_v52 }
 0x36f   : > { %4096 = vst.msk [vmem:[#allocation2 + $0x30] sm:$0xff] %vm2925_vm1, %v4028_v61  ;;  %v3553_v49 = vpop.f32.mrf.mxu0 }
 0x370   : > { %v3554_v24 = vadd.f32 %v15069_v31, %v3553_v49 }
 0x372   : > { %v3709_v16 = vmax.f32 %v3554_v24, 0.0 }
 0x373   : > { %8603 = vmatmul.msk.bf16.gmra.mxu3 %vm3436_vm9, %v19947_v7 }
 0x374   : > { %v3839_v1 = vrot.slane %v3709_v16, 7 }
 0x376   : > { %v3840_v27 = vsel %vm3834_vm10, %v3838_v52, %v3839_v1  ;;  %v4060_v13 = vsel %vm3834_vm10, %v3839_v1, 0.0 }
 0x377   : > { %4097 = vst.msk [vmem:[#allocation2 + $0x38] sm:$0xff] %vm2925_vm1, %v3840_v27  ;;  %v3556_v17 = vpop.f32.mrf.mxu0 }
 0x378   : > { %4098 = vst.msk [vmem:[#allocation2 + $0x40] sm:$0x3] %vm4094_vm11, %v4060_v13  ;;  %v3557_v14 = vadd.f32 %v15069_v31, %v3556_v17 }
 0x37a   : > { %v3710_v33 = vmax.f32 %v3557_v14, 0.0 }
 0x37b   : > { %8590 = vmatmul.msk.bf16.gmra.mxu0 %vm3436_vm9, %v19948_v54 }
 0x37c   : > { %v3841_v3 = vrot.slane %v3710_v33, 7 }
 0x37e   : > { %v4029_v15 = vsel %vm3834_vm10, 0.0, %v3841_v3  ;;  %v4270_v0 = vld [vmem:[#allocation2 + $0x31] sm:$0xff] }
 0x37f   : > { %4099 = vst.msk [vmem:[#allocation2 + $0x48] sm:$0xff] %vm2925_vm1, %v4029_v15  ;;  %v3558_v29 = vpop.f32.mrf.mxu0  ;;  %v4271_v46 = vld [vmem:[#allocation2 + $0x39] sm:$0xff] }
 0x380   : > { %v3559_v9 = vadd.f32 %v15069_v31, %v3558_v29  ;;  %v9995_v20 = vpack.i.bf16 %v4271_v46, %v4270_v0 }
 0x382   : > { %v3711_v4 = vmax.f32 %v3559_v9, 0.0  ;;  %9996 = vrot.lane.b32.xlu0 %v9995_v20, %s11547_s26  ;;  %v19953_v9 = vpack.c.bf16 %v14962_v36, %v14959_v26 }
 0x383   : > { %8604 = vmatmul.msk.bf16.gmra.mxu3 %vm3436_vm9, %v19949_v37 }
 0x384   : > { %v3842_v39 = vrot.slane %v3711_v4, 7 }
 0x386   : > { %v3843_v42 = vsel %vm3834_vm10, %v3841_v3, %v3842_v39  ;;  %v4061_v38 = vsel %vm3834_vm10, %v3842_v39, 0.0 }
 0x387   : > { %4100 = vst.msk [vmem:[#allocation2 + $0x50] sm:$0xff] %vm2925_vm1, %v3843_v42  ;;  %v3561_v11 = vpop.f32.mrf.mxu0 }
 0x388   : > { %4101 = vst.msk [vmem:[#allocation2 + $0x58] sm:$0x3] %vm4094_vm11, %v4061_v38  ;;  %v3562_v19 = vadd.f32 %v15069_v31, %v3561_v11 }
 0x38a   : > { %v3712_v2 = vmax.f32 %v3562_v19, 0.0 }
 0x38b   : > { %8591 = vmatmul.msk.bf16.gmra.mxu0 %vm3436_vm9, %v19950_v44 }
 0x38c   : > { %v3844_v58 = vrot.slane %v3712_v2, 7 }
 0x38e   : > { %v4030_v62 = vsel %vm3834_vm10, 0.0, %v3844_v58  ;;  %v4272_v56 = vld [vmem:[#allocation2 + $0x49] sm:$0xff] }
 0x38f   : > { %4102 = vst.msk [vmem:[#allocation2 + $0x60] sm:$0xff] %vm2925_vm1, %v4030_v62  ;;  %v3563_v32 = vpop.f32.mrf.mxu0  ;;  %v4273_v48 = vld [vmem:[#allocation2 + $0x51] sm:$0xff] }
 0x390   : > { %v3564_v34 = vadd.f32 %v15069_v31, %v3563_v32  ;;  %v10000_v12 = vpack.i.bf16 %v4273_v48, %v4272_v56 }
 0x392   : > { %v3713_v55 = vmax.f32 %v3564_v34, 0.0  ;;  %10001 = vrot.lane.b32.xlu1 %v10000_v12, %s11547_s26 }
 0x393   : > { %8605 = vmatmul.msk.bf16.gmra.mxu3 %vm3436_vm9, %v19951_v10  ;;  %v3631_v60 = vpop.f32.mrf.mxu3 }
 0x394   : > { %v3845_v40 = vrot.slane %v3713_v55, 7  ;;  %v3632_v49 = vadd.f32 %v15069_v31, %v3631_v60 }
 0x396   : > { %v3846_v52 = vsel %vm3834_vm10, %v3844_v58, %v3845_v40  ;;  %v4062_v61 = vsel %vm3834_vm10, %v3845_v40, 0.0  ;;  %v3740_v16 = vmax.f32 %v3632_v49, 0.0  ;;  %v19954_v58 = vpack.c.bf16 %v14769_v18, %v14766_v57 }
 0x397   : > { %4103 = vst.msk [vmem:[#allocation2 + $0x68] sm:$0xff] %vm2925_vm1, %v3846_v52  ;;  %v3566_v24 = vpop.f32.mrf.mxu0 }
 0x398   : > { %4104 = vst.msk [vmem:[#allocation2 + $0x70] sm:$0x3] %vm4094_vm11, %v4062_v61  ;;  %v3567_v7 = vadd.f32 %v15069_v31, %v3566_v24  ;;  %v3886_v1 = vrot.slane %v3740_v16, 7  ;;  %v19955_v61 = vpack.c.bf16 %v14813_v30, %v14810_v23 }
 0x39a   : > { %v3714_v8 = vmax.f32 %v3567_v7, 0.0  ;;  %v4044_v27 = vsel %vm3834_vm10, 0.0, %v3886_v1 }
 0x39b   : > { %8592 = vmatmul.msk.bf16.gmra.mxu0 %vm3436_vm9, %v19952_v41  ;;  %4144 = vst.msk [vmem:[#allocation2 + $0x1e0] sm:$0xff] %vm2925_vm1, %v4044_v27  ;;  %v3633_v17 = vpop.f32.mrf.mxu3 }
 0x39c   : > { %v3847_v13 = vrot.slane %v3714_v8, 7  ;;  %v3634_v33 = vadd.f32 %v15069_v31, %v3633_v17 }
 0x39e   : > { %v4031_v14 = vsel %vm3834_vm10, 0.0, %v3847_v13  ;;  %v4274_v54 = vld [vmem:[#allocation2 + $0x61] sm:$0xff]  ;;  %v3741_v0 = vmax.f32 %v3634_v33, 0.0 }
 0x39f   : > { %4105 = vst.msk [vmem:[#allocation2 + $0x78] sm:$0xff] %vm2925_vm1, %v4031_v14  ;;  %v3568_v3 = vpop.f32.mrf.mxu0  ;;  %v4275_v15 = vld [vmem:[#allocation2 + $0x69] sm:$0xff]  ;;  %v19956_v14 = vpack.c.bf16 %v14763_v6, %v14760_v45 }
 0x3a0   : > { %v3569_v22 = vadd.f32 %v15069_v31, %v3568_v3  ;;  %v10005_v50 = vpack.i.bf16 %v4275_v15, %v4274_v54  ;;  %v3887_v29 = vrot.slane %v3741_v0, 7 }
 0x3a2   : > { %v3715_v46 = vmax.f32 %v3569_v22, 0.0  ;;  %10006 = vrot.lane.b32.xlu2 %v10005_v50, %s11547_s26  ;;  %v3888_v20 = vsel %vm3834_vm10, %v3886_v1, %v3887_v29  ;;  %v4076_v4 = vsel %vm3834_vm10, %v3887_v29, 0.0 }
 0x3a3   : > { %8606 = vmatmul.msk.bf16.gmra.mxu3 %vm3436_vm9, %v19953_v9  ;;  %4145 = vst.msk [vmem:[#allocation2 + $0x1e8] sm:$0xff] %vm2925_vm1, %v3888_v20  ;;  %v3636_v39 = vpop.f32.mrf.mxu3 }
 0x3a4   : > { %v3848_v37 = vrot.slane %v3715_v46, 7  ;;  %4146 = vst.msk [vmem:[#allocation2 + $0x1f0] sm:$0x3] %vm4094_vm11, %v4076_v4  ;;  %v3637_v11 = vadd.f32 %v15069_v31, %v3636_v39 }
 0x3a6   : > { %v3849_v42 = vsel %vm3834_vm10, %v3847_v13, %v3848_v37  ;;  %v4063_v38 = vsel %vm3834_vm10, %v3848_v37, 0.0  ;;  %v3742_v36 = vmax.f32 %v3637_v11, 0.0 }
 0x3a7   : > { %4106 = vst.msk [vmem:[#allocation2 + $0x80] sm:$0xff] %vm2925_vm1, %v3849_v42 }
 0x3a8   : > { %v3571_v26 = vpop.f32.mrf.mxu0  ;;  %4107 = vst.msk [vmem:[#allocation2 + $0x88] sm:$0x3] %vm4094_vm11, %v4063_v38  ;;  %v3889_v2 = vrot.slane %v3742_v36, 7  ;;  %v8789_v36 = vunpack.i.h.bf16 %v19957_v5 }
 0x3a9   : > { %v3572_v19 = vadd.f32 %v15069_v31, %v3571_v26 }
 0x3aa   : > { %v4045_v62 = vsel %vm3834_vm10, 0.0, %v3889_v2 }
 0x3ab   : > { %v3716_v44 = vmax.f32 %v3572_v19, 0.0  ;;  %8593 = vmatmul.msk.bf16.gmra.mxu0 %vm3436_vm9, %v19954_v58  ;;  %4147 = vst.msk [vmem:[#allocation2 + $0x1f8] sm:$0xff] %vm2925_vm1, %v4045_v62  ;;  %v3638_v32 = vpop.f32.mrf.mxu3  ;;  %v266_v19 = vld [vmem:[%s11604_s24 + $0x1b0] sm:$0xff] }
 0x3ac   : > { %v3639_v34 = vadd.f32 %v15069_v31, %v3638_v32 }
 0x3ad   : > { %v3850_v56 = vrot.slane %v3716_v44, 7 }
 0x3ae   : > { %v4276_v12 = vld [vmem:[#allocation2 + $0x79] sm:$0xff]  ;;  %v3743_v40 = vmax.f32 %v3639_v34, 0.0 }
 0x3af   : > { %v4032_v48 = vsel %vm3834_vm10, 0.0, %v3850_v56  ;;  %v4277_v10 = vld [vmem:[#allocation2 + $0x81] sm:$0xff] }
 0x3b0   : > { %4108 = vst.msk [vmem:[#allocation2 + $0x90] sm:$0xff] %vm2925_vm1, %v4032_v48  ;;  %v3573_v55 = vpop.f32.mrf.mxu0  ;;  %v10010_v18 = vpack.i.bf16 %v4277_v10, %v4276_v12  ;;  %v3890_v60 = vrot.slane %v3743_v40, 7  ;;  %v19959_v48 = vld [vmem:[#allocation68_spill] sm:$0xff]  ;;  %v19960_v10 = vpack.c.bf16 %v14608_v63, %v14605_v47  ;;  %v2893_v40 = vsel %vm2860_vm0, %v266_v19, %v8788_v59  ;;  %v19962_v63 = vld [vmem:[#allocation147_spill] sm:$0xff] }
 0x3b1   : > { %v3574_v57 = vadd.f32 %v15069_v31, %v3573_v55  ;;  %v9108_v34 = vunpack.i.l.bf16 %v19959_v48 }
 0x3b2   : > { %10011 = vrot.lane.b32.xlu0 %v10010_v18, %s11547_s26  ;;  %v3891_v49 = vsel %vm3834_vm10, %v3889_v2, %v3890_v60  ;;  %v4077_v24 = vsel %vm3834_vm10, %v3890_v60, 0.0  ;;  %v19958_v2 = vld [vmem:[#allocation28_spill] sm:$0xff]  ;;  %v19961_v18 = vld [vmem:[#allocation113_spill] sm:$0xff] }
 0x3b3   : > { %v3717_v52 = vmax.f32 %v3574_v57, 0.0  ;;  %8607 = vmatmul.msk.bf16.gmra.mxu3 %vm3436_vm9, %v19955_v61  ;;  %4148 = vst.msk [vmem:[#allocation2 + $0x200] sm:$0xff] %vm2925_vm1, %v3891_v49  ;;  %v8948_v44 = vunpack.i.l.bf16 %v19958_v2  ;;  %v8949_v32 = vunpack.i.h.bf16 %v19958_v2  ;;  %v9109_v57 = vunpack.i.h.bf16 %v19959_v48 }
 0x3b4   : > { %4149 = vst.msk [vmem:[#allocation2 + $0x208] sm:$0x3] %vm4094_vm11, %v4077_v24  ;;  %v9268_v60 = vunpack.i.l.bf16 %v19961_v18  ;;  %v9269_v47 = vunpack.i.h.bf16 %v19961_v18 }
 0x3b5   : > { %v3851_v16 = vrot.slane %v3717_v52, 7  ;;  %v2958_v61 = vsel %vm2925_vm1, %v2893_v40, %v8948_v44 }
 0x3b6   : > { %v3641_v7 = vpop.f32.mrf.mxu3 }
 0x3b7   : > { %v3852_v1 = vsel %vm3834_vm10, %v3850_v56, %v3851_v16  ;;  %v4064_v8 = vsel %vm3834_vm10, %v3851_v16, 0.0  ;;  %v3642_v41 = vadd.f32 %v15069_v31, %v3641_v7  ;;  %v267_v56 = vld [vmem:[%s11604_s24 + $0x1b8] sm:$0xff]  ;;  %v3023_v7 = vsel %vm2990_vm2, %v2958_v61, %v9108_v34  ;;  %s11559_s24 = smov 72  }
 0x3b8   : > { %4109 = vst.msk [vmem:[#allocation2 + $0x98] sm:$0xff] %vm2925_vm1, %v3852_v1  ;;  %v3576_v23 = vpop.f32.mrf.mxu0  ;;  %v2894_v52 = vsel %vm2860_vm0, %v267_v56, %v8789_v36  ;;  %v9428_v1 = vunpack.i.l.bf16 %v19962_v63  ;;  %vm7470_vm0 = vcmask 523264  }
 0x3b9   : > { %4110 = vst.msk [vmem:[#allocation2 + $0xa0] sm:$0x3] %vm4094_vm11, %v4064_v8  ;;  %v3744_v30 = vmax.f32 %v3642_v41, 0.0  ;;  %v3577_v27 = vadd.f32 %v15069_v31, %v3576_v23  ;;  %v2959_v16 = vsel %vm2925_vm1, %v2894_v52, %v8949_v32  ;;  %v9429_v41 = vunpack.i.h.bf16 %v19962_v63  ;;  %v19963_v23 = vld [vmem:[#allocation183_spill] sm:$0xff] }
 0x3ba   : > { %v19966_v63 = vld [vmem:[#allocation39_spill] sm:$0xff] }
 0x3bb   : > { %v3892_v13 = vrot.slane %v3744_v30, 7  ;;  %v3718_v17 = vmax.f32 %v3577_v27, 0.0  ;;  %8594 = vmatmul.msk.bf16.gmra.mxu0 %vm3436_vm9, %v19956_v14  ;;  %v9588_v30 = vunpack.i.l.bf16 %v19963_v23  ;;  %v3024_v14 = vsel %vm2990_vm2, %v2959_v16, %v9109_v57 }
 0x3bc   : > { %vm7535_vm2 = vcmask 588800  }
 0x3bd   : > { %v4046_v33 = vsel %vm3834_vm10, 0.0, %v3892_v13  ;;  %v3853_v54 = vrot.slane %v3718_v17, 7 }
 0x3be   : > { %4150 = vst.msk [vmem:[#allocation2 + $0x210] sm:$0xff] %vm2925_vm1, %v4046_v33  ;;  %v3643_v3 = vpop.f32.mrf.mxu3  ;;  %v3088_v33 = vsel %vm3055_vm3, %v3023_v7, %v9268_v60 }
 0x3bf   : > { %v4033_v15 = vsel %vm3834_vm10, 0.0, %v3853_v54  ;;  %v3644_v0 = vadd.f32 %v15069_v31, %v3643_v3  ;;  %v4278_v22 = vld [vmem:[#allocation2 + $0x91] sm:$0xff] }
 0x3c0   : > { %4111 = vst.msk [vmem:[#allocation2 + $0xa8] sm:$0xff] %vm2925_vm1, %v4033_v15  ;;  %v3578_v50 = vpop.f32.mrf.mxu0  ;;  %v4279_v29 = vld [vmem:[#allocation2 + $0x99] sm:$0xff]  ;;  %v19964_v3 = vld [vmem:[#allocation98_spill] sm:$0xff] }
 0x3c1   : > { %v3745_v46 = vmax.f32 %v3644_v0, 0.0  ;;  %v3579_v45 = vadd.f32 %v15069_v31, %v3578_v50  ;;  %v10015_v6 = vpack.i.bf16 %v4279_v29, %v4278_v22  ;;  %v9748_v15 = vunpack.i.l.bf16 %v19964_v3 }
 0x3c2   : > { %v9749_v50 = vunpack.i.h.bf16 %v19964_v3 }
 0x3c3   : > { %v3893_v9 = vrot.slane %v3745_v46, 7  ;;  %v3719_v20 = vmax.f32 %v3579_v45, 0.0  ;;  %10016 = vrot.lane.b32.xlu1 %v10015_v6, %s11547_s26  ;;  %8608 = vmatmul.msk.bf16.gmra.mxu3 %vm3436_vm9, %v3408_v43  ;;  %v3089_v6 = vsel %vm3055_vm3, %v3024_v14, %v9269_v47 }
 0x3c5   : > { %v3894_v4 = vsel %vm3834_vm10, %v3892_v13, %v3893_v9  ;;  %v4078_v37 = vsel %vm3834_vm10, %v3893_v9, 0.0  ;;  %v3854_v39 = vrot.slane %v3719_v20, 7  ;;  %v3153_v9 = vsel %vm3120_vm5, %v3088_v33, %v9428_v1  ;;  %v19965_v20 = vld [vmem:[#allocation112_spill] sm:$0xff]  ;;  %v19967_v1 = vld [vmem:[#allocation114_spill] sm:$0xff] }
 0x3c6   : > { %4151 = vst.msk [vmem:[#allocation2 + $0x218] sm:$0xff] %vm2925_vm1, %v3894_v4  ;;  %v3646_v42 = vpop.f32.mrf.mxu3  ;;  %v9909_v4 = vunpack.i.h.bf16 %v19965_v20 }
 0x3c7   : > { %4152 = vst.msk [vmem:[#allocation2 + $0x220] sm:$0x3] %vm4094_vm11, %v4078_v37  ;;  %v3855_v38 = vsel %vm3834_vm10, %v3853_v54, %v3854_v39  ;;  %v4065_v11 = vsel %vm3834_vm10, %v3854_v39, 0.0  ;;  %v3647_v26 = vadd.f32 %v15069_v31, %v3646_v42  ;;  %v9589_v54 = vunpack.i.h.bf16 %v19963_v23 }
 0x3c8   : > { %4112 = vst.msk [vmem:[#allocation2 + $0xb0] sm:$0xff] %vm2925_vm1, %v3855_v38  ;;  %v3581_v43 = vpop.f32.mrf.mxu0  ;;  %v9908_v37 = vunpack.i.l.bf16 %v19965_v20  ;;  %v3154_v39 = vsel %vm3120_vm5, %v3089_v6, %v9429_v41  ;;  %v3218_v42 = vsel %vm3185_vm6, %v3153_v9, %v9588_v30 }
 0x3c9   : > { %4113 = vst.msk [vmem:[#allocation2 + $0xb8] sm:$0x3] %vm4094_vm11, %v4065_v11  ;;  %v3746_v58 = vmax.f32 %v3647_v26, 0.0  ;;  %v3582_v62 = vadd.f32 %v15069_v31, %v3581_v43  ;;  %v3219_v26 = vsel %vm3185_vm6, %v3154_v39, %v9589_v54  ;;  %v3283_v5 = vsel %vm3250_vm8, %v3218_v42, %v9748_v15 }
 0x3ca   : > { %v3284_v59 = vsel %vm3250_vm8, %v3219_v26, %v9749_v50  ;;  %v3348_v2 = vsel %vm3315_vm7, %v3283_v5, %v9908_v37 }
 0x3cb   : > { %v3895_v12 = vrot.slane %v3746_v58, 7  ;;  %v3720_v55 = vmax.f32 %v3582_v62, 0.0  ;;  %8595 = vmatmul.msk.bf16.gmra.mxu0 %vm3436_vm9, %v19960_v10  ;;  %v3349_v44 = vsel %vm3315_vm7, %v3284_v59, %v9909_v4 }
 0x3cc   : > { %v3396_v48 = vpack.c.bf16 %v3349_v44, %v3348_v2 }
 0x3cd   : > { %v4047_v49 = vsel %vm3834_vm10, 0.0, %v3895_v12  ;;  %v3856_v24 = vrot.slane %v3720_v55, 7 }
 0x3ce   : > { %4153 = vst.msk [vmem:[#allocation2 + $0x228] sm:$0xff] %vm2925_vm1, %v4047_v49  ;;  %v3648_v8 = vpop.f32.mrf.mxu3 }
 0x3cf   : > { %v4034_v27 = vsel %vm3834_vm10, 0.0, %v3856_v24  ;;  %v3649_v13 = vadd.f32 %v15069_v31, %v3648_v8  ;;  %v4280_v17 = vld [vmem:[#allocation2 + $0xa9] sm:$0xff]  ;;  %v19968_v8 = vpack.c.bf16 %v19966_v63, %v19967_v1 }
 0x3d0   : > { %4114 = vst.msk [vmem:[#allocation2 + $0xc0] sm:$0xff] %vm2925_vm1, %v4034_v27  ;;  %v3583_v0 = vpop.f32.mrf.mxu0  ;;  %v4281_v22 = vld [vmem:[#allocation2 + $0xb1] sm:$0xff] }
 0x3d1   : > { %v3747_v29 = vmax.f32 %v3649_v13, 0.0  ;;  %v3584_v46 = vadd.f32 %v15069_v31, %v3583_v0  ;;  %v10020_v45 = vpack.i.bf16 %v4281_v22, %v4280_v17 }
 0x3d3   : > { %v3896_v38 = vrot.slane %v3747_v29, 7  ;;  %v3721_v11 = vmax.f32 %v3584_v46, 0.0  ;;  %10021 = vrot.lane.b32.xlu2 %v10020_v45, %s11547_s26  ;;  %8609 = vmatmul.msk.bf16.gmra.mxu3 %vm3436_vm9, %v3409_v35 }
 0x3d5   : > { %v3897_v43 = vsel %vm3834_vm10, %v3895_v12, %v3896_v38  ;;  %v4079_v36 = vsel %vm3834_vm10, %v3896_v38, 0.0  ;;  %v3857_v19 = vrot.slane %v3721_v11, 7 }
 0x3d6   : > { %4154 = vst.msk [vmem:[#allocation2 + $0x230] sm:$0xff] %vm2925_vm1, %v3897_v43  ;;  %v3651_v53 = vpop.f32.mrf.mxu3 }
 0x3d7   : > { %4155 = vst.msk [vmem:[#allocation2 + $0x238] sm:$0x3] %vm4094_vm11, %v4079_v36  ;;  %v3858_v28 = vsel %vm3834_vm10, %v3856_v24, %v3857_v19  ;;  %v4066_v35 = vsel %vm3834_vm10, %v3857_v19, 0.0  ;;  %v3652_v58 = vadd.f32 %v15069_v31, %v3651_v53 }
 0x3d8   : > { %4115 = vst.msk [vmem:[#allocation2 + $0xc8] sm:$0xff] %vm2925_vm1, %v3858_v28  ;;  %v3586_v62 = vpop.f32.mrf.mxu0 }
 0x3d9   : > { %4116 = vst.msk [vmem:[#allocation2 + $0xd0] sm:$0x3] %vm4094_vm11, %v4066_v35  ;;  %v3748_v56 = vmax.f32 %v3652_v58, 0.0  ;;  %v3587_v32 = vadd.f32 %v15069_v31, %v3586_v62 }
 0x3db   : > { %v3898_v34 = vrot.slane %v3748_v56, 7  ;;  %v3722_v12 = vmax.f32 %v3587_v32, 0.0  ;;  %8596 = vmatmul.msk.bf16.gmra.mxu0 %vm3436_vm9, %v3396_v48 }
 0x3dd   : > { %v4048_v55 = vsel %vm3834_vm10, 0.0, %v3898_v34  ;;  %v3859_v10 = vrot.slane %v3722_v12, 7 }
 0x3de   : > { %4156 = vst.msk [vmem:[#allocation2 + $0x240] sm:$0xff] %vm2925_vm1, %v4048_v55  ;;  %v3653_v40 = vpop.f32.mrf.mxu3 }
 0x3df   : > { %v4035_v57 = vsel %vm3834_vm10, 0.0, %v3859_v10  ;;  %v3654_v18 = vadd.f32 %v15069_v31, %v3653_v40  ;;  %v4282_v60 = vld [vmem:[#allocation2 + $0xc1] sm:$0xff] }
 0x3e0   : > { %4117 = vst.msk [vmem:[#allocation2 + $0xd8] sm:$0xff] %vm2925_vm1, %v4035_v57  ;;  %v3588_v52 = vpop.f32.mrf.mxu0  ;;  %v4283_v61 = vld [vmem:[#allocation2 + $0xc9] sm:$0xff] }
 0x3e1   : > { %v3749_v49 = vmax.f32 %v3654_v18, 0.0  ;;  %v3589_v24 = vadd.f32 %v15069_v31, %v3588_v52  ;;  %v10025_v16 = vpack.i.bf16 %v4283_v61, %v4282_v60 }
 0x3e3   : > { %v3899_v7 = vrot.slane %v3749_v49, 7  ;;  %v3723_v47 = vmax.f32 %v3589_v24, 0.0  ;;  %10026 = vrot.lane.b32.xlu0 %v10025_v16, %s11547_s26  ;;  %8610 = vmatmul.msk.bf16.gmra.mxu3 %vm3436_vm9, %v19968_v8 }
 0x3e5   : > { %v3900_v41 = vsel %vm3834_vm10, %v3898_v34, %v3899_v7  ;;  %v4080_v23 = vsel %vm3834_vm10, %v3899_v7, 0.0  ;;  %v3860_v30 = vrot.slane %v3723_v47, 7 }
 0x3e6   : > { %4157 = vst.msk [vmem:[#allocation2 + $0x248] sm:$0xff] %vm2925_vm1, %v3900_v41  ;;  %v3656_v27 = vpop.f32.mrf.mxu3 }
 0x3e7   : > { %4158 = vst.msk [vmem:[#allocation2 + $0x250] sm:$0x3] %vm4094_vm11, %v4080_v23  ;;  %v3861_v13 = vsel %vm3834_vm10, %v3859_v10, %v3860_v30  ;;  %v4067_v17 = vsel %vm3834_vm10, %v3860_v30, 0.0  ;;  %v3657_v14 = vadd.f32 %v15069_v31, %v3656_v27 }
 0x3e8   : > { %4118 = vst.msk [vmem:[#allocation2 + $0xe0] sm:$0xff] %vm2925_vm1, %v3861_v13  ;;  %v3591_v33 = vpop.f32.mrf.mxu0 }
 0x3e9   : > { %4119 = vst.msk [vmem:[#allocation2 + $0xe8] sm:$0x3] %vm4094_vm11, %v4067_v17  ;;  %v3750_v54 = vmax.f32 %v3657_v14, 0.0  ;;  %v3592_v3 = vadd.f32 %v15069_v31, %v3591_v33 }
 0x3eb   : > { %v3901_v15 = vrot.slane %v3750_v54, 7  ;;  %v3724_v0 = vmax.f32 %v3592_v3, 0.0 }
 0x3ed   : > { %v4049_v22 = vsel %vm3834_vm10, 0.0, %v3901_v15  ;;  %v3862_v50 = vrot.slane %v3724_v0, 7 }
 0x3ee   : > { %4159 = vst.msk [vmem:[#allocation2 + $0x258] sm:$0xff] %vm2925_vm1, %v4049_v22  ;;  %v3658_v29 = vpop.f32.mrf.mxu3 }
 0x3ef   : > { %v4036_v46 = vsel %vm3834_vm10, 0.0, %v3862_v50  ;;  %v3659_v45 = vadd.f32 %v15069_v31, %v3658_v29  ;;  %v4284_v6 = vld [vmem:[#allocation2 + $0xd9] sm:$0xff] }
 0x3f0   : > { %4120 = vst.msk [vmem:[#allocation2 + $0xf0] sm:$0xff] %vm2925_vm1, %v4036_v46  ;;  %v3593_v9 = vpop.f32.mrf.mxu0  ;;  %v4285_v20 = vld [vmem:[#allocation2 + $0xe1] sm:$0xff] }
 0x3f1   : > { %v3751_v4 = vmax.f32 %v3659_v45, 0.0  ;;  %v3594_v37 = vadd.f32 %v15069_v31, %v3593_v9  ;;  %v10030_v39 = vpack.i.bf16 %v4285_v20, %v4284_v6 }
 0x3f3   : > { %v3902_v42 = vrot.slane %v3751_v4, 7  ;;  %v3725_v38 = vmax.f32 %v3594_v37, 0.0  ;;  %10031 = vrot.lane.b32.xlu1 %v10030_v39, %s11547_s26  ;;  %8611 = vmatmul.msk.bf16.gmra.mxu3 %vm3436_vm9, %v3411_v21 }
 0x3f5   : > { %v3903_v11 = vsel %vm3834_vm10, %v3901_v15, %v3902_v42  ;;  %v4081_v26 = vsel %vm3834_vm10, %v3902_v42, 0.0  ;;  %v3863_v5 = vrot.slane %v3725_v38, 7 }
 0x3f6   : > { %4160 = vst.msk [vmem:[#allocation2 + $0x260] sm:$0xff] %vm2925_vm1, %v3903_v11  ;;  %v3661_v59 = vpop.f32.mrf.mxu3 }
 0x3f7   : > { %4161 = vst.msk [vmem:[#allocation2 + $0x268] sm:$0x3] %vm4094_vm11, %v4081_v26  ;;  %v3864_v43 = vsel %vm3834_vm10, %v3862_v50, %v3863_v5  ;;  %v4068_v36 = vsel %vm3834_vm10, %v3863_v5, 0.0  ;;  %v3662_v19 = vadd.f32 %v15069_v31, %v3661_v59 }
 0x3f8   : > { %4121 = vst.msk [vmem:[#allocation2 + $0xf8] sm:$0xff] %vm2925_vm1, %v3864_v43  ;;  %v3596_v51 = vpop.f32.mrf.mxu0 }
 0x3f9   : > { %4122 = vst.msk [vmem:[#allocation2 + $0x100] sm:$0x3] %vm4094_vm11, %v4068_v36  ;;  %v3752_v25 = vmax.f32 %v3662_v19, 0.0  ;;  %v3597_v21 = vadd.f32 %v15069_v31, %v3596_v51 }
 0x3fb   : > { %v3904_v2 = vrot.slane %v3752_v25, 7  ;;  %v3726_v44 = vmax.f32 %v3597_v21, 0.0 }
 0x3fd   : > { %v4050_v53 = vsel %vm3834_vm10, 0.0, %v3904_v2  ;;  %v3865_v28 = vrot.slane %v3726_v44, 7 }
 0x3fe   : > { %4162 = vst.msk [vmem:[#allocation2 + $0x270] sm:$0xff] %vm2925_vm1, %v4050_v53  ;;  %v3663_v35 = vpop.f32.mrf.mxu3 }
 0x3ff   : > { %v4037_v58 = vsel %vm3834_vm10, 0.0, %v3865_v28  ;;  %v3664_v62 = vadd.f32 %v15069_v31, %v3663_v35  ;;  %v4286_v56 = vld [vmem:[#allocation2 + $0xf1] sm:$0xff] }
 0x400   : > { %4123 = vst.msk [vmem:[#allocation2 + $0x108] sm:$0xff] %vm2925_vm1, %v4037_v58  ;;  %v3598_v32 = vpop.f32.mrf.mxu0  ;;  %v4287_v48 = vld [vmem:[#allocation2 + $0xf9] sm:$0xff] }
 0x401   : > { %v3753_v34 = vmax.f32 %v3664_v62, 0.0  ;;  %v3599_v12 = vadd.f32 %v15069_v31, %v3598_v32  ;;  %v10035_v55 = vpack.i.bf16 %v4287_v48, %v4286_v56 }
 0x403   : > { %v3905_v10 = vrot.slane %v3753_v34, 7  ;;  %v3727_v40 = vmax.f32 %v3599_v12, 0.0  ;;  %10036 = vrot.lane.b32.xlu2 %v10035_v55, %s11547_s26 }
 0x405   : > { %v3906_v57 = vsel %vm3834_vm10, %v3904_v2, %v3905_v10  ;;  %v4082_v18 = vsel %vm3834_vm10, %v3905_v10, 0.0  ;;  %v3866_v60 = vrot.slane %v3727_v40, 7 }
 0x406   : > { %4163 = vst.msk [vmem:[#allocation2 + $0x278] sm:$0xff] %vm2925_vm1, %v3906_v57  ;;  %v3666_v52 = vpop.f32.mrf.mxu3 }
 0x407   : > { %4164 = vst.msk [vmem:[#allocation2 + $0x280] sm:$0x3] %vm4094_vm11, %v4082_v18  ;;  %v3867_v61 = vsel %vm3834_vm10, %v3865_v28, %v3866_v60  ;;  %v4069_v49 = vsel %vm3834_vm10, %v3866_v60, 0.0  ;;  %v3667_v24 = vadd.f32 %v15069_v31, %v3666_v52 }
 0x408   : > { %4124 = vst.msk [vmem:[#allocation2 + $0x110] sm:$0xff] %vm2925_vm1, %v3867_v61  ;;  %v3601_v16 = vpop.f32.mrf.mxu0 }
 0x409   : > { %4125 = vst.msk [vmem:[#allocation2 + $0x118] sm:$0x3] %vm4094_vm11, %v4069_v49  ;;  %v3754_v7 = vmax.f32 %v3667_v24, 0.0  ;;  %v3602_v47 = vadd.f32 %v15069_v31, %v3601_v16 }
 0x40b   : > { %v3907_v63 = vrot.slane %v3754_v7, 7  ;;  %v3728_v1 = vmax.f32 %v3602_v47, 0.0 }
 0x40d   : > { %v4051_v8 = vsel %vm3834_vm10, 0.0, %v3907_v63  ;;  %v3868_v41 = vrot.slane %v3728_v1, 7 }
 0x40e   : > { %4165 = vst.msk [vmem:[#allocation2 + $0x288] sm:$0xff] %vm2925_vm1, %v4051_v8  ;;  %v3668_v23 = vpop.f32.mrf.mxu3  ;;  %v4298_v8 = vld [vmem:[#allocation2 + $0x1b1] sm:$0xff] }
 0x40f   : > { %v4038_v30 = vsel %vm3834_vm10, 0.0, %v3868_v41  ;;  %v3669_v27 = vadd.f32 %v15069_v31, %v3668_v23  ;;  %v4288_v13 = vld [vmem:[#allocation2 + $0x109] sm:$0xff] }
 0x410   : > { %4126 = vst.msk [vmem:[#allocation2 + $0x120] sm:$0xff] %vm2925_vm1, %v4038_v30  ;;  %v3603_v17 = vpop.f32.mrf.mxu0  ;;  %v4289_v14 = vld [vmem:[#allocation2 + $0x111] sm:$0xff] }
 0x411   : > { %v3755_v33 = vmax.f32 %v3669_v27, 0.0  ;;  %v3604_v54 = vadd.f32 %v15069_v31, %v3603_v17  ;;  %v10040_v3 = vpack.i.bf16 %v4289_v14, %v4288_v13 }
 0x413   : > { %v3908_v15 = vrot.slane %v3755_v33, 7  ;;  %v3729_v0 = vmax.f32 %v3604_v54, 0.0  ;;  %10041 = vrot.lane.b32.xlu0 %v10040_v3, %s11547_s26 }
 0x415   : > { %v3909_v22 = vsel %vm3834_vm10, %v3907_v63, %v3908_v15  ;;  %v4083_v50 = vsel %vm3834_vm10, %v3908_v15, 0.0  ;;  %v3869_v29 = vrot.slane %v3729_v0, 7 }
 0x416   : > { %4166 = vst.msk [vmem:[#allocation2 + $0x290] sm:$0xff] %vm2925_vm1, %v3909_v22  ;;  %v3671_v46 = vpop.f32.mrf.mxu3 }
 0x417   : > { %4167 = vst.msk [vmem:[#allocation2 + $0x298] sm:$0x3] %vm4094_vm11, %v4083_v50  ;;  %v3870_v45 = vsel %vm3834_vm10, %v3868_v41, %v3869_v29  ;;  %v4070_v6 = vsel %vm3834_vm10, %v3869_v29, 0.0  ;;  %v3672_v9 = vadd.f32 %v15069_v31, %v3671_v46  ;;  %v4299_v41 = vld [vmem:[#allocation2 + $0x1b9] sm:$0xff] }
 0x418   : > { %4127 = vst.msk [vmem:[#allocation2 + $0x128] sm:$0xff] %vm2925_vm1, %v3870_v45  ;;  %v3606_v20 = vpop.f32.mrf.mxu0  ;;  %v10065_v54 = vpack.i.bf16 %v4299_v41, %v4298_v8 }
 0x419   : > { %4128 = vst.msk [vmem:[#allocation2 + $0x130] sm:$0x3] %vm4094_vm11, %v4070_v6  ;;  %v3756_v4 = vmax.f32 %v3672_v9, 0.0  ;;  %v3607_v37 = vadd.f32 %v15069_v31, %v3606_v20  ;;  %v4304_v6 = vld [vmem:[#allocation2 + $0x1f9] sm:$0xff]  ;;  %v4305_v9 = vld [vmem:[#allocation2 + $0x201] sm:$0xff] }
 0x41b   : > { %v3910_v39 = vrot.slane %v3756_v4, 7  ;;  %v3730_v42 = vmax.f32 %v3607_v37, 0.0 }
 0x41d   : > { %v4052_v38 = vsel %vm3834_vm10, 0.0, %v3910_v39  ;;  %v3871_v11 = vrot.slane %v3730_v42, 7 }
 0x41e   : > { %4168 = vst.msk [vmem:[#allocation2 + $0x2a0] sm:$0xff] %vm2925_vm1, %v4052_v38  ;;  %v3673_v26 = vpop.f32.mrf.mxu3 }
 0x41f   : > { %v4039_v5 = vsel %vm3834_vm10, 0.0, %v3871_v11  ;;  %v3674_v59 = vadd.f32 %v15069_v31, %v3673_v26  ;;  %v4290_v43 = vld [vmem:[#allocation2 + $0x121] sm:$0xff] }
 0x420   : > { %4129 = vst.msk [vmem:[#allocation2 + $0x138] sm:$0xff] %vm2925_vm1, %v4039_v5  ;;  %v3608_v36 = vpop.f32.mrf.mxu0  ;;  %v4291_v19 = vld [vmem:[#allocation2 + $0x129] sm:$0xff]  ;;  %v10080_v5 = vpack.i.bf16 %v4305_v9, %v4304_v6 }
 0x421   : > { %v3757_v51 = vmax.f32 %v3674_v59, 0.0  ;;  %v3609_v25 = vadd.f32 %v15069_v31, %v3608_v36  ;;  %v10045_v21 = vpack.i.bf16 %v4291_v19, %v4290_v43 }
 0x423   : > { %v3911_v2 = vrot.slane %v3757_v51, 7  ;;  %v3731_v44 = vmax.f32 %v3609_v25, 0.0  ;;  %10046 = vrot.lane.b32.xlu1 %v10045_v21, %s11547_s26  ;;  %v4310_v21 = vld [vmem:[#allocation2 + $0x241] sm:$0xff] }
 0x425   : > { %v3912_v53 = vsel %vm3834_vm10, %v3910_v39, %v3911_v2  ;;  %v4084_v28 = vsel %vm3834_vm10, %v3911_v2, 0.0  ;;  %v3872_v35 = vrot.slane %v3731_v44, 7  ;;  %v4311_v2 = vld [vmem:[#allocation2 + $0x249] sm:$0xff] }
 0x426   : > { %4169 = vst.msk [vmem:[#allocation2 + $0x2a8] sm:$0xff] %vm2925_vm1, %v3912_v53  ;;  %v3676_v58 = vpop.f32.mrf.mxu3 }
 0x427   : > { %4170 = vst.msk [vmem:[#allocation2 + $0x2b0] sm:$0x3] %vm4094_vm11, %v4084_v28  ;;  %v3873_v62 = vsel %vm3834_vm10, %v3871_v11, %v3872_v35  ;;  %v4071_v56 = vsel %vm3834_vm10, %v3872_v35, 0.0  ;;  %v3677_v32 = vadd.f32 %v15069_v31, %v3676_v58 }
 0x428   : > { %4130 = vst.msk [vmem:[#allocation2 + $0x140] sm:$0xff] %vm2925_vm1, %v3873_v62  ;;  %v3611_v48 = vpop.f32.mrf.mxu0 }
 0x429   : > { %4131 = vst.msk [vmem:[#allocation2 + $0x148] sm:$0x3] %vm4094_vm11, %v4071_v56  ;;  %v3758_v34 = vmax.f32 %v3677_v32, 0.0  ;;  %v3612_v12 = vadd.f32 %v15069_v31, %v3611_v48  ;;  %v10095_v56 = vpack.i.bf16 %v4311_v2, %v4310_v21  ;;  %v4315_v21 = vld [vmem:[#allocation2 + $0x279] sm:$0xff] }
 0x42b   : > { %v3913_v55 = vrot.slane %v3758_v34, 7  ;;  %v3732_v10 = vmax.f32 %v3612_v12, 0.0 }
 0x42d   : > { %v4053_v40 = vsel %vm3834_vm10, 0.0, %v3913_v55  ;;  %v3874_v57 = vrot.slane %v3732_v10, 7  ;;  %v4316_v10 = vld [vmem:[#allocation2 + $0x289] sm:$0xff] }
 0x42e   : > { %4171 = vst.msk [vmem:[#allocation2 + $0x2b8] sm:$0xff] %vm2925_vm1, %v4053_v40  ;;  %v3678_v18 = vpop.f32.mrf.mxu3  ;;  %v4317_v40 = vld [vmem:[#allocation2 + $0x291] sm:$0xff] }
 0x42f   : > { %v4040_v60 = vsel %vm3834_vm10, 0.0, %v3874_v57  ;;  %v3679_v52 = vadd.f32 %v15069_v31, %v3678_v18  ;;  %v4292_v61 = vld [vmem:[#allocation2 + $0x139] sm:$0xff] }
 0x430   : > { %4132 = vst.msk [vmem:[#allocation2 + $0x150] sm:$0xff] %vm2925_vm1, %v4040_v60  ;;  %v3613_v49 = vpop.f32.mrf.mxu0  ;;  %v4293_v24 = vld [vmem:[#allocation2 + $0x141] sm:$0xff]  ;;  %v15432_v18 = vld [vmem:[%s18883_s2] ss:$0 sm:$0xff] }
 0x431   : > { %v3759_v16 = vmax.f32 %v3679_v52, 0.0  ;;  %v3614_v7 = vadd.f32 %v15069_v31, %v3613_v49  ;;  %v10050_v47 = vpack.i.bf16 %v4293_v24, %v4292_v61 }
 0x433   : > { %v3914_v63 = vrot.slane %v3759_v16, 7  ;;  %v3733_v1 = vmax.f32 %v3614_v7, 0.0  ;;  %10051 = vrot.lane.b32.xlu2 %v10050_v47, %s11547_s26  ;;  %v10110_v7 = vpack.i.bf16 %v4317_v40, %v4316_v10 }
 0x435   : > { %v3915_v23 = vsel %vm3834_vm10, %v3913_v55, %v3914_v63  ;;  %v4085_v30 = vsel %vm3834_vm10, %v3914_v63, 0.0  ;;  %v3875_v27 = vrot.slane %v3733_v1, 7 }
 0x436   : > { %4172 = vst.msk [vmem:[#allocation2 + $0x2c0] sm:$0xff] %vm2925_vm1, %v3915_v23  ;;  %v3681_v13 = vpop.f32.mrf.mxu3  ;;  %v4302_v23 = vld [vmem:[#allocation2 + $0x1e1] sm:$0xff] }
 0x437   : > { %4173 = vst.msk [vmem:[#allocation2 + $0x2c8] sm:$0x3] %vm4094_vm11, %v4085_v30  ;;  %v3876_v17 = vsel %vm3834_vm10, %v3874_v57, %v3875_v27  ;;  %v4072_v14 = vsel %vm3834_vm10, %v3875_v27, 0.0  ;;  %v3682_v33 = vadd.f32 %v15069_v31, %v3681_v13  ;;  %v4303_v27 = vld [vmem:[#allocation2 + $0x1e9] sm:$0xff] }
 0x438   : > { %4133 = vst.msk [vmem:[#allocation2 + $0x158] sm:$0xff] %vm2925_vm1, %v3876_v17  ;;  %v3616_v3 = vpop.f32.mrf.mxu0 }
 0x439   : > { %4134 = vst.msk [vmem:[#allocation2 + $0x160] sm:$0x3] %vm4094_vm11, %v4072_v14  ;;  %v3760_v15 = vmax.f32 %v3682_v33, 0.0  ;;  %v3617_v0 = vadd.f32 %v15069_v31, %v3616_v3 }
 0x43b   : > { %v3916_v22 = vrot.slane %v3760_v15, 7  ;;  %v3734_v50 = vmax.f32 %v3617_v0, 0.0  ;;  %10066 = vrot.lane.b32.xlu2 %v10065_v54, %s11547_s26 }
 0x43d   : > { %v4054_v29 = vsel %vm3834_vm10, 0.0, %v3916_v22  ;;  %v3877_v46 = vrot.slane %v3734_v50, 7 }
 0x43e   : > { %4174 = vst.msk [vmem:[#allocation2 + $0x2d0] sm:$0xff] %vm2925_vm1, %v4054_v29  ;;  %v3683_v45 = vpop.f32.mrf.mxu3 }
 0x43f   : > { %v4041_v20 = vsel %vm3834_vm10, 0.0, %v3877_v46  ;;  %v3684_v4 = vadd.f32 %v15069_v31, %v3683_v45  ;;  %v4294_v37 = vld [vmem:[#allocation2 + $0x151] sm:$0xff] }
 0x440   : > { %4135 = vst.msk [vmem:[#allocation2 + $0x168] sm:$0xff] %vm2925_vm1, %v4041_v20  ;;  %v3618_v39 = vpop.f32.mrf.mxu0  ;;  %v4295_v42 = vld [vmem:[#allocation2 + $0x159] sm:$0xff]  ;;  %v4308_v20 = vld [vmem:[#allocation2 + $0x229] sm:$0xff] }
 0x441   : > { %v3761_v38 = vmax.f32 %v3684_v4, 0.0  ;;  %v3619_v11 = vadd.f32 %v15069_v31, %v3618_v39  ;;  %v10055_v26 = vpack.i.bf16 %v4295_v42, %v4294_v37  ;;  %v4309_v4 = vld [vmem:[#allocation2 + $0x231] sm:$0xff] }
 0x443   : > { %v3917_v59 = vrot.slane %v3761_v38, 7  ;;  %v3735_v43 = vmax.f32 %v3619_v11, 0.0  ;;  %10056 = vrot.lane.b32.xlu0 %v10055_v26, %s11547_s26  ;;  %10081 = vrot.lane.b32.xlu2 %v10080_v5, %s11547_s26  ;;  %v10090_v26 = vpack.i.bf16 %v4309_v4, %v4308_v20  ;;  %v4318_v4 = vld [vmem:[#allocation2 + $0x2a1] sm:$0xff] }
 0x445   : > { %v3918_v36 = vsel %vm3834_vm10, %v3916_v22, %v3917_v59  ;;  %v4086_v19 = vsel %vm3834_vm10, %v3917_v59, 0.0  ;;  %v3878_v51 = vrot.slane %v3735_v43, 7  ;;  %v10075_v22 = vpack.i.bf16 %v4303_v27, %v4302_v23  ;;  %v4332_v27 = vld [vmem:[#allocation2 + $0x1a] sm:$0xff] }
 0x446   : > { %4175 = vst.msk [vmem:[#allocation2 + $0x2d8] sm:$0xff] %vm2925_vm1, %v3918_v36  ;;  %v3686_v25 = vpop.f32.mrf.mxu3 }
 0x447   : > { %4176 = vst.msk [vmem:[#allocation2 + $0x2e0] sm:$0x3] %vm4094_vm11, %v4086_v19  ;;  %v3879_v44 = vsel %vm3834_vm10, %v3877_v46, %v3878_v51  ;;  %v4073_v53 = vsel %vm3834_vm10, %v3878_v51, 0.0  ;;  %v3687_v28 = vadd.f32 %v15069_v31, %v3686_v25  ;;  %v4314_v25 = vld [vmem:[#allocation2 + $0x271] sm:$0xff] }
 0x448   : > { %4136 = vst.msk [vmem:[#allocation2 + $0x170] sm:$0xff] %vm2925_vm1, %v3879_v44  ;;  %v3621_v35 = vpop.f32.mrf.mxu0 }
 0x449   : > { %4137 = vst.msk [vmem:[#allocation2 + $0x178] sm:$0x3] %vm4094_vm11, %v4073_v53  ;;  %v3762_v58 = vmax.f32 %v3687_v28, 0.0  ;;  %v3622_v62 = vadd.f32 %v15069_v31, %v3621_v35  ;;  %v10105_v35 = vpack.i.bf16 %v4315_v21, %v4314_v25 }
 0x44b   : > { %v3919_v32 = vrot.slane %v3762_v58, 7  ;;  %v3736_v48 = vmax.f32 %v3622_v62, 0.0  ;;  %10096 = vrot.lane.b32.xlu2 %v10095_v56, %s11547_s26 }
 0x44d   : > { %v4055_v34 = vsel %vm3834_vm10, 0.0, %v3919_v32  ;;  %v3880_v12 = vrot.slane %v3736_v48, 7  ;;  %v4322_v13 = vld [vmem:[#allocation2 + $0x2d1] sm:$0xff]  ;;  %v4321_v48 = vld [vmem:[#allocation2 + $0x2c1] sm:$0xff] }
 0x44e   : > { %4177 = vst.msk [vmem:[#allocation2 + $0x2e8] sm:$0xff] %vm2925_vm1, %v4055_v34  ;;  %v3688_v55 = vpop.f32.mrf.mxu3  ;;  %v4323_v17 = vld [vmem:[#allocation2 + $0x2d9] sm:$0xff] }
 0x44f   : > { %v4042_v57 = vsel %vm3834_vm10, 0.0, %v3880_v12  ;;  %v3689_v31 = vadd.f32 %v15432_v18, %v3688_v55  ;;  %v4296_v60 = vld [vmem:[#allocation2 + $0x169] sm:$0xff]  ;;  %v10125_v50 = vpack.i.bf16 %v4323_v17, %v4322_v13 }
 0x450   : > { %4138 = vst.msk [vmem:[#allocation2 + $0x180] sm:$0xff] %vm2925_vm1, %v4042_v57  ;;  %v3623_v52 = vpop.f32.mrf.mxu0  ;;  %v4297_v61 = vld [vmem:[#allocation2 + $0x171] sm:$0xff]  ;;  %v4333_v13 = vld [vmem:[#allocation2 + $0x22] sm:$0xff] }
 0x451   : > { %v3763_v49 = vmax.f32 %v3689_v31, 0.0  ;;  %v3624_v24 = vadd.f32 %v15432_v18, %v3623_v52  ;;  %v10060_v16 = vpack.i.bf16 %v4297_v61, %v4296_v60  ;;  %v4306_v61 = vld [vmem:[#allocation2 + $0x211] sm:$0xff] }
 0x453   : > { %v3920_v47 = vrot.slane %v3763_v49, 7  ;;  %v3737_v63 = vmax.f32 %v3624_v24, 0.0  ;;  %10061 = vrot.lane.b32.xlu1 %v10060_v16, %s11547_s26  ;;  %10111 = vrot.lane.b32.xlu2 %v10110_v7, %s11547_s26  ;;  %v4307_v7 = vld [vmem:[#allocation2 + $0x219] sm:$0xff] }
 0x455   : > { %v3921_v1 = vsel %vm3834_vm10, %v3919_v32, %v3920_v47  ;;  %v4087_v8 = vsel %vm3834_vm10, %v3920_v47, 0.0  ;;  %v3881_v41 = vrot.slane %v3737_v63, 7  ;;  %v4320_v32 = vld [vmem:[#allocation2 + $0x2b9] sm:$0xff] }
 0x456   : > { %4178 = vst.msk [vmem:[#allocation2 + $0x2f0] sm:$0xff] %vm2925_vm1, %v3921_v1  ;;  %v3691_v30 = vpop.f32.mrf.mxu3  ;;  %v10120_v40 = vpack.i.bf16 %v4321_v48, %v4320_v32 }
 0x457   : > { %4179 = vst.msk [vmem:[#allocation2 + $0x2f8] sm:$0x3] %vm4094_vm11, %v4087_v8  ;;  %v3882_v14 = vsel %vm3834_vm10, %v3880_v12, %v3881_v41  ;;  %v4074_v33 = vsel %vm3834_vm10, %v3881_v41, 0.0  ;;  %v3692_v54 = vadd.f32 %v15432_v18, %v3691_v30  ;;  %v10085_v8 = vpack.i.bf16 %v4307_v7, %v4306_v61  ;;  %v4358_v7 = vld [vmem:[#allocation2 + $0x152] sm:$0xff] }
 0x458   : > { %4139 = vst.msk [vmem:[#allocation2 + $0x188] sm:$0xff] %vm2925_vm1, %v3882_v14  ;;  %v3626_v3 = vpop.f32.mrf.mxu0 }
 0x459   : > { %4140 = vst.msk [vmem:[#allocation2 + $0x190] sm:$0x3] %vm4094_vm11, %v4074_v33  ;;  %v3764_v15 = vmax.f32 %v3692_v54, 0.0  ;;  %v3627_v0 = vadd.f32 %v15432_v18, %v3626_v3  ;;  %v4312_v33 = vld [vmem:[#allocation2 + $0x259] sm:$0xff]  ;;  %v4313_v54 = vld [vmem:[#allocation2 + $0x261] sm:$0xff] }
 0x45b   : > { %v3922_v29 = vrot.slane %v3764_v15, 7  ;;  %v3738_v46 = vmax.f32 %v3627_v0, 0.0  ;;  %10076 = vrot.lane.b32.xlu1 %v10075_v22, %s11547_s26  ;;  %10126 = vrot.lane.b32.xlu2 %v10125_v50, %s11547_s26  ;;  %v15483_v0 = vpop.permute.xlu2 %9991  ;;  %v10100_v50 = vpack.i.bf16 %v4313_v54, %v4312_v33 }
 0x45d   : > { %v4056_v45 = vsel %vm3834_vm10, 0.0, %v3922_v29  ;;  %v3883_v6 = vrot.slane %v3738_v46, 7 }
 0x45e   : > { %4180 = vst.msk [vmem:[#allocation2 + $0x300] sm:$0xff] %vm2925_vm1, %v4056_v45  ;;  %v3693_v9 = vpop.f32.mrf.mxu3  ;;  %v4334_v45 = vld [vmem:[#allocation2 + $0x32] sm:$0xff] }
 0x45f   : > { %v4043_v37 = vsel %vm3834_vm10, 0.0, %v3883_v6  ;;  %v3694_v39 = vadd.f32 %v15432_v18, %v3693_v9 }
 0x460   : > { %4141 = vst.msk [vmem:[#allocation2 + $0x1c8] sm:$0xff] %vm2925_vm1, %v4043_v37  ;;  %v3628_v42 = vpop.f32.mrf.mxu0  ;;  %v4319_v37 = vld [vmem:[#allocation2 + $0x2a9] sm:$0xff] }
 0x461   : > { %v3765_v38 = vmax.f32 %v3694_v39, 0.0  ;;  %v3629_v11 = vadd.f32 %v15432_v18, %v3628_v42  ;;  %v4339_v39 = vld [vmem:[#allocation2 + $0x6a] sm:$0xff] }
 0x463   : > { %v3923_v5 = vrot.slane %v3765_v38, 7  ;;  %v3739_v59 = vmax.f32 %v3629_v11, 0.0  ;;  %10091 = vrot.lane.b32.xlu1 %v10090_v26, %s11547_s26  ;;  %v15492_v38 = vpop.permute.xlu2 %10006  ;;  %v10115_v11 = vpack.i.bf16 %v4319_v37, %v4318_v4  ;;  %v4374_v4 = vld [vmem:[#allocation2 + $0x242] sm:$0xff] }
 0x464   : > { %v4354_v37 = vld [vmem:[#allocation2 + $0x122] sm:$0xff] }
 0x465   : > { %v3924_v43 = vsel %vm3834_vm10, %v3922_v29, %v3923_v5  ;;  %v4088_v36 = vsel %vm3834_vm10, %v3923_v5, 0.0  ;;  %v3884_v19 = vrot.slane %v3739_v59, 7  ;;  %v10150_v29 = vpack.i.bf16 %v4333_v13, %v4332_v27  ;;  %v4340_v5 = vld [vmem:[#allocation2 + $0x7a] sm:$0xff]  ;;  %v4341_v59 = vld [vmem:[#allocation2 + $0x82] sm:$0xff] }
 0x466   : > { %4181 = vst.msk [vmem:[#allocation2 + $0x308] sm:$0xff] %vm2925_vm1, %v3924_v43  ;;  %v3696_v51 = vpop.f32.mrf.mxu3  ;;  %v4344_v43 = vld [vmem:[#allocation2 + $0xaa] sm:$0xff]  ;;  %v10170_v25 = vpack.i.bf16 %v4341_v59, %v4340_v5  ;;  %v4376_v59 = vld [vmem:[#allocation2 + $0x25a] sm:$0xff] }
 0x467   : > { %4182 = vst.msk [vmem:[#allocation2 + $0x310] sm:$0x3] %vm4094_vm11, %v4088_v36  ;;  %v3885_v2 = vsel %vm3834_vm10, %v3883_v6, %v3884_v19  ;;  %v4075_v44 = vsel %vm3834_vm10, %v3884_v19, 0.0  ;;  %v3697_v53 = vadd.f32 %v15432_v18, %v3696_v51  ;;  %v4335_v6 = vld [vmem:[#allocation2 + $0x3a] sm:$0xff]  ;;  %v4324_v36 = vld [vmem:[#allocation2 + $0x2e9] sm:$0xff]  ;;  %v4325_v19 = vld [vmem:[#allocation2 + $0x2f1] sm:$0xff] }
 0x468   : > { %4142 = vst.msk [vmem:[#allocation2 + $0x1d0] sm:$0xff] %vm2925_vm1, %v3885_v2  ;;  %v10155_v42 = vpack.i.bf16 %v4335_v6, %v4334_v45  ;;  %v4345_v51 = vld [vmem:[#allocation2 + $0xb2] sm:$0xff]  ;;  %v10130_v2 = vpack.i.bf16 %v4325_v19, %v4324_v36  ;;  %v15533_v36 = vpop.permute.xlu0 %9996 }
 0x469   : > { %4143 = vst.msk [vmem:[#allocation2 + $0x1d8] sm:$0x3] %vm4094_vm11, %v4075_v44  ;;  %v3766_v28 = vmax.f32 %v3697_v53, 0.0  ;;  %v10180_v44 = vpack.i.bf16 %v4345_v51, %v4344_v43  ;;  %v4346_v53 = vld [vmem:[#allocation2 + $0xc2] sm:$0xff]  ;;  %v4370_v6 = vld [vmem:[#allocation2 + $0x212] sm:$0xff]  ;;  %v4380_v51 = vld [vmem:[#allocation2 + $0x28a] sm:$0xff] }
 0x46a   : > { %v4377_v43 = vld [vmem:[#allocation2 + $0x262] sm:$0xff] }
 0x46b   : > { %v3925_v58 = vrot.slane %v3766_v28, 7  ;;  %10106 = vrot.lane.b32.xlu1 %v10105_v35, %s11547_s26  ;;  %v15497_v21 = vpop.permute.xlu2 %10021  ;;  %v4347_v28 = vld [vmem:[#allocation2 + $0xca] sm:$0xff]  ;;  %v4330_v35 = vld [vmem:[#allocation2 + $0x2] sm:$0xff] }
 0x46c   : > { %v10185_v32 = vpack.i.bf16 %v4347_v28, %v4346_v53  ;;  %v10260_v28 = vpack.i.bf16 %v4377_v43, %v4376_v59  ;;  %v4384_v59 = vld [vmem:[#allocation2 + $0x2ba] sm:$0xff]  ;;  %v4385_v43 = vld [vmem:[#allocation2 + $0x2c2] sm:$0xff] }
 0x46d   : > { %v4057_v62 = vsel %vm3834_vm10, 0.0, %v3925_v58  ;;  %v4326_v24 = vld [vmem:[#allocation2 + $0x301] sm:$0xff] }
 0x46e   : > { %4183 = vst.msk [vmem:[#allocation2 + $0x318] sm:$0xff] %vm2925_vm1, %v4057_v62  ;;  %v3698_v56 = vpop.f32.mrf.mxu3  ;;  %v4327_v16 = vld [vmem:[#allocation2 + $0x309] sm:$0xff]  ;;  %v4350_v62 = vld [vmem:[#allocation2 + $0xf2] sm:$0xff] }
 0x46f   : > { %v3699_v34 = vadd.f32 %v15432_v18, %v3698_v56  ;;  %v4300_v12 = vld [vmem:[#allocation2 + $0x1c9] sm:$0xff]  ;;  %v10135_v1 = vpack.i.bf16 %v4327_v16, %v4326_v24  ;;  %v4351_v56 = vld [vmem:[#allocation2 + $0xfa] sm:$0xff] }
 0x470   : > { %v4301_v55 = vld [vmem:[#allocation2 + $0x1d1] sm:$0xff] }
 0x471   : > { %v3767_v10 = vmax.f32 %v3699_v34, 0.0  ;;  %v10070_v57 = vpack.i.bf16 %v4301_v55, %v4300_v12  ;;  %v10195_v12 = vpack.i.bf16 %v4351_v56, %v4350_v62  ;;  %v15505_v55 = vpop.permute.xlu1 %9986  ;;  %v4365_v33 = vld [vmem:[#allocation2 + $0x1d2] sm:$0xff]  ;;  %v4382_v62 = vld [vmem:[#allocation2 + $0x2a2] sm:$0xff]  ;;  %v4383_v56 = vld [vmem:[#allocation2 + $0x2aa] sm:$0xff] }
 0x473   : > { %v3926_v31 = vrot.slane %v3767_v10, 7  ;;  %10121 = vrot.lane.b32.xlu1 %v10120_v40, %s11547_s26  ;;  %10071 = vrot.lane.b32.xlu0 %v10070_v57, %s11547_s26  ;;  %v15502_v34 = vpop.permute.xlu2 %10036  ;;  %v4352_v10 = vld [vmem:[#allocation2 + $0x10a] sm:$0xff]  ;;  %v4353_v40 = vld [vmem:[#allocation2 + $0x112] sm:$0xff] }
 0x474   : > { %v4336_v57 = vld [vmem:[#allocation2 + $0x4a] sm:$0xff]  ;;  %v10200_v61 = vpack.i.bf16 %v4353_v40, %v4352_v10  ;;  %v4386_v40 = vld [vmem:[#allocation2 + $0x2d2] sm:$0xff] }
 0x475   : > { %v3927_v60 = vsel %vm3834_vm10, %v3925_v58, %v3926_v31  ;;  %v4089_v52 = vsel %vm3834_vm10, %v3926_v31, 0.0  ;;  %v4331_v58 = vld [vmem:[#allocation2 + $0xa] sm:$0xff]  ;;  %v4337_v31 = vld [vmem:[#allocation2 + $0x52] sm:$0xff] }
 0x476   : > { %4184 = vst.msk [vmem:[#allocation2 + $0x320] sm:$0xff] %vm2925_vm1, %v3927_v60  ;;  %v3701_v49 = vpop.f32.mrf.mxu3  ;;  %v10145_v48 = vpack.i.bf16 %v4331_v58, %v4330_v35  ;;  %v4356_v60 = vld [vmem:[#allocation2 + $0x13a] sm:$0xff]  ;;  %v10160_v24 = vpack.i.bf16 %v4337_v31, %v4336_v57  ;;  %v4367_v10 = vld [vmem:[#allocation2 + $0x1ea] sm:$0xff]  ;;  %v10275_v31 = vpack.i.bf16 %v4383_v56, %v4382_v62 }
 0x477   : > { %4185 = vst.msk [vmem:[#allocation2 + $0x328] sm:$0x3] %vm4094_vm11, %v4089_v52  ;;  %v3702_v47 = vadd.f32 %v15432_v18, %v3701_v49  ;;  %v4357_v52 = vld [vmem:[#allocation2 + $0x142] sm:$0xff]  ;;  %v4387_v57 = vld [vmem:[#allocation2 + $0x2da] sm:$0xff] }
 0x478   : > { %v10210_v16 = vpack.i.bf16 %v4357_v52, %v4356_v60 }
 0x479   : > { %v3768_v63 = vmax.f32 %v3702_v47, 0.0  ;;  %v4359_v47 = vld [vmem:[#allocation2 + $0x15a] sm:$0xff] }
 0x47b   : > { %v3928_v41 = vrot.slane %v3768_v63, 7  ;;  %10136 = vrot.lane.b32.xlu1 %v10135_v1, %s11547_s26  ;;  %10086 = vrot.lane.b32.xlu0 %v10085_v8, %s11547_s26  ;;  %v4362_v63 = vld [vmem:[#allocation2 + $0x1b2] sm:$0xff]  ;;  %v4363_v1 = vld [vmem:[#allocation2 + $0x1ba] sm:$0xff]  ;;  %v15514_v8 = vpop.permute.xlu1 %10001 }
 0x47c   : > { %v10225_v27 = vpack.i.bf16 %v4363_v1, %v4362_v63  ;;  %v4372_v63 = vld [vmem:[#allocation2 + $0x22a] sm:$0xff]  ;;  %v4373_v1 = vld [vmem:[#allocation2 + $0x232] sm:$0xff] }
 0x47d   : > { %v4058_v23 = vsel %vm3834_vm10, 0.0, %v3928_v41  ;;  %v4328_v30 = vld [vmem:[#allocation2 + $0x319] sm:$0xff] }
 0x47e   : > { %4186 = vst.msk [vmem:[#allocation2 + $0x330] sm:$0xff] %vm2925_vm1, %v4058_v23  ;;  %v3703_v17 = vpop.f32.mrf.mxu3  ;;  %v4329_v14 = vld [vmem:[#allocation2 + $0x321] sm:$0xff] }
 0x47f   : > { %v3704_v3 = vadd.f32 %v15432_v18, %v3703_v17  ;;  %v10140_v15 = vpack.i.bf16 %v4329_v14, %v4328_v30  ;;  %v4338_v18 = vld [vmem:[#allocation2 + $0x62] sm:$0xff]  ;;  %v4343_v23 = vld [vmem:[#allocation2 + $0x9a] sm:$0xff]  ;;  %v10215_v30 = vpack.i.bf16 %v4359_v47, %v4358_v7  ;;  %v4364_v14 = vld [vmem:[#allocation2 + $0x1ca] sm:$0xff] }
 0x480   : > { %v10165_v26 = vpack.i.bf16 %v4339_v39, %v4338_v18  ;;  %v4355_v39 = vld [vmem:[#allocation2 + $0x12a] sm:$0xff] }
 0x481   : > { %v3769_v22 = vmax.f32 %v3704_v3, 0.0  ;;  %10141 = vrot.lane.b32.xlu2 %v10140_v15, %s11547_s26  ;;  %v4368_v3 = vld [vmem:[#allocation2 + $0x1fa] sm:$0xff] }
 0x482   : > { %v4348_v15 = vld [vmem:[#allocation2 + $0xda] sm:$0xff] }
 0x483   : > { %v3929_v46 = vrot.slane %v3769_v22, 7  ;;  %10101 = vrot.lane.b32.xlu0 %v10100_v50, %s11547_s26  ;;  %10151 = vrot.lane.b32.xlu1 %v10150_v29, %s11549_s28  ;;  %v15521_v54 = vpop.permute.xlu1 %10016  ;;  %v4349_v22 = vld [vmem:[#allocation2 + $0xe2] sm:$0xff]  ;;  %v10230_v29 = vpack.i.bf16 %v4365_v33, %v4364_v14 }
 0x484   : > { %v4369_v50 = vld [vmem:[#allocation2 + $0x202] sm:$0xff] }
 0x485   : > { %v3930_v9 = vsel %vm3834_vm10, %v3928_v41, %v3929_v46  ;;  %v4090_v20 = vsel %vm3834_vm10, %v3929_v46, 0.0  ;;  %v4342_v41 = vld [vmem:[#allocation2 + $0x92] sm:$0xff]  ;;  %v10190_v46 = vpack.i.bf16 %v4349_v22, %v4348_v15  ;;  %v10240_v45 = vpack.i.bf16 %v4369_v50, %v4368_v3  ;;  %v4395_v33 = vld [vmem:[#allocation2 + $0x20] sm:$0xff] }
 0x486   : > { %4187 = vst.msk [vmem:[#allocation2 + $0x338] sm:$0xff] %vm2925_vm1, %v3930_v9  ;;  %v10175_v13 = vpack.i.bf16 %v4343_v23, %v4342_v41  ;;  %v4371_v9 = vld [vmem:[#allocation2 + $0x21a] sm:$0xff]  ;;  %v4393_v23 = vld [vmem:[#allocation2 + $0x322] sm:$0xff]  ;;  %v4378_v50 = vld [vmem:[#allocation2 + $0x272] sm:$0xff] }
 0x487   : > { %4188 = vst.msk [vmem:[#allocation2 + $0x340] sm:$0x3] %vm4094_vm11, %v4090_v20  ;;  %v4392_v41 = vld [vmem:[#allocation2 + $0x31a] sm:$0xff] }
 0x488   : > { %v4394_v22 = vld [vmem:[#allocation2 + $0x18] sm:$0xff] }
 0x489   : > { %10156 = vrot.lane.b32.xlu2 %v10155_v42, %s11549_s28  ;;  %v4375_v42 = vld [vmem:[#allocation2 + $0x24a] sm:$0xff] }
 0x48a   : > { %v10255_v5 = vpack.i.bf16 %v4375_v42, %v4374_v4 }
 0x48b   : > { %10116 = vrot.lane.b32.xlu0 %v10115_v11, %s11547_s26  ;;  %10166 = vrot.lane.b32.xlu1 %v10165_v26, %s11549_s28  ;;  %v15526_v20 = vpop.permute.xlu1 %10031  ;;  %v10245_v11 = vpack.i.bf16 %v4371_v9, %v4370_v6  ;;  %v10205_v26 = vpack.i.bf16 %v4355_v39, %v4354_v37  ;;  %v4398_v6 = vld [vmem:[#allocation2 + $0x48] sm:$0xff] }
 0x48c   : > { %v4401_v39 = vld [vmem:[#allocation2 + $0x68] sm:$0xff] }
 0x48d   : > { %v15509_v49 = vpop.permute.xlu2 %10051 }
 0x491   : > { %10171 = vrot.lane.b32.xlu2 %v10170_v25, %s11549_s28  ;;  %v4360_v25 = vld [vmem:[#allocation2 + $0x16a] sm:$0xff] }
 0x493   : > { %10131 = vrot.lane.b32.xlu0 %v10130_v2, %s11547_s26  ;;  %10181 = vrot.lane.b32.xlu1 %v10180_v44, %s11549_s28  ;;  %v4361_v2 = vld [vmem:[#allocation2 + $0x172] sm:$0xff] }
 0x494   : > { %v4381_v44 = vld [vmem:[#allocation2 + $0x292] sm:$0xff]  ;;  %v10220_v35 = vpack.i.bf16 %v4361_v2, %v4360_v25  ;;  %v10280_v2 = vpack.i.bf16 %v4385_v43, %v4384_v59 }
 0x495   : > { %v15517_v17 = vpop.permute.xlu2 %10066  ;;  %v15535_v19 = vpop.permute.xlu1 %10046  ;;  %v10270_v58 = vpack.i.bf16 %v4381_v44, %v4380_v51  ;;  %v4214_v25 = vld [vmem:[#allocation2 + $0x90] sm:$0xff]  ;;  %v4402_v59 = vld [vmem:[#allocation2 + $0x78] sm:$0xff] }
 0x499   : > { %10186 = vrot.lane.b32.xlu2 %v10185_v32, %s11549_s28  ;;  %v15542_v32 = vpop.permute.xlu0 %10011 }
 0x49b   : > { %10146 = vrot.lane.b32.xlu0 %v10145_v48, %s11549_s28  ;;  %10196 = vrot.lane.b32.xlu1 %v10195_v12, %s11549_s28  ;;  %v4366_v12 = vld [vmem:[#allocation2 + $0x1e2] sm:$0xff] }
 0x49c   : > { %v10235_v52 = vpack.i.bf16 %v4367_v10, %v4366_v12  ;;  %v4221_v12 = vld [vmem:[#allocation2 + $0xe0] sm:$0xff] }
 0x49d   : > { %v15528_v18 = vpop.permute.xlu2 %10081  ;;  %v4390_v10 = vld [vmem:[#allocation2 + $0x302] sm:$0xff] }
 0x4a1   : > { %10201 = vrot.lane.b32.xlu2 %v10200_v61, %s11549_s28  ;;  %v10285_v61 = vpack.i.bf16 %v4387_v57, %v4386_v40  ;;  %v15551_v7 = vpop.permute.xlu0 %10026  ;;  %v4391_v40 = vld [vmem:[#allocation2 + $0x30a] sm:$0xff] }
 0x4a3   : > { %10161 = vrot.lane.b32.xlu0 %v10160_v24, %s11549_s28  ;;  %10211 = vrot.lane.b32.xlu1 %v10210_v16, %s11549_s28  ;;  %v4388_v24 = vld [vmem:[#allocation2 + $0x2ea] sm:$0xff]  ;;  %v4389_v16 = vld [vmem:[#allocation2 + $0x2f2] sm:$0xff] }
 0x4a5   : > { %v15537_v53 = vpop.permute.xlu2 %10096 }
 0x4a9   : > { %10216 = vrot.lane.b32.xlu2 %v10215_v30, %s11549_s28  ;;  %v10290_v30 = vpack.i.bf16 %v4389_v16, %v4388_v24  ;;  %v15560_v3 = vpop.permute.xlu0 %10041  ;;  %v4223_v16 = vld [vmem:[#allocation2 + $0xf8] sm:$0xff] }
 0x4aa   : > { %19969 = vst [vmem:[#allocation115_spill] sm:$0xff] %v15560_v3  ;;  %v4248_v3 = vld [vmem:[#allocation2 + $0x258] sm:$0xff] }
 0x4ab   : > { %10176 = vrot.lane.b32.xlu0 %v10175_v13, %s11549_s28  ;;  %10226 = vrot.lane.b32.xlu1 %v10225_v27, %s11549_s28  ;;  %v10250_v27 = vpack.i.bf16 %v4373_v1, %v4372_v63  ;;  %v10300_v13 = vpack.i.bf16 %v4393_v23, %v4392_v41  ;;  %v4222_v41 = vld [vmem:[#allocation2 + $0xf0] sm:$0xff]  ;;  %v4227_v23 = vld [vmem:[#allocation2 + $0x128] sm:$0xff] }
 0x4ad   : > { %v15546_v60 = vpop.permute.xlu2 %10111 }
 0x4b1   : > { %10231 = vrot.lane.b32.xlu2 %v10230_v29, %s11549_s28  ;;  %v4379_v29 = vld [vmem:[#allocation2 + $0x27a] sm:$0xff] }
 0x4b2   : > { %v10265_v9 = vpack.i.bf16 %v4379_v29, %v4378_v50 }
 0x4b3   : > { %10191 = vrot.lane.b32.xlu0 %v10190_v46, %s11549_s28  ;;  %10241 = vrot.lane.b32.xlu1 %v10240_v45, %s11549_s28  ;;  %v4399_v46 = vld [vmem:[#allocation2 + $0x50] sm:$0xff]  ;;  %v10305_v45 = vpack.i.bf16 %v4395_v33, %v4394_v22 }
 0x4b4   : > { %v10315_v4 = vpack.i.bf16 %v4399_v46, %v4398_v6  ;;  %v4396_v33 = vld [vmem:[#allocation2 + $0x30] sm:$0xff]  ;;  %v4229_v46 = vld [vmem:[#allocation2 + $0x140] sm:$0xff] }
 0x4b5   : > { %v15556_v14 = vpop.permute.xlu2 %10126  ;;  %v15569_v42 = vpop.permute.xlu0 %10056 }
 0x4b9   : > { %10246 = vrot.lane.b32.xlu2 %v10245_v11, %s11549_s28 }
 0x4bb   : > { %10206 = vrot.lane.b32.xlu0 %v10205_v26, %s11549_s28  ;;  %10256 = vrot.lane.b32.xlu1 %v10255_v5, %s11549_s28  ;;  %v4400_v26 = vld [vmem:[#allocation2 + $0x60] sm:$0xff]  ;;  %v4215_v5 = vld [vmem:[#allocation2 + $0x98] sm:$0xff] }
 0x4bc   : > { %v10320_v51 = vpack.i.bf16 %v4401_v39, %v4400_v26  ;;  %v10330_v44 = vpack.i.bf16 %v4215_v5, %v4214_v25  ;;  %v4403_v39 = vld [vmem:[#allocation2 + $0x80] sm:$0xff]  ;;  %v4232_v5 = vld [vmem:[#allocation2 + $0x168] sm:$0xff] }
 0x4bd   : > { %v10325_v43 = vpack.i.bf16 %v4403_v39, %v4402_v59 }
 0x4c1   : > { %10261 = vrot.lane.b32.xlu2 %v10260_v28, %s11549_s28 }
 0x4c3   : > { %10221 = vrot.lane.b32.xlu0 %v10220_v35, %s11549_s28  ;;  %10271 = vrot.lane.b32.xlu1 %v10270_v58, %s11549_s28  ;;  %v4217_v35 = vld [vmem:[#allocation2 + $0xb0] sm:$0xff]  ;;  %v4216_v58 = vld [vmem:[#allocation2 + $0xa8] sm:$0xff] }
 0x4c4   : > { %v10335_v57 = vpack.i.bf16 %v4217_v35, %v4216_v58  ;;  %v4219_v58 = vld [vmem:[#allocation2 + $0xc8] sm:$0xff] }
 0x4c5   : > { %v15544_v48 = vpop.permute.xlu1 %10061 }
 0x4c9   : > { %10276 = vrot.lane.b32.xlu2 %v10275_v31, %s11549_s28  ;;  %v4220_v31 = vld [vmem:[#allocation2 + $0xd8] sm:$0xff] }
 0x4cb   : > { %10236 = vrot.lane.b32.xlu0 %v10235_v52, %s11549_s28  ;;  %10286 = vrot.lane.b32.xlu1 %v10285_v61, %s11549_s28  ;;  %v10295_v52 = vpack.i.bf16 %v4391_v40, %v4390_v10  ;;  %v10345_v61 = vpack.i.bf16 %v4221_v12, %v4220_v31  ;;  %v4239_v12 = vld [vmem:[#allocation2 + $0x1e8] sm:$0xff]  ;;  %v4424_v10 = vld [vmem:[#allocation2 + $0x180] sm:$0xff] }
 0x4cc   : > { %v4238_v31 = vld [vmem:[#allocation2 + $0x1e0] sm:$0xff] }
 0x4cd   : > { %v15553_v47 = vpop.permute.xlu1 %10076 }
 0x4d1   : > { %10291 = vrot.lane.b32.xlu2 %v10290_v30, %s11549_s28  ;;  %v4397_v30 = vld [vmem:[#allocation2 + $0x38] sm:$0xff] }
 0x4d2   : > { %v10310_v22 = vpack.i.bf16 %v4397_v30, %v4396_v33  ;;  %v4245_v33 = vld [vmem:[#allocation2 + $0x230] sm:$0xff] }
 0x4d3   : > { %10251 = vrot.lane.b32.xlu0 %v10250_v27, %s11549_s28  ;;  %10301 = vrot.lane.b32.xlu1 %v10300_v13, %s11549_s28  ;;  %v10350_v27 = vpack.i.bf16 %v4223_v16, %v4222_v41  ;;  %v4226_v13 = vld [vmem:[#allocation2 + $0x120] sm:$0xff] }
 0x4d4   : > { %v10360_v50 = vpack.i.bf16 %v4227_v23, %v4226_v13  ;;  %v4241_v41 = vld [vmem:[#allocation2 + $0x200] sm:$0xff]  ;;  %v4240_v13 = vld [vmem:[#allocation2 + $0x1f8] sm:$0xff] }
 0x4d5   : > { %v15562_v15 = vpop.permute.xlu1 %10091 }
 0x4d6   : > { %19970 = vst [vmem:[#allocation44_spill] sm:$0xff] %v15562_v15  ;;  %v16064_v15 = vld [vmem:[#allocation2 + $0x242] sm:$0xff] }
 0x4d7   : > { %20132 = vst [vmem:[#allocation199_spill] sm:$0xff] %v16064_v15  ;;  %v16184_v15 = vld [vmem:[#allocation2 + $0x289] sm:$0xff] }
 0x4d8   : > { %20155 = vst [vmem:[#allocation222_spill] sm:$0xff] %v16184_v15 }
 0x4d9   : > { %10306 = vrot.lane.b32.xlu2 %v10305_v45, %s11551_s30 }
 0x4db   : > { %10266 = vrot.lane.b32.xlu0 %v10265_v9, %s11549_s28  ;;  %10316 = vrot.lane.b32.xlu1 %v10315_v4, %s11551_s30  ;;  %v15567_v37 = vpop.permute.xlu2 %10141  ;;  %v4228_v9 = vld [vmem:[#allocation2 + $0x138] sm:$0xff]  ;;  %v4233_v4 = vld [vmem:[#allocation2 + $0x170] sm:$0xff] }
 0x4dc   : > { %19971 = vst [vmem:[#allocation45_spill] sm:$0xff] %v15567_v37  ;;  %v10365_v26 = vpack.i.bf16 %v4229_v46, %v4228_v9  ;;  %v4244_v46 = vld [vmem:[#allocation2 + $0x228] sm:$0xff]  ;;  %v4612_v37 = vld [vmem:[#allocation2 + $0x158] sm:$0xff] }
 0x4dd   : > { %v15571_v11 = vpop.permute.xlu1 %10106 }
 0x4de   : > { %19972 = vst [vmem:[#allocation116_spill] sm:$0xff] %v15571_v11  ;;  %v15972_v11 = vld [vmem:[#allocation2 + $0x9a] sm:$0xff] }
 0x4df   : > { %20109 = vst [vmem:[#allocation93_spill] sm:$0xff] %v15972_v11  ;;  %v16083_v11 = vld [vmem:[#allocation2 + $0x260] sm:$0xff] }
 0x4e1   : > { %10321 = vrot.lane.b32.xlu2 %v10320_v51, %s11551_s30  ;;  %v10375_v51 = vpack.i.bf16 %v4233_v4, %v4232_v5  ;;  %v10405_v4 = vpack.i.bf16 %v4245_v33, %v4244_v46  ;;  %v4237_v33 = vld [vmem:[#allocation2 + $0x1d0] sm:$0xff]  ;;  %v4236_v46 = vld [vmem:[#allocation2 + $0x1c8] sm:$0xff] }
 0x4e3   : > { %10281 = vrot.lane.b32.xlu0 %v10280_v2, %s11549_s28  ;;  %10331 = vrot.lane.b32.xlu1 %v10330_v44, %s11551_s30  ;;  %v15576_v28 = vpop.permute.xlu2 %10156  ;;  %v4425_v2 = vld [vmem:[#allocation2 + $0x188] sm:$0xff] }
 0x4e4   : > { %19973 = vst [vmem:[#allocation117_spill] sm:$0xff] %v15576_v28  ;;  %v10380_v40 = vpack.i.bf16 %v4425_v2, %v4424_v10  ;;  %v4251_v2 = vld [vmem:[#allocation2 + $0x278] sm:$0xff]  ;;  %v4250_v10 = vld [vmem:[#allocation2 + $0x270] sm:$0xff]  ;;  %v9989_v28 = vunpack.i.h.bf16 %v15505_v55 }
 0x4e5   : > { %v15578_v62 = vpop.permute.xlu1 %10121  ;;  %v15580_v56 = vpop.permute.xlu0 %10071 }
 0x4e6   : > { %19974 = vst [vmem:[#allocation118_spill] sm:$0xff] %v15578_v62  ;;  %v4202_v62 = vld [vmem:[#allocation2] sm:$0xff] }
 0x4e7   : > { %19975 = vst [vmem:[#allocation119_spill] sm:$0xff] %v15580_v56  ;;  %v4205_v56 = vld [vmem:[#allocation2 + $0x20] sm:$0xff] }
 0x4e9   : > { %10336 = vrot.lane.b32.xlu2 %v10335_v57, %s11551_s30  ;;  %v4218_v57 = vld [vmem:[#allocation2 + $0xc0] sm:$0xff] }
 0x4eb   : > { %10296 = vrot.lane.b32.xlu0 %v10295_v52, %s11549_s28  ;;  %10346 = vrot.lane.b32.xlu1 %v10345_v61, %s11551_s30  ;;  %v15585_v24 = vpop.permute.xlu2 %10171  ;;  %v10340_v52 = vpack.i.bf16 %v4219_v58, %v4218_v57  ;;  %v10390_v61 = vpack.i.bf16 %v4239_v12, %v4238_v31  ;;  %v4230_v12 = vld [vmem:[#allocation2 + $0x150] sm:$0xff]  ;;  %v10420_v57 = vpack.i.bf16 %v4251_v2, %v4250_v10  ;;  %v4243_v10 = vld [vmem:[#allocation2 + $0x218] sm:$0xff] }
 0x4ec   : > { %19976 = vst [vmem:[#allocation120_spill] sm:$0xff] %v15585_v24  ;;  %v9994_v24 = vunpack.i.h.bf16 %v15483_v0 }
 0x4ed   : > { %v15587_v63 = vpop.permute.xlu1 %10136  ;;  %v15589_v1 = vpop.permute.xlu0 %10086 }
 0x4ee   : > { %19977 = vst [vmem:[#allocation121_spill] sm:$0xff] %v15587_v63  ;;  %v15934_v63 = vld [vmem:[#allocation2 + $0x99] sm:$0xff] }
 0x4ef   : > { %19978 = vst [vmem:[#allocation122_spill] sm:$0xff] %v15589_v1  ;;  %v15932_v1 = vld [vmem:[#allocation2 + $0x91] sm:$0xff] }
 0x4f0   : > { %20097 = vst [vmem:[#allocation97_spill] sm:$0xff] %v15932_v1  ;;  %v16060_v1 = vld [vmem:[#allocation2 + $0xd8] sm:$0xff] }
 0x4f1   : > { %10351 = vrot.lane.b32.xlu2 %v10350_v27, %s11551_s30  ;;  %v4225_v27 = vld [vmem:[#allocation2 + $0x110] sm:$0xff]  ;;  %20098 = vst [vmem:[#allocation46_spill] sm:$0xff] %v15934_v63 }
 0x4f2   : > { %v16062_v63 = vld [vmem:[#allocation2 + $0x249] sm:$0xff] }
 0x4f3   : > { %10311 = vrot.lane.b32.xlu0 %v10310_v22, %s11551_s30  ;;  %10361 = vrot.lane.b32.xlu1 %v10360_v50, %s11551_s30  ;;  %v15594_v29 = vpop.permute.xlu2 %10186  ;;  %v10395_v22 = vpack.i.bf16 %v4241_v41, %v4240_v13  ;;  %v4224_v50 = vld [vmem:[#allocation2 + $0x108] sm:$0xff]  ;;  %v4257_v13 = vld [vmem:[#allocation2 + $0x2c0] sm:$0xff]  ;;  %20131 = vst [vmem:[#allocation198_spill] sm:$0xff] %v16062_v63 }
 0x4f4   : > { %19979 = vst [vmem:[#allocation176_spill] sm:$0xff] %v15594_v29  ;;  %v10355_v9 = vpack.i.bf16 %v4225_v27, %v4224_v50  ;;  %v4252_v27 = vld [vmem:[#allocation2 + $0x288] sm:$0xff]  ;;  %v4256_v50 = vld [vmem:[#allocation2 + $0x2b8] sm:$0xff] }
 0x4f5   : > { %v15596_v45 = vpop.permute.xlu0 %10101  ;;  %v15598_v6 = vpop.permute.xlu1 %10151  ;;  %v4255_v29 = vld [vmem:[#allocation2 + $0x2a8] sm:$0xff] }
 0x4f6   : > { %19980 = vst [vmem:[#allocation177_spill] sm:$0xff] %v15596_v45  ;;  %v15950_v45 = vld [vmem:[#allocation2 + $0x90] sm:$0xff] }
 0x4f7   : > { %19981 = vst [vmem:[#allocation123_spill] sm:$0xff] %v15598_v6  ;;  %v4204_v6 = vld [vmem:[#allocation2 + $0x18] sm:$0xff] }
 0x4f9   : > { %10366 = vrot.lane.b32.xlu2 %v10365_v26, %s11551_s30  ;;  %v4247_v26 = vld [vmem:[#allocation2 + $0x248] sm:$0xff] }
 0x4fb   : > { %10326 = vrot.lane.b32.xlu0 %v10325_v43, %s11551_s30  ;;  %10376 = vrot.lane.b32.xlu1 %v10375_v51, %s11551_s30  ;;  %v15603_v25 = vpop.permute.xlu2 %10201  ;;  %v4246_v43 = vld [vmem:[#allocation2 + $0x240] sm:$0xff]  ;;  %v4231_v51 = vld [vmem:[#allocation2 + $0x158] sm:$0xff] }
 0x4fc   : > { %19982 = vst [vmem:[#allocation62_spill] sm:$0xff] %v15603_v25  ;;  %v10410_v58 = vpack.i.bf16 %v4247_v26, %v4246_v43  ;;  %v4259_v43 = vld [vmem:[#allocation2 + $0x2d8] sm:$0xff] }
 0x4fd   : > { %v15605_v44 = vpop.permute.xlu0 %10116  ;;  %v15607_v35 = vpop.permute.xlu1 %10166 }
 0x4fe   : > { %19983 = vst [vmem:[#allocation124_spill] sm:$0xff] %v15605_v44  ;;  %v15927_v44 = vld [vmem:[#allocation2 + $0x82] sm:$0xff] }
 0x4ff   : > { %19984 = vst [vmem:[#allocation126_spill] sm:$0xff] %v15607_v35  ;;  %v15925_v35 = vld [vmem:[#allocation2 + $0x1e0] sm:$0xff] }
 0x500   : > { %20095 = vst [vmem:[#allocation158_spill] sm:$0xff] %v15925_v35  ;;  %v4203_v35 = vld [vmem:[#allocation2 + $0x8] sm:$0xff] }
 0x501   : > { %10381 = vrot.lane.b32.xlu2 %v10380_v40, %s11551_s30  ;;  %v10370_v40 = vpack.i.bf16 %v4231_v51, %v4230_v12  ;;  %v4263_v12 = vld [vmem:[#allocation2 + $0x308] sm:$0xff]  ;;  %20096 = vst [vmem:[#allocation160_spill] sm:$0xff] %v15927_v44  ;;  %v16034_v44 = vld [vmem:[#allocation2 + $0x232] sm:$0xff] }
 0x502   : > { %20124 = vst [vmem:[#allocation113_spill] sm:$0xff] %v16034_v44  ;;  %v16136_v44 = vld [vmem:[#allocation2 + $0x111] sm:$0xff] }
 0x503   : > { %10341 = vrot.lane.b32.xlu0 %v10340_v52, %s11551_s30  ;;  %10391 = vrot.lane.b32.xlu1 %v10390_v61, %s11551_s30  ;;  %v15612_v16 = vpop.permute.xlu2 %10216  ;;  %v4253_v52 = vld [vmem:[#allocation2 + $0x290] sm:$0xff]  ;;  %20147 = vst [vmem:[#allocation214_spill] sm:$0xff] %v16136_v44 }
 0x504   : > { %19985 = vst [vmem:[#allocation127_spill] sm:$0xff] %v15612_v16  ;;  %v15923_v16 = vld [vmem:[#allocation2 + $0x200] sm:$0xff]  ;;  %v11491_v44 = vld [vmem:[#allocation2 + $0x90] sm:$0xff] }
 0x505   : > { %v15614_v23 = vpop.permute.xlu0 %10131  ;;  %v15616_v30 = vpop.permute.xlu1 %10181 }
 0x506   : > { %19986 = vst [vmem:[#allocation129_spill] sm:$0xff] %v15614_v23  ;;  %v15921_v23 = vld [vmem:[#allocation2 + $0x98] sm:$0xff] }
 0x507   : > { %19987 = vst [vmem:[#allocation130_spill] sm:$0xff] %v15616_v30 }
 0x509   : > { %10396 = vrot.lane.b32.xlu2 %v10395_v22, %s11551_s30  ;;  %v10425_v22 = vpack.i.bf16 %v4253_v52, %v4252_v27  ;;  %v4242_v52 = vld [vmem:[#allocation2 + $0x210] sm:$0xff] }
 0x50a   : > { %v10400_v27 = vpack.i.bf16 %v4243_v10, %v4242_v52  ;;  %v4461_v52 = vld [vmem:[#allocation2 + $0x39] sm:$0xff] }
 0x50b   : > { %10356 = vrot.lane.b32.xlu0 %v10355_v9, %s11551_s30  ;;  %10406 = vrot.lane.b32.xlu1 %v10405_v4, %s11551_s30  ;;  %v15621_v39 = vpop.permute.xlu2 %10231  ;;  %v10385_v9 = vpack.i.bf16 %v4237_v33, %v4236_v46  ;;  %v10435_v4 = vpack.i.bf16 %v4257_v13, %v4256_v50 }
 0x50c   : > { %19988 = vst [vmem:[#allocation131_spill] sm:$0xff] %v15621_v39 }
 0x50d   : > { %v15623_v5 = vpop.permute.xlu0 %10146  ;;  %v15625_v59 = vpop.permute.xlu1 %10196 }
 0x50e   : > { %19989 = vst [vmem:[#allocation70_spill] sm:$0xff] %v15623_v5  ;;  %v15915_v5 = vld [vmem:[#allocation2 + $0x1ea] sm:$0xff] }
 0x50f   : > { %19990 = vst [vmem:[#allocation132_spill] sm:$0xff] %v15625_v59  ;;  %v15913_v59 = vld [vmem:[#allocation2 + $0x1e2] sm:$0xff] }
 0x510   : > { %20092 = vst [vmem:[#allocation175_spill] sm:$0xff] %v15913_v59  ;;  %v16036_v59 = vld [vmem:[#allocation2 + $0xc2] sm:$0xff] }
 0x511   : > { %10411 = vrot.lane.b32.xlu2 %v10410_v58, %s11551_s30  ;;  %v4258_v58 = vld [vmem:[#allocation2 + $0x2d0] sm:$0xff]  ;;  %20093 = vst [vmem:[#allocation57_spill] sm:$0xff] %v15915_v5 }
 0x512   : > { %20125 = vst [vmem:[#allocation147_spill] sm:$0xff] %v16036_v59 }
 0x513   : > { %10371 = vrot.lane.b32.xlu0 %v10370_v40, %s11551_s30  ;;  %10421 = vrot.lane.b32.xlu1 %v10420_v57, %s11551_s30  ;;  %v15630_v31 = vpop.permute.xlu2 %10246  ;;  %v10440_v40 = vpack.i.bf16 %v4259_v43, %v4258_v58  ;;  %v4262_v57 = vld [vmem:[#allocation2 + $0x300] sm:$0xff] }
 0x514   : > { %19991 = vst [vmem:[#allocation182_spill] sm:$0xff] %v15630_v31  ;;  %v10450_v13 = vpack.i.bf16 %v4263_v12, %v4262_v57  ;;  %v4249_v43 = vld [vmem:[#allocation2 + $0x260] sm:$0xff]  ;;  %v4460_v57 = vld [vmem:[#allocation2 + $0x31] sm:$0xff] }
 0x515   : > { %v15632_v61 = vpop.permute.xlu0 %10161  ;;  %v15634_v41 = vpop.permute.xlu1 %10211  ;;  %v4459_v58 = vld [vmem:[#allocation2 + $0x21] sm:$0xff]  ;;  %v10415_v12 = vpack.i.bf16 %v4249_v43, %v4248_v3  ;;  %v4466_v43 = vld [vmem:[#allocation2 + $0x79] sm:$0xff] }
 0x516   : > { %19992 = vst [vmem:[#allocation133_spill] sm:$0xff] %v15632_v61  ;;  %v15911_v61 = vld [vmem:[#allocation2 + $0x6a] sm:$0xff]  ;;  %v4609_v31 = vld [vmem:[#allocation2 + $0x138] sm:$0xff] }
 0x517   : > { %19993 = vst [vmem:[#allocation134_spill] sm:$0xff] %v15634_v41  ;;  %v15909_v41 = vld [vmem:[#allocation2 + $0x62] sm:$0xff] }
 0x518   : > { %20090 = vst [vmem:[#allocation16_spill] sm:$0xff] %v15909_v41  ;;  %v16000_v41 = vld [vmem:[#allocation2 + $0x230] sm:$0xff] }
 0x519   : > { %10426 = vrot.lane.b32.xlu2 %v10425_v22, %s11551_s30  ;;  %v4265_v22 = vld [vmem:[#allocation2 + $0x320] sm:$0xff]  ;;  %20091 = vst [vmem:[#allocation172_spill] sm:$0xff] %v15911_v61  ;;  %v16018_v61 = vld [vmem:[#allocation2 + $0x229] sm:$0xff] }
 0x51a   : > { %20120 = vst [vmem:[#allocation110_spill] sm:$0xff] %v16018_v61  ;;  %v4208_v61 = vld [vmem:[#allocation2 + $0x48] sm:$0xff] }
 0x51b   : > { %10386 = vrot.lane.b32.xlu0 %v10385_v9, %s11551_s30  ;;  %10436 = vrot.lane.b32.xlu1 %v10435_v4, %s11551_s30  ;;  %v15639_v26 = vpop.permute.xlu2 %10261  ;;  %v4458_v9 = vld [vmem:[#allocation2 + $0x19] sm:$0xff] }
 0x51c   : > { %19994 = vst [vmem:[#allocation135_spill] sm:$0xff] %v15639_v26  ;;  %v4264_v4 = vld [vmem:[#allocation2 + $0x318] sm:$0xff]  ;;  %v10465_v10 = vpack.i.bf16 %v4459_v58, %v4458_v9  ;;  %v4467_v58 = vld [vmem:[#allocation2 + $0x81] sm:$0xff]  ;;  %v15907_v26 = vld [vmem:[#allocation2 + $0x1e9] sm:$0xff] }
 0x51d   : > { %v15641_v51 = vpop.permute.xlu0 %10176  ;;  %v15643_v2 = vpop.permute.xlu1 %10226  ;;  %v10455_v25 = vpack.i.bf16 %v4265_v22, %v4264_v4  ;;  %v4465_v22 = vld [vmem:[#allocation2 + $0x69] sm:$0xff]  ;;  %v10470_v4 = vpack.i.bf16 %v4461_v52, %v4460_v57  ;;  %v4471_v57 = vld [vmem:[#allocation2 + $0xb1] sm:$0xff]  ;;  %v10485_v52 = vpack.i.bf16 %v4467_v58, %v4466_v43  ;;  %v4477_v43 = vld [vmem:[#allocation2 + $0xf9] sm:$0xff]  ;;  %20089 = vst [vmem:[#allocation92_spill] sm:$0xff] %v15907_v26 }
 0x51e   : > { %19995 = vst [vmem:[#allocation136_spill] sm:$0xff] %v15641_v51  ;;  %v15905_v51 = vld [vmem:[#allocation2 + $0x1e1] sm:$0xff]  ;;  %v4611_v26 = vld [vmem:[#allocation2 + $0x150] sm:$0xff] }
 0x51f   : > { %19996 = vst [vmem:[#allocation137_spill] sm:$0xff] %v15643_v2  ;;  %v15903_v2 = vld [vmem:[#allocation2 + $0x81] sm:$0xff] }
 0x520   : > { %20087 = vst [vmem:[#allocation104_spill] sm:$0xff] %v15903_v2  ;;  %v16066_v2 = vld [vmem:[#allocation2 + $0x24a] sm:$0xff] }
 0x521   : > { %10441 = vrot.lane.b32.xlu2 %v10440_v40, %s11551_s30  ;;  %20088 = vst [vmem:[#allocation91_spill] sm:$0xff] %v15905_v51  ;;  %v16020_v51 = vld [vmem:[#allocation2 + $0x231] sm:$0xff] }
 0x522   : > { %20121 = vst [vmem:[#allocation4_spill] sm:$0xff] %v16020_v51 }
 0x523   : > { %10401 = vrot.lane.b32.xlu0 %v10400_v27, %s11551_s30  ;;  %10451 = vrot.lane.b32.xlu1 %v10450_v13, %s11551_s30  ;;  %v15648_v33 = vpop.permute.xlu2 %10276  ;;  %20133 = vst [vmem:[#allocation200_spill] sm:$0xff] %v16066_v2  ;;  %v4212_v2 = vld [vmem:[#allocation2 + $0x78] sm:$0xff] }
 0x524   : > { %19997 = vst [vmem:[#allocation184_spill] sm:$0xff] %v15648_v33  ;;  %v15901_v33 = vld [vmem:[#allocation2 + $0x79] sm:$0xff] }
 0x525   : > { %v15650_v50 = vpop.permute.xlu0 %10191  ;;  %v15652_v46 = vpop.permute.xlu1 %10241  ;;  %20086 = vst [vmem:[#allocation157_spill] sm:$0xff] %v15901_v33 }
 0x526   : > { %19998 = vst [vmem:[#allocation187_spill] sm:$0xff] %v15650_v50  ;;  %v4254_v50 = vld [vmem:[#allocation2 + $0x2a0] sm:$0xff] }
 0x527   : > { %19999 = vst [vmem:[#allocation138_spill] sm:$0xff] %v15652_v46  ;;  %v4464_v46 = vld [vmem:[#allocation2 + $0x61] sm:$0xff]  ;;  %v10430_v3 = vpack.i.bf16 %v4255_v29, %v4254_v50 }
 0x529   : > { %10456 = vrot.lane.b32.xlu2 %v10455_v25, %s11551_s30  ;;  %v10480_v25 = vpack.i.bf16 %v4465_v22, %v4464_v46  ;;  %v4472_v22 = vld [vmem:[#allocation2 + $0xc1] sm:$0xff] }
 0x52b   : > { %10416 = vrot.lane.b32.xlu0 %v10415_v12, %s11551_s30  ;;  %10466 = vrot.lane.b32.xlu1 %v10465_v10, %s11553_s7  ;;  %v15657_v40 = vpop.permute.xlu2 %10291 }
 0x52c   : > { %20000 = vst [vmem:[#allocation69_spill] sm:$0xff] %v15657_v40  ;;  %v4260_v40 = vld [vmem:[#allocation2 + $0x2e8] sm:$0xff] }
 0x52d   : > { %v15659_v27 = vpop.permute.xlu0 %10206  ;;  %v15661_v13 = vpop.permute.xlu1 %10256 }
 0x52e   : > { %20001 = vst [vmem:[#allocation76_spill] sm:$0xff] %v15659_v27  ;;  %v4470_v27 = vld [vmem:[#allocation2 + $0xa9] sm:$0xff] }
 0x52f   : > { %20002 = vst [vmem:[#allocation77_spill] sm:$0xff] %v15661_v13  ;;  %v4261_v13 = vld [vmem:[#allocation2 + $0x2f0] sm:$0xff]  ;;  %v10495_v50 = vpack.i.bf16 %v4471_v57, %v4470_v27 }
 0x530   : > { %v10445_v29 = vpack.i.bf16 %v4261_v13, %v4260_v40  ;;  %v4478_v57 = vld [vmem:[#allocation2 + $0x109] sm:$0xff] }
 0x531   : > { %10471 = vrot.lane.b32.xlu2 %v10470_v4, %s11553_s7  ;;  %v4473_v4 = vld [vmem:[#allocation2 + $0xc9] sm:$0xff] }
 0x532   : > { %v10500_v58 = vpack.i.bf16 %v4473_v4, %v4472_v22  ;;  %v4482_v22 = vld [vmem:[#allocation2 + $0x139] sm:$0xff]  ;;  %v4483_v4 = vld [vmem:[#allocation2 + $0x141] sm:$0xff] }
 0x533   : > { %10431 = vrot.lane.b32.xlu0 %v10430_v3, %s11551_s30  ;;  %10481 = vrot.lane.b32.xlu1 %v10480_v25, %s11553_s7  ;;  %v15666_v9 = vpop.permute.xlu2 %10306 }
 0x534   : > { %20003 = vst [vmem:[#allocation139_spill] sm:$0xff] %v15666_v9  ;;  %v4456_v9 = vld [vmem:[#allocation2 + $0x330] sm:$0xff] }
 0x535   : > { %v15668_v12 = vpop.permute.xlu0 %10221  ;;  %v15670_v10 = vpop.permute.xlu1 %10271 }
 0x536   : > { %20004 = vst [vmem:[#allocation140_spill] sm:$0xff] %v15668_v12  ;;  %v4476_v12 = vld [vmem:[#allocation2 + $0xf1] sm:$0xff] }
 0x537   : > { %20005 = vst [vmem:[#allocation83_spill] sm:$0xff] %v15670_v10  ;;  %v4457_v10 = vld [vmem:[#allocation2 + $0x338] sm:$0xff]  ;;  %v10510_v27 = vpack.i.bf16 %v4477_v43, %v4476_v12  ;;  %v10525_v12 = vpack.i.bf16 %v4483_v4, %v4482_v22  ;;  %v4490_v22 = vld [vmem:[#allocation2 + $0x1c9] sm:$0xff] }
 0x538   : > { %v10460_v40 = vpack.i.bf16 %v4457_v10, %v4456_v9  ;;  %v4484_v43 = vld [vmem:[#allocation2 + $0x151] sm:$0xff] }
 0x539   : > { %10486 = vrot.lane.b32.xlu2 %v10485_v52, %s11553_s7  ;;  %v4479_v52 = vld [vmem:[#allocation2 + $0x111] sm:$0xff] }
 0x53a   : > { %v4491_v4 = vld [vmem:[#allocation2 + $0x1d1] sm:$0xff] }
 0x53b   : > { %10446 = vrot.lane.b32.xlu0 %v10445_v29, %s11551_s30  ;;  %10496 = vrot.lane.b32.xlu1 %v10495_v50, %s11553_s7  ;;  %v15675_v46 = vpop.permute.xlu2 %10321 }
 0x53c   : > { %20006 = vst [vmem:[#allocation141_spill] sm:$0xff] %v15675_v46  ;;  %v10515_v46 = vpack.i.bf16 %v4479_v52, %v4478_v57  ;;  %v4489_v57 = vld [vmem:[#allocation2 + $0x189] sm:$0xff] }
 0x53d   : > { %v15677_v3 = vpop.permute.xlu0 %10236  ;;  %v15679_v25 = vpop.permute.xlu1 %10286 }
 0x53e   : > { %20007 = vst [vmem:[#allocation84_spill] sm:$0xff] %v15677_v3  ;;  %v4463_v3 = vld [vmem:[#allocation2 + $0x51] sm:$0xff] }
 0x53f   : > { %20008 = vst [vmem:[#allocation142_spill] sm:$0xff] %v15679_v25  ;;  %v4462_v25 = vld [vmem:[#allocation2 + $0x49] sm:$0xff] }
 0x540   : > { %v10475_v9 = vpack.i.bf16 %v4463_v3, %v4462_v25 }
 0x541   : > { %10501 = vrot.lane.b32.xlu2 %v10500_v58, %s11553_s7  ;;  %v4485_v58 = vld [vmem:[#allocation2 + $0x159] sm:$0xff] }
 0x542   : > { %v10530_v52 = vpack.i.bf16 %v4485_v58, %v4484_v43  ;;  %v4495_v43 = vld [vmem:[#allocation2 + $0x201] sm:$0xff]  ;;  %v10545_v58 = vpack.i.bf16 %v4491_v4, %v4490_v22  ;;  %v4501_v22 = vld [vmem:[#allocation2 + $0x249] sm:$0xff] }
 0x543   : > { %10461 = vrot.lane.b32.xlu0 %v10460_v40, %s11551_s30  ;;  %10511 = vrot.lane.b32.xlu1 %v10510_v27, %s11553_s7  ;;  %v15684_v13 = vpop.permute.xlu2 %10336 }
 0x544   : > { %20009 = vst [vmem:[#allocation143_spill] sm:$0xff] %v15684_v13  ;;  %v4488_v13 = vld [vmem:[#allocation2 + $0x181] sm:$0xff] }
 0x545   : > { %v15686_v29 = vpop.permute.xlu0 %10251  ;;  %v15688_v50 = vpop.permute.xlu1 %10301  ;;  %v10540_v3 = vpack.i.bf16 %v4489_v57, %v4488_v13  ;;  %v4496_v57 = vld [vmem:[#allocation2 + $0x211] sm:$0xff] }
 0x546   : > { %20010 = vst [vmem:[#allocation144_spill] sm:$0xff] %v15686_v29  ;;  %v4469_v29 = vld [vmem:[#allocation2 + $0x99] sm:$0xff] }
 0x547   : > { %20011 = vst [vmem:[#allocation188_spill] sm:$0xff] %v15688_v50  ;;  %v4468_v50 = vld [vmem:[#allocation2 + $0x91] sm:$0xff] }
 0x549   : > { %10516 = vrot.lane.b32.xlu2 %v10515_v46, %s11553_s7  ;;  %v10490_v46 = vpack.i.bf16 %v4469_v29, %v4468_v50 }
 0x54b   : > { %10476 = vrot.lane.b32.xlu0 %v10475_v9, %s11553_s7  ;;  %10526 = vrot.lane.b32.xlu1 %v10525_v12, %s11553_s7  ;;  %v15693_v10 = vpop.permute.xlu2 %10351 }
 0x54c   : > { %20012 = vst [vmem:[#allocation168_spill] sm:$0xff] %v15693_v10  ;;  %v4475_v10 = vld [vmem:[#allocation2 + $0xe1] sm:$0xff] }
 0x54d   : > { %v15695_v40 = vpop.permute.xlu0 %10266  ;;  %v15697_v27 = vpop.permute.xlu1 %10316 }
 0x54e   : > { %20013 = vst [vmem:[#allocation189_spill] sm:$0xff] %v15695_v40  ;;  %v4474_v40 = vld [vmem:[#allocation2 + $0xd9] sm:$0xff] }
 0x54f   : > { %20014 = vst [vmem:[#allocation88_spill] sm:$0xff] %v15697_v27  ;;  %v4494_v27 = vld [vmem:[#allocation2 + $0x1f9] sm:$0xff]  ;;  %v10505_v13 = vpack.i.bf16 %v4475_v10, %v4474_v40 }
 0x550   : > { %v10555_v29 = vpack.i.bf16 %v4495_v43, %v4494_v27  ;;  %v4502_v43 = vld [vmem:[#allocation2 + $0x259] sm:$0xff] }
 0x551   : > { %10531 = vrot.lane.b32.xlu2 %v10530_v52, %s11553_s7  ;;  %v4497_v52 = vld [vmem:[#allocation2 + $0x219] sm:$0xff] }
 0x552   : > { %v10560_v4 = vpack.i.bf16 %v4497_v52, %v4496_v57  ;;  %v4507_v57 = vld [vmem:[#allocation2 + $0x291] sm:$0xff] }
 0x553   : > { %10491 = vrot.lane.b32.xlu0 %v10490_v46, %s11553_s7  ;;  %10541 = vrot.lane.b32.xlu1 %v10540_v3, %s11553_s7  ;;  %v15702_v25 = vpop.permute.xlu2 %10366 }
 0x554   : > { %20015 = vst [vmem:[#allocation75_spill] sm:$0xff] %v15702_v25  ;;  %v4481_v25 = vld [vmem:[#allocation2 + $0x129] sm:$0xff] }
 0x555   : > { %v15704_v9 = vpop.permute.xlu0 %10281  ;;  %v15706_v12 = vpop.permute.xlu1 %10331 }
 0x556   : > { %20016 = vst [vmem:[#allocation192_spill] sm:$0xff] %v15704_v9  ;;  %v4480_v9 = vld [vmem:[#allocation2 + $0x121] sm:$0xff] }
 0x557   : > { %20017 = vst [vmem:[#allocation78_spill] sm:$0xff] %v15706_v12  ;;  %v4500_v12 = vld [vmem:[#allocation2 + $0x241] sm:$0xff]  ;;  %v10520_v10 = vpack.i.bf16 %v4481_v25, %v4480_v9 }
 0x558   : > { %v10570_v40 = vpack.i.bf16 %v4501_v22, %v4500_v12  ;;  %v4508_v22 = vld [vmem:[#allocation2 + $0x2a1] sm:$0xff] }
 0x559   : > { %10546 = vrot.lane.b32.xlu2 %v10545_v58, %s11553_s7  ;;  %v4503_v58 = vld [vmem:[#allocation2 + $0x261] sm:$0xff] }
 0x55a   : > { %v10575_v52 = vpack.i.bf16 %v4503_v58, %v4502_v43  ;;  %v4513_v43 = vld [vmem:[#allocation2 + $0x2d9] sm:$0xff] }
 0x55b   : > { %10506 = vrot.lane.b32.xlu0 %v10505_v13, %s11553_s7  ;;  %10556 = vrot.lane.b32.xlu1 %v10555_v29, %s11553_s7  ;;  %v15711_v50 = vpop.permute.xlu2 %10381 }
 0x55c   : > { %20018 = vst [vmem:[#allocation145_spill] sm:$0xff] %v15711_v50  ;;  %v4487_v50 = vld [vmem:[#allocation2 + $0x171] sm:$0xff] }
 0x55d   : > { %v15713_v46 = vpop.permute.xlu0 %10296  ;;  %v15715_v3 = vpop.permute.xlu1 %10346 }
 0x55e   : > { %20019 = vst [vmem:[#allocation146_spill] sm:$0xff] %v15713_v46  ;;  %v4486_v46 = vld [vmem:[#allocation2 + $0x169] sm:$0xff] }
 0x55f   : > { %20020 = vst [vmem:[#allocation148_spill] sm:$0xff] %v15715_v3  ;;  %v4506_v3 = vld [vmem:[#allocation2 + $0x289] sm:$0xff]  ;;  %v10535_v25 = vpack.i.bf16 %v4487_v50, %v4486_v46 }
 0x560   : > { %v10585_v9 = vpack.i.bf16 %v4507_v57, %v4506_v3  ;;  %v4514_v57 = vld [vmem:[#allocation2 + $0x2e9] sm:$0xff] }
 0x561   : > { %10561 = vrot.lane.b32.xlu2 %v10560_v4, %s11553_s7  ;;  %v4509_v4 = vld [vmem:[#allocation2 + $0x2a9] sm:$0xff] }
 0x562   : > { %v10590_v58 = vpack.i.bf16 %v4509_v4, %v4508_v22  ;;  %v4519_v22 = vld [vmem:[#allocation2 + $0x321] sm:$0xff] }
 0x563   : > { %10521 = vrot.lane.b32.xlu0 %v10520_v10, %s11553_s7  ;;  %10571 = vrot.lane.b32.xlu1 %v10570_v40, %s11553_s7  ;;  %v15720_v27 = vpop.permute.xlu2 %10396 }
 0x564   : > { %20021 = vst [vmem:[#allocation149_spill] sm:$0xff] %v15720_v27  ;;  %v4512_v27 = vld [vmem:[#allocation2 + $0x2d1] sm:$0xff] }
 0x565   : > { %v15722_v13 = vpop.permute.xlu0 %10311  ;;  %v15724_v29 = vpop.permute.xlu1 %10361  ;;  %v10600_v46 = vpack.i.bf16 %v4513_v43, %v4512_v27  ;;  %v4520_v43 = vld [vmem:[#allocation2 + $0x331] sm:$0xff] }
 0x566   : > { %20022 = vst [vmem:[#allocation179_spill] sm:$0xff] %v15722_v13  ;;  %v4493_v13 = vld [vmem:[#allocation2 + $0x1e9] sm:$0xff] }
 0x567   : > { %20023 = vst [vmem:[#allocation81_spill] sm:$0xff] %v15724_v29  ;;  %v4492_v29 = vld [vmem:[#allocation2 + $0x1e1] sm:$0xff] }
 0x568   : > { %v10550_v50 = vpack.i.bf16 %v4493_v13, %v4492_v29 }
 0x569   : > { %10576 = vrot.lane.b32.xlu2 %v10575_v52, %s11553_s7  ;;  %v4515_v52 = vld [vmem:[#allocation2 + $0x2f1] sm:$0xff] }
 0x56a   : > { %v10605_v4 = vpack.i.bf16 %v4515_v52, %v4514_v57  ;;  %v4525_v57 = vld [vmem:[#allocation2 + $0x3a] sm:$0xff] }
 0x56b   : > { %10536 = vrot.lane.b32.xlu0 %v10535_v25, %s11553_s7  ;;  %10586 = vrot.lane.b32.xlu1 %v10585_v9, %s11553_s7  ;;  %v15729_v12 = vpop.permute.xlu2 %10411 }
 0x56c   : > { %20024 = vst [vmem:[#allocation80_spill] sm:$0xff] %v15729_v12  ;;  %v4518_v12 = vld [vmem:[#allocation2 + $0x319] sm:$0xff] }
 0x56d   : > { %v15731_v10 = vpop.permute.xlu0 %10326  ;;  %v15733_v40 = vpop.permute.xlu1 %10376  ;;  %v10615_v13 = vpack.i.bf16 %v4519_v22, %v4518_v12  ;;  %v4526_v22 = vld [vmem:[#allocation2 + $0x4a] sm:$0xff] }
 0x56e   : > { %20025 = vst [vmem:[#allocation82_spill] sm:$0xff] %v15731_v10  ;;  %v4499_v10 = vld [vmem:[#allocation2 + $0x231] sm:$0xff] }
 0x56f   : > { %20026 = vst [vmem:[#allocation150_spill] sm:$0xff] %v15733_v40  ;;  %v4498_v40 = vld [vmem:[#allocation2 + $0x229] sm:$0xff] }
 0x570   : > { %v10565_v27 = vpack.i.bf16 %v4499_v10, %v4498_v40 }
 0x571   : > { %10591 = vrot.lane.b32.xlu2 %v10590_v58, %s11553_s7  ;;  %v4521_v58 = vld [vmem:[#allocation2 + $0x339] sm:$0xff] }
 0x572   : > { %v10620_v52 = vpack.i.bf16 %v4521_v58, %v4520_v43  ;;  %v4511_v43 = vld [vmem:[#allocation2 + $0x2c1] sm:$0xff] }
 0x573   : > { %10551 = vrot.lane.b32.xlu0 %v10550_v50, %s11553_s7  ;;  %10601 = vrot.lane.b32.xlu1 %v10600_v46, %s11553_s7  ;;  %v15738_v3 = vpop.permute.xlu2 %10426  ;;  %v4531_v58 = vld [vmem:[#allocation2 + $0x82] sm:$0xff] }
 0x574   : > { %20027 = vst [vmem:[#allocation86_spill] sm:$0xff] %v15738_v3  ;;  %v4505_v3 = vld [vmem:[#allocation2 + $0x279] sm:$0xff] }
 0x575   : > { %v15740_v25 = vpop.permute.xlu0 %10341  ;;  %v15742_v9 = vpop.permute.xlu1 %10391 }
 0x576   : > { %20028 = vst [vmem:[#allocation87_spill] sm:$0xff] %v15740_v25  ;;  %v4504_v25 = vld [vmem:[#allocation2 + $0x271] sm:$0xff] }
 0x577   : > { %20029 = vst [vmem:[#allocation151_spill] sm:$0xff] %v15742_v9  ;;  %v4524_v9 = vld [vmem:[#allocation2 + $0x32] sm:$0xff]  ;;  %v10580_v12 = vpack.i.bf16 %v4505_v3, %v4504_v25 }
 0x578   : > { %v10630_v10 = vpack.i.bf16 %v4525_v57, %v4524_v9  ;;  %v4532_v57 = vld [vmem:[#allocation2 + $0x92] sm:$0xff] }
 0x579   : > { %10606 = vrot.lane.b32.xlu2 %v10605_v4, %s11553_s7  ;;  %v4527_v4 = vld [vmem:[#allocation2 + $0x52] sm:$0xff] }
 0x57b   : > { %10566 = vrot.lane.b32.xlu0 %v10565_v27, %s11553_s7  ;;  %10616 = vrot.lane.b32.xlu1 %v10615_v13, %s11553_s7  ;;  %v15747_v29 = vpop.permute.xlu2 %10441 }
 0x57c   : > { %20030 = vst [vmem:[#allocation152_spill] sm:$0xff] %v15747_v29  ;;  %v4517_v29 = vld [vmem:[#allocation2 + $0x309] sm:$0xff] }
 0x57d   : > { %v15749_v50 = vpop.permute.xlu0 %10356  ;;  %v15751_v46 = vpop.permute.xlu1 %10406 }
 0x57e   : > { %20031 = vst [vmem:[#allocation154_spill] sm:$0xff] %v15749_v50  ;;  %v4510_v50 = vld [vmem:[#allocation2 + $0x2b9] sm:$0xff] }
 0x57f   : > { %20032 = vst [vmem:[#allocation185_spill] sm:$0xff] %v15751_v46  ;;  %v4530_v46 = vld [vmem:[#allocation2 + $0x7a] sm:$0xff]  ;;  %v10595_v3 = vpack.i.bf16 %v4511_v43, %v4510_v50 }
 0x580   : > { %v10645_v25 = vpack.i.bf16 %v4531_v58, %v4530_v46  ;;  %v4538_v58 = vld [vmem:[#allocation2 + $0xda] sm:$0xff] }
 0x581   : > { %10621 = vrot.lane.b32.xlu2 %v10620_v52, %s11553_s7  ;;  %v10635_v52 = vpack.i.bf16 %v4527_v4, %v4526_v22  ;;  %v4537_v22 = vld [vmem:[#allocation2 + $0xca] sm:$0xff] }
 0x583   : > { %10581 = vrot.lane.b32.xlu0 %v10580_v12, %s11553_s7  ;;  %10631 = vrot.lane.b32.xlu1 %v10630_v10, %s11555_s19  ;;  %v15756_v40 = vpop.permute.xlu2 %10456  ;;  %v4533_v12 = vld [vmem:[#allocation2 + $0x9a] sm:$0xff] }
 0x584   : > { %20033 = vst [vmem:[#allocation155_spill] sm:$0xff] %v15756_v40  ;;  %v4516_v40 = vld [vmem:[#allocation2 + $0x301] sm:$0xff]  ;;  %v10650_v4 = vpack.i.bf16 %v4533_v12, %v4532_v57  ;;  %v4543_v57 = vld [vmem:[#allocation2 + $0x112] sm:$0xff] }
 0x585   : > { %v15758_v27 = vpop.permute.xlu0 %10371  ;;  %v15760_v13 = vpop.permute.xlu1 %10421  ;;  %v10610_v50 = vpack.i.bf16 %v4517_v29, %v4516_v40 }
 0x586   : > { %20034 = vst [vmem:[#allocation159_spill] sm:$0xff] %v15758_v27  ;;  %v4536_v27 = vld [vmem:[#allocation2 + $0xc2] sm:$0xff] }
 0x587   : > { %20035 = vst [vmem:[#allocation167_spill] sm:$0xff] %v15760_v13  ;;  %v10660_v46 = vpack.i.bf16 %v4537_v22, %v4536_v27  ;;  %v4544_v22 = vld [vmem:[#allocation2 + $0x122] sm:$0xff] }
 0x589   : > { %10636 = vrot.lane.b32.xlu2 %v10635_v52, %s11555_s19  ;;  %v4539_v52 = vld [vmem:[#allocation2 + $0xe2] sm:$0xff] }
 0x58a   : > { %v10665_v12 = vpack.i.bf16 %v4539_v52, %v4538_v58  ;;  %v4549_v58 = vld [vmem:[#allocation2 + $0x15a] sm:$0xff] }
 0x58b   : > { %10596 = vrot.lane.b32.xlu0 %v10595_v3, %s11553_s7  ;;  %10646 = vrot.lane.b32.xlu1 %v10645_v25, %s11555_s19  ;;  %v15765_v9 = vpop.permute.xlu2 %10471 }
 0x58c   : > { %20036 = vst [vmem:[#allocation178_spill] sm:$0xff] %v15765_v9  ;;  %v4542_v9 = vld [vmem:[#allocation2 + $0x10a] sm:$0xff] }
 0x58d   : > { %v15767_v10 = vpop.permute.xlu0 %10386  ;;  %v15769_v13 = vpop.permute.xlu1 %10436  ;;  %v10675_v40 = vpack.i.bf16 %v4543_v57, %v4542_v9  ;;  %v4550_v57 = vld [vmem:[#allocation2 + $0x16a] sm:$0xff] }
 0x58e   : > { %20037 = vst [vmem:[#allocation180_spill] sm:$0xff] %v15767_v10  ;;  %v4523_v10 = vld [vmem:[#allocation2 + $0x22] sm:$0xff] }
 0x58f   : > { %20038 = vst [vmem:[#allocation186_spill] sm:$0xff] %v15769_v13  ;;  %v4522_v13 = vld [vmem:[#allocation2 + $0x1a] sm:$0xff] }
 0x590   : > { %v10625_v29 = vpack.i.bf16 %v4523_v10, %v4522_v13 }
 0x591   : > { %10651 = vrot.lane.b32.xlu2 %v10650_v4, %s11555_s19  ;;  %v4545_v4 = vld [vmem:[#allocation2 + $0x12a] sm:$0xff] }
 0x592   : > { %v10680_v52 = vpack.i.bf16 %v4545_v4, %v4544_v22  ;;  %v4555_v22 = vld [vmem:[#allocation2 + $0x1d2] sm:$0xff] }
 0x593   : > { %10611 = vrot.lane.b32.xlu0 %v10610_v50, %s11553_s7  ;;  %10661 = vrot.lane.b32.xlu1 %v10660_v46, %s11555_s19  ;;  %v15774_v43 = vpop.permute.xlu2 %10486 }
 0x594   : > { %20039 = vst [vmem:[#allocation196_spill] sm:$0xff] %v15774_v43  ;;  %v4548_v43 = vld [vmem:[#allocation2 + $0x152] sm:$0xff] }
 0x595   : > { %v15776_v3 = vpop.permute.xlu0 %10401  ;;  %v15778_v25 = vpop.permute.xlu1 %10451  ;;  %v10690_v9 = vpack.i.bf16 %v4549_v58, %v4548_v43  ;;  %v4556_v58 = vld [vmem:[#allocation2 + $0x1e2] sm:$0xff] }
 0x596   : > { %20040 = vst [vmem:[#allocation197_spill] sm:$0xff] %v15776_v3  ;;  %v4529_v3 = vld [vmem:[#allocation2 + $0x6a] sm:$0xff] }
 0x597   : > { %20041 = vst [vmem:[#allocation7_spill] sm:$0xff] %v15778_v25  ;;  %v4528_v25 = vld [vmem:[#allocation2 + $0x62] sm:$0xff] }
 0x598   : > { %v10640_v13 = vpack.i.bf16 %v4529_v3, %v4528_v25 }
 0x599   : > { %10666 = vrot.lane.b32.xlu2 %v10665_v12, %s11555_s19  ;;  %v4551_v12 = vld [vmem:[#allocation2 + $0x172] sm:$0xff] }
 0x59a   : > { %v10695_v4 = vpack.i.bf16 %v4551_v12, %v4550_v57  ;;  %v4561_v57 = vld [vmem:[#allocation2 + $0x21a] sm:$0xff] }
 0x59b   : > { %10626 = vrot.lane.b32.xlu0 %v10625_v29, %s11555_s19  ;;  %10676 = vrot.lane.b32.xlu1 %v10675_v40, %s11555_s19  ;;  %v15783_v27 = vpop.permute.xlu2 %10501 }
 0x59c   : > { %20042 = vst [vmem:[#allocation50_spill] sm:$0xff] %v15783_v27  ;;  %v4554_v27 = vld [vmem:[#allocation2 + $0x1ca] sm:$0xff] }
 0x59d   : > { %v15785_v50 = vpop.permute.xlu0 %10416  ;;  %v15787_v46 = vpop.permute.xlu1 %10466  ;;  %v10705_v3 = vpack.i.bf16 %v4555_v22, %v4554_v27  ;;  %v4562_v22 = vld [vmem:[#allocation2 + $0x22a] sm:$0xff] }
 0x59e   : > { %20043 = vst [vmem:[#allocation195_spill] sm:$0xff] %v15785_v50  ;;  %v4535_v50 = vld [vmem:[#allocation2 + $0xb2] sm:$0xff] }
 0x59f   : > { %20044 = vst [vmem:[#allocation74_spill] sm:$0xff] %v15787_v46  ;;  %v4534_v46 = vld [vmem:[#allocation2 + $0xaa] sm:$0xff] }
 0x5a0   : > { %v10655_v43 = vpack.i.bf16 %v4535_v50, %v4534_v46 }
 0x5a1   : > { %10681 = vrot.lane.b32.xlu2 %v10680_v52, %s11555_s19  ;;  %v4557_v52 = vld [vmem:[#allocation2 + $0x1ea] sm:$0xff] }
 0x5a2   : > { %v10710_v12 = vpack.i.bf16 %v4557_v52, %v4556_v58  ;;  %v4567_v58 = vld [vmem:[#allocation2 + $0x262] sm:$0xff] }
 0x5a3   : > { %10641 = vrot.lane.b32.xlu0 %v10640_v13, %s11555_s19  ;;  %10691 = vrot.lane.b32.xlu1 %v10690_v9, %s11555_s19  ;;  %v15792_v10 = vpop.permute.xlu2 %10516 }
 0x5a4   : > { %20045 = vst [vmem:[#allocation95_spill] sm:$0xff] %v15792_v10  ;;  %v4541_v10 = vld [vmem:[#allocation2 + $0xfa] sm:$0xff] }
 0x5a5   : > { %v15794_v29 = vpop.permute.xlu0 %10431  ;;  %v15796_v40 = vpop.permute.xlu1 %10481 }
 0x5a6   : > { %20046 = vst [vmem:[#allocation96_spill] sm:$0xff] %v15794_v29  ;;  %v4540_v29 = vld [vmem:[#allocation2 + $0xf2] sm:$0xff] }
 0x5a7   : > { %20047 = vst [vmem:[#allocation8_spill] sm:$0xff] %v15796_v40  ;;  %v4560_v40 = vld [vmem:[#allocation2 + $0x212] sm:$0xff]  ;;  %v10670_v27 = vpack.i.bf16 %v4541_v10, %v4540_v29 }
 0x5a8   : > { %v10720_v50 = vpack.i.bf16 %v4561_v57, %v4560_v40  ;;  %v4568_v57 = vld [vmem:[#allocation2 + $0x272] sm:$0xff] }
 0x5a9   : > { %10696 = vrot.lane.b32.xlu2 %v10695_v4, %s11555_s19  ;;  %v4563_v4 = vld [vmem:[#allocation2 + $0x232] sm:$0xff] }
 0x5aa   : > { %v10725_v52 = vpack.i.bf16 %v4563_v4, %v4562_v22  ;;  %v4573_v22 = vld [vmem:[#allocation2 + $0x2aa] sm:$0xff] }
 0x5ab   : > { %10656 = vrot.lane.b32.xlu0 %v10655_v43, %s11555_s19  ;;  %10706 = vrot.lane.b32.xlu1 %v10705_v3, %s11555_s19  ;;  %v15801_v25 = vpop.permute.xlu2 %10531 }
 0x5ac   : > { %20048 = vst [vmem:[#allocation20_spill] sm:$0xff] %v15801_v25  ;;  %v4547_v25 = vld [vmem:[#allocation2 + $0x142] sm:$0xff] }
 0x5ad   : > { %v15803_v13 = vpop.permute.xlu0 %10446  ;;  %v15805_v9 = vpop.permute.xlu1 %10496 }
 0x5ae   : > { %20049 = vst [vmem:[#allocation52_spill] sm:$0xff] %v15803_v13  ;;  %v4546_v13 = vld [vmem:[#allocation2 + $0x13a] sm:$0xff] }
 0x5af   : > { %20050 = vst [vmem:[#allocation79_spill] sm:$0xff] %v15805_v9  ;;  %v4566_v9 = vld [vmem:[#allocation2 + $0x25a] sm:$0xff]  ;;  %v10685_v10 = vpack.i.bf16 %v4547_v25, %v4546_v13 }
 0x5b0   : > { %v10735_v29 = vpack.i.bf16 %v4567_v58, %v4566_v9  ;;  %v4574_v58 = vld [vmem:[#allocation2 + $0x2ba] sm:$0xff] }
 0x5b1   : > { %10711 = vrot.lane.b32.xlu2 %v10710_v12, %s11555_s19  ;;  %v4569_v12 = vld [vmem:[#allocation2 + $0x27a] sm:$0xff] }
 0x5b2   : > { %v10740_v4 = vpack.i.bf16 %v4569_v12, %v4568_v57  ;;  %v4579_v57 = vld [vmem:[#allocation2 + $0x2f2] sm:$0xff] }
 0x5b3   : > { %10671 = vrot.lane.b32.xlu0 %v10670_v27, %s11555_s19  ;;  %10721 = vrot.lane.b32.xlu1 %v10720_v50, %s11555_s19  ;;  %v15810_v46 = vpop.permute.xlu2 %10546 }
 0x5b4   : > { %20051 = vst [vmem:[#allocation99_spill] sm:$0xff] %v15810_v46  ;;  %v4553_v46 = vld [vmem:[#allocation2 + $0x18a] sm:$0xff] }
 0x5b5   : > { %v15812_v43 = vpop.permute.xlu0 %10461  ;;  %v15814_v3 = vpop.permute.xlu1 %10511 }
 0x5b6   : > { %20052 = vst [vmem:[#allocation34_spill] sm:$0xff] %v15812_v43  ;;  %v4552_v43 = vld [vmem:[#allocation2 + $0x182] sm:$0xff] }
 0x5b7   : > { %20053 = vst [vmem:[#allocation190_spill] sm:$0xff] %v15814_v3  ;;  %v4572_v3 = vld [vmem:[#allocation2 + $0x2a2] sm:$0xff]  ;;  %v10700_v25 = vpack.i.bf16 %v4553_v46, %v4552_v43 }
 0x5b8   : > { %v10750_v13 = vpack.i.bf16 %v4573_v22, %v4572_v3  ;;  %v4580_v22 = vld [vmem:[#allocation2 + $0x302] sm:$0xff] }
 0x5b9   : > { %10726 = vrot.lane.b32.xlu2 %v10725_v52, %s11555_s19  ;;  %v4575_v52 = vld [vmem:[#allocation2 + $0x2c2] sm:$0xff] }
 0x5ba   : > { %v10755_v12 = vpack.i.bf16 %v4575_v52, %v4574_v58  ;;  %v4585_v58 = vld [vmem:[#allocation2 + $0x33a] sm:$0xff] }
 0x5bb   : > { %10686 = vrot.lane.b32.xlu0 %v10685_v10, %s11555_s19  ;;  %10736 = vrot.lane.b32.xlu1 %v10735_v29, %s11555_s19  ;;  %v15819_v40 = vpop.permute.xlu2 %10561 }
 0x5bc   : > { %20054 = vst [vmem:[#allocation40_spill] sm:$0xff] %v15819_v40  ;;  %v4578_v40 = vld [vmem:[#allocation2 + $0x2ea] sm:$0xff] }
 0x5bd   : > { %v15821_v27 = vpop.permute.xlu0 %10476  ;;  %v15823_v50 = vpop.permute.xlu1 %10526  ;;  %v10765_v43 = vpack.i.bf16 %v4579_v57, %v4578_v40  ;;  %v4588_v57 = vld [vmem:[#allocation2 + $0x38] sm:$0xff] }
 0x5be   : > { %20055 = vst [vmem:[#allocation166_spill] sm:$0xff] %v15821_v27  ;;  %v4559_v27 = vld [vmem:[#allocation2 + $0x202] sm:$0xff] }
 0x5bf   : > { %20056 = vst [vmem:[#allocation100_spill] sm:$0xff] %v15823_v50  ;;  %v4558_v50 = vld [vmem:[#allocation2 + $0x1fa] sm:$0xff] }
 0x5c0   : > { %v10715_v46 = vpack.i.bf16 %v4559_v27, %v4558_v50 }
 0x5c1   : > { %10741 = vrot.lane.b32.xlu2 %v10740_v4, %s11555_s19  ;;  %v4581_v4 = vld [vmem:[#allocation2 + $0x30a] sm:$0xff] }
 0x5c2   : > { %v10770_v52 = vpack.i.bf16 %v4581_v4, %v4580_v22  ;;  %v4591_v4 = vld [vmem:[#allocation2 + $0x60] sm:$0xff] }
 0x5c3   : > { %10701 = vrot.lane.b32.xlu0 %v10700_v25, %s11555_s19  ;;  %10751 = vrot.lane.b32.xlu1 %v10750_v13, %s11555_s19  ;;  %v15828_v9 = vpop.permute.xlu2 %10576 }
 0x5c4   : > { %20057 = vst [vmem:[#allocation21_spill] sm:$0xff] %v15828_v9  ;;  %v4565_v9 = vld [vmem:[#allocation2 + $0x24a] sm:$0xff] }
 0x5c5   : > { %v15830_v10 = vpop.permute.xlu0 %10491  ;;  %v15832_v29 = vpop.permute.xlu1 %10541 }
 0x5c6   : > { %20058 = vst [vmem:[#allocation165_spill] sm:$0xff] %v15830_v10  ;;  %v4564_v10 = vld [vmem:[#allocation2 + $0x242] sm:$0xff] }
 0x5c7   : > { %20059 = vst [vmem:[#allocation90_spill] sm:$0xff] %v15832_v29  ;;  %v4584_v29 = vld [vmem:[#allocation2 + $0x332] sm:$0xff]  ;;  %v10730_v40 = vpack.i.bf16 %v4565_v9, %v4564_v10 }
 0x5c8   : > { %v10780_v27 = vpack.i.bf16 %v4585_v58, %v4584_v29  ;;  %v4594_v58 = vld [vmem:[#allocation2 + $0x80] sm:$0xff] }
 0x5c9   : > { %10756 = vrot.lane.b32.xlu2 %v10755_v12, %s11555_s19 }
 0x5cb   : > { %10716 = vrot.lane.b32.xlu0 %v10715_v46, %s11555_s19  ;;  %10766 = vrot.lane.b32.xlu1 %v10765_v43, %s11555_s19  ;;  %v15837_v3 = vpop.permute.xlu2 %10591  ;;  %v4587_v43 = vld [vmem:[#allocation2 + $0x30] sm:$0xff] }
 0x5cc   : > { %20060 = vst [vmem:[#allocation73_spill] sm:$0xff] %v15837_v3  ;;  %v4571_v3 = vld [vmem:[#allocation2 + $0x292] sm:$0xff]  ;;  %v10785_v22 = vpack.i.bf16 %v4588_v57, %v4587_v43  ;;  %v4577_v57 = vld [vmem:[#allocation2 + $0x2da] sm:$0xff] }
 0x5cd   : > { %v15839_v25 = vpop.permute.xlu0 %10506  ;;  %v15841_v13 = vpop.permute.xlu1 %10556  ;;  %v4598_v43 = vld [vmem:[#allocation2 + $0xb0] sm:$0xff] }
 0x5ce   : > { %20061 = vst [vmem:[#allocation51_spill] sm:$0xff] %v15839_v25  ;;  %v4570_v25 = vld [vmem:[#allocation2 + $0x28a] sm:$0xff] }
 0x5cf   : > { %20062 = vst [vmem:[#allocation26_spill] sm:$0xff] %v15841_v13  ;;  %v4592_v13 = vld [vmem:[#allocation2 + $0x68] sm:$0xff]  ;;  %v10745_v9 = vpack.i.bf16 %v4571_v3, %v4570_v25 }
 0x5d0   : > { %v10795_v10 = vpack.i.bf16 %v4592_v13, %v4591_v4 }
 0x5d1   : > { %10771 = vrot.lane.b32.xlu2 %v10770_v52, %s11555_s19 }
 0x5d3   : > { %10731 = vrot.lane.b32.xlu0 %v10730_v40, %s11555_s19  ;;  %10781 = vrot.lane.b32.xlu1 %v10780_v27, %s11555_s19  ;;  %v15846_v50 = vpop.permute.xlu2 %10606  ;;  %v4593_v27 = vld [vmem:[#allocation2 + $0x78] sm:$0xff] }
 0x5d4   : > { %20063 = vst [vmem:[#allocation193_spill] sm:$0xff] %v15846_v50  ;;  %v10800_v50 = vpack.i.bf16 %v4594_v58, %v4593_v27  ;;  %v4604_v58 = vld [vmem:[#allocation2 + $0xf8] sm:$0xff] }
 0x5d5   : > { %v15848_v12 = vpop.permute.xlu0 %10521  ;;  %v15850_v46 = vpop.permute.xlu1 %10571 }
 0x5d6   : > { %20064 = vst [vmem:[#allocation103_spill] sm:$0xff] %v15848_v12  ;;  %v4576_v12 = vld [vmem:[#allocation2 + $0x2d2] sm:$0xff] }
 0x5d7   : > { %20065 = vst [vmem:[#allocation162_spill] sm:$0xff] %v15850_v46  ;;  %v4597_v46 = vld [vmem:[#allocation2 + $0xa8] sm:$0xff]  ;;  %v10760_v3 = vpack.i.bf16 %v4577_v57, %v4576_v12  ;;  %v4606_v57 = vld [vmem:[#allocation2 + $0x110] sm:$0xff] }
 0x5d8   : > { %v10810_v25 = vpack.i.bf16 %v4598_v43, %v4597_v46 }
 0x5d9   : > { %10786 = vrot.lane.b32.xlu2 %v10785_v22, %s11556_s21  ;;  %v4600_v22 = vld [vmem:[#allocation2 + $0xc8] sm:$0xff] }
 0x5db   : > { %10746 = vrot.lane.b32.xlu0 %v10745_v9, %s11555_s19  ;;  %10796 = vrot.lane.b32.xlu1 %v10795_v10, %s11556_s21  ;;  %v15855_v29 = vpop.permute.xlu2 %10621  ;;  %v4599_v10 = vld [vmem:[#allocation2 + $0xc0] sm:$0xff] }
 0x5dc   : > { %20066 = vst [vmem:[#allocation101_spill] sm:$0xff] %v15855_v29  ;;  %v4582_v29 = vld [vmem:[#allocation2 + $0x31a] sm:$0xff]  ;;  %v10815_v27 = vpack.i.bf16 %v4600_v22, %v4599_v10  ;;  %v15883_v10 = vld [vmem:[#allocation2 + $0x32] sm:$0xff] }
 0x5dd   : > { %v15857_v52 = vpop.permute.xlu0 %10536  ;;  %v15859_v40 = vpop.permute.xlu1 %10586  ;;  %v15881_v22 = vld [vmem:[#allocation2 + $0x39] sm:$0xff]  ;;  %20077 = vst [vmem:[#allocation174_spill] sm:$0xff] %v15883_v10  ;;  %v15962_v10 = vld [vmem:[#allocation2 + $0xb1] sm:$0xff] }
 0x5de   : > { %20067 = vst [vmem:[#allocation102_spill] sm:$0xff] %v15857_v52  ;;  %v4603_v52 = vld [vmem:[#allocation2 + $0xf0] sm:$0xff] }
 0x5df   : > { %20068 = vst [vmem:[#allocation94_spill] sm:$0xff] %v15859_v40  ;;  %v4583_v40 = vld [vmem:[#allocation2 + $0x322] sm:$0xff]  ;;  %v10825_v12 = vpack.i.bf16 %v4604_v58, %v4603_v52 }
 0x5e0   : > { %20076 = vst [vmem:[#allocation106_spill] sm:$0xff] %v15881_v22  ;;  %v4605_v52 = vld [vmem:[#allocation2 + $0x108] sm:$0xff]  ;;  %v4610_v58 = vld [vmem:[#allocation2 + $0x140] sm:$0xff]  ;;  %v15954_v22 = vld [vmem:[#allocation2 + $0x218] sm:$0xff] }
 0x5e1   : > { %10801 = vrot.lane.b32.xlu2 %v10800_v50, %s11556_s21  ;;  %v10775_v50 = vpack.i.bf16 %v4583_v40, %v4582_v29  ;;  %v15885_v29 = vld [vmem:[#allocation2 + $0x3a] sm:$0xff]  ;;  %v4589_v40 = vld [vmem:[#allocation2 + $0x48] sm:$0xff]  ;;  %v10840_v30 = vpack.i.bf16 %v4610_v58, %v4609_v31  ;;  %20105 = vst [vmem:[#allocation128_spill] sm:$0xff] %v15962_v10 }
 0x5e2   : > { %20078 = vst [vmem:[#allocation173_spill] sm:$0xff] %v15885_v29  ;;  %v15938_v31 = vld [vmem:[#allocation2 + $0x201] sm:$0xff]  ;;  %v15960_v58 = vld [vmem:[#allocation2 + $0xa9] sm:$0xff]  ;;  %v15970_v29 = vld [vmem:[#allocation2 + $0x92] sm:$0xff] }
 0x5e3   : > { %10761 = vrot.lane.b32.xlu0 %v10760_v3, %s11555_s19  ;;  %10811 = vrot.lane.b32.xlu1 %v10810_v25, %s11556_s21  ;;  %v15864_v13 = vpop.permute.xlu2 %10636  ;;  %v4590_v25 = vld [vmem:[#allocation2 + $0x50] sm:$0xff]  ;;  %20100 = vst [vmem:[#allocation32_spill] sm:$0xff] %v15938_v31  ;;  %v16057_v31 = vsel %vm2925_vm1, %v4203_v35, %v9989_v28  ;;  %v9999_v28 = vunpack.i.h.bf16 %v15533_v36  ;;  %v9998_v35 = vunpack.i.l.bf16 %v15533_v36  ;;  %v4207_v36 = vld [vmem:[#allocation2 + $0x38] sm:$0xff]  ;;  %v4210_v10 = vld [vmem:[#allocation2 + $0x60] sm:$0xff] }
 0x5e4   : > { %20069 = vst [vmem:[#allocation56_spill] sm:$0xff] %v15864_v13  ;;  %v15879_v13 = vld [vmem:[#allocation2 + $0x31] sm:$0xff]  ;;  %v10790_v39 = vpack.i.bf16 %v4590_v25, %v4589_v40  ;;  %v15940_v25 = vld [vmem:[#allocation2 + $0x1fa] sm:$0xff]  ;;  %v15942_v40 = vld [vmem:[#allocation2 + $0x202] sm:$0xff] }
 0x5e5   : > { %v15866_v4 = vpop.permute.xlu0 %10551  ;;  %v15868_v9 = vpop.permute.xlu1 %10601  ;;  %20075 = vst [vmem:[#allocation6_spill] sm:$0xff] %v15879_v13  ;;  %v15952_v13 = vld [vmem:[#allocation2 + $0x1f8] sm:$0xff] }
 0x5e6   : > { %20070 = vst [vmem:[#allocation89_spill] sm:$0xff] %v15866_v4  ;;  %v15899_v4 = vld [vmem:[#allocation2 + $0x1e8] sm:$0xff] }
 0x5e7   : > { %20071 = vst [vmem:[#allocation170_spill] sm:$0xff] %v15868_v9  ;;  %v10830_v9 = vpack.i.bf16 %v4606_v57, %v4605_v52  ;;  %v15917_v57 = vld [vmem:[#allocation2 + $0x7a] sm:$0xff]  ;;  %v9993_v52 = vunpack.i.l.bf16 %v15483_v0 }
 0x5e8   : > { %20085 = vst [vmem:[#allocation156_spill] sm:$0xff] %v15899_v4  ;;  %v16016_v4 = vld [vmem:[#allocation2 + $0xc9] sm:$0xff] }
 0x5e9   : > { %10816 = vrot.lane.b32.xlu2 %v10815_v27, %s11556_s21  ;;  %v15887_v27 = vld [vmem:[#allocation2 + $0x49] sm:$0xff]  ;;  %20094 = vst [vmem:[#allocation15_spill] sm:$0xff] %v15917_v57 }
 0x5ea   : > { %20079 = vst [vmem:[#allocation33_spill] sm:$0xff] %v15887_v27  ;;  %v15982_v27 = vld [vmem:[#allocation2 + $0x212] sm:$0xff]  ;;  %v16032_v57 = vld [vmem:[#allocation2 + $0x22a] sm:$0xff] }
 0x5eb   : > { %10776 = vrot.lane.b32.xlu0 %v10775_v50, %s11555_s19  ;;  %10826 = vrot.lane.b32.xlu1 %v10825_v12, %s11556_s21  ;;  %v15873_v46 = vpop.permute.xlu2 %10651  ;;  %v15889_v50 = vld [vmem:[#allocation2 + $0x51] sm:$0xff]  ;;  %v15891_v12 = vld [vmem:[#allocation2 + $0x61] sm:$0xff]  ;;  %20101 = vst [vmem:[#allocation181_spill] sm:$0xff] %v15940_v25 }
 0x5ec   : > { %20072 = vst [vmem:[#allocation191_spill] sm:$0xff] %v15873_v46  ;;  %v15893_v46 = vld [vmem:[#allocation2 + $0x69] sm:$0xff]  ;;  %v16099_v25 = vld [vmem:[#allocation2 + $0xf1] sm:$0xff] }
 0x5ed   : > { %v15875_v43 = vpop.permute.xlu0 %10566  ;;  %v15877_v3 = vpop.permute.xlu1 %10616  ;;  %20080 = vst [vmem:[#allocation105_spill] sm:$0xff] %v15889_v50  ;;  %v15991_v50 = vsel %vm2925_vm1, %v4204_v6, %v9993_v52  ;;  %v16007_v6 = vsel %vm2925_vm1, %v4205_v56, %v9994_v24  ;;  %v9988_v52 = vunpack.i.l.bf16 %v15505_v55  ;;  %v10845_v56 = vpack.i.bf16 %v4612_v37, %v4611_v26  ;;  %v16022_v24 = vld [vmem:[#allocation2 + $0xe0] sm:$0xff]  ;;  %v16024_v55 = vld [vmem:[#allocation2 + $0x228] sm:$0xff] }
 0x5ee   : > { %20073 = vst [vmem:[#allocation9_spill] sm:$0xff] %v15875_v43  ;;  %v15897_v43 = vld [vmem:[#allocation2 + $0x52] sm:$0xff]  ;;  %v16038_v37 = vld [vmem:[#allocation2 + $0xca] sm:$0xff]  ;;  %v4615_v26 = vld [vmem:[#allocation2 + $0x180] sm:$0xff] }
 0x5ef   : > { %20074 = vst [vmem:[#allocation107_spill] sm:$0xff] %v15877_v3  ;;  %v15895_v3 = vld [vmem:[#allocation2 + $0x4a] sm:$0xff] }
 0x5f0   : > { %20081 = vst [vmem:[#allocation163_spill] sm:$0xff] %v15891_v12 }
 0x5f1   : > { %20082 = vst [vmem:[#allocation153_spill] sm:$0xff] %v15893_v46  ;;  %10831 = vrot.lane.b32.xlu2 %v10830_v9, %s11556_s21  ;;  %v15936_v9 = vld [vmem:[#allocation2 + $0x1f9] sm:$0xff]  ;;  %v15998_v46 = vld [vmem:[#allocation2 + $0x210] sm:$0xff] }
 0x5f2   : > { %20083 = vst [vmem:[#allocation27_spill] sm:$0xff] %v15895_v3  ;;  %v15986_v3 = vld [vmem:[#allocation2 + $0xaa] sm:$0xff] }
 0x5f3   : > { %20084 = vst [vmem:[#allocation14_spill] sm:$0xff] %v15897_v43  ;;  %10791 = vrot.lane.b32.xlu0 %v10790_v39, %s11556_s21  ;;  %10841 = vrot.lane.b32.xlu1 %v10840_v30, %s11556_s21  ;;  %v15948_v0 = vpop.permute.xlu2 %10666  ;;  %v15964_v39 = vld [vmem:[#allocation2 + $0x211] sm:$0xff]  ;;  %v15966_v30 = vld [vmem:[#allocation2 + $0x219] sm:$0xff] }
 0x5f4   : > { %20099 = vst [vmem:[#allocation161_spill] sm:$0xff] %v15936_v9  ;;  %v15988_v43 = vld [vmem:[#allocation2 + $0xb2] sm:$0xff]  ;;  %v16089_v9 = vld [vmem:[#allocation2 + $0xe2] sm:$0xff] }
 0x5f5   : > { %20102 = vst [vmem:[#allocation125_spill] sm:$0xff] %v15942_v40  ;;  %v15994_v33 = vpop.permute.xlu0 %10581  ;;  %v15996_v12 = vpop.permute.xlu1 %10631  ;;  %v16052_v40 = vld [vmem:[#allocation2 + $0x241] sm:$0xff] }
 0x5f6   : > { %20103 = vst [vmem:[#allocation63_spill] sm:$0xff] %v15948_v0  ;;  %v15984_v0 = vld [vmem:[#allocation2 + $0x21a] sm:$0xff] }
 0x5f7   : > { %20104 = vst [vmem:[#allocation64_spill] sm:$0xff] %v15960_v58  ;;  %v16105_v58 = vld [vmem:[#allocation2 + $0x259] sm:$0xff] }
 0x5f8   : > { %20106 = vst [vmem:[#allocation22_spill] sm:$0xff] %v15964_v39  ;;  %v16101_v39 = vld [vmem:[#allocation2 + $0xf9] sm:$0xff] }
 0x5f9   : > { %20107 = vst [vmem:[#allocation38_spill] sm:$0xff] %v15966_v30  ;;  %10846 = vrot.lane.b32.xlu2 %v10845_v56, %s11556_s21  ;;  %v16077_v56 = vld [vmem:[#allocation2 + $0x198] sm:$0xff]  ;;  %v16167_v30 = vld [vmem:[#allocation2 + $0x270] sm:$0xff] }
 0x5fa   : > { %20108 = vst [vmem:[#allocation10_spill] sm:$0xff] %v15970_v29  ;;  %v16081_v29 = vld [vmem:[#allocation2 + $0x240] sm:$0xff] }
 0x5fb   : > { %20110 = vst [vmem:[#allocation169_spill] sm:$0xff] %v15982_v27  ;;  %v16087_v27 = vld [vmem:[#allocation2 + $0xda] sm:$0xff] }
 0x5fc   : > { %20111 = vst [vmem:[#allocation58_spill] sm:$0xff] %v15984_v0  ;;  %v10014_v0 = vunpack.i.h.bf16 %v15542_v32 }
 0x5fd   : > { %20112 = vst [vmem:[#allocation194_spill] sm:$0xff] %v15986_v3  ;;  %v4206_v3 = vld [vmem:[#allocation2 + $0x30] sm:$0xff]  ;;  %v16122_v51 = vpop.permute.xlu0 %10596 }
 0x5fe   : > { %20113 = vst [vmem:[#allocation5_spill] sm:$0xff] %v15988_v43  ;;  %v16095_v43 = vpop.permute.xlu2 %10681  ;;  %v16141_v59 = vsel %vm2925_vm1, %v4206_v3, %v9998_v35  ;;  %v4209_v35 = vld [vmem:[#allocation2 + $0x50] sm:$0xff] }
 0x5ff   : > { %20114 = vst [vmem:[#allocation164_spill] sm:$0xff] %v15991_v50  ;;  %v16014_v50 = vld [vmem:[#allocation2 + $0xc1] sm:$0xff] }
 0x600   : > { %20115 = vst [vmem:[#allocation85_spill] sm:$0xff] %v15994_v33  ;;  %v10805_v33 = vpack.i.bf16 %v15921_v23, %v15950_v45  ;;  %v16044_v45 = vld [vmem:[#allocation2 + $0xd9] sm:$0xff]  ;;  %v16046_v23 = vld [vmem:[#allocation2 + $0xe1] sm:$0xff] }
 0x601   : > { %20116 = vst [vmem:[#allocation109_spill] sm:$0xff] %v15996_v12  ;;  %v4616_v12 = vld [vmem:[#allocation2 + $0x188] sm:$0xff] }
 0x602   : > { %20117 = vst [vmem:[#allocation171_spill] sm:$0xff] %v16007_v6  ;;  %v16042_v6 = vld [vmem:[#allocation2 + $0x248] sm:$0xff]  ;;  %v10855_v5 = vpack.i.bf16 %v4616_v12, %v4615_v26  ;;  %v16075_v12 = vsel %vm2925_vm1, %v4202_v62, %v9988_v52  ;;  %v16079_v26 = vld [vmem:[#allocation2 + $0x1a0] sm:$0xff]  ;;  %v10009_v62 = vunpack.i.h.bf16 %v15492_v38  ;;  %v10008_v52 = vunpack.i.l.bf16 %v15492_v38  ;;  %10806 = vrot.lane.b32.xlu0 %v10805_v33, %s11556_s21 }
 0x603   : > { %20118 = vst [vmem:[#allocation108_spill] sm:$0xff] %v16014_v50  ;;  %v4211_v38 = vld [vmem:[#allocation2 + $0x68] sm:$0xff]  ;;  %v10003_v33 = vunpack.i.l.bf16 %v15514_v8  ;;  %v16116_v50 = vld [vmem:[#allocation2 + $0x25a] sm:$0xff] }
 0x604   : > { %20119 = vst [vmem:[#allocation111_spill] sm:$0xff] %v16016_v4  ;;  %10856 = vrot.lane.b32.xlu1 %v10855_v5, %s11556_s21  ;;  %v10820_v5 = vpack.i.bf16 %v16022_v24, %v16060_v1  ;;  %v16118_v4 = vld [vmem:[#allocation2 + $0x262] sm:$0xff]  ;;  %v10860_v1 = vpack.i.bf16 %v16079_v26, %v16077_v56  ;;  %v16144_v56 = vsel %vm2925_vm1, %v4207_v36, %v9999_v28  ;;  %v10004_v26 = vunpack.i.h.bf16 %v15514_v8  ;;  %v16147_v24 = vld [vmem:[#allocation2 + $0x271] sm:$0xff] }
 0x605   : > { %20122 = vst [vmem:[#allocation28_spill] sm:$0xff] %v16024_v55  ;;  %v16130_v55 = vld [vmem:[#allocation2 + $0x278] sm:$0xff]  ;;  %v16159_v3 = vsel %vm2925_vm1, %v4210_v10, %v10008_v52  ;;  %v16161_v28 = vld [vmem:[#allocation2 + $0x128] sm:$0xff]  ;;  %v16165_v36 = vld [vmem:[#allocation2 + $0x290] sm:$0xff] }
 0x606   : > { %20123 = vst [vmem:[#allocation68_spill] sm:$0xff] %v16032_v57  ;;  %v16134_v57 = vld [vmem:[#allocation2 + $0x109] sm:$0xff]  ;;  %v16176_v10 = vld [vmem:[#allocation2 + $0x121] sm:$0xff]  ;;  %10861 = vrot.lane.b32.xlu2 %v10860_v1, %s11556_s21  ;;  %v16197_v8 = vld [vmem:[#allocation2 + $0x292] sm:$0xff]  ;;  %v16200_v63 = vsel %vm2925_vm1, %v4209_v35, %v10004_v26  ;;  %v10019_v26 = vunpack.i.h.bf16 %v15521_v54  ;;  %v20159_v35 = vpack.i.bf16 %v15923_v16, %v15952_v13  ;;  %v10018_v16 = vunpack.i.l.bf16 %v15521_v54  ;;  %v16261_v1 = vpop.permute.xlu0 %10611 }
 0x607   : > { %20126 = vst [vmem:[#allocation183_spill] sm:$0xff] %v16038_v37  ;;  %v16149_v37 = vld [vmem:[#allocation2 + $0x279] sm:$0xff]  ;;  %v16178_v52 = vld [vmem:[#allocation2 + $0x129] sm:$0xff] }
 0x608   : > { %20127 = vst [vmem:[#allocation98_spill] sm:$0xff] %v16044_v45  ;;  %v16237_v13 = vld [vmem:[#allocation2 + $0x2c0] sm:$0xff]  ;;  %v16299_v45 = vsel %vm2925_vm1, %v11491_v44, %v10018_v16  ;;  %v16332_v44 = vld [vmem:[#allocation2 + $0x2e8] sm:$0xff] }
 0x609   : > { %20128 = vst [vmem:[#allocation112_spill] sm:$0xff] %v16046_v23  ;;  %v11492_v23 = vld [vmem:[#allocation2 + $0xc8] sm:$0xff] }
 0x60a   : > { %20129 = vst [vmem:[#allocation39_spill] sm:$0xff] %v16052_v40  ;;  %v16169_v40 = vld [vmem:[#allocation2 + $0x27a] sm:$0xff]  ;;  %10821 = vrot.lane.b32.xlu0 %v10820_v5, %s11556_s21  ;;  %v16336_v16 = vld [vmem:[#allocation2 + $0x308] sm:$0xff] }
 0x60b   : > { %20130 = vst [vmem:[#allocation114_spill] sm:$0xff] %v16057_v31  ;;  %v16124_v31 = vpop.permute.xlu1 %10646 }
 0x60c   : > { %20134 = vst [vmem:[#allocation201_spill] sm:$0xff] %v16075_v12  ;;  %v16112_v12 = vld [vmem:[#allocation2 + $0x261] sm:$0xff]  ;;  %10871 = vrot.lane.b32.xlu1 %v20159_v35, %s11556_s21 }
 0x60d   : > { %20135 = vst [vmem:[#allocation202_spill] sm:$0xff] %v16087_v27  ;;  %v10023_v27 = vunpack.i.l.bf16 %v15497_v21  ;;  %v11489_v35 = vld [vmem:[#allocation2 + $0xa8] sm:$0xff] }
 0x60e   : > { %20136 = vst [vmem:[#allocation203_spill] sm:$0xff] %v16089_v9  ;;  %v16193_v9 = vld [vmem:[#allocation2 + $0x291] sm:$0xff] }
 0x60f   : > { %20137 = vst [vmem:[#allocation204_spill] sm:$0xff] %v16095_v43  ;;  %v16110_v43 = vld [vmem:[#allocation2 + $0x258] sm:$0xff] }
 0x610   : > { %20138 = vst [vmem:[#allocation205_spill] sm:$0xff] %v16099_v25  ;;  %v16220_v25 = vpop.permute.xlu2 %10696 }
 0x611   : > { %20139 = vst [vmem:[#allocation206_spill] sm:$0xff] %v16101_v39  ;;  %v16226_v39 = vld [vmem:[#allocation2 + $0x2a0] sm:$0xff] }
 0x612   : > { %20140 = vst [vmem:[#allocation207_spill] sm:$0xff] %v16105_v58  ;;  %v16206_v58 = vld [vmem:[#allocation2 + $0x2a8] sm:$0xff] }
 0x613   : > { %20141 = vst [vmem:[#allocation208_spill] sm:$0xff] %v16112_v12  ;;  %v16228_v12 = vld [vmem:[#allocation2 + $0x139] sm:$0xff]  ;;  %v16263_v15 = vpop.permute.xlu1 %10661 }
 0x614   : > { %20142 = vst [vmem:[#allocation209_spill] sm:$0xff] %v16116_v50  ;;  %v4213_v50 = vld [vmem:[#allocation2 + $0x80] sm:$0xff] }
 0x615   : > { %20143 = vst [vmem:[#allocation210_spill] sm:$0xff] %v16118_v4  ;;  %v16202_v4 = vld [vmem:[#allocation2 + $0x120] sm:$0xff]  ;;  %v16250_v5 = vsel %vm2925_vm1, %v4213_v50, %v10014_v0  ;;  %v10029_v0 = vunpack.i.h.bf16 %v15551_v7 }
 0x616   : > { %20144 = vst [vmem:[#allocation211_spill] sm:$0xff] %v16122_v51  ;;  %v16156_v51 = vsel %vm2925_vm1, %v4211_v38, %v10009_v62  ;;  %v16174_v62 = vsel %vm2925_vm1, %v4208_v61, %v10003_v33  ;;  %v10013_v61 = vunpack.i.l.bf16 %v15542_v32  ;;  %v10024_v33 = vunpack.i.h.bf16 %v15497_v21  ;;  %v16195_v38 = vld [vmem:[#allocation2 + $0x28a] sm:$0xff]  ;;  %v16269_v50 = vld [vmem:[#allocation2 + $0x2b9] sm:$0xff] }
 0x617   : > { %20145 = vst [vmem:[#allocation212_spill] sm:$0xff] %v16124_v31  ;;  %v16153_v31 = vld [vmem:[#allocation2 + $0x272] sm:$0xff]  ;;  %v16204_v32 = vld [vmem:[#allocation2 + $0x288] sm:$0xff] }
 0x618   : > { %20146 = vst [vmem:[#allocation213_spill] sm:$0xff] %v16134_v57  ;;  %v16241_v21 = vld [vmem:[#allocation2 + $0x151] sm:$0xff]  ;;  %v16253_v54 = vsel %vm2925_vm1, %v4212_v2, %v10013_v61  ;;  %v16271_v2 = vld [vmem:[#allocation2 + $0x2c1] sm:$0xff]  ;;  %v10039_v61 = vunpack.i.h.bf16 %v15502_v34 }
 0x619   : > { %20148 = vst [vmem:[#allocation215_spill] sm:$0xff] %v16147_v24  ;;  %v16230_v24 = vld [vmem:[#allocation2 + $0x141] sm:$0xff]  ;;  %v16247_v57 = vld [vmem:[#allocation2 + $0x2aa] sm:$0xff] }
 0x61a   : > { %20149 = vst [vmem:[#allocation216_spill] sm:$0xff] %v16149_v37  ;;  %v16234_v37 = vld [vmem:[#allocation2 + $0x2a2] sm:$0xff] }
 0x61b   : > { %20150 = vst [vmem:[#allocation217_spill] sm:$0xff] %v16153_v31  ;;  %v11488_v31 = vld [vmem:[#allocation2 + $0xb0] sm:$0xff] }
 0x61c   : > { %20151 = vst [vmem:[#allocation218_spill] sm:$0xff] %v16169_v40  ;;  %v16256_v40 = vsel %vm2925_vm1, %v11488_v31, %v10024_v33  ;;  %v10028_v31 = vunpack.i.l.bf16 %v15551_v7  ;;  %v16290_v7 = vld [vmem:[#allocation2 + $0x169] sm:$0xff]  ;;  %v20178_v33 = vpack.i.bf16 %v15954_v22, %v15998_v46  ;;  %v11494_v22 = vld [vmem:[#allocation2 + $0xf8] sm:$0xff] }
 0x61d   : > { %20152 = vst [vmem:[#allocation219_spill] sm:$0xff] %v16174_v62  ;;  %v16309_v62 = vld [vmem:[#allocation2 + $0x189] sm:$0xff] }
 0x61e   : > { %20153 = vst [vmem:[#allocation220_spill] sm:$0xff] %v16176_v10  ;;  %v16259_v10 = vsel %vm2925_vm1, %v11489_v35, %v10023_v27  ;;  %v16276_v27 = vld [vmem:[#allocation2 + $0x170] sm:$0xff]  ;;  %10876 = vrot.lane.b32.xlu2 %v20178_v33, %s11556_s21  ;;  %v16330_v33 = vsel %vm2925_vm1, %v11494_v22, %v10039_v61  ;;  %v16352_v61 = vpop.permute.xlu2 %10711  ;;  %v10048_v22 = vunpack.i.l.bf16 %v15535_v19 }
 0x61f   : > { %20154 = vst [vmem:[#allocation221_spill] sm:$0xff] %v16178_v52  ;;  %v16280_v35 = vld [vmem:[#allocation2 + $0x2d0] sm:$0xff]  ;;  %v16356_v52 = vld [vmem:[#allocation2 + $0x338] sm:$0xff] }
 0x620   : > { %20156 = vst [vmem:[#allocation223_spill] sm:$0xff] %v16193_v9  ;;  %v16292_v9 = vld [vmem:[#allocation2 + $0x171] sm:$0xff] }
 0x621   : > { %20157 = vst [vmem:[#allocation224_spill] sm:$0xff] %v16195_v38  ;;  %v16267_v38 = vld [vmem:[#allocation2 + $0x159] sm:$0xff] }
 0x622   : > { %20158 = vst [vmem:[#allocation225_spill] sm:$0xff] %v16197_v8 }
 0x623   : > { %20160 = vst [vmem:[#allocation226_spill] sm:$0xff] %v16220_v25  ;;  %v16265_v25 = vld [vmem:[#allocation2 + $0x2b8] sm:$0xff] }
 0x624   : > { %20161 = vst [vmem:[#allocation227_spill] sm:$0xff] %v16228_v12  ;;  %v10098_v12 = vunpack.i.l.bf16 %v15537_v53 }
 0x625   : > { %20162 = vst [vmem:[#allocation228_spill] sm:$0xff] %v16230_v24  ;;  %v11499_v24 = vld [vmem:[#allocation2 + $0x138] sm:$0xff] }
 0x626   : > { %20163 = vst [vmem:[#allocation229_spill] sm:$0xff] %v16234_v37  ;;  %v16324_v37 = vsel %vm2925_vm1, %v11492_v23, %v10029_v0  ;;  %v20182_v0 = vpack.i.bf16 %v16161_v28, %v16202_v4  ;;  %v11497_v4 = vld [vmem:[#allocation2 + $0xd8] sm:$0xff] }
 0x627   : > { %20164 = vst [vmem:[#allocation230_spill] sm:$0xff] %v16241_v21  ;;  %v10058_v21 = vunpack.i.l.bf16 %v15569_v42 }
 0x628   : > { %20165 = vst [vmem:[#allocation231_spill] sm:$0xff] %v16247_v57  ;;  %v11493_v57 = vld [vmem:[#allocation2 + $0xc0] sm:$0xff]  ;;  %10836 = vrot.lane.b32.xlu0 %v20182_v0, %s11556_s21  ;;  %v16368_v0 = vld [vmem:[#allocation2 + $0x318] sm:$0xff] }
 0x629   : > { %20166 = vst [vmem:[#allocation232_spill] sm:$0xff] %v16250_v5  ;;  %v11490_v5 = vld [vmem:[#allocation2 + $0x98] sm:$0xff]  ;;  %v16327_v46 = vsel %vm2925_vm1, %v11493_v57, %v10028_v31  ;;  %v10054_v57 = vunpack.i.h.bf16 %v15509_v49  ;;  %v20183_v31 = vpack.i.bf16 %v16042_v6, %v16081_v29  ;;  %v10053_v29 = vunpack.i.l.bf16 %v15509_v49 }
 0x62a   : > { %20167 = vst [vmem:[#allocation233_spill] sm:$0xff] %v16253_v54  ;;  %v16282_v54 = vld [vmem:[#allocation2 + $0x2d8] sm:$0xff]  ;;  %v16285_v8 = vsel %vm2925_vm1, %v11490_v5, %v10019_v26  ;;  %v10034_v26 = vunpack.i.h.bf16 %v15526_v20  ;;  %v16303_v5 = vld [vmem:[#allocation2 + $0x2f0] sm:$0xff]  ;;  %v10049_v6 = vunpack.i.h.bf16 %v15535_v19  ;;  %v10083_v19 = vunpack.i.l.bf16 %v15528_v18 }
 0x62b   : > { %20168 = vst [vmem:[#allocation234_spill] sm:$0xff] %v16261_v1  ;;  %v16288_v1 = vld [vmem:[#allocation2 + $0x168] sm:$0xff]  ;;  %10886 = vrot.lane.b32.xlu1 %v20183_v31, %s11556_s21  ;;  %v16370_v31 = vld [vmem:[#allocation2 + $0x300] sm:$0xff]  ;;  %v10114_v49 = vunpack.i.h.bf16 %v15546_v60 }
 0x62c   : > { %20169 = vst [vmem:[#allocation235_spill] sm:$0xff] %v16263_v15  ;;  %v10038_v15 = vunpack.i.l.bf16 %v15502_v34  ;;  %v10033_v34 = vunpack.i.l.bf16 %v15526_v20  ;;  %v16334_v20 = vld [vmem:[#allocation2 + $0x320] sm:$0xff] }
 0x62d   : > { %20170 = vst [vmem:[#allocation236_spill] sm:$0xff] %v16267_v38  ;;  %v11505_v38 = vld [vmem:[#allocation2 + $0x240] sm:$0xff] }
 0x62e   : > { %20171 = vst [vmem:[#allocation237_spill] sm:$0xff] %v16269_v50  ;;  %v11495_v50 = vld [vmem:[#allocation2 + $0xf0] sm:$0xff]  ;;  %v16364_v28 = vsel %vm2925_vm1, %v11497_v4, %v10033_v34  ;;  %v4235_v4 = vld [vmem:[#allocation2 + $0x1b8] sm:$0xff] }
 0x62f   : > { %20172 = vst [vmem:[#allocation238_spill] sm:$0xff] %v16271_v2  ;;  %v16341_v23 = vsel %vm2925_vm1, %v11495_v50, %v10038_v15  ;;  %v11496_v50 = vld [vmem:[#allocation2 + $0xe0] sm:$0xff]  ;;  %v10069_v15 = vunpack.i.h.bf16 %v15517_v17  ;;  %v4234_v34 = vld [vmem:[#allocation2 + $0x1b0] sm:$0xff] }
 0x630   : > { %20173 = vst [vmem:[#allocation239_spill] sm:$0xff] %v16285_v8  ;;  %v16307_v8 = vld [vmem:[#allocation2 + $0x181] sm:$0xff]  ;;  %v16361_v2 = vsel %vm2925_vm1, %v11496_v50, %v10034_v26  ;;  %v16376_v26 = vpop.permute.xlu1 %10676  ;;  %v16380_v50 = vld [vmem:[#allocation2 + $0x330] sm:$0xff] }
 0x631   : > { %20174 = vst [vmem:[#allocation240_spill] sm:$0xff] %v16290_v7  ;;  %v11500_v7 = vld [vmem:[#allocation2 + $0x128] sm:$0xff] }
 0x632   : > { %20175 = vst [vmem:[#allocation241_spill] sm:$0xff] %v16292_v9 }
 0x633   : > { %20176 = vst [vmem:[#allocation242_spill] sm:$0xff] %v16307_v8  ;;  %v11498_v8 = vld [vmem:[#allocation2 + $0x140] sm:$0xff] }
 0x634   : > { %20177 = vst [vmem:[#allocation243_spill] sm:$0xff] %v16309_v62  ;;  %v10099_v62 = vunpack.i.h.bf16 %v15537_v53  ;;  %v16407_v53 = vsel %vm2925_vm1, %v4235_v4, %v10069_v15  ;;  %v11504_v4 = vld [vmem:[#allocation2 + $0x248] sm:$0xff] }
 0x635   : > { %20179 = vst [vmem:[#allocation244_spill] sm:$0xff] %v16324_v37  ;;  %v10068_v37 = vunpack.i.l.bf16 %v15517_v17  ;;  %v16396_v17 = vsel %vm2925_vm1, %v11499_v24, %v10053_v29  ;;  %v10129_v24 = vunpack.i.h.bf16 %v15556_v14  ;;  %v11502_v29 = vld [vmem:[#allocation2 + $0x200] sm:$0xff] }
 0x636   : > { %20180 = vst [vmem:[#allocation245_spill] sm:$0xff] %v16327_v46  ;;  %v16374_v46 = vpop.permute.xlu0 %10626 }
 0x637   : > { %20181 = vst [vmem:[#allocation246_spill] sm:$0xff] %v16336_v16  ;;  %v11516_v16 = vld [vmem:[#allocation2 + $0x230] sm:$0xff] }
 0x638   : > { %20184 = vst [vmem:[#allocation247_spill] sm:$0xff] %v16352_v61  ;;  %v10084_v61 = vunpack.i.h.bf16 %v15528_v18  ;;  %v16399_v18 = vsel %vm2925_vm1, %v11500_v7, %v10049_v6  ;;  %v20188_v7 = vpack.i.bf16 %v16083_v11, %v16110_v43  ;;  %v16429_v11 = vsel %vm2925_vm1, %v11505_v38, %v10098_v12  ;;  %v11506_v43 = vld [vmem:[#allocation2 + $0x290] sm:$0xff]  ;;  %v11507_v12 = vld [vmem:[#allocation2 + $0x288] sm:$0xff] }
 0x639   : > { %20185 = vst [vmem:[#allocation248_spill] sm:$0xff] %v16370_v31 }
 0x63a   : > { %20186 = vst [vmem:[#allocation249_spill] sm:$0xff] %v16374_v46  ;;  %v10113_v46 = vunpack.i.l.bf16 %v15546_v60  ;;  %10891 = vrot.lane.b32.xlu2 %v20188_v7, %s11556_s21  ;;  %v16416_v60 = vsel %vm2925_vm1, %v4234_v34, %v10068_v37  ;;  %v16419_v6 = vsel %vm2925_vm1, %v11502_v29, %v10084_v61  ;;  %v16432_v37 = vsel %vm2925_vm1, %v11506_v43, %v10114_v49  ;;  %v11508_v49 = vld [vmem:[#allocation2 + $0x158] sm:$0xff] }
 0x63b   : > { %20187 = vst [vmem:[#allocation250_spill] sm:$0xff] %v16376_v26  ;;  %v16390_v26 = vsel %vm2925_vm1, %v11498_v8, %v10054_v57  ;;  %v10059_v8 = vunpack.i.h.bf16 %v15569_v42  ;;  %v11501_v57 = vld [vmem:[#allocation2 + $0x120] sm:$0xff]  ;;  %v10128_v42 = vunpack.i.l.bf16 %v15556_v14  ;;  %v10064_v61 = vunpack.i.h.bf16 %v15544_v48 }
 0x63c   : > { %v16404_v9 = vsel %vm2925_vm1, %v11501_v57, %v10048_v22  ;;  %v11503_v22 = vld [vmem:[#allocation2 + $0x1f8] sm:$0xff]  ;;  %v16426_v57 = vsel %vm2925_vm1, %v11504_v4, %v10099_v62  ;;  %20189 = vst [vmem:[#allocation251_spill] sm:$0xff] %v16432_v37  ;;  %v20190_v34 = vpack.i.bf16 %v16276_v27, %v16288_v1  ;;  %v20191_v14 = vpack.i.bf16 %v16165_v36, %v16204_v32  ;;  %v16443_v62 = vpop.permute.xlu2 %10726  ;;  %v11509_v27 = vld [vmem:[#allocation2 + $0x150] sm:$0xff] }
 0x63d   : > { %v16422_v15 = vsel %vm2925_vm1, %v11503_v22, %v10083_v19  ;;  %20192 = vst [vmem:[#allocation252_spill] sm:$0xff] %v16443_v62  ;;  %v16446_v38 = vsel %vm2925_vm1, %v11507_v12, %v10113_v46  ;;  %v16449_v19 = vsel %vm2925_vm1, %v11508_v49, %v10059_v8  ;;  %v10063_v7 = vunpack.i.l.bf16 %v15544_v48  ;;  %v11510_v36 = vld [vmem:[#allocation2 + $0x2d8] sm:$0xff]  ;;  %v20194_v46 = vld [vmem:[#allocation44_spill] sm:$0xff]  ;;  %v16463_v8 = vpop.permute.xlu1 %10691  ;;  %v20200_v62 = vld [vmem:[#allocation117_spill] sm:$0xff] }
 0x63e   : > { %10851 = vrot.lane.b32.xlu0 %v20190_v34, %s11556_s21  ;;  %10901 = vrot.lane.b32.xlu1 %v20191_v14, %s11556_s21  ;;  %v10079_v1 = vunpack.i.h.bf16 %v15553_v47  ;;  %v16454_v29 = vsel %vm2925_vm1, %v11509_v27, %v10058_v21  ;;  %v16457_v32 = vsel %vm2925_vm1, %v11510_v36, %v10129_v24  ;;  %v10078_v22 = vunpack.i.l.bf16 %v15553_v47  ;;  %v16461_v43 = vpop.permute.xlu0 %10641  ;;  %20196 = vst [vmem:[#allocation254_spill] sm:$0xff] %v16463_v8  ;;  %v11511_v34 = vld [vmem:[#allocation2 + $0x2d0] sm:$0xff]  ;;  %v20198_v21 = vld [vmem:[#allocation45_spill] sm:$0xff]  ;;  %v20199_v47 = vld [vmem:[#allocation116_spill] sm:$0xff] }
 0x63f   : > { %20193 = vst [vmem:[#allocation253_spill] sm:$0xff] %v16457_v32  ;;  %v10094_v4 = vunpack.i.h.bf16 %v20194_v46  ;;  %v16466_v48 = vsel %vm2925_vm1, %v11511_v34, %v10128_v42  ;;  %v10093_v14 = vunpack.i.l.bf16 %v20194_v46  ;;  %v10144_v12 = vunpack.i.h.bf16 %v20198_v21  ;;  %v11512_v24 = vld [vmem:[#allocation2 + $0x170] sm:$0xff]  ;;  %v11513_v32 = vld [vmem:[#allocation2 + $0x168] sm:$0xff] }
 0x640   : > { %20195 = vst [vmem:[#allocation44_spill] sm:$0xff] %v16461_v43  ;;  %v10143_v49 = vunpack.i.l.bf16 %v20198_v21  ;;  %v16472_v27 = vsel %vm2925_vm1, %v11512_v24, %v10064_v61  ;;  %v10109_v36 = vunpack.i.h.bf16 %v20199_v47  ;;  %v10108_v43 = vunpack.i.l.bf16 %v20199_v47  ;;  %v11514_v34 = vld [vmem:[#allocation2 + $0x1e8] sm:$0xff]  ;;  %v11515_v61 = vld [vmem:[#allocation2 + $0x1e0] sm:$0xff] }
 0x641   : > { %20197 = vst [vmem:[#allocation255_spill] sm:$0xff] %v16466_v48  ;;  %v10159_v8 = vunpack.i.h.bf16 %v20200_v62  ;;  %v16478_v42 = vsel %vm2925_vm1, %v11513_v32, %v10063_v7  ;;  %v16481_v46 = vsel %vm2925_vm1, %v11514_v34, %v10079_v1  ;;  %v10158_v21 = vunpack.i.l.bf16 %v20200_v62  ;;  %v20202_v48 = vld [vmem:[#allocation118_spill] sm:$0xff]  ;;  %v20204_v7 = vld [vmem:[#allocation119_spill] sm:$0xff]  ;;  %v11517_v62 = vld [vmem:[#allocation2 + $0x228] sm:$0xff] }
 0x642   : > { %20201 = vst [vmem:[#allocation45_spill] sm:$0xff] %v16481_v46  ;;  %v10124_v31 = vunpack.i.h.bf16 %v20202_v48  ;;  %v16486_v24 = vsel %vm2925_vm1, %v11515_v61, %v10078_v22  ;;  %v16489_v47 = vsel %vm2925_vm1, %v11516_v16, %v10094_v4  ;;  %v10123_v37 = vunpack.i.l.bf16 %v20202_v48  ;;  %v11518_v46 = vld [vmem:[#allocation2 + $0x320] sm:$0xff]  ;;  %v11519_v61 = vld [vmem:[#allocation2 + $0x318] sm:$0xff] }
 0x643   : > { %20203 = vst [vmem:[#allocation116_spill] sm:$0xff] %v16489_v47  ;;  %v10074_v32 = vunpack.i.h.bf16 %v20204_v7  ;;  %v20205_v1 = vpack.i.bf16 %v16206_v58, %v16226_v39  ;;  %v16498_v34 = vsel %vm2925_vm1, %v11517_v62, %v10093_v14  ;;  %v16501_v22 = vsel %vm2925_vm1, %v11518_v46, %v10144_v12  ;;  %v11520_v48 = vld [vmem:[#allocation2 + $0x278] sm:$0xff]  ;;  %v11521_v58 = vld [vmem:[#allocation2 + $0x270] sm:$0xff]  ;;  %v20210_v12 = vld [vmem:[#allocation121_spill] sm:$0xff] }
 0x644   : > { %20206 = vst [vmem:[#allocation117_spill] sm:$0xff] %v16501_v22  ;;  %v16504_v16 = vsel %vm2925_vm1, %v11519_v61, %v10143_v49  ;;  %v10073_v4 = vunpack.i.l.bf16 %v20204_v7  ;;  %v16508_v47 = vsel %vm2925_vm1, %v11520_v48, %v10109_v36  ;;  %v16511_v39 = vsel %vm2925_vm1, %v11521_v58, %v10108_v43  ;;  %v20212_v49 = vld [vmem:[#allocation158_spill] sm:$0xff]  ;;  %v16526_v7 = vpop.permute.xlu2 %10741 }
 0x645   : > { %10906 = vrot.lane.b32.xlu2 %v20205_v1, %s11556_s21  ;;  %20207 = vst [vmem:[#allocation118_spill] sm:$0xff] %v16508_v47  ;;  %v16515_v14 = vsel %vm3055_vm3, %v16144_v56, %v10159_v8  ;;  %v10139_v46 = vunpack.i.h.bf16 %v20210_v12  ;;  %v20211_v1 = vld [vmem:[#allocation156_spill] sm:$0xff]  ;;  %v20214_v36 = vpack.i.bf16 %v16282_v54, %v16280_v35  ;;  %v16530_v43 = vsel %vm3055_vm3, %v16141_v59, %v10158_v21  ;;  %v20218_v48 = vld [vmem:[#allocation122_spill] sm:$0xff]  ;;  %v20220_v59 = vld [vmem:[#allocation177_spill] sm:$0xff] }
 0x646   : > { %20208 = vst [vmem:[#allocation119_spill] sm:$0xff] %v16511_v39  ;;  %v20213_v62 = vpack.i.bf16 %v20211_v1, %v20212_v49  ;;  %v11522_v56 = vld [vmem:[#allocation2 + $0x2c0] sm:$0xff]  ;;  %v10138_v61 = vunpack.i.l.bf16 %v20210_v12  ;;  %v10089_v58 = vunpack.i.h.bf16 %v20218_v48  ;;  %v11523_v1 = vld [vmem:[#allocation2 + $0x2b8] sm:$0xff]  ;;  %v11524_v54 = vld [vmem:[#allocation2 + $0x1d0] sm:$0xff]  ;;  %v10104_v21 = vunpack.i.h.bf16 %v20220_v59 }
 0x647   : > { %20209 = vst [vmem:[#allocation256_spill] sm:$0xff] %v16515_v14  ;;  %10916 = vrot.lane.b32.xlu1 %v20214_v36, %s11556_s21  ;;  %v16533_v8 = vsel %vm2925_vm1, %v11522_v56, %v10124_v31  ;;  %v16538_v49 = vsel %vm2925_vm1, %v11523_v1, %v10123_v37  ;;  %v16541_v35 = vsel %vm2925_vm1, %v11524_v54, %v10074_v32  ;;  %v16545_v36 = vpop.permute.xlu0 %10656  ;;  %v16547_v31 = vpop.permute.xlu1 %10706  ;;  %v11525_v56 = vld [vmem:[#allocation2 + $0x1c8] sm:$0xff]  ;;  %v10103_v37 = vunpack.i.l.bf16 %v20220_v59  ;;  %v20224_v1 = vld [vmem:[#allocation123_spill] sm:$0xff]  ;;  %v11529_v32 = vld [vmem:[#allocation2 + $0x210] sm:$0xff] }
 0x648   : > { %10866 = vrot.lane.b32.xlu0 %v20213_v62, %s11556_s21  ;;  %20215 = vst [vmem:[#allocation121_spill] sm:$0xff] %v16526_v7  ;;  %v10088_v62 = vunpack.i.l.bf16 %v20218_v48  ;;  %v7053_v12 = vsel %vm2925_vm1, %v11525_v56, %v10073_v4  ;;  %v11526_v54 = vld [vmem:[#allocation2 + $0x308] sm:$0xff]  ;;  %v10154_v14 = vunpack.i.h.bf16 %v20224_v1  ;;  %v11528_v4 = vld [vmem:[#allocation2 + $0x218] sm:$0xff] }
 0x649   : > { %20216 = vst [vmem:[#allocation156_spill] sm:$0xff] %v16530_v43  ;;  %v16555_v48 = vsel %vm2925_vm1, %v11526_v54, %v10139_v46  ;;  %v7060_v56 = vsel %vm2925_vm1, %v11528_v4, %v10089_v58  ;;  %v11530_v46 = vld [vmem:[#allocation2 + $0x260] sm:$0xff]  ;;  %v11531_v58 = vld [vmem:[#allocation2 + $0x258] sm:$0xff] }
 0x64a   : > { %20217 = vst [vmem:[#allocation158_spill] sm:$0xff] %v16533_v8  ;;  %v20228_v8 = vld [vmem:[#allocation126_spill] sm:$0xff]  ;;  %v7059_v7 = vsel %vm2925_vm1, %v11529_v32, %v10088_v62  ;;  %v16567_v54 = vsel %vm2925_vm1, %v11530_v46, %v10104_v21  ;;  %v20232_v32 = vld [vmem:[#allocation129_spill] sm:$0xff] }
 0x64b   : > { %20219 = vst [vmem:[#allocation122_spill] sm:$0xff] %v16538_v49  ;;  %v10153_v49 = vunpack.i.l.bf16 %v20224_v1  ;;  %v10168_v47 = vunpack.i.l.bf16 %v20228_v8  ;;  %v10169_v1 = vunpack.i.h.bf16 %v20228_v8  ;;  %v10134_v4 = vunpack.i.h.bf16 %v20232_v32  ;;  %v20233_v8 = vld [vmem:[#allocation171_spill] sm:$0xff] }
 0x64c   : > { %20221 = vst [vmem:[#allocation177_spill] sm:$0xff] %v16545_v36  ;;  %v20226_v36 = vld [vmem:[#allocation124_spill] sm:$0xff]  ;;  %v16586_v46 = vsel %vm3055_vm3, %v20233_v8, %v10154_v14  ;;  %v16601_v14 = vpop.permute.xlu2 %10756  ;;  %v20239_v8 = vld [vmem:[#allocation131_spill] sm:$0xff] }
 0x64d   : > { %20222 = vst [vmem:[#allocation257_spill] sm:$0xff] %v16547_v31  ;;  %v10119_v43 = vunpack.i.h.bf16 %v20226_v36  ;;  %v11527_v31 = vld [vmem:[#allocation2 + $0x300] sm:$0xff]  ;;  %v10118_v59 = vunpack.i.l.bf16 %v20226_v36  ;;  %v16576_v36 = vsel %vm2925_vm1, %v11531_v58, %v10103_v37  ;;  %v20234_v37 = vld [vmem:[#allocation130_spill] sm:$0xff] }
 0x64e   : > { %20225 = vst [vmem:[#allocation123_spill] sm:$0xff] %v16555_v48  ;;  %v16560_v39 = vsel %vm2925_vm1, %v11527_v31, %v10138_v61  ;;  %v20229_v48 = vld [vmem:[#allocation127_spill] sm:$0xff]  ;;  %v20230_v61 = vpack.i.bf16 %v16303_v5, %v16332_v44  ;;  %v20231_v31 = vld [vmem:[#allocation164_spill] sm:$0xff]  ;;  %v10133_v44 = vunpack.i.l.bf16 %v20232_v32  ;;  %v10184_v32 = vunpack.i.h.bf16 %v20234_v37 }
 0x64f   : > { %20227 = vst [vmem:[#allocation124_spill] sm:$0xff] %v16560_v39  ;;  %v10219_v22 = vunpack.i.h.bf16 %v20229_v48  ;;  %v16580_v62 = vsel %vm3055_vm3, %v20231_v31, %v10153_v49  ;;  %v10218_v21 = vunpack.i.l.bf16 %v20229_v48  ;;  %v11532_v39 = vld [vmem:[#allocation2 + $0x2a8] sm:$0xff]  ;;  %v20235_v49 = vld [vmem:[#allocation28_spill] sm:$0xff]  ;;  %v20237_v48 = vpack.i.bf16 %v16334_v20, %v16368_v0 }
 0x650   : > { %10921 = vrot.lane.b32.xlu2 %v20230_v61, %s11556_s21  ;;  %v16589_v5 = vsel %vm2925_vm1, %v11532_v39, %v10119_v43  ;;  %v10183_v61 = vunpack.i.l.bf16 %v20234_v37  ;;  %v20236_v58 = vpack.i.bf16 %v16000_v41, %v20235_v49  ;;  %20238 = vst [vmem:[#allocation126_spill] sm:$0xff] %v16601_v14  ;;  %v11533_v31 = vld [vmem:[#allocation2 + $0x2a0] sm:$0xff]  ;;  %v16608_v43 = vsel %vm3055_vm3, %v16159_v3, %v10168_v47  ;;  %v16624_v3 = vpop.permute.xlu1 %10721  ;;  %v11534_v37 = vld [vmem:[#allocation2 + $0x2f0] sm:$0xff] }
 0x651   : > { %10931 = vrot.lane.b32.xlu1 %v20237_v48, %s11556_s21  ;;  %v16604_v39 = vsel %vm2925_vm1, %v11533_v31, %v10118_v59  ;;  %v10234_v41 = vunpack.i.h.bf16 %v20239_v8  ;;  %v16614_v49 = vsel %vm3055_vm3, %v16156_v51, %v10169_v1  ;;  %v16618_v20 = vsel %vm3055_vm3, %v16449_v19, %v10219_v22  ;;  %v20240_v59 = vld [vmem:[#allocation70_spill] sm:$0xff]  ;;  %v16622_v48 = vpop.permute.xlu0 %10671  ;;  %20242 = vst [vmem:[#allocation164_spill] sm:$0xff] %v16624_v3  ;;  %v20243_v19 = vld [vmem:[#allocation132_spill] sm:$0xff]  ;;  %v11535_v31 = vld [vmem:[#allocation2 + $0x2e8] sm:$0xff] }
 0x652   : > { %10881 = vrot.lane.b32.xlu0 %v20236_v58, %s11556_s21  ;;  %v10233_v0 = vunpack.i.l.bf16 %v20239_v8  ;;  %v10149_v58 = vunpack.i.h.bf16 %v20240_v59  ;;  %20241 = vst [vmem:[#allocation127_spill] sm:$0xff] %v16622_v48  ;;  %v16628_v47 = vsel %vm3055_vm3, %v16454_v29, %v10218_v21  ;;  %v16631_v51 = vsel %vm2925_vm1, %v11534_v37, %v10134_v4  ;;  %v20245_v29 = vld [vmem:[#allocation182_spill] sm:$0xff] }
 0x653   : > { %v10148_v1 = vunpack.i.l.bf16 %v20240_v59  ;;  %v10198_v22 = vunpack.i.l.bf16 %v20243_v19  ;;  %v16636_v8 = vsel %vm2925_vm1, %v11535_v31, %v10133_v44  ;;  %v16640_v48 = vsel %vm3055_vm3, %v16259_v10, %v10183_v61  ;;  %v20246_v44 = vld [vmem:[#allocation133_spill] sm:$0xff]  ;;  %v20247_v10 = vld [vmem:[#allocation114_spill] sm:$0xff] }
 0x654   : > { %20244 = vst [vmem:[#allocation129_spill] sm:$0xff] %v16640_v48  ;;  %v10199_v3 = vunpack.i.h.bf16 %v20243_v19  ;;  %v10249_v21 = vunpack.i.h.bf16 %v20245_v29  ;;  %v16646_v4 = vsel %vm3055_vm3, %v16256_v40, %v10184_v32  ;;  %v16650_v59 = vsel %vm3055_vm3, %v16541_v35, %v10234_v41  ;;  %v20248_v48 = vld [vmem:[#allocation134_spill] sm:$0xff]  ;;  %v20250_v32 = vld [vmem:[#allocation201_spill] sm:$0xff] }
 0x655   : > { %v10248_v37 = vunpack.i.l.bf16 %v20245_v29  ;;  %v10164_v31 = vunpack.i.h.bf16 %v20246_v44  ;;  %v16655_v14 = vsel %vm3055_vm3, %v7053_v12, %v10233_v0  ;;  %v16659_v61 = vsel %vm3055_vm3, %v20247_v10, %v10149_v58  ;;  %v20251_v58 = vld [vmem:[#allocation135_spill] sm:$0xff] }
 0x656   : > { %v10163_v19 = vunpack.i.l.bf16 %v20246_v44  ;;  %v10213_v40 = vunpack.i.l.bf16 %v20248_v48  ;;  %v20249_v35 = vpack.i.bf16 %v16356_v52, %v16380_v50  ;;  %v16669_v41 = vsel %vm3055_vm3, %v20250_v32, %v10148_v1  ;;  %v20252_v50 = vld [vmem:[#allocation136_spill] sm:$0xff]  ;;  %v20258_v32 = vld [vmem:[#allocation137_spill] sm:$0xff] }
 0x657   : > { %v16673_v12 = vsel %vm3055_vm3, %v16341_v23, %v10198_v22  ;;  %v10214_v0 = vunpack.i.h.bf16 %v20248_v48  ;;  %v10264_v29 = vunpack.i.h.bf16 %v20251_v58  ;;  %v16679_v44 = vsel %vm3055_vm3, %v16330_v33, %v10199_v3  ;;  %v20254_v48 = vld [vmem:[#allocation106_spill] sm:$0xff]  ;;  %v16694_v33 = vpop.permute.xlu2 %10771 }
 0x658   : > { %10936 = vrot.lane.b32.xlu2 %v20249_v35, %s11556_s21  ;;  %v16682_v10 = vsel %vm3055_vm3, %v7060_v56, %v10249_v21  ;;  %v10263_v52 = vunpack.i.l.bf16 %v20251_v58  ;;  %v10179_v1 = vunpack.i.h.bf16 %v20252_v50  ;;  %v20253_v23 = vpack.i.bf16 %v16130_v55, %v16167_v30  ;;  %v20255_v22 = vld [vmem:[#allocation6_spill] sm:$0xff]  ;;  %20257 = vst [vmem:[#allocation171_spill] sm:$0xff] %v16694_v33  ;;  %v20259_v55 = vld [vmem:[#allocation219_spill] sm:$0xff]  ;;  %v20295_v33 = vld [vmem:[#allocation45_spill] sm:$0xff] }
 0x659   : > { %v20256_v35 = vpack.i.bf16 %v20254_v48, %v20255_v22  ;;  %v16697_v56 = vsel %vm3055_vm3, %v7059_v7, %v10248_v37  ;;  %v16701_v3 = vsel %vm3055_vm3, %v16200_v63, %v10164_v31  ;;  %v10178_v21 = vunpack.i.l.bf16 %v20252_v50  ;;  %v20260_v7 = vld [vmem:[#allocation184_spill] sm:$0xff]  ;;  %v16715_v22 = vpop.permute.xlu0 %10686  ;;  %v16717_v63 = vpop.permute.xlu1 %10736 }
 0x65a   : > { %10896 = vrot.lane.b32.xlu0 %v20253_v23, %s11556_s21  ;;  %v10228_v30 = vunpack.i.l.bf16 %v20258_v32  ;;  %v16707_v58 = vsel %vm3055_vm3, %v20259_v55, %v10163_v19  ;;  %v16711_v23 = vsel %vm3055_vm3, %v16396_v17, %v10213_v40  ;;  %v10229_v48 = vunpack.i.h.bf16 %v20258_v32  ;;  %20261 = vst [vmem:[#allocation130_spill] sm:$0xff] %v16715_v22  ;;  %v20263_v17 = vld [vmem:[#allocation187_spill] sm:$0xff] }
 0x65b   : > { %10946 = vrot.lane.b32.xlu1 %v20256_v35, %s11557_s22  ;;  %v10279_v37 = vunpack.i.h.bf16 %v20260_v7  ;;  %20262 = vst [vmem:[#allocation28_spill] sm:$0xff] %v16717_v63  ;;  %v16721_v31 = vsel %vm3055_vm3, %v16390_v26, %v10214_v0  ;;  %v16725_v19 = vsel %vm3055_vm3, %v16567_v54, %v10264_v29  ;;  %v10278_v50 = vunpack.i.l.bf16 %v20260_v7  ;;  %v20264_v32 = vld [vmem:[#allocation239_spill] sm:$0xff]  ;;  %v20265_v26 = vld [vmem:[#allocation138_spill] sm:$0xff]  ;;  %v20268_v63 = vld [vmem:[#allocation105_spill] sm:$0xff] }
 0x65c   : > { %v10194_v40 = vunpack.i.h.bf16 %v20263_v17  ;;  %v16731_v35 = vsel %vm3055_vm3, %v16576_v36, %v10263_v52  ;;  %v16735_v55 = vsel %vm3055_vm3, %v20264_v32, %v10179_v1  ;;  %v10193_v22 = vunpack.i.l.bf16 %v20263_v17  ;;  %v20266_v36 = vld [vmem:[#allocation69_spill] sm:$0xff] }
 0x65d   : > { %v10243_v0 = vunpack.i.l.bf16 %v20265_v26  ;;  %v16741_v54 = vsel %vm3055_vm3, %v16299_v45, %v10178_v21  ;;  %v16745_v29 = vsel %vm3055_vm3, %v16416_v60, %v10228_v30  ;;  %v10244_v7 = vunpack.i.h.bf16 %v20265_v26  ;;  %v20267_v45 = vld [vmem:[#allocation76_spill] sm:$0xff]  ;;  %v20269_v60 = vld [vmem:[#allocation33_spill] sm:$0xff] }
 0x65e   : > { %v10294_v52 = vunpack.i.h.bf16 %v20266_v36  ;;  %v16751_v1 = vsel %vm3055_vm3, %v16407_v53, %v10229_v48  ;;  %v16755_v17 = vsel %vm3055_vm3, %v16589_v5, %v10279_v37  ;;  %v10293_v32 = vunpack.i.l.bf16 %v20266_v36  ;;  %v20271_v48 = vld [vmem:[#allocation77_spill] sm:$0xff] }
 0x65f   : > { %v10209_v21 = vunpack.i.h.bf16 %v20267_v45  ;;  %v20270_v30 = vpack.i.bf16 %v20268_v63, %v20269_v60  ;;  %v16765_v26 = vsel %vm3055_vm3, %v16604_v39, %v10278_v50  ;;  %v16769_v53 = vsel %vm3055_vm3, %v16361_v2, %v10194_v40  ;;  %v20272_v39 = vld [vmem:[#allocation139_spill] sm:$0xff]  ;;  %v20274_v40 = vld [vmem:[#allocation104_spill] sm:$0xff] }
 0x660   : > { %v10208_v5 = vunpack.i.l.bf16 %v20267_v45  ;;  %v10258_v37 = vunpack.i.l.bf16 %v20271_v48  ;;  %v16775_v36 = vsel %vm3055_vm3, %v16364_v28, %v10193_v22  ;;  %v16779_v63 = vsel %vm3055_vm3, %v16422_v15, %v10243_v0  ;;  %v20275_v45 = vld [vmem:[#allocation157_spill] sm:$0xff]  ;;  %v16791_v28 = vpop.permute.xlu2 %10786 }
 0x661   : > { %10951 = vrot.lane.b32.xlu2 %v20270_v30, %s11557_s22  ;;  %v10259_v60 = vunpack.i.h.bf16 %v20271_v48  ;;  %v10309_v50 = vunpack.i.h.bf16 %v20272_v39  ;;  %v20273_v2 = vpack.i.bf16 %v16237_v13, %v16265_v25  ;;  %v20276_v30 = vpack.i.bf16 %v20274_v40, %v20275_v45  ;;  %20277 = vst [vmem:[#allocation131_spill] sm:$0xff] %v16791_v28  ;;  %v20278_v48 = vld [vmem:[#allocation140_spill] sm:$0xff]  ;;  %v16813_v45 = vpop.permute.xlu0 %10701 }
 0x662   : > { %v16795_v15 = vsel %vm3055_vm3, %v16419_v6, %v10244_v7  ;;  %v16799_v22 = vsel %vm3055_vm3, %v16631_v51, %v10294_v52  ;;  %v10308_v0 = vunpack.i.l.bf16 %v20272_v39  ;;  %v10224_v25 = vunpack.i.h.bf16 %v20278_v48  ;;  %v20279_v6 = vld [vmem:[#allocation83_spill] sm:$0xff]  ;;  %v16815_v51 = vpop.permute.xlu1 %10751 }
 0x663   : > { %10911 = vrot.lane.b32.xlu0 %v20273_v2, %s11556_s21  ;;  %10961 = vrot.lane.b32.xlu1 %v20276_v30, %s11557_s22  ;;  %v16805_v13 = vsel %vm3055_vm3, %v16636_v8, %v10293_v32  ;;  %v16809_v2 = vsel %vm3055_vm3, %v16399_v18, %v10209_v21  ;;  %v10223_v40 = vunpack.i.l.bf16 %v20278_v48  ;;  %v10273_v7 = vunpack.i.l.bf16 %v20279_v6  ;;  %20280 = vst [vmem:[#allocation70_spill] sm:$0xff] %v16815_v51  ;;  %v20281_v18 = vld [vmem:[#allocation141_spill] sm:$0xff]  ;;  %v20287_v51 = vld [vmem:[#allocation46_spill] sm:$0xff] }
 0x664   : > { %v16819_v52 = vsel %vm3055_vm3, %v16404_v9, %v10208_v5  ;;  %v16823_v8 = vsel %vm3055_vm3, %v16429_v11, %v10258_v37  ;;  %v10274_v32 = vunpack.i.h.bf16 %v20279_v6  ;;  %v10324_v21 = vunpack.i.h.bf16 %v20281_v18  ;;  %v20283_v9 = vld [vmem:[#allocation84_spill] sm:$0xff] }
 0x665   : > { %v16829_v39 = vsel %vm3055_vm3, %v16426_v57, %v10259_v60  ;;  %v16833_v30 = vsel %vm3185_vm6, %v16659_v61, %v10309_v50  ;;  %v10323_v48 = vunpack.i.l.bf16 %v20281_v18  ;;  %v10239_v5 = vunpack.i.h.bf16 %v20283_v9  ;;  %v20284_v57 = vld [vmem:[#allocation142_spill] sm:$0xff] }
 0x666   : > { %20282 = vst [vmem:[#allocation132_spill] sm:$0xff] %v16833_v30  ;;  %v16839_v11 = vsel %vm3185_vm6, %v16669_v41, %v10308_v0  ;;  %v16843_v37 = vsel %vm3055_vm3, %v16472_v27, %v10224_v25  ;;  %v10238_v6 = vunpack.i.l.bf16 %v20283_v9  ;;  %v10288_v60 = vunpack.i.l.bf16 %v20284_v57  ;;  %v20286_v41 = vld [vmem:[#allocation143_spill] sm:$0xff]  ;;  %v20288_v27 = vld [vmem:[#allocation97_spill] sm:$0xff] }
 0x667   : > { %v16849_v61 = vsel %vm3055_vm3, %v16478_v42, %v10223_v40  ;;  %v16853_v50 = vsel %vm3055_vm3, %v16446_v38, %v10273_v7  ;;  %v10289_v18 = vunpack.i.h.bf16 %v20284_v57  ;;  %v10339_v0 = vunpack.i.h.bf16 %v20286_v41  ;;  %v20290_v9 = vld [vmem:[#allocation251_spill] sm:$0xff]  ;;  %v20293_v40 = vld [vmem:[#allocation144_spill] sm:$0xff] }
 0x668   : > { %20285 = vst [vmem:[#allocation182_spill] sm:$0xff] %v16853_v50  ;;  %v20289_v25 = vpack.i.bf16 %v20287_v51, %v20288_v27  ;;  %v16863_v28 = vsel %vm3055_vm3, %v20290_v9, %v10274_v32  ;;  %v16867_v42 = vsel %vm3185_vm6, %v16701_v3, %v10324_v21  ;;  %v10338_v38 = vunpack.i.l.bf16 %v20286_v41  ;;  %v20296_v32 = vld [vmem:[#allocation188_spill] sm:$0xff]  ;;  %v20297_v9 = vld [vmem:[#allocation246_spill] sm:$0xff]  ;;  %v20300_v41 = vld [vmem:[#allocation111_spill] sm:$0xff] }
 0x669   : > { %20291 = vst [vmem:[#allocation133_spill] sm:$0xff] %v16863_v28  ;;  %v10254_v7 = vunpack.i.h.bf16 %v20293_v40  ;;  %v16873_v57 = vsel %vm3185_vm6, %v16707_v58, %v10323_v48  ;;  %v16877_v51 = vsel %vm3055_vm3, %v20295_v33, %v10239_v5  ;;  %v10253_v27 = vunpack.i.l.bf16 %v20293_v40  ;;  %v20298_v3 = vld [vmem:[#allocation248_spill] sm:$0xff]  ;;  %v16889_v58 = vpop.permute.xlu2 %10801  ;;  %v20304_v48 = vld [vmem:[#allocation255_spill] sm:$0xff] }
 0x66a   : > { %10966 = vrot.lane.b32.xlu2 %v20289_v25, %s11557_s22  ;;  %20292 = vst [vmem:[#allocation114_spill] sm:$0xff] %v16867_v42  ;;  %v10303_v25 = vunpack.i.l.bf16 %v20296_v32  ;;  %v20299_v21 = vpack.i.bf16 %v20297_v9, %v20298_v3  ;;  %v20301_v42 = vld [vmem:[#allocation108_spill] sm:$0xff]  ;;  %v7119_v33 = vsel %vm3055_vm3, %v16486_v24, %v10238_v6  ;;  %v16895_v5 = vsel %vm3055_vm3, %v20304_v48, %v10288_v60  ;;  %v4649_v9 = vld [vmem:[#allocation2 + $0x348] sm:$0xff]  ;;  %v4650_v3 = vld [vmem:[#allocation2 + $0x350] sm:$0xff]  ;;  %v16909_v60 = vpop.permute.xlu0 %10716 }
 0x66b   : > { %20294 = vst [vmem:[#allocation134_spill] sm:$0xff] %v16873_v57  ;;  %v20302_v28 = vpack.i.bf16 %v20300_v41, %v20301_v42  ;;  %v10304_v40 = vunpack.i.h.bf16 %v20296_v32  ;;  %v20305_v57 = vld [vmem:[#allocation168_spill] sm:$0xff]  ;;  %v20309_v6 = vld [vmem:[#allocation189_spill] sm:$0xff]  ;;  %v16911_v41 = vpop.permute.xlu1 %10766  ;;  %v16915_v32 = vsel %vm3185_vm6, %v16741_v54, %v10338_v38 }
 0x66c   : > { %10926 = vrot.lane.b32.xlu0 %v20299_v21, %s11556_s21  ;;  %20303 = vst [vmem:[#allocation201_spill] sm:$0xff] %v16889_v58  ;;  %v10354_v50 = vunpack.i.h.bf16 %v20305_v57  ;;  %v20306_v21 = vld [vmem:[#allocation253_spill] sm:$0xff]  ;;  %v10353_v24 = vunpack.i.l.bf16 %v20305_v57  ;;  %v10269_v42 = vunpack.i.h.bf16 %v20309_v6  ;;  %v20312_v48 = vld [vmem:[#allocation116_spill] sm:$0xff]  ;;  %v16925_v57 = vsel %vm3055_vm3, %v16504_v16, %v10303_v25  ;;  %v20320_v16 = vld [vmem:[#allocation118_spill] sm:$0xff] }
 0x66d   : > { %10976 = vrot.lane.b32.xlu1 %v20302_v28, %s11557_s22  ;;  %v16901_v30 = vsel %vm3055_vm3, %v20306_v21, %v10289_v18  ;;  %v16905_v28 = vsel %vm3185_vm6, %v16735_v55, %v10339_v0  ;;  %20310 = vst [vmem:[#allocation106_spill] sm:$0xff] %v16911_v41  ;;  %v7126_v18 = vsel %vm3055_vm3, %v20312_v48, %v10254_v7  ;;  %v10268_v21 = vunpack.i.l.bf16 %v20309_v6  ;;  %v20313_v58 = vld [vmem:[#allocation88_spill] sm:$0xff]  ;;  %v20318_v7 = vld [vmem:[#allocation75_spill] sm:$0xff] }
 0x66e   : > { %20307 = vst [vmem:[#allocation135_spill] sm:$0xff] %v16901_v30  ;;  %v10318_v55 = vunpack.i.l.bf16 %v20313_v58  ;;  %v7125_v0 = vsel %vm3055_vm3, %v16498_v34, %v10253_v27  ;;  %v10319_v41 = vunpack.i.h.bf16 %v20313_v58  ;;  %v20315_v30 = vld [vmem:[#allocation117_spill] sm:$0xff]  ;;  %v16934_v38 = vsel %vm3185_vm6, %v16769_v53, %v10354_v50  ;;  %v20321_v25 = vld [vmem:[#allocation192_spill] sm:$0xff]  ;;  %v20325_v50 = vld [vmem:[#allocation119_spill] sm:$0xff] }
 0x66f   : > { %20308 = vst [vmem:[#allocation136_spill] sm:$0xff] %v16905_v28  ;;  %v10940_v28 = vpack.i.bf16 %v4650_v3, %v4649_v9  ;;  %v16930_v54 = vsel %vm3055_vm3, %v20315_v30, %v10304_v40  ;;  %v10369_v6 = vunpack.i.h.bf16 %v20318_v7  ;;  %v10368_v48 = vunpack.i.l.bf16 %v20318_v7  ;;  %v20322_v40 = vld [vmem:[#allocation112_spill] sm:$0xff]  ;;  %v20323_v9 = vld [vmem:[#allocation98_spill] sm:$0xff] }
 0x670   : > { %20311 = vst [vmem:[#allocation6_spill] sm:$0xff] %v16915_v32  ;;  %v16940_v34 = vsel %vm3185_vm6, %v16775_v36, %v10353_v24  ;;  %v7132_v27 = vsel %vm3055_vm3, %v20320_v16, %v10269_v42  ;;  %v10284_v58 = vunpack.i.h.bf16 %v20321_v25  ;;  %v10283_v30 = vunpack.i.l.bf16 %v20321_v25  ;;  %v20326_v7 = vld [vmem:[#allocation156_spill] sm:$0xff]  ;;  %v20328_v36 = vld [vmem:[#allocation145_spill] sm:$0xff]  ;;  %v20331_v25 = vld [vmem:[#allocation146_spill] sm:$0xff] }
 0x671   : > { %20314 = vst [vmem:[#allocation137_spill] sm:$0xff] %v16925_v57  ;;  %v20324_v53 = vpack.i.bf16 %v20322_v40, %v20323_v9  ;;  %v7131_v3 = vsel %vm3055_vm3, %v20325_v50, %v10268_v21  ;;  %v10384_v24 = vunpack.i.h.bf16 %v20328_v36  ;;  %v10383_v42 = vunpack.i.l.bf16 %v20328_v36  ;;  %v20329_v16 = vld [vmem:[#allocation256_spill] sm:$0xff]  ;;  %v20332_v9 = vld [vmem:[#allocation149_spill] sm:$0xff]  ;;  %v20333_v21 = vld [vmem:[#allocation214_spill] sm:$0xff] }
 0x672   : > { %20316 = vst [vmem:[#allocation219_spill] sm:$0xff] %v16930_v54  ;;  %v10299_v54 = vunpack.i.h.bf16 %v20331_v25  ;;  %v10298_v40 = vunpack.i.l.bf16 %v20331_v25  ;;  %v16974_v36 = vsel %vm3185_vm6, %v16809_v2, %v10369_v6  ;;  %v20339_v25 = vld [vmem:[#allocation179_spill] sm:$0xff]  ;;  %v20341_v57 = vld [vmem:[#allocation122_spill] sm:$0xff]  ;;  %v16988_v2 = vpop.permute.xlu0 %10731 }
 0x673   : > { %20317 = vst [vmem:[#allocation184_spill] sm:$0xff] %v16934_v38  ;;  %10981 = vrot.lane.b32.xlu2 %v20324_v53, %s11557_s22  ;;  %v16954_v38 = vsel %vm3185_vm6, %v20326_v7, %v10318_v55  ;;  %v10399_v53 = vunpack.i.h.bf16 %v20332_v9  ;;  %v20334_v55 = vld [vmem:[#allocation213_spill] sm:$0xff]  ;;  %v16970_v7 = vpop.permute.xlu2 %10816  ;;  %v16990_v6 = vpop.permute.xlu1 %10781 }
 0x674   : > { %20319 = vst [vmem:[#allocation187_spill] sm:$0xff] %v16940_v34  ;;  %v16960_v34 = vsel %vm3185_vm6, %v20329_v16, %v10319_v41  ;;  %10941 = vrot.lane.b32.xlu0 %v10940_v28, %s11556_s21  ;;  %v20335_v50 = vpack.i.bf16 %v20333_v21, %v20334_v55  ;;  %v16978_v41 = vsel %vm3185_vm6, %v16819_v52, %v10368_v48  ;;  %v10398_v16 = vunpack.i.l.bf16 %v20332_v9  ;;  %v20340_v28 = vld [vmem:[#allocation158_spill] sm:$0xff] }
 0x675   : > { %20327 = vst [vmem:[#allocation239_spill] sm:$0xff] %v16954_v38  ;;  %v7138_v38 = vsel %vm3055_vm3, %v20340_v28, %v10284_v58  ;;  %v7137_v21 = vsel %vm3055_vm3, %v20341_v57, %v10283_v30  ;;  %v16994_v52 = vsel %vm3185_vm6, %v16843_v37, %v10384_v24  ;;  %v16998_v48 = vsel %vm3185_vm6, %v16849_v61, %v10383_v42  ;;  %v20344_v58 = vld [vmem:[#allocation80_spill] sm:$0xff]  ;;  %v20345_v30 = vld [vmem:[#allocation123_spill] sm:$0xff]  ;;  %v20347_v24 = vld [vmem:[#allocation82_spill] sm:$0xff] }
 0x676   : > { %20330 = vst [vmem:[#allocation138_spill] sm:$0xff] %v16960_v34  ;;  %10991 = vrot.lane.b32.xlu1 %v20335_v50, %s11557_s22  ;;  %v10313_v34 = vunpack.i.l.bf16 %v20339_v25  ;;  %v10414_v9 = vunpack.i.h.bf16 %v20344_v58  ;;  %v10413_v57 = vunpack.i.l.bf16 %v20344_v58  ;;  %v17004_v28 = vsel %vm3055_vm3, %v20345_v30, %v10299_v54  ;;  %v20348_v58 = vld [vmem:[#allocation150_spill] sm:$0xff] }
 0x677   : > { %20336 = vst [vmem:[#allocation69_spill] sm:$0xff] %v16970_v7  ;;  %v10314_v7 = vunpack.i.h.bf16 %v20339_v25  ;;  %v20346_v25 = vld [vmem:[#allocation124_spill] sm:$0xff]  ;;  %v17012_v37 = vsel %vm3185_vm6, %v16877_v51, %v10399_v53  ;;  %v17016_v61 = vsel %vm3185_vm6, %v7119_v33, %v10398_v16  ;;  %v10329_v54 = vunpack.i.h.bf16 %v20347_v24  ;;  %v20349_v53 = vld [vmem:[#allocation86_spill] sm:$0xff]  ;;  %v20350_v33 = vld [vmem:[#allocation221_spill] sm:$0xff] }
 0x678   : > { %20337 = vst [vmem:[#allocation76_spill] sm:$0xff] %v16974_v36  ;;  %v17008_v50 = vsel %vm3055_vm3, %v20346_v25, %v10298_v40  ;;  %v10328_v36 = vunpack.i.l.bf16 %v20347_v24  ;;  %v17020_v42 = vsel %vm3185_vm6, %v16580_v62, %v10313_v34  ;;  %v10378_v30 = vunpack.i.l.bf16 %v20348_v58  ;;  %v20351_v16 = vld [vmem:[#allocation220_spill] sm:$0xff]  ;;  %v20355_v24 = vld [vmem:[#allocation87_spill] sm:$0xff] }
 0x679   : > { %20338 = vst [vmem:[#allocation105_spill] sm:$0xff] %v16978_v41  ;;  %v17026_v40 = vsel %vm3185_vm6, %v16586_v46, %v10314_v7  ;;  %v10379_v51 = vunpack.i.h.bf16 %v20348_v58  ;;  %v10429_v25 = vunpack.i.h.bf16 %v20349_v53  ;;  %v10428_v41 = vunpack.i.l.bf16 %v20349_v53  ;;  %v20356_v53 = vld [vmem:[#allocation151_spill] sm:$0xff] }
 0x67a   : > { %20343 = vst [vmem:[#allocation33_spill] sm:$0xff] %v16990_v6  ;;  %v20352_v55 = vpack.i.bf16 %v20350_v33, %v20351_v16  ;;  %v17036_v62 = vsel %vm3185_vm6, %v7126_v18, %v10414_v9  ;;  %v17039_v34 = vsel %vm3185_vm6, %v7125_v0, %v10413_v57  ;;  %v10344_v46 = vunpack.i.h.bf16 %v20355_v24  ;;  %v20357_v33 = vld [vmem:[#allocation152_spill] sm:$0xff]  ;;  %v20358_v18 = vld [vmem:[#allocation153_spill] sm:$0xff]  ;;  %v20359_v9 = vld [vmem:[#allocation163_spill] sm:$0xff] }
 0x67b   : > { %20353 = vst [vmem:[#allocation77_spill] sm:$0xff] %v17036_v62  ;;  %v10343_v7 = vunpack.i.l.bf16 %v20355_v24  ;;  %v17045_v58 = vsel %vm3185_vm6, %v16608_v43, %v10328_v36  ;;  %v10394_v6 = vunpack.i.h.bf16 %v20356_v53  ;;  %v10393_v32 = vunpack.i.l.bf16 %v20356_v53  ;;  %v20361_v0 = vld [vmem:[#allocation236_spill] sm:$0xff]  ;;  %v20362_v57 = vld [vmem:[#allocation230_spill] sm:$0xff]  ;;  %v17058_v24 = vpop.permute.xlu2 %10831 }
 0x67c   : > { %10996 = vrot.lane.b32.xlu2 %v20352_v55, %s11557_s22  ;;  %20354 = vst [vmem:[#allocation139_spill] sm:$0xff] %v17039_v34  ;;  %v10444_v55 = vunpack.i.h.bf16 %v20357_v33  ;;  %v20360_v16 = vpack.i.bf16 %v20358_v18, %v20359_v9  ;;  %v20363_v62 = vpack.i.bf16 %v20361_v0, %v20362_v57  ;;  %v17062_v43 = vsel %vm3185_vm6, %v16614_v49, %v10329_v54  ;;  %v20365_v34 = vld [vmem:[#allocation154_spill] sm:$0xff]  ;;  %v4681_v9 = vld [vmem:[#allocation2 + $0x199] sm:$0xff] }
 0x67d   : > { %20364 = vst [vmem:[#allocation104_spill] sm:$0xff] %v17058_v24  ;;  %v17066_v36 = vsel %vm3185_vm6, %v16628_v47, %v10378_v30  ;;  %v10443_v53 = vunpack.i.l.bf16 %v20357_v33  ;;  %v10358_v18 = vunpack.i.l.bf16 %v20365_v34  ;;  %v17072_v0 = vsel %vm3185_vm6, %v16618_v20, %v10379_v51  ;;  %v17081_v47 = vpop.permute.xlu0 %10746  ;;  %v17083_v30 = vpop.permute.xlu1 %10796  ;;  %v20367_v33 = vld [vmem:[#allocation129_spill] sm:$0xff] }
 0x67e   : > { %10956 = vrot.lane.b32.xlu0 %v20360_v16, %s11557_s22  ;;  %11006 = vrot.lane.b32.xlu1 %v20363_v62, %s11557_s22  ;;  %v4682_v16 = vld [vmem:[#allocation2 + $0x1a1] sm:$0xff]  ;;  %v17075_v62 = vsel %vm3185_vm6, %v7132_v27, %v10429_v25  ;;  %v17078_v49 = vsel %vm3185_vm6, %v7131_v3, %v10428_v41  ;;  %v10359_v54 = vunpack.i.h.bf16 %v20365_v34  ;;  %20366 = vst [vmem:[#allocation157_spill] sm:$0xff] %v17083_v30 }
 0x67f   : > { %v17087_v57 = vsel %vm3185_vm6, %v20367_v33, %v10343_v7  ;;  %v17091_v20 = vsel %vm3185_vm6, %v16646_v4, %v10344_v46  ;;  %v20368_v51 = vld [vmem:[#allocation185_spill] sm:$0xff]  ;;  %v17097_v3 = vsel %vm3185_vm6, %v16655_v14, %v10393_v32  ;;  %v17101_v41 = vsel %vm3185_vm6, %v16650_v59, %v10394_v6  ;;  %v20370_v46 = vld [vmem:[#allocation155_spill] sm:$0xff]  ;;  %v20378_v30 = vld [vmem:[#allocation180_spill] sm:$0xff] }
 0x680   : > { %v10409_v27 = vunpack.i.h.bf16 %v20368_v51  ;;  %v10408_v25 = vunpack.i.l.bf16 %v20368_v51  ;;  %v17104_v34 = vsel %vm3185_vm6, %v7138_v38, %v10444_v55  ;;  %v11020_v7 = vpack.i.bf16 %v4682_v16, %v4681_v9  ;;  %v20371_v59 = vld [vmem:[#allocation159_spill] sm:$0xff] }
 0x681   : > { %20369 = vst [vmem:[#allocation140_spill] sm:$0xff] %v17104_v34  ;;  %v17107_v33 = vsel %vm3185_vm6, %v7137_v21, %v10443_v53  ;;  %v17111_v4 = vsel %vm3185_vm6, %v16673_v12, %v10358_v18  ;;  %v10459_v51 = vunpack.i.h.bf16 %v20370_v46  ;;  %v10458_v14 = vunpack.i.l.bf16 %v20370_v46  ;;  %v20372_v55 = vld [vmem:[#allocation167_spill] sm:$0xff]  ;;  %v20373_v21 = vld [vmem:[#allocation241_spill] sm:$0xff]  ;;  %v20374_v53 = vld [vmem:[#allocation240_spill] sm:$0xff] }
 0x682   : > { %v17117_v32 = vsel %vm3185_vm6, %v16679_v44, %v10359_v54  ;;  %v10374_v6 = vunpack.i.h.bf16 %v20371_v59  ;;  %v10373_v38 = vunpack.i.l.bf16 %v20371_v59  ;;  %v10423_v9 = vunpack.i.l.bf16 %v20372_v55  ;;  %v20377_v54 = vld [vmem:[#allocation178_spill] sm:$0xff] }
 0x683   : > { %v20375_v16 = vpack.i.bf16 %v20373_v21, %v20374_v53  ;;  %v17128_v12 = vsel %vm3185_vm6, %v16697_v56, %v10408_v25  ;;  %v17132_v18 = vsel %vm3185_vm6, %v16682_v10, %v10409_v27  ;;  %v10424_v44 = vunpack.i.h.bf16 %v20372_v55  ;;  %v20379_v21 = vld [vmem:[#allocation186_spill] sm:$0xff]  ;;  %v20381_v56 = vld [vmem:[#allocation64_spill] sm:$0xff]  ;;  %v17145_v10 = vpop.permute.xlu2 %10846 }
 0x684   : > { %20376 = vst [vmem:[#allocation83_spill] sm:$0xff] %v17132_v18  ;;  %v10473_v46 = vunpack.i.l.bf16 %v20377_v54  ;;  %v10474_v59 = vunpack.i.h.bf16 %v20377_v54  ;;  %v10389_v24 = vunpack.i.h.bf16 %v20378_v30  ;;  %v10388_v34 = vunpack.i.l.bf16 %v20378_v30  ;;  %v20384_v54 = vld [vmem:[#allocation196_spill] sm:$0xff] }
 0x685   : > { %11011 = vrot.lane.b32.xlu2 %v20375_v16, %s11557_s22  ;;  %v10438_v53 = vunpack.i.l.bf16 %v20379_v21  ;;  %v20380_v16 = vld [vmem:[#allocation128_spill] sm:$0xff]  ;;  %20383 = vst [vmem:[#allocation141_spill] sm:$0xff] %v17145_v10  ;;  %v17149_v27 = vsel %vm3185_vm6, %v17004_v28, %v10459_v51  ;;  %v17153_v55 = vsel %vm3185_vm6, %v17008_v50, %v10458_v14  ;;  %v10439_v30 = vunpack.i.h.bf16 %v20379_v21  ;;  %v17170_v50 = vpop.permute.xlu0 %10761  ;;  %v17172_v14 = vpop.permute.xlu1 %10811  ;;  %v20401_v10 = vld [vmem:[#allocation74_spill] sm:$0xff] }
 0x686   : > { %v20382_v25 = vpack.i.bf16 %v20380_v16, %v20381_v56  ;;  %11021 = vrot.lane.b32.xlu1 %v11020_v7, %s11557_s22  ;;  %v10488_v18 = vunpack.i.l.bf16 %v20384_v54  ;;  %v17159_v16 = vsel %vm3185_vm6, %v16711_v23, %v10373_v38  ;;  %v17163_v7 = vsel %vm3185_vm6, %v16721_v31, %v10374_v6  ;;  %20385 = vst [vmem:[#allocation84_spill] sm:$0xff] %v17172_v14  ;;  %v20386_v31 = vld [vmem:[#allocation197_spill] sm:$0xff]  ;;  %v20391_v56 = vld [vmem:[#allocation91_spill] sm:$0xff] }
 0x687   : > { %v17167_v28 = vsel %vm3185_vm6, %v16731_v35, %v10423_v9  ;;  %v10489_v51 = vunpack.i.h.bf16 %v20384_v54  ;;  %v17176_v21 = vsel %vm3185_vm6, %v16725_v19, %v10424_v44  ;;  %v17180_v23 = vsel %vm3315_vm7, %v17020_v42, %v10473_v46  ;;  %v20387_v46 = vld [vmem:[#allocation90_spill] sm:$0xff] }
 0x688   : > { %10971 = vrot.lane.b32.xlu0 %v20382_v25, %s11557_s22  ;;  %v10404_v6 = vunpack.i.h.bf16 %v20386_v31  ;;  %v10403_v38 = vunpack.i.l.bf16 %v20386_v31  ;;  %v17186_v35 = vsel %vm3315_vm7, %v17026_v40, %v10474_v59  ;;  %v17190_v9 = vsel %vm3185_vm6, %v16745_v29, %v10388_v34 }
 0x689   : > { %v17194_v19 = vsel %vm3185_vm6, %v16751_v1, %v10389_v24  ;;  %v17198_v42 = vsel %vm3185_vm6, %v16765_v26, %v10438_v53  ;;  %v17202_v44 = vsel %vm3185_vm6, %v16755_v17, %v10439_v30  ;;  %v17206_v40 = vsel %vm3315_vm7, %v17045_v58, %v10488_v18  ;;  %v20389_v24 = vld [vmem:[#allocation7_spill] sm:$0xff]  ;;  %v20390_v17 = vld [vmem:[#allocation92_spill] sm:$0xff]  ;;  %v20393_v30 = vld [vmem:[#allocation50_spill] sm:$0xff] }
 0x68a   : > { %v10544_v59 = vunpack.i.h.bf16 %v20387_v46  ;;  %v10543_v29 = vunpack.i.l.bf16 %v20387_v46  ;;  %v17212_v1 = vsel %vm3315_vm7, %v17062_v43, %v10489_v51  ;;  %v10454_v34 = vunpack.i.h.bf16 %v20389_v24 }
 0x68b   : > { %20388 = vst [vmem:[#allocation142_spill] sm:$0xff] %v17212_v1  ;;  %v10704_v26 = vunpack.i.h.bf16 %v16813_v45  ;;  %v10703_v53 = vunpack.i.l.bf16 %v16813_v45  ;;  %v20392_v25 = vpack.i.bf16 %v20390_v17, %v20391_v56  ;;  %v17223_v58 = vsel %vm3185_vm6, %v16779_v63, %v10403_v38  ;;  %v20394_v45 = vld [vmem:[#allocation195_spill] sm:$0xff]  ;;  %v20395_v17 = vld [vmem:[#allocation206_spill] sm:$0xff]  ;;  %v20396_v56 = vld [vmem:[#allocation205_spill] sm:$0xff] }
 0x68c   : > { %v17227_v18 = vsel %vm3185_vm6, %v16795_v15, %v10404_v6  ;;  %v10453_v43 = vunpack.i.l.bf16 %v20389_v24  ;;  %v10504_v54 = vunpack.i.h.bf16 %v20393_v30  ;;  %v10503_v51 = vunpack.i.l.bf16 %v20393_v30  ;;  %v20398_v38 = vld [vmem:[#allocation38_spill] sm:$0xff]  ;;  %v10862_v24 = vpop.permute.xlu2 %10861 }
 0x68d   : > { %11026 = vrot.lane.b32.xlu2 %v20392_v25, %s11557_s22  ;;  %v10419_v31 = vunpack.i.h.bf16 %v20394_v45  ;;  %v10418_v46 = vunpack.i.l.bf16 %v20394_v45  ;;  %v20397_v63 = vpack.i.bf16 %v20395_v17, %v20396_v56  ;;  %v20399_v15 = vld [vmem:[#allocation22_spill] sm:$0xff]  ;;  %v7241_v25 = vsel %vm3315_vm7, %v16998_v48, %v10543_v29 }
 0x68e   : > { %v20400_v6 = vpack.i.bf16 %v20398_v38, %v20399_v15  ;;  %v7242_v30 = vsel %vm3315_vm7, %v16994_v52, %v10544_v59  ;;  %v10864_v14 = vunpack.i.h.bf16 %v10862_v24  ;;  %v10863_v45 = vunpack.i.l.bf16 %v10862_v24  ;;  %v17251_v38 = vpop.permute.xlu1 %10826 }
 0x68f   : > { %v10468_v1 = vunpack.i.l.bf16 %v20401_v10  ;;  %v7306_v17 = vsel %vm7275_vm12, %v7241_v25, %v10703_v53  ;;  %v7307_v56 = vsel %vm7275_vm12, %v7242_v30, %v10704_v26  ;;  %20402 = vst [vmem:[#allocation143_spill] sm:$0xff] %v17251_v38  ;;  %v10469_v15 = vunpack.i.h.bf16 %v20401_v10 }
 0x690   : > { %10986 = vrot.lane.b32.xlu0 %v20397_v63, %s11557_s22  ;;  %11036 = vrot.lane.b32.xlu1 %v20400_v6, %s11557_s22  ;;  %v17249_v63 = vpop.permute.xlu0 %10776  ;;  %v20403_v6 = vld [vmem:[#allocation95_spill] sm:$0xff]  ;;  %v17256_v29 = vsel %vm7340_vm13, %v7306_v17, %v10863_v45  ;;  %v17259_v52 = vsel %vm7340_vm13, %v7307_v56, %v10864_v14  ;;  %v17263_v59 = vsel %vm3185_vm6, %v16805_v13, %v10453_v43  ;;  %v20406_v43 = vld [vmem:[#allocation26_spill] sm:$0xff]  ;;  %v20412_v45 = vld [vmem:[#allocation8_spill] sm:$0xff] }
 0x691   : > { %v10518_v48 = vunpack.i.l.bf16 %v20403_v6  ;;  %20404 = vst [vmem:[#allocation46_spill] sm:$0xff] %v17256_v29  ;;  %v17267_v26 = vsel %vm3185_vm6, %v16799_v22, %v10454_v34  ;;  %v17271_v53 = vsel %vm3315_vm7, %v17087_v57, %v10503_v51  ;;  %v17275_v10 = vsel %vm3315_vm7, %v17091_v20, %v10504_v54  ;;  %v20408_v51 = vld [vmem:[#allocation110_spill] sm:$0xff]  ;;  %v20413_v56 = vld [vmem:[#allocation20_spill] sm:$0xff] }
 0x692   : > { %20405 = vst [vmem:[#allocation97_spill] sm:$0xff] %v17259_v52  ;;  %v17279_v14 = vsel %vm3185_vm6, %v16823_v8, %v10418_v46  ;;  %v17283_v13 = vsel %vm3185_vm6, %v16829_v39, %v10419_v31  ;;  %v10559_v24 = vunpack.i.h.bf16 %v20406_v43  ;;  %v10558_v22 = vunpack.i.l.bf16 %v20406_v43  ;;  %v20407_v8 = vld [vmem:[#allocation4_spill] sm:$0xff] }
 0x693   : > { %v17289_v57 = vsel %vm3315_vm7, %v16839_v11, %v10468_v1  ;;  %v10519_v34 = vunpack.i.h.bf16 %v20403_v6  ;;  %v10719_v20 = vunpack.i.h.bf16 %v16909_v60  ;;  %v10718_v54 = vunpack.i.l.bf16 %v16909_v60  ;;  %v20410_v39 = vld [vmem:[#allocation132_spill] sm:$0xff] }
 0x694   : > { %v20409_v46 = vpack.i.bf16 %v20407_v8, %v20408_v51  ;;  %v17300_v31 = vsel %vm3315_vm7, %v20410_v39, %v10469_v15  ;;  %v17304_v25 = vsel %vm3315_vm7, %v17111_v4, %v10518_v48  ;;  %v20411_v11 = vld [vmem:[#allocation96_spill] sm:$0xff]  ;;  %v10484_v17 = vunpack.i.h.bf16 %v20412_v45  ;;  %v20415_v15 = vld [vmem:[#allocation227_spill] sm:$0xff]  ;;  %v10877_v39 = vpop.permute.xlu2 %10876 }
 0x695   : > { %v10434_v1 = vunpack.i.h.bf16 %v20411_v11  ;;  %v10433_v30 = vunpack.i.l.bf16 %v20411_v11  ;;  %v10483_v60 = vunpack.i.l.bf16 %v20412_v45  ;;  %v10534_v6 = vunpack.i.h.bf16 %v20413_v56  ;;  %v20414_v8 = vld [vmem:[#allocation228_spill] sm:$0xff]  ;;  %v20418_v48 = vld [vmem:[#allocation207_spill] sm:$0xff] }
 0x696   : > { %11041 = vrot.lane.b32.xlu2 %v20409_v46, %s11557_s22  ;;  %v10533_v43 = vunpack.i.l.bf16 %v20413_v56  ;;  %v20416_v51 = vpack.i.bf16 %v20414_v8, %v20415_v15  ;;  %v20417_v4 = vld [vmem:[#allocation208_spill] sm:$0xff]  ;;  %v7247_v11 = vsel %vm3315_vm7, %v17016_v61, %v10558_v22  ;;  %v7248_v45 = vsel %vm3315_vm7, %v17012_v37, %v10559_v24  ;;  %v20422_v22 = vld [vmem:[#allocation79_spill] sm:$0xff] }
 0x697   : > { %v20419_v46 = vpack.i.bf16 %v20417_v4, %v20418_v48  ;;  %v10879_v38 = vunpack.i.h.bf16 %v10877_v39  ;;  %v10878_v52 = vunpack.i.l.bf16 %v10877_v39  ;;  %v17326_v56 = vsel %vm3315_vm7, %v17117_v32, %v10519_v34  ;;  %v20420_v8 = vld [vmem:[#allocation52_spill] sm:$0xff]  ;;  %v20425_v34 = vld [vmem:[#allocation182_spill] sm:$0xff] }
 0x698   : > { %11001 = vrot.lane.b32.xlu0 %v20416_v51, %s11557_s22  ;;  %v10449_v15 = vunpack.i.h.bf16 %v20420_v8  ;;  %v7312_v51 = vsel %vm7275_vm12, %v7247_v11, %v10718_v54  ;;  %v7313_v4 = vsel %vm7275_vm12, %v7248_v45, %v10719_v20  ;;  %v17331_v48 = vpop.permute.xlu0 %10791  ;;  %v10448_v61 = vunpack.i.l.bf16 %v20420_v8  ;;  %v20426_v54 = vld [vmem:[#allocation133_spill] sm:$0xff]  ;;  %v20427_v11 = vld [vmem:[#allocation162_spill] sm:$0xff] }
 0x699   : > { %11051 = vrot.lane.b32.xlu1 %v20419_v46, %s11557_s22  ;;  %v17333_v46 = vpop.permute.xlu1 %10841  ;;  %v10498_v37 = vunpack.i.l.bf16 %v20422_v22  ;;  %v17338_v24 = vsel %vm7340_vm13, %v7312_v51, %v10878_v52  ;;  %v17341_v32 = vsel %vm7340_vm13, %v7313_v4, %v10879_v38  ;;  %v17345_v39 = vsel %vm3185_vm6, %v20425_v34, %v10433_v30  ;;  %v20429_v52 = vld [vmem:[#allocation114_spill] sm:$0xff]  ;;  %v20431_v4 = vld [vmem:[#allocation99_spill] sm:$0xff] }
 0x69a   : > { %20421 = vst [vmem:[#allocation251_spill] sm:$0xff] %v17333_v46  ;;  %v17349_v20 = vsel %vm3185_vm6, %v20426_v54, %v10434_v1  ;;  %v10574_v45 = vunpack.i.h.bf16 %v20427_v11  ;;  %v10573_v8 = vunpack.i.l.bf16 %v20427_v11  ;;  %v20428_v46 = vld [vmem:[#allocation134_spill] sm:$0xff]  ;;  %v17359_v38 = vsel %vm3315_vm7, %v20429_v52, %v10484_v17  ;;  %v20433_v17 = vld [vmem:[#allocation215_spill] sm:$0xff] }
 0x69b   : > { %20423 = vst [vmem:[#allocation144_spill] sm:$0xff] %v17338_v24  ;;  %v17355_v29 = vsel %vm3315_vm7, %v20428_v46, %v10483_v60  ;;  %v17363_v30 = vsel %vm3315_vm7, %v17159_v16, %v10533_v43  ;;  %v17367_v1 = vsel %vm3315_vm7, %v17163_v7, %v10534_v6  ;;  %v10499_v51 = vunpack.i.h.bf16 %v20422_v22  ;;  %v20432_v46 = vld [vmem:[#allocation216_spill] sm:$0xff]  ;;  %v20436_v43 = vld [vmem:[#allocation135_spill] sm:$0xff]  ;;  %v20438_v6 = vld [vmem:[#allocation6_spill] sm:$0xff] }
 0x69c   : > { %20424 = vst [vmem:[#allocation45_spill] sm:$0xff] %v17341_v32  ;;  %v10548_v34 = vunpack.i.l.bf16 %v20431_v4  ;;  %v10734_v54 = vunpack.i.h.bf16 %v16988_v2  ;;  %v10733_v60 = vunpack.i.l.bf16 %v16988_v2  ;;  %v20434_v11 = vpack.i.bf16 %v20432_v46, %v20433_v17  ;;  %v20440_v2 = vld [vmem:[#allocation139_spill] sm:$0xff]  ;;  %v20441_v24 = vld [vmem:[#allocation77_spill] sm:$0xff]  ;;  %v20442_v17 = vld [vmem:[#allocation102_spill] sm:$0xff] }
 0x69d   : > { %20430 = vst [vmem:[#allocation188_spill] sm:$0xff] %v17359_v38  ;;  %v17379_v16 = vsel %vm3185_vm6, %v16895_v5, %v10448_v61  ;;  %v17383_v7 = vsel %vm3185_vm6, %v20436_v43, %v10449_v15  ;;  %v17387_v22 = vsel %vm3315_vm7, %v20438_v6, %v10498_v37  ;;  %v10549_v52 = vunpack.i.h.bf16 %v20431_v4  ;;  %v20443_v61 = vld [vmem:[#allocation243_spill] sm:$0xff]  ;;  %v20444_v15 = vld [vmem:[#allocation242_spill] sm:$0xff]  ;;  %v20446_v37 = vld [vmem:[#allocation57_spill] sm:$0xff] }
 0x69e   : > { %11056 = vrot.lane.b32.xlu2 %v20434_v11, %s11557_s22  ;;  %20435 = vst [vmem:[#allocation246_spill] sm:$0xff] %v17379_v16  ;;  %v7253_v32 = vsel %vm3315_vm7, %v20440_v2, %v10573_v8  ;;  %v7254_v46 = vsel %vm3315_vm7, %v20441_v24, %v10574_v45  ;;  %v10539_v11 = vunpack.i.h.bf16 %v20442_v17  ;;  %v10538_v5 = vunpack.i.l.bf16 %v20442_v17  ;;  %v20447_v6 = vld [vmem:[#allocation175_spill] sm:$0xff]  ;;  %v20449_v8 = vld [vmem:[#allocation226_spill] sm:$0xff]  ;;  %v20450_v16 = vld [vmem:[#allocation136_spill] sm:$0xff] }
 0x69f   : > { %20437 = vst [vmem:[#allocation248_spill] sm:$0xff] %v17383_v7  ;;  %v20445_v43 = vpack.i.bf16 %v20443_v61, %v20444_v15  ;;  %v20448_v4 = vpack.i.bf16 %v20446_v37, %v20447_v6  ;;  %v10699_v2 = vunpack.i.h.bf16 %v20449_v8  ;;  %v10698_v24 = vunpack.i.l.bf16 %v20449_v8 }
 0x6a0   : > { %20439 = vst [vmem:[#allocation111_spill] sm:$0xff] %v17387_v22  ;;  %v10892_v22 = vpop.permute.xlu2 %10891  ;;  %v17408_v17 = vsel %vm3315_vm7, %v20450_v16, %v10499_v51  ;;  %v17412_v61 = vsel %vm3315_vm7, %v17190_v9, %v10548_v34  ;;  %v7318_v15 = vsel %vm7275_vm12, %v7253_v32, %v10733_v60  ;;  %v17416_v37 = vpop.permute.xlu0 %10806  ;;  %v7239_v9 = vsel %vm3315_vm7, %v17066_v36, %v10538_v5  ;;  %v20454_v16 = vld [vmem:[#allocation34_spill] sm:$0xff] }
 0x6a1   : > { %11016 = vrot.lane.b32.xlu0 %v20445_v43, %s11557_s22  ;;  %11066 = vrot.lane.b32.xlu1 %v20448_v4, %s11558_s23  ;;  %v10894_v45 = vunpack.i.h.bf16 %v10892_v22  ;;  %v10893_v7 = vunpack.i.l.bf16 %v10892_v22  ;;  %v7319_v43 = vsel %vm7275_vm12, %v7254_v46, %v10734_v54  ;;  %v10857_v6 = vpop.permute.xlu1 %10856  ;;  %v20451_v4 = vld [vmem:[#allocation94_spill] sm:$0xff]  ;;  %v7240_v32 = vsel %vm3315_vm7, %v17072_v0, %v10539_v11 }
 0x6a2   : > { %v10589_v38 = vunpack.i.h.bf16 %v20451_v4  ;;  %v10588_v8 = vunpack.i.l.bf16 %v20451_v4  ;;  %v10859_v34 = vunpack.i.h.bf16 %v10857_v6  ;;  %v10858_v54 = vunpack.i.l.bf16 %v10857_v6  ;;  %v20458_v11 = vld [vmem:[#allocation190_spill] sm:$0xff] }
 0x6a3   : > { %v17421_v22 = vsel %vm7340_vm13, %v7318_v15, %v10893_v7  ;;  %v17424_v51 = vsel %vm7340_vm13, %v7319_v43, %v10894_v45  ;;  %v17432_v60 = vsel %vm3315_vm7, %v17194_v19, %v10549_v52  ;;  %v7304_v7 = vsel %vm7275_vm12, %v7239_v9, %v10698_v24  ;;  %v20457_v19 = vld [vmem:[#allocation42_spill] sm:$0xff]  ;;  %v20459_v24 = vld [vmem:[#allocation40_spill] sm:$0xff]  ;;  %v20460_v9 = vld [vmem:[#allocation89_spill] sm:$0xff] }
 0x6a4   : > { %20452 = vst [vmem:[#allocation108_spill] sm:$0xff] %v17421_v22  ;;  %v7305_v15 = vsel %vm7275_vm12, %v7240_v32, %v10699_v2  ;;  %v10749_v45 = vunpack.i.h.bf16 %v17081_v47  ;;  %v10748_v43 = vunpack.i.l.bf16 %v17081_v47  ;;  %v17440_v36 = vsel %vm7340_vm13, %v7304_v7, %v10858_v54  ;;  %v20461_v54 = vld [vmem:[#allocation32_spill] sm:$0xff]  ;;  %v20462_v7 = vld [vmem:[#allocation161_spill] sm:$0xff] }
 0x6a5   : > { %20453 = vst [vmem:[#allocation255_spill] sm:$0xff] %v17424_v51  ;;  %v17443_v0 = vsel %vm7340_vm13, %v7305_v15, %v10859_v34  ;;  %v10564_v2 = vunpack.i.h.bf16 %v20459_v24  ;;  %v10563_v6 = vunpack.i.l.bf16 %v20459_v24  ;;  %v7259_v47 = vsel %vm3315_vm7, %v17078_v49, %v10588_v8  ;;  %v20465_v24 = vld [vmem:[#allocation247_spill] sm:$0xff] }
 0x6a6   : > { %20455 = vst [vmem:[#allocation168_spill] sm:$0xff] %v17440_v36  ;;  %11071 = vrot.lane.b32.xlu2 %v20457_v19, %s11559_s24  ;;  %v7260_v4 = vsel %vm3315_vm7, %v17075_v62, %v10589_v38  ;;  %v10554_v32 = vunpack.i.h.bf16 %v20460_v9  ;;  %v10553_v34 = vunpack.i.l.bf16 %v20460_v9  ;;  %v20463_v15 = vpack.i.bf16 %v20461_v54, %v20462_v7  ;;  %v20464_v19 = vld [vmem:[#allocation13_spill] sm:$0xff] }
 0x6a7   : > { %20456 = vst [vmem:[#allocation253_spill] sm:$0xff] %v17443_v0  ;;  %v10714_v46 = vunpack.i.h.bf16 %v20465_v24  ;;  %v10713_v49 = vunpack.i.l.bf16 %v20465_v24  ;;  %v20466_v62 = vld [vmem:[#allocation21_spill] sm:$0xff]  ;;  %v7324_v9 = vsel %vm7275_vm12, %v7259_v47, %v10748_v43  ;;  %v7325_v36 = vsel %vm7275_vm12, %v7260_v4, %v10749_v45 }
 0x6a8   : > { %v10907_v5 = vpop.permute.xlu2 %10906  ;;  %v10579_v38 = vunpack.i.h.bf16 %v20466_v62  ;;  %v10578_v0 = vunpack.i.l.bf16 %v20466_v62  ;;  %v17469_v54 = vpop.permute.xlu0 %10821  ;;  %v7245_v24 = vsel %vm3315_vm7, %v17097_v3, %v10553_v34  ;;  %v7246_v43 = vsel %vm3315_vm7, %v17101_v41, %v10554_v32  ;;  %v20470_v62 = vld [vmem:[#allocation9_spill] sm:$0xff] }
 0x6a9   : > { %11031 = vrot.lane.b32.xlu0 %v20463_v15, %s11557_s22  ;;  %11081 = vrot.lane.b32.xlu1 %v20464_v19, %s11559_s24  ;;  %v10909_v8 = vunpack.i.h.bf16 %v10907_v5  ;;  %v10908_v52 = vunpack.i.l.bf16 %v10907_v5  ;;  %v10872_v7 = vpop.permute.xlu1 %10871  ;;  %v20467_v15 = vld [vmem:[#allocation170_spill] sm:$0xff]  ;;  %v17485_v4 = vsel %vm3315_vm7, %v17223_v58, %v10563_v6  ;;  %v20471_v32 = vld [vmem:[#allocation125_spill] sm:$0xff]  ;;  %v17504_v34 = vsel %vm3315_vm7, %v17227_v18, %v10564_v2  ;;  %v20476_v18 = vld [vmem:[#allocation107_spill] sm:$0xff] }
 0x6aa   : > { %v10604_v19 = vunpack.i.h.bf16 %v20467_v15  ;;  %v10603_v51 = vunpack.i.l.bf16 %v20467_v15  ;;  %v10874_v45 = vunpack.i.h.bf16 %v10872_v7  ;;  %v10873_v47 = vunpack.i.l.bf16 %v10872_v7  ;;  %v20472_v58 = vld [vmem:[#allocation181_spill] sm:$0xff] }
 0x6ab   : > { %v17474_v22 = vsel %vm7340_vm13, %v7324_v9, %v10908_v52  ;;  %v17477_v5 = vsel %vm7340_vm13, %v7325_v36, %v10909_v8  ;;  %v10568_v15 = vunpack.i.l.bf16 %v20470_v62  ;;  %v7310_v52 = vsel %vm7275_vm12, %v7245_v24, %v10713_v49  ;;  %v20474_v7 = vld [vmem:[#allocation73_spill] sm:$0xff] }
 0x6ac   : > { %20468 = vst [vmem:[#allocation189_spill] sm:$0xff] %v17474_v22  ;;  %v7311_v9 = vsel %vm7275_vm12, %v7246_v43, %v10714_v46  ;;  %v10764_v36 = vunpack.i.h.bf16 %v17170_v50  ;;  %v10763_v8 = vunpack.i.l.bf16 %v17170_v50  ;;  %v17493_v3 = vsel %vm7340_vm13, %v7310_v52, %v10873_v47  ;;  %v20477_v52 = vld [vmem:[#allocation198_spill] sm:$0xff] }
 0x6ad   : > { %20469 = vst [vmem:[#allocation116_spill] sm:$0xff] %v17477_v5  ;;  %v17496_v41 = vsel %vm7340_vm13, %v7311_v9, %v10874_v45  ;;  %v20473_v6 = vpack.i.bf16 %v20471_v32, %v20472_v58  ;;  %v17508_v46 = vsel %vm3315_vm7, %v17279_v14, %v10578_v0  ;;  %v17512_v50 = vsel %vm3315_vm7, %v17283_v13, %v10579_v38  ;;  %v20475_v45 = vld [vmem:[#allocation140_spill] sm:$0xff]  ;;  %v20478_v14 = vld [vmem:[#allocation39_spill] sm:$0xff]  ;;  %v20480_v13 = vld [vmem:[#allocation14_spill] sm:$0xff] }
 0x6ae   : > { %v10569_v49 = vunpack.i.h.bf16 %v20470_v62  ;;  %v10593_v24 = vunpack.i.l.bf16 %v20474_v7  ;;  %v7265_v43 = vsel %vm3315_vm7, %v17107_v33, %v10603_v51  ;;  %v7266_v47 = vsel %vm3315_vm7, %v20475_v45, %v10604_v19  ;;  %v20481_v38 = vld [vmem:[#allocation27_spill] sm:$0xff]  ;;  %v20483_v32 = vld [vmem:[#allocation252_spill] sm:$0xff]  ;;  %v20485_v5 = vld [vmem:[#allocation85_spill] sm:$0xff] }
 0x6af   : > { %11086 = vrot.lane.b32.xlu2 %v20473_v6, %s11558_s23  ;;  %v10619_v2 = vunpack.i.h.bf16 %v20476_v18  ;;  %v20479_v0 = vpack.i.bf16 %v20477_v52, %v20478_v14  ;;  %v20482_v9 = vpack.i.bf16 %v20480_v13, %v20481_v38  ;;  %v10729_v58 = vunpack.i.h.bf16 %v20483_v32  ;;  %v20484_v38 = vld [vmem:[#allocation83_spill] sm:$0xff] }
 0x6b0   : > { %v10922_v62 = vpop.permute.xlu2 %10921  ;;  %v10728_v33 = vunpack.i.l.bf16 %v20483_v32  ;;  %v7251_v19 = vsel %vm3315_vm7, %v17128_v12, %v10568_v15  ;;  %v10618_v45 = vunpack.i.l.bf16 %v20476_v18  ;;  %v7330_v52 = vsel %vm7275_vm12, %v7265_v43, %v10763_v8  ;;  %v20488_v15 = vld [vmem:[#allocation109_spill] sm:$0xff] }
 0x6b1   : > { %11046 = vrot.lane.b32.xlu0 %v20479_v0, %s11557_s22  ;;  %11096 = vrot.lane.b32.xlu1 %v20482_v9, %s11558_s23  ;;  %v10924_v51 = vunpack.i.h.bf16 %v10922_v62  ;;  %v10923_v6 = vunpack.i.l.bf16 %v10922_v62  ;;  %v7331_v14 = vsel %vm7275_vm12, %v7266_v47, %v10764_v36  ;;  %v17536_v0 = vpop.permute.xlu0 %10836  ;;  %v10887_v13 = vpop.permute.xlu1 %10886  ;;  %v7252_v9 = vsel %vm3315_vm7, %v20484_v38, %v10569_v49  ;;  %v20490_v38 = vld [vmem:[#allocation254_spill] sm:$0xff] }
 0x6b2   : > { %v10583_v22 = vunpack.i.l.bf16 %v20485_v5  ;;  %v10584_v12 = vunpack.i.h.bf16 %v20485_v5  ;;  %v10633_v8 = vunpack.i.l.bf16 %v20488_v15  ;;  %v10889_v43 = vunpack.i.h.bf16 %v10887_v13 }
 0x6b3   : > { %v17542_v32 = vsel %vm7340_vm13, %v7330_v52, %v10923_v6  ;;  %v17545_v62 = vsel %vm7340_vm13, %v7331_v14, %v10924_v51  ;;  %v10888_v36 = vunpack.i.l.bf16 %v10887_v13  ;;  %v17552_v18 = vsel %vm3315_vm7, %v17345_v39, %v10593_v24  ;;  %v20489_v13 = vld [vmem:[#allocation12_spill] sm:$0xff] }
 0x6b4   : > { %20486 = vst [vmem:[#allocation88_spill] sm:$0xff] %v17542_v32  ;;  %v7316_v49 = vsel %vm7275_vm12, %v7251_v19, %v10728_v33  ;;  %v7317_v6 = vsel %vm7275_vm12, %v7252_v9, %v10729_v58  ;;  %v10779_v52 = vunpack.i.h.bf16 %v17249_v63  ;;  %v10778_v51 = vunpack.i.l.bf16 %v17249_v63 }
 0x6b5   : > { %20487 = vst [vmem:[#allocation117_spill] sm:$0xff] %v17545_v62  ;;  %v17559_v5 = vsel %vm7340_vm13, %v7316_v49, %v10888_v36  ;;  %v17562_v14 = vsel %vm7340_vm13, %v7317_v6, %v10889_v43  ;;  %v7271_v39 = vsel %vm3315_vm7, %v17153_v55, %v10618_v45  ;;  %v7272_v24 = vsel %vm3315_vm7, %v17149_v27, %v10619_v2  ;;  %v20491_v55 = vld [vmem:[#allocation223_spill] sm:$0xff]  ;;  %v20492_v45 = vld [vmem:[#allocation222_spill] sm:$0xff]  ;;  %v20494_v27 = vld [vmem:[#allocation49_spill] sm:$0xff] }
 0x6b6   : > { %v7257_v58 = vsel %vm3315_vm7, %v17167_v28, %v10583_v22  ;;  %v10634_v63 = vunpack.i.h.bf16 %v20488_v15  ;;  %v7258_v33 = vsel %vm3315_vm7, %v17176_v21, %v10584_v12  ;;  %v7278_v19 = vsel %vm7275_vm12, %v17180_v23, %v10633_v8  ;;  %v20495_v22 = vld [vmem:[#allocation121_spill] sm:$0xff]  ;;  %v20496_v23 = vld [vmem:[#allocation211_spill] sm:$0xff] }
 0x6b7   : > { %11101 = vrot.lane.b32.xlu2 %v20489_v13, %s11559_s24  ;;  %v10694_v9 = vunpack.i.h.bf16 %v20490_v38  ;;  %v10693_v43 = vunpack.i.l.bf16 %v20490_v38  ;;  %v20493_v36 = vpack.i.bf16 %v20491_v55, %v20492_v45  ;;  %v10744_v2 = vunpack.i.h.bf16 %v20495_v22 }
 0x6b8   : > { %v10937_v28 = vpop.permute.xlu2 %10936  ;;  %v10743_v21 = vunpack.i.l.bf16 %v20495_v22  ;;  %v10599_v8 = vunpack.i.h.bf16 %v20496_v23  ;;  %v10598_v49 = vunpack.i.l.bf16 %v20496_v23  ;;  %v7336_v6 = vsel %vm7275_vm12, %v7271_v39, %v10778_v51 }
 0x6b9   : > { %11061 = vrot.lane.b32.xlu0 %v20493_v36, %s11557_s22  ;;  %11111 = vrot.lane.b32.xlu1 %v20494_v27, %s11559_s24  ;;  %v10939_v12 = vunpack.i.h.bf16 %v10937_v28  ;;  %v10938_v15 = vunpack.i.l.bf16 %v10937_v28  ;;  %v7337_v13 = vsel %vm7275_vm12, %v7272_v24, %v10779_v52  ;;  %v10852_v38 = vpop.permute.xlu0 %10851  ;;  %v10902_v55 = vpop.permute.xlu1 %10901  ;;  %v7302_v28 = vsel %vm7275_vm12, %v17363_v30, %v10693_v43 }
 0x6ba   : > { %v10854_v27 = vunpack.i.h.bf16 %v10852_v38  ;;  %v10853_v22 = vunpack.i.l.bf16 %v10852_v38  ;;  %v7303_v23 = vsel %vm7275_vm12, %v17367_v1, %v10694_v9  ;;  %v10904_v47 = vunpack.i.h.bf16 %v10902_v55  ;;  %v20500_v9 = vld [vmem:[#allocation16_spill] sm:$0xff] }
 0x6bb   : > { %v17592_v45 = vsel %vm7340_vm13, %v7336_v6, %v10938_v15  ;;  %v17595_v36 = vsel %vm7340_vm13, %v7337_v13, %v10939_v12  ;;  %v10903_v51 = vunpack.i.l.bf16 %v10902_v55  ;;  %v7322_v52 = vsel %vm7275_vm12, %v7257_v58, %v10743_v21  ;;  %v20499_v58 = vld [vmem:[#allocation172_spill] sm:$0xff] }
 0x6bc   : > { %20497 = vst [vmem:[#allocation75_spill] sm:$0xff] %v17592_v45  ;;  %v7323_v39 = vsel %vm7275_vm12, %v7258_v33, %v10744_v2  ;;  %v17604_v24 = vsel %vm7340_vm13, %v7302_v28, %v10853_v22  ;;  %v17607_v12 = vsel %vm7340_vm13, %v7303_v23, %v10854_v27  ;;  %v10794_v15 = vunpack.i.h.bf16 %v17331_v48  ;;  %v20502_v21 = vld [vmem:[#allocation212_spill] sm:$0xff]  ;;  %v20504_v22 = vld [vmem:[#allocation173_spill] sm:$0xff]  ;;  %v20505_v28 = vld [vmem:[#allocation174_spill] sm:$0xff] }
 0x6bd   : > { %20498 = vst [vmem:[#allocation118_spill] sm:$0xff] %v17595_v36  ;;  %v10793_v6 = vunpack.i.l.bf16 %v17331_v48  ;;  %v17612_v30 = vsel %vm7340_vm13, %v7322_v52, %v10903_v51  ;;  %v17615_v1 = vsel %vm7340_vm13, %v7323_v39, %v10904_v47  ;;  %v20501_v33 = vpack.i.bf16 %v20499_v58, %v20500_v9  ;;  %v20503_v47 = vld [vmem:[#allocation257_spill] sm:$0xff]  ;;  %v20510_v51 = vld [vmem:[#allocation126_spill] sm:$0xff]  ;;  %v20582_v36 = vld [vmem:[#allocation56_spill] sm:$0xff] }
 0x6be   : > { %v7279_v43 = vsel %vm7275_vm12, %v17186_v35, %v10634_v63  ;;  %v7263_v2 = vsel %vm3315_vm7, %v17198_v42, %v10598_v49  ;;  %v10649_v13 = vunpack.i.h.bf16 %v20502_v21  ;;  %v10648_v48 = vunpack.i.l.bf16 %v20502_v21  ;;  %v20507_v35 = vld [vmem:[#allocation113_spill] sm:$0xff]  ;;  %v20508_v63 = vld [vmem:[#allocation68_spill] sm:$0xff]  ;;  %v20511_v58 = vld [vmem:[#allocation234_spill] sm:$0xff] }
 0x6bf   : > { %11116 = vrot.lane.b32.xlu2 %v20501_v33, %s11558_s23  ;;  %v7264_v38 = vsel %vm3315_vm7, %v17202_v44, %v10599_v8  ;;  %v10709_v55 = vunpack.i.h.bf16 %v20503_v47  ;;  %v10708_v27 = vunpack.i.l.bf16 %v20503_v47  ;;  %v20506_v23 = vpack.i.bf16 %v20504_v22, %v20505_v28 }
 0x6c0   : > { %v20509_v42 = vpack.i.bf16 %v20507_v35, %v20508_v63  ;;  %v10952_v49 = vpop.permute.xlu2 %10951  ;;  %v10759_v52 = vunpack.i.h.bf16 %v20510_v51  ;;  %v10758_v44 = vunpack.i.l.bf16 %v20510_v51  ;;  %v10614_v9 = vunpack.i.h.bf16 %v20511_v58 }
 0x6c1   : > { %11076 = vrot.lane.b32.xlu0 %v20506_v23, %s11558_s23  ;;  %v10954_v8 = vunpack.i.h.bf16 %v10952_v49  ;;  %v10953_v39 = vunpack.i.l.bf16 %v10952_v49  ;;  %v10613_v33 = vunpack.i.l.bf16 %v20511_v58  ;;  %v7343_v21 = vsel %vm7340_vm13, %v7278_v19, %v10793_v6  ;;  %v10867_v22 = vpop.permute.xlu0 %10866  ;;  %v10917_v28 = vpop.permute.xlu1 %10916 }
 0x6c2   : > { %11126 = vrot.lane.b32.xlu1 %v20509_v42, %s11558_s23  ;;  %v7344_v47 = vsel %vm7340_vm13, %v7279_v43, %v10794_v15  ;;  %v10869_v63 = vunpack.i.h.bf16 %v10867_v22  ;;  %v10868_v42 = vunpack.i.l.bf16 %v10867_v22  ;;  %v7308_v49 = vsel %vm7275_vm12, %v17412_v61, %v10708_v27 }
 0x6c3   : > { %v17646_v23 = vsel %vm7405_vm14, %v7343_v21, %v10953_v39  ;;  %v17649_v35 = vsel %vm7405_vm14, %v7344_v47, %v10954_v8  ;;  %v7309_v51 = vsel %vm7275_vm12, %v17432_v60, %v10709_v55  ;;  %v10919_v58 = vunpack.i.h.bf16 %v10917_v28  ;;  %v20515_v55 = vld [vmem:[#allocation142_spill] sm:$0xff] }
 0x6c4   : > { %v10918_v19 = vunpack.i.l.bf16 %v10917_v28  ;;  %v7328_v15 = vsel %vm7275_vm12, %v7263_v2, %v10758_v44  ;;  %v7329_v6 = vsel %vm7275_vm12, %v7264_v38, %v10759_v52  ;;  %v17658_v43 = vsel %vm7340_vm13, %v7308_v49, %v10868_v42  ;;  %v20514_v2 = vld [vmem:[#allocation48_spill] sm:$0xff]  ;;  %v20516_v52 = vld [vmem:[#allocation235_spill] sm:$0xff]  ;;  %v20518_v49 = vld [vmem:[#allocation41_spill] sm:$0xff] }
 0x6c5   : > { %v17661_v8 = vsel %vm7340_vm13, %v7309_v51, %v10869_v63  ;;  %v10809_v39 = vunpack.i.h.bf16 %v17416_v37  ;;  %v10808_v21 = vunpack.i.l.bf16 %v17416_v37  ;;  %v17669_v60 = vsel %vm7340_vm13, %v7329_v6, %v10919_v58  ;;  %v20517_v28 = vld [vmem:[#allocation164_spill] sm:$0xff] }
 0x6c6   : > { %v17666_v61 = vsel %vm7340_vm13, %v7328_v15, %v10918_v19  ;;  %20513 = vst [vmem:[#allocation112_spill] sm:$0xff] %v17669_v60  ;;  %v7284_v38 = vsel %vm7275_vm12, %v17206_v40, %v10648_v48  ;;  %v7285_v27 = vsel %vm7275_vm12, %v20515_v55, %v10649_v13  ;;  %v10664_v44 = vunpack.i.h.bf16 %v20516_v52  ;;  %v20519_v40 = vld [vmem:[#allocation19_spill] sm:$0xff] }
 0x6c7   : > { %20512 = vst [vmem:[#allocation192_spill] sm:$0xff] %v17666_v61  ;;  %11131 = vrot.lane.b32.xlu2 %v20514_v2, %s11559_s24  ;;  %v10663_v47 = vunpack.i.l.bf16 %v20516_v52  ;;  %v7269_v37 = vsel %vm3315_vm7, %v17263_v59, %v10613_v33  ;;  %v7270_v22 = vsel %vm3315_vm7, %v17267_v26, %v10614_v9  ;;  %v10724_v63 = vunpack.i.h.bf16 %v20517_v28  ;;  %v20520_v48 = vld [vmem:[#allocation171_spill] sm:$0xff]  ;;  %v20521_v33 = vld [vmem:[#allocation249_spill] sm:$0xff] }
 0x6c8   : > { %v10723_v42 = vunpack.i.l.bf16 %v20517_v28  ;;  %v10967_v13 = vpop.permute.xlu2 %10966  ;;  %v10774_v51 = vunpack.i.h.bf16 %v20520_v48  ;;  %v10773_v58 = vunpack.i.l.bf16 %v20520_v48  ;;  %v10629_v15 = vunpack.i.h.bf16 %v20521_v33  ;;  %v20639_v60 = vld [vmem:[#allocation103_spill] sm:$0xff] }
 0x6c9   : > { %11091 = vrot.lane.b32.xlu0 %v20518_v49, %s11559_s24  ;;  %v10969_v19 = vunpack.i.h.bf16 %v10967_v13  ;;  %v10968_v59 = vunpack.i.l.bf16 %v10967_v13  ;;  %v10628_v26 = vunpack.i.l.bf16 %v20521_v33  ;;  %v7349_v9 = vsel %vm7340_vm13, %v7284_v38, %v10808_v21  ;;  %v10882_v2 = vpop.permute.xlu0 %10881  ;;  %v10932_v55 = vpop.permute.xlu1 %10931  ;;  %v4703_v61 = vld [vmem:[#allocation2 + $0x2d1] sm:$0xff] }
 0x6ca   : > { %11141 = vrot.lane.b32.xlu1 %v20519_v40, %s11559_s24  ;;  %v7350_v6 = vsel %vm7340_vm13, %v7285_v27, %v10809_v39  ;;  %v10884_v49 = vunpack.i.h.bf16 %v10882_v2  ;;  %v10883_v40 = vunpack.i.l.bf16 %v10882_v2  ;;  %v7314_v13 = vsel %vm7275_vm12, %v17485_v4, %v10723_v42 }
 0x6cb   : > { %v17696_v52 = vsel %vm7405_vm14, %v7349_v9, %v10968_v59  ;;  %v17699_v28 = vsel %vm7405_vm14, %v7350_v6, %v10969_v19  ;;  %v7315_v48 = vsel %vm7275_vm12, %v17504_v34, %v10724_v63  ;;  %v10934_v33 = vunpack.i.h.bf16 %v10932_v55  ;;  %v20525_v63 = vld [vmem:[#allocation199_spill] sm:$0xff] }
 0x6cc   : > { %v10933_v21 = vunpack.i.l.bf16 %v10932_v55  ;;  %v7334_v39 = vsel %vm7275_vm12, %v7269_v37, %v10773_v58  ;;  %v7335_v38 = vsel %vm7275_vm12, %v7270_v22, %v10774_v51  ;;  %v17708_v27 = vsel %vm7340_vm13, %v7314_v13, %v10883_v40  ;;  %v20524_v37 = vld [vmem:[#allocation200_spill] sm:$0xff]  ;;  %v20527_v58 = vld [vmem:[#allocation250_spill] sm:$0xff] }
 0x6cd   : > { %v17711_v19 = vsel %vm7340_vm13, %v7315_v48, %v10884_v49  ;;  %v10824_v59 = vunpack.i.h.bf16 %v17469_v54  ;;  %v10823_v9 = vunpack.i.l.bf16 %v17469_v54  ;;  %v17719_v34 = vsel %vm7340_vm13, %v7335_v38, %v10934_v33  ;;  %v20528_v49 = vld [vmem:[#allocation28_spill] sm:$0xff]  ;;  %v20529_v48 = vld [vmem:[#allocation58_spill] sm:$0xff] }
 0x6ce   : > { %v17716_v4 = vsel %vm7340_vm13, %v7334_v39, %v10933_v21  ;;  %20523 = vst [vmem:[#allocation119_spill] sm:$0xff] %v17719_v34  ;;  %v20526_v22 = vpack.i.bf16 %v20524_v37, %v20525_v63  ;;  %v7290_v42 = vsel %vm7275_vm12, %v17271_v53, %v10663_v47  ;;  %v7291_v51 = vsel %vm7275_vm12, %v17275_v10, %v10664_v44  ;;  %v20530_v53 = vld [vmem:[#allocation169_spill] sm:$0xff]  ;;  %v20533_v44 = vld [vmem:[#allocation10_spill] sm:$0xff]  ;;  %v20535_v39 = vld [vmem:[#allocation131_spill] sm:$0xff] }
 0x6cf   : > { %20522 = vst [vmem:[#allocation98_spill] sm:$0xff] %v17716_v4  ;;  %v10679_v6 = vunpack.i.h.bf16 %v20527_v58  ;;  %v10678_v54 = vunpack.i.l.bf16 %v20527_v58  ;;  %v7276_v2 = vsel %vm7275_vm12, %v17289_v57, %v10628_v26  ;;  %v7277_v55 = vsel %vm7275_vm12, %v17300_v31, %v10629_v15  ;;  %v20532_v10 = vld [vmem:[#allocation93_spill] sm:$0xff]  ;;  %v20536_v38 = vld [vmem:[#allocation44_spill] sm:$0xff] }
 0x6d0   : > { %11146 = vrot.lane.b32.xlu2 %v20526_v22, %s11558_s23  ;;  %v10739_v40 = vunpack.i.h.bf16 %v20528_v49  ;;  %v10738_v13 = vunpack.i.l.bf16 %v20528_v49  ;;  %v20531_v47 = vpack.i.bf16 %v20529_v48, %v20530_v53  ;;  %v20534_v33 = vpack.i.bf16 %v20532_v10, %v20533_v44  ;;  %v10982_v21 = vpop.permute.xlu2 %10981 }
 0x6d1   : > { %v10789_v57 = vunpack.i.h.bf16 %v20535_v39  ;;  %v10788_v26 = vunpack.i.l.bf16 %v20535_v39  ;;  %v10984_v31 = vunpack.i.h.bf16 %v10982_v21  ;;  %v10983_v15 = vunpack.i.l.bf16 %v10982_v21  ;;  %v10897_v49 = vpop.permute.xlu0 %10896  ;;  %v10947_v48 = vpop.permute.xlu1 %10946 }
 0x6d2   : > { %11106 = vrot.lane.b32.xlu0 %v20531_v47, %s11558_s23  ;;  %11156 = vrot.lane.b32.xlu1 %v20534_v33, %s11558_s23  ;;  %v10644_v37 = vunpack.i.h.bf16 %v20536_v38  ;;  %v10643_v63 = vunpack.i.l.bf16 %v20536_v38  ;;  %v7355_v22 = vsel %vm7340_vm13, %v7290_v42, %v10823_v9  ;;  %v7356_v58 = vsel %vm7340_vm13, %v7291_v51, %v10824_v59 }
 0x6d3   : > { %v17752_v53 = vsel %vm7405_vm14, %v7355_v22, %v10983_v15  ;;  %v17755_v47 = vsel %vm7405_vm14, %v7356_v58, %v10984_v31  ;;  %v10899_v10 = vunpack.i.h.bf16 %v10897_v49  ;;  %v10898_v44 = vunpack.i.l.bf16 %v10897_v49  ;;  %v20540_v49 = vld [vmem:[#allocation70_spill] sm:$0xff] }
 0x6d4   : > { %v7320_v33 = vsel %vm7275_vm12, %v17508_v46, %v10738_v13  ;;  %v7321_v21 = vsel %vm7275_vm12, %v17512_v50, %v10739_v40  ;;  %v10949_v39 = vunpack.i.h.bf16 %v10947_v48  ;;  %v10948_v9 = vunpack.i.l.bf16 %v10947_v48  ;;  %v20539_v13 = vld [vmem:[#allocation193_spill] sm:$0xff] }
 0x6d5   : > { %v7341_v59 = vsel %vm7340_vm13, %v7276_v2, %v10788_v26  ;;  %v7342_v42 = vsel %vm7340_vm13, %v7277_v55, %v10789_v57  ;;  %v17764_v51 = vsel %vm7340_vm13, %v7320_v33, %v10898_v44  ;;  %v17767_v31 = vsel %vm7340_vm13, %v7321_v21, %v10899_v10  ;;  %v20537_v2 = vld [vmem:[#allocation18_spill] sm:$0xff]  ;;  %v20541_v10 = vld [vmem:[#allocation11_spill] sm:$0xff]  ;;  %v20543_v33 = vld [vmem:[#allocation201_spill] sm:$0xff] }
 0x6d6   : > { %v10839_v15 = vunpack.i.h.bf16 %v17536_v0  ;;  %v10838_v38 = vunpack.i.l.bf16 %v17536_v0  ;;  %v17772_v46 = vsel %vm7405_vm14, %v7341_v59, %v10948_v9  ;;  %v17775_v50 = vsel %vm7405_vm14, %v7342_v42, %v10949_v39 }
 0x6d7   : > { %v20538_v55 = vunpack.i.h.bf16 %v20474_v7  ;;  %v10609_v57 = vunpack.i.h.bf16 %v20539_v13  ;;  %v10608_v26 = vunpack.i.l.bf16 %v20539_v13  ;;  %v7296_v0 = vsel %vm7275_vm12, %v17304_v25, %v10678_v54 }
 0x6d8   : > { %11161 = vrot.lane.b32.xlu2 %v20537_v2, %s11559_s24  ;;  %v7297_v22 = vsel %vm7275_vm12, %v17326_v56, %v10679_v6  ;;  %v7282_v58 = vsel %vm7275_vm12, %v17355_v29, %v10643_v63  ;;  %v10754_v48 = vunpack.i.h.bf16 %v20540_v49  ;;  %v10753_v7 = vunpack.i.l.bf16 %v20540_v49  ;;  %v10997_v44 = vpop.permute.xlu2 %10996  ;;  %v20544_v6 = vld [vmem:[#allocation188_spill] sm:$0xff]  ;;  %v20545_v63 = vld [vmem:[#allocation177_spill] sm:$0xff] }
 0x6d9   : > { %v7262_v40 = vsel %vm3315_vm7, %v17349_v20, %v20538_v55  ;;  %v20542_v20 = vld [vmem:[#allocation55_spill] sm:$0xff]  ;;  %v10804_v21 = vunpack.i.h.bf16 %v20543_v33  ;;  %v10803_v25 = vunpack.i.l.bf16 %v20543_v33  ;;  %v10999_v54 = vunpack.i.h.bf16 %v10997_v44  ;;  %v10912_v42 = vpop.permute.xlu0 %10911  ;;  %v10962_v2 = vpop.permute.xlu1 %10961 }
 0x6da   : > { %11121 = vrot.lane.b32.xlu0 %v20541_v10, %s11559_s24  ;;  %11171 = vrot.lane.b32.xlu1 %v20542_v20, %s11559_s24  ;;  %v10998_v56 = vunpack.i.l.bf16 %v10997_v44  ;;  %v7283_v29 = vsel %vm7275_vm12, %v20544_v6, %v10644_v37  ;;  %v10659_v39 = vunpack.i.h.bf16 %v20545_v63  ;;  %v7361_v9 = vsel %vm7340_vm13, %v7296_v0, %v10838_v38 }
 0x6db   : > { %v7362_v59 = vsel %vm7340_vm13, %v7297_v22, %v10839_v15  ;;  %v10914_v49 = vunpack.i.h.bf16 %v10912_v42  ;;  %v10913_v10 = vunpack.i.l.bf16 %v10912_v42  ;;  %v7326_v20 = vsel %vm7275_vm12, %v17552_v18, %v10753_v7 }
 0x6dc   : > { %v17805_v55 = vsel %vm7405_vm14, %v7361_v9, %v10998_v56  ;;  %v17808_v13 = vsel %vm7405_vm14, %v7362_v59, %v10999_v54  ;;  %v7327_v37 = vsel %vm7275_vm12, %v7262_v40, %v10754_v48  ;;  %v10964_v44 = vunpack.i.h.bf16 %v10962_v2  ;;  %v20548_v56 = vld [vmem:[#allocation106_spill] sm:$0xff]  ;;  %v20555_v9 = vld [vmem:[#allocation219_spill] sm:$0xff] }
 0x6dd   : > { %v10963_v33 = vunpack.i.l.bf16 %v10962_v2  ;;  %v7347_v38 = vsel %vm7340_vm13, %v7282_v58, %v10803_v25  ;;  %v7348_v15 = vsel %vm7340_vm13, %v7283_v29, %v10804_v21  ;;  %v17816_v0 = vsel %vm7340_vm13, %v7326_v20, %v10913_v10  ;;  %v20549_v58 = vld [vmem:[#allocation5_spill] sm:$0xff]  ;;  %v20550_v48 = vld [vmem:[#allocation194_spill] sm:$0xff] }
 0x6de   : > { %20546 = vst [vmem:[#allocation156_spill] sm:$0xff] %v17816_v0  ;;  %v17819_v22 = vsel %vm7340_vm13, %v7327_v37, %v10914_v49  ;;  %v10658_v54 = vunpack.i.l.bf16 %v20545_v63  ;;  %v10768_v6 = vunpack.i.l.bf16 %v20548_v56  ;;  %v17827_v40 = vsel %vm7405_vm14, %v7348_v15, %v10964_v44  ;;  %v20553_v25 = vld [vmem:[#allocation137_spill] sm:$0xff]  ;;  %v20557_v49 = vld [vmem:[#allocation187_spill] sm:$0xff]  ;;  %v20558_v20 = vld [vmem:[#allocation246_spill] sm:$0xff] }
 0x6df   : > { %20547 = vst [vmem:[#allocation145_spill] sm:$0xff] %v17819_v22  ;;  %v17824_v18 = vsel %vm7405_vm14, %v7347_v38, %v10963_v33  ;;  %v20551_v7 = vpack.i.bf16 %v20549_v58, %v20550_v48  ;;  %v20552_v21 = vunpack.i.l.bf16 %v20454_v16  ;;  %v20554_v63 = vunpack.i.h.bf16 %v20454_v16  ;;  %v20559_v44 = vld [vmem:[#allocation248_spill] sm:$0xff]  ;;  %v20560_v15 = vld [vmem:[#allocation69_spill] sm:$0xff]  ;;  %v20562_v48 = vld [vmem:[#allocation15_spill] sm:$0xff] }
 0x6e0   : > { %v10514_v42 = vunpack.i.h.bf16 %v20458_v11  ;;  %v20556_v2 = vunpack.i.l.bf16 %v20458_v11  ;;  %v7267_v37 = vsel %vm3315_vm7, %v20558_v20, %v10608_v26  ;;  %v7268_v33 = vsel %vm3315_vm7, %v20559_v44, %v10609_v57  ;;  %v20561_v58 = vld [vmem:[#allocation160_spill] sm:$0xff]  ;;  %v20564_v11 = vld [vmem:[#allocation218_spill] sm:$0xff]  ;;  %v20568_v20 = vld [vmem:[#allocation111_spill] sm:$0xff] }
 0x6e1   : > { %11176 = vrot.lane.b32.xlu2 %v20551_v7, %s11558_s23  ;;  %v7209_v29 = vsel %vm3185_vm6, %v20553_v25, %v20552_v21  ;;  %v7210_v59 = vsel %vm3185_vm6, %v20555_v9, %v20554_v63  ;;  %v10769_v38 = vunpack.i.h.bf16 %v20548_v56  ;;  %v10818_v16 = vunpack.i.l.bf16 %v20560_v15  ;;  %v20565_v21 = vld [vmem:[#allocation217_spill] sm:$0xff]  ;;  %v11012_v63 = vpop.permute.xlu2 %11011 }
 0x6e2   : > { %v7229_v10 = vsel %vm3315_vm7, %v20557_v49, %v20556_v2  ;;  %v20563_v7 = vpack.i.bf16 %v20561_v58, %v20562_v48  ;;  %v20566_v25 = vpack.i.bf16 %v20564_v11, %v20565_v21  ;;  %v20567_v9 = vld [vmem:[#allocation101_spill] sm:$0xff]  ;;  %v10819_v2 = vunpack.i.h.bf16 %v20560_v15  ;;  %v10977_v11 = vpop.permute.xlu1 %10976 }
 0x6e3   : > { %v10624_v26 = vunpack.i.h.bf16 %v20567_v9  ;;  %v11014_v57 = vunpack.i.h.bf16 %v11012_v63  ;;  %v11013_v49 = vunpack.i.l.bf16 %v11012_v63  ;;  %v10623_v56 = vunpack.i.l.bf16 %v20567_v9 }
 0x6e4   : > { %11136 = vrot.lane.b32.xlu0 %v20563_v7, %s11558_s23  ;;  %11186 = vrot.lane.b32.xlu1 %v20566_v25, %s11558_s23  ;;  %v7288_v44 = vsel %vm7275_vm12, %v20568_v20, %v10658_v54  ;;  %v7289_v58 = vsel %vm7275_vm12, %v17408_v17, %v10659_v39  ;;  %v7332_v48 = vsel %vm7275_vm12, %v7267_v37, %v10768_v6  ;;  %v10927_v7 = vpop.permute.xlu0 %10926  ;;  %v10979_v20 = vunpack.i.h.bf16 %v10977_v11  ;;  %v8673_v37 = vld [vmem:[%s18884_s3 + $0x20] sm:$0x30] }
 0x6e5   : > { %v17870_v21 = vsel %vm7405_vm14, %v17604_v24, %v11013_v49  ;;  %v17874_v15 = vsel %vm7405_vm14, %v17607_v12, %v11014_v57  ;;  %v10929_v25 = vunpack.i.h.bf16 %v10927_v7  ;;  %v10928_v63 = vunpack.i.l.bf16 %v10927_v7  ;;  %v8630_v12 = vld [vmem:[%s18884_s3 + $0x20] sm:$0xf]  ;;  %v20574_v57 = vld [vmem:[#allocation54_spill] sm:$0xff] }
 0x6e6   : > { %20569 = vst [vmem:[#allocation256_spill] sm:$0xff] %v17870_v21  ;;  %v7333_v9 = vsel %vm7275_vm12, %v7268_v33, %v10769_v38  ;;  %v7353_v54 = vsel %vm7340_vm13, %v7288_v44, %v10818_v16  ;;  %v10978_v17 = vunpack.i.l.bf16 %v10977_v11  ;;  %v7354_v39 = vsel %vm7340_vm13, %v7289_v58, %v10819_v2  ;;  %v20573_v33 = vld [vmem:[#allocation127_spill] sm:$0xff]  ;;  %v20575_v44 = vld [vmem:[#allocation184_spill] sm:$0xff] }
 0x6e7   : > { %20570 = vst [vmem:[#allocation146_spill] sm:$0xff] %v17874_v15  ;;  %v17880_v6 = vsel %vm7340_vm13, %v7332_v48, %v10928_v63  ;;  %v17883_v24 = vsel %vm7340_vm13, %v7333_v9, %v10929_v25  ;;  %v10673_v38 = vunpack.i.l.bf16 %v20573_v33  ;;  %v17896_v2 = vsel %vm7405_vm14, %v7354_v39, %v10979_v20  ;;  %v20576_v48 = vld [vmem:[#allocation166_spill] sm:$0xff]  ;;  %v20577_v25 = vld [vmem:[#allocation33_spill] sm:$0xff]  ;;  %v20579_v39 = vld [vmem:[#allocation47_spill] sm:$0xff] }
 0x6e8   : > { %20571 = vst [vmem:[#allocation149_spill] sm:$0xff] %v17880_v6  ;;  %v17893_v16 = vsel %vm7405_vm14, %v7353_v54, %v10978_v17  ;;  %v8631_v49 = vor.u32 %v8673_v37, %v8630_v12  ;;  %v7230_v58 = vsel %vm3315_vm7, %v20575_v44, %v10514_v42  ;;  %v10479_v7 = vunpack.i.h.bf16 %v20576_v48  ;;  %v20578_v17 = vld [vmem:[#allocation104_spill] sm:$0xff]  ;;  %v20580_v12 = vld [vmem:[#allocation25_spill] sm:$0xff] }
 0x6e9   : > { %20572 = vst [vmem:[#allocation214_spill] sm:$0xff] %v17883_v24  ;;  %11191 = vrot.lane.b32.xlu2 %v20574_v57, %s11559_s24  ;;  %v10674_v11 = vunpack.i.h.bf16 %v20573_v33  ;;  %v10783_v63 = vunpack.i.l.bf16 %v20577_v25  ;;  %v10478_v9 = vunpack.i.l.bf16 %v20576_v48  ;;  %v10784_v54 = vunpack.i.h.bf16 %v20577_v25  ;;  %v17912_v37 = vpop.permute.xlu2 %11026  ;;  %v20581_v57 = vld [vmem:[#allocation100_spill] sm:$0xff] }
 0x6ea   : > { %v10833_v20 = vunpack.i.l.bf16 %v20578_v17  ;;  %v7770_v42 = vsel %vm7768_vm15, %v8631_v49, 0  ;;  %v10529_v33 = vunpack.i.h.bf16 %v20581_v57  ;;  %v10528_v44 = vunpack.i.l.bf16 %v20581_v57  ;;  %v10992_v57 = vpop.permute.xlu1 %10991 }
 0x6eb   : > { %v7273_v48 = vsel %vm3315_vm7, %v7209_v29, %v10623_v56  ;;  %v10834_v25 = vunpack.i.h.bf16 %v20578_v17  ;;  %8677 = vmatpush.bf16.msra.mxu2 %v7770_v42  ;;  %7775 = vmatpush.bf16.msra.mxu1 %v7770_v42  ;;  %v10639_v45 = vunpack.i.h.bf16 %v20582_v36  ;;  %v10638_v49 = vunpack.i.l.bf16 %v20582_v36 }
 0x6ec   : > { %11151 = vrot.lane.b32.xlu0 %v20579_v39, %s11559_s24  ;;  %11201 = vrot.lane.b32.xlu1 %v20580_v12, %s11559_s24  ;;  %v8672_v39 = vld [vmem:[%s18884_s3 + $0x18] sm:$0xff]  ;;  %v7274_v12 = vsel %vm3315_vm7, %v7210_v59, %v10624_v26  ;;  %v7294_v34 = vsel %vm7275_vm12, %v7229_v10, %v10673_v38  ;;  %v10942_v4 = vpop.permute.xlu0 %10941  ;;  %v7295_v29 = vsel %vm7275_vm12, %v7230_v58, %v10674_v11  ;;  %v10994_v15 = vunpack.i.h.bf16 %v10992_v57  ;;  %v20583_v26 = vld [vmem:[#allocation130_spill] sm:$0xff]  ;;  %v20586_v58 = vld [vmem:[#allocation157_spill] sm:$0xff] }
 0x6ed   : > { %v7338_v56 = vsel %vm7275_vm12, %v7273_v48, %v10783_v63  ;;  %v10944_v17 = vunpack.i.h.bf16 %v10942_v4  ;;  %v10943_v24 = vunpack.i.l.bf16 %v10942_v4  ;;  %v7339_v6 = vsel %vm7275_vm12, %v7274_v12, %v10784_v54  ;;  %v8671_v4 = vld [vmem:[%s18884_s3 + $0x10] sm:$0xff]  ;;  %v20593_v12 = vld [vmem:[#allocation239_spill] sm:$0xff] }
 0x6ee   : > { %v7359_v42 = vsel %vm7340_vm13, %v7294_v34, %v10833_v20  ;;  %v10993_v59 = vunpack.i.l.bf16 %v10992_v57  ;;  %v10689_v21 = vunpack.i.h.bf16 %v20583_v26  ;;  %v7360_v36 = vsel %vm7340_vm13, %v7295_v29, %v10834_v25  ;;  %v20592_v48 = vld [vmem:[#allocation78_spill] sm:$0xff] }
 0x6ef   : > { %v17933_v10 = vsel %vm7340_vm13, %v7338_v56, %v10943_v24  ;;  %v17936_v38 = vsel %vm7340_vm13, %v7339_v6, %v10944_v17  ;;  %8678 = vmatpush.bf16.msra.mxu2 %v8672_v39  ;;  %7776 = vmatpush.bf16.msra.mxu1 %v8672_v39  ;;  %v10688_v34 = vunpack.i.l.bf16 %v20583_v26  ;;  %v10798_v11 = vunpack.i.l.bf16 %v20586_v58  ;;  %v20589_v24 = vld [vmem:[#allocation225_spill] sm:$0xff]  ;;  %v20590_v6 = vld [vmem:[#allocation224_spill] sm:$0xff]  ;;  %v20594_v57 = vld [vmem:[#allocation138_spill] sm:$0xff] }
 0x6f0   : > { %20584 = vst [vmem:[#allocation213_spill] sm:$0xff] %v17933_v10  ;;  %v17944_v63 = vsel %vm7405_vm14, %v7359_v42, %v10993_v59  ;;  %v17947_v54 = vsel %vm7405_vm14, %v7360_v36, %v10994_v15  ;;  %v20591_v20 = vpack.i.bf16 %v20589_v24, %v20590_v6  ;;  %v10333_v25 = vunpack.i.l.bf16 %v20592_v48  ;;  %v20595_v56 = vld [vmem:[#allocation105_spill] sm:$0xff]  ;;  %v20596_v42 = vld [vmem:[#allocation76_spill] sm:$0xff] }
 0x6f1   : > { %20585 = vst [vmem:[#allocation179_spill] sm:$0xff] %v17936_v38  ;;  %v7215_v39 = vsel %vm3315_vm7, %v20593_v12, %v10478_v9  ;;  %v7216_v29 = vsel %vm3315_vm7, %v20594_v57, %v10479_v7  ;;  %v7235_v17 = vsel %vm3315_vm7, %v20595_v56, %v10528_v44  ;;  %v7236_v15 = vsel %vm3315_vm7, %v20596_v42, %v10529_v33  ;;  %v20597_v59 = vld [vmem:[#allocation165_spill] sm:$0xff]  ;;  %v20602_v9 = vld [vmem:[#allocation203_spill] sm:$0xff]  ;;  %v20603_v7 = vld [vmem:[#allocation202_spill] sm:$0xff]  ;;  %v11042_v44 = vpop.permute.xlu2 %11041 }
 0x6f2   : > { %20587 = vst [vmem:[#allocation158_spill] sm:$0xff] %v17944_v63  ;;  %11206 = vrot.lane.b32.xlu2 %v20591_v20, %s11558_s23  ;;  %v10494_v26 = vunpack.i.h.bf16 %v20597_v59  ;;  %v10799_v36 = vunpack.i.h.bf16 %v20586_v58  ;;  %v20598_v24 = vld [vmem:[#allocation141_spill] sm:$0xff]  ;;  %v20599_v20 = vld [vmem:[#allocation210_spill] sm:$0xff]  ;;  %v20604_v12 = vpack.i.bf16 %v20602_v9, %v20603_v7  ;;  %v7280_v57 = vsel %vm7275_vm12, %v7215_v39, %v10638_v49  ;;  %v11007_v49 = vpop.permute.xlu1 %11006 }
 0x6f3   : > { %20588 = vst [vmem:[#allocation122_spill] sm:$0xff] %v17947_v54  ;;  %v10848_v6 = vunpack.i.l.bf16 %v20598_v24  ;;  %v20600_v38 = vld [vmem:[#allocation209_spill] sm:$0xff]  ;;  %v10849_v33 = vunpack.i.h.bf16 %v20598_v24  ;;  %v11044_v56 = vunpack.i.h.bf16 %v11042_v44  ;;  %v11043_v42 = vunpack.i.l.bf16 %v11042_v44  ;;  %8679 = vmatpush.bf16.msra.mxu2 %v8671_v4  ;;  %7777 = vmatpush.bf16.msra.mxu1 %v8671_v4  ;;  %v4704_v54 = vld [vmem:[#allocation2 + $0x2d9] sm:$0xff] }
 0x6f4   : > { %v20601_v10 = vpack.i.bf16 %v20599_v20, %v20600_v38  ;;  %11216 = vrot.lane.b32.xlu1 %v20604_v12, %s11558_s23  ;;  %v8670_v58 = vld [vmem:[%s18884_s3 + $0x8] sm:$0xff]  ;;  %v7300_v38 = vsel %vm7275_vm12, %v7235_v17, %v10688_v34  ;;  %v7301_v20 = vsel %vm7275_vm12, %v7236_v15, %v10689_v21  ;;  %v7345_v9 = vsel %vm7340_vm13, %v7280_v57, %v10798_v11  ;;  %v10957_v7 = vpop.permute.xlu0 %10956 }
 0x6f5   : > { %v17984_v39 = vsel %vm7405_vm14, %v17708_v27, %v11043_v42  ;;  %v17988_v24 = vsel %vm7405_vm14, %v17711_v19, %v11044_v56  ;;  %v10959_v12 = vunpack.i.h.bf16 %v10957_v7  ;;  %v10958_v4 = vunpack.i.l.bf16 %v10957_v7  ;;  %v8669_v19 = vld [vmem:[%s18884_s3] sm:$0xff] }
 0x6f6   : > { %11166 = vrot.lane.b32.xlu0 %v20601_v10, %s11558_s23  ;;  %v7281_v10 = vsel %vm7275_vm12, %v7216_v29, %v10639_v45  ;;  %v7365_v34 = vsel %vm7340_vm13, %v7300_v38, %v10848_v6  ;;  %v11009_v29 = vunpack.i.h.bf16 %v11007_v49  ;;  %v11008_v21 = vunpack.i.l.bf16 %v11007_v49  ;;  %v20609_v56 = vld [vmem:[#allocation120_spill] sm:$0xff] }
 0x6f7   : > { %v7346_v45 = vsel %vm7340_vm13, %v7281_v10, %v10799_v36  ;;  %v10493_v11 = vunpack.i.l.bf16 %v20597_v59  ;;  %v7366_v17 = vsel %vm7340_vm13, %v7301_v20, %v10849_v33  ;;  %v17995_v15 = vsel %vm7405_vm14, %v7345_v9, %v10958_v4  ;;  %8680 = vmatpush.bf16.msra.mxu2 %v8670_v58  ;;  %7778 = vmatpush.bf16.msra.mxu1 %v8670_v58  ;;  %v20605_v36 = vld [vmem:[#allocation191_spill] sm:$0xff]  ;;  %v20608_v33 = vld [vmem:[#allocation24_spill] sm:$0xff]  ;;  %v20613_v20 = vld [vmem:[#allocation233_spill] sm:$0xff] }
 0x6f8   : > { %v17998_v27 = vsel %vm7405_vm14, %v7346_v45, %v10959_v12  ;;  %v10654_v6 = vunpack.i.h.bf16 %v20605_v36  ;;  %v10653_v44 = vunpack.i.l.bf16 %v20605_v36  ;;  %v18006_v59 = vsel %vm7405_vm14, %v7365_v34, %v11008_v21  ;;  %v20611_v10 = vld [vmem:[#allocation232_spill] sm:$0xff]  ;;  %v20617_v36 = vld [vmem:[#allocation17_spill] sm:$0xff] }
 0x6f9   : > { %20606 = vst [vmem:[#allocation80_spill] sm:$0xff] %v18006_v59  ;;  %v18009_v57 = vsel %vm7405_vm14, %v7366_v17, %v11009_v29  ;;  %v20610_v42 = vunpack.i.h.bf16 %v20609_v56  ;;  %v20612_v58 = vunpack.i.l.bf16 %v20609_v56  ;;  %v20614_v7 = vld [vmem:[#allocation176_spill] sm:$0xff]  ;;  %v20615_v45 = vunpack.i.h.bf16 %v20592_v48  ;;  %v20619_v56 = vld [vmem:[#allocation229_spill] sm:$0xff] }
 0x6fa   : > { %20607 = vst [vmem:[#allocation123_spill] sm:$0xff] %v18009_v57  ;;  %11221 = vrot.lane.b32.xlu2 %v20608_v33, %s11559_s24  ;;  %v10189_v49 = vunpack.i.h.bf16 %v20614_v7  ;;  %v10188_v12 = vunpack.i.l.bf16 %v20614_v7  ;;  %v20616_v29 = vld [vmem:[#allocation84_spill] sm:$0xff]  ;;  %v20618_v33 = vld [vmem:[#allocation231_spill] sm:$0xff] }
 0x6fb   : > { %v7094_v38 = vsel %vm3055_vm3, %v20611_v10, %v20610_v42  ;;  %v7093_v9 = vsel %vm3055_vm3, %v20613_v20, %v20612_v58  ;;  %v10814_v21 = vunpack.i.h.bf16 %v20616_v29  ;;  %v10813_v17 = vunpack.i.l.bf16 %v20616_v29  ;;  %v11057_v10 = vpop.permute.xlu2 %11056  ;;  %8681 = vmatpush.bf16.msra.mxu2 %v8669_v19  ;;  %7779 = vmatpush.bf16.msra.mxu1 %v8669_v19 }
 0x6fc   : > { %v7157_v4 = vsel %vm3185_vm6, %v7093_v9, %v10333_v25  ;;  %v7158_v34 = vsel %vm3185_vm6, %v7094_v38, %v20615_v45  ;;  %v20620_v42 = vpack.i.bf16 %v20618_v33, %v20619_v56  ;;  %v11059_v48 = vunpack.i.h.bf16 %v11057_v10  ;;  %v20621_v38 = vld [vmem:[#allocation148_spill] sm:$0xff]  ;;  %v11022_v33 = vpop.permute.xlu1 %11021 }
 0x6fd   : > { %v7221_v58 = vsel %vm3315_vm7, %v7157_v4, %v10493_v11  ;;  %v7222_v25 = vsel %vm3315_vm7, %v7158_v34, %v10494_v26  ;;  %v11058_v20 = vunpack.i.l.bf16 %v11057_v10  ;;  %v10349_v9 = vunpack.i.h.bf16 %v20621_v38  ;;  %v20622_v10 = vld [vmem:[#allocation51_spill] sm:$0xff] }
 0x6fe   : > { %11181 = vrot.lane.b32.xlu0 %v20617_v36, %s11559_s24  ;;  %11231 = vrot.lane.b32.xlu1 %v20620_v42, %s11558_s23  ;;  %v10348_v7 = vunpack.i.l.bf16 %v20621_v38  ;;  %v7286_v45 = vsel %vm7275_vm12, %v7221_v58, %v10653_v44  ;;  %v7287_v29 = vsel %vm7275_vm12, %v7222_v25, %v10654_v6  ;;  %v10972_v36 = vpop.permute.xlu0 %10971  ;;  %v18047_v26 = vsel %vm7405_vm14, %v17767_v31, %v11059_v48  ;;  %v20623_v31 = vld [vmem:[#allocation63_spill] sm:$0xff]  ;;  %v20624_v38 = vld [vmem:[#allocation46_spill] sm:$0xff] }
 0x6ff   : > { %v18043_v56 = vsel %vm7405_vm14, %v17764_v51, %v11058_v20  ;;  %v10974_v11 = vunpack.i.h.bf16 %v10972_v36  ;;  %v10973_v19 = vunpack.i.l.bf16 %v10972_v36  ;;  %v7351_v4 = vsel %vm7340_vm13, %v7286_v45, %v10813_v17  ;;  %v20629_v36 = vld [vmem:[#allocation115_spill] sm:$0xff] }
 0x700   : > { %v7352_v34 = vsel %vm7340_vm13, %v7287_v29, %v10814_v21  ;;  %v11024_v42 = vunpack.i.h.bf16 %v11022_v33  ;;  %v11023_v44 = vunpack.i.l.bf16 %v11022_v33  ;;  %v10509_v6 = vunpack.i.h.bf16 %v20622_v10  ;;  %v20626_v21 = vld [vmem:[#allocation97_spill] sm:$0xff] }
 0x701   : > { %v10508_v58 = vunpack.i.l.bf16 %v20622_v10  ;;  %v18054_v25 = vsel %vm7405_vm14, %v7351_v4, %v10973_v19  ;;  %v18057_v51 = vsel %vm7405_vm14, %v7352_v34, %v10974_v11  ;;  %v10669_v48 = vunpack.i.h.bf16 %v20623_v31  ;;  %v20628_v29 = vld [vmem:[#allocation61_spill] sm:$0xff]  ;;  %v20630_v19 = vld [vmem:[#allocation244_spill] sm:$0xff] }
 0x702   : > { %v10668_v20 = vunpack.i.l.bf16 %v20623_v31  ;;  %v18063_v17 = vsel %vm7405_vm14, %v20624_v38, %v11023_v44  ;;  %v18067_v45 = vsel %vm7405_vm14, %v20626_v21, %v11024_v42  ;;  %11236 = vrot.lane.b32.xlu2 %v20628_v29, %s11559_s24  ;;  %v10044_v33 = vunpack.i.h.bf16 %v20629_v36  ;;  %v20631_v34 = vld [vmem:[#allocation245_spill] sm:$0xff]  ;;  %v20632_v38 = vld [vmem:[#allocation143_spill] sm:$0xff] }
 0x703   : > { %20625 = vst [vmem:[#allocation124_spill] sm:$0xff] %v18063_v17  ;;  %v10043_v11 = vunpack.i.l.bf16 %v20629_v36  ;;  %v7100_v4 = vsel %vm3055_vm3, %v20630_v19, %v10189_v49  ;;  %v7099_v10 = vsel %vm3055_vm3, %v20631_v34, %v10188_v12  ;;  %v10829_v42 = vunpack.i.h.bf16 %v20632_v38  ;;  %v20633_v29 = vld [vmem:[#allocation183_spill] sm:$0xff]  ;;  %v18087_v49 = vpop.permute.xlu2 %11071  ;;  %v20637_v19 = vld [vmem:[#allocation62_spill] sm:$0xff]  ;;  %v20638_v34 = vld [vmem:[#allocation81_spill] sm:$0xff] }
 0x704   : > { %20627 = vst [vmem:[#allocation82_spill] sm:$0xff] %v18067_v45  ;;  %v7163_v44 = vsel %vm3185_vm6, %v7099_v10, %v10348_v7  ;;  %v7164_v31 = vsel %vm3185_vm6, %v7100_v4, %v10349_v9  ;;  %v10828_v21 = vunpack.i.l.bf16 %v20632_v38  ;;  %v20634_v45 = vld [vmem:[#allocation147_spill] sm:$0xff]  ;;  %v10204_v12 = vunpack.i.h.bf16 %v20637_v19 }
 0x705   : > { %v20635_v17 = vpack.i.bf16 %v20633_v29, %v20634_v45  ;;  %v20636_v36 = vld [vmem:[#allocation23_spill] sm:$0xff]  ;;  %v10203_v7 = vunpack.i.l.bf16 %v20637_v19  ;;  %v7227_v9 = vsel %vm3315_vm7, %v7163_v44, %v10508_v58  ;;  %v7228_v4 = vsel %vm3315_vm7, %v7164_v31, %v10509_v6 }
 0x706   : > { %11246 = vrot.lane.b32.xlu1 %v20636_v36, %s11559_s24  ;;  %v10364_v10 = vunpack.i.h.bf16 %v20638_v34  ;;  %v10363_v38 = vunpack.i.l.bf16 %v20638_v34  ;;  %v7292_v45 = vsel %vm7275_vm12, %v7227_v9, %v10668_v20  ;;  %v10987_v29 = vpop.permute.xlu0 %10986  ;;  %v11037_v36 = vpop.permute.xlu1 %11036  ;;  %v10524_v19 = vunpack.i.h.bf16 %v20639_v60 }
 0x707   : > { %11196 = vrot.lane.b32.xlu0 %v20635_v17, %s11558_s23  ;;  %v7293_v17 = vsel %vm7275_vm12, %v7228_v4, %v10669_v48  ;;  %v10989_v57 = vunpack.i.h.bf16 %v10987_v29  ;;  %v10988_v59 = vunpack.i.l.bf16 %v10987_v29  ;;  %v11039_v62 = vunpack.i.h.bf16 %v11037_v36  ;;  %v20640_v48 = vld [vmem:[#allocation144_spill] sm:$0xff]  ;;  %v20641_v4 = vld [vmem:[#allocation45_spill] sm:$0xff]  ;;  %v11536_v29 = vld [vmem:[#allocation2 + $0x110] sm:$0xff] }
 0x708   : > { %v11038_v32 = vunpack.i.l.bf16 %v11037_v36  ;;  %v10523_v58 = vunpack.i.l.bf16 %v20639_v60  ;;  %v7357_v6 = vsel %vm7340_vm13, %v7292_v45, %v10828_v21  ;;  %v7358_v44 = vsel %vm7340_vm13, %v7293_v17, %v10829_v42  ;;  %v11537_v21 = vld [vmem:[#allocation2 + $0x108] sm:$0xff]  ;;  %v20642_v45 = vld [vmem:[#allocation204_spill] sm:$0xff] }
 0x709   : > { %v18102_v31 = vsel %vm7405_vm14, %v7357_v6, %v10988_v59  ;;  %v18105_v20 = vsel %vm7405_vm14, %v7358_v44, %v10989_v57  ;;  %v18113_v34 = vsel %vm7405_vm14, %v20641_v4, %v11039_v62  ;;  %v7042_v60 = vsel %vm2925_vm1, %v11536_v29, %v10044_v33  ;;  %v20643_v57 = vld [vmem:[#allocation238_spill] sm:$0xff]  ;;  %v20644_v36 = vld [vmem:[#allocation237_spill] sm:$0xff] }
 0x70a   : > { %v18109_v9 = vsel %vm7405_vm14, %v20640_v48, %v11038_v32  ;;  %v7041_v42 = vsel %vm2925_vm1, %v11537_v21, %v10043_v11  ;;  %v10684_v59 = vunpack.i.h.bf16 %v20642_v45  ;;  %v10683_v17 = vunpack.i.l.bf16 %v20642_v45  ;;  %v20646_v48 = vld [vmem:[#allocation251_spill] sm:$0xff]  ;;  %v20647_v29 = vld [vmem:[#allocation53_spill] sm:$0xff]  ;;  %v20648_v21 = vld [vmem:[#allocation60_spill] sm:$0xff] }
 0x70b   : > { %v20645_v6 = vpack.i.bf16 %v20643_v57, %v20644_v36  ;;  %v7106_v32 = vsel %vm3055_vm3, %v7042_v60, %v10204_v12  ;;  %v7105_v62 = vsel %vm3055_vm3, %v7041_v42, %v10203_v7  ;;  %v10844_v4 = vunpack.i.h.bf16 %v20646_v48  ;;  %v18133_v45 = vpop.permute.xlu2 %11086  ;;  %v4733_v60 = vld [vmem:[#allocation2 + $0x10a] sm:$0xff] }
 0x70c   : > { %v7169_v44 = vsel %vm3185_vm6, %v7105_v62, %v10363_v38  ;;  %v7170_v33 = vsel %vm3185_vm6, %v7106_v32, %v10364_v10  ;;  %v10843_v11 = vunpack.i.l.bf16 %v20646_v48  ;;  %v4734_v38 = vld [vmem:[#allocation2 + $0x112] sm:$0xff]  ;;  %vm7671_vm3 = vcmask 621568  }
 0x70d   : > { %11251 = vrot.lane.b32.xlu2 %v20645_v6, %s11557_s22  ;;  %v7233_v12 = vsel %vm3315_vm7, %v7169_v44, %v10523_v58  ;;  %v7234_v7 = vsel %vm3315_vm7, %v7170_v33, %v10524_v19  ;;  %v4699_v6 = vld [vmem:[#allocation2 + $0x2a1] sm:$0xff]  ;;  %v11265_v44 = vpack.i.bf16 %v4734_v38, %v4733_v60  ;;  %v11028_v60 = vunpack.i.l.bf16 %v17912_v37 }
 0x70e   : > { %11261 = vrot.lane.b32.xlu1 %v20648_v21, %s11559_s24  ;;  %v7298_v10 = vsel %vm7275_vm12, %v7233_v12, %v10683_v17  ;;  %v7299_v42 = vsel %vm7275_vm12, %v7234_v7, %v10684_v59  ;;  %v11002_v57 = vpop.permute.xlu0 %11001  ;;  %v11052_v36 = vpop.permute.xlu1 %11051  ;;  %v4700_v21 = vld [vmem:[#allocation2 + $0x2a9] sm:$0xff]  ;;  %v20651_v17 = vld [vmem:[#allocation108_spill] sm:$0xff]  ;;  %v20652_v7 = vld [vmem:[#allocation255_spill] sm:$0xff] }
 0x70f   : > { %11211 = vrot.lane.b32.xlu0 %v20647_v29, %s11559_s24  ;;  %v11004_v32 = vunpack.i.h.bf16 %v11002_v57  ;;  %v11003_v62 = vunpack.i.l.bf16 %v11002_v57  ;;  %v11054_v48 = vunpack.i.h.bf16 %v11052_v36  ;;  %v11053_v29 = vunpack.i.l.bf16 %v11052_v36  ;;  %v4767_v36 = vld [vmem:[#allocation2 + $0x2d2] sm:$0xff] }
 0x710   : > { %v7363_v58 = vsel %vm7340_vm13, %v7298_v10, %v10843_v11  ;;  %v7364_v19 = vsel %vm7340_vm13, %v7299_v42, %v10844_v4  ;;  %v11225_v11 = vpack.i.bf16 %v4700_v21, %v4699_v6  ;;  %v11275_v10 = vpack.i.bf16 %v4704_v54, %v4703_v61  ;;  %v4731_v42 = vld [vmem:[#allocation2 + $0xf2] sm:$0xff] }
 0x711   : > { %v18142_v33 = vsel %vm7405_vm14, %v7363_v58, %v11003_v62  ;;  %v18145_v59 = vsel %vm7405_vm14, %v7364_v19, %v11004_v32  ;;  %v18149_v12 = vsel %vm7405_vm14, %v20651_v17, %v11053_v29  ;;  %v18153_v57 = vsel %vm7405_vm14, %v20652_v7, %v11054_v48  ;;  %v4768_v32 = vld [vmem:[#allocation2 + $0x2da] sm:$0xff]  ;;  %v4735_v19 = vld [vmem:[#allocation2 + $0x122] sm:$0xff] }
 0x712   : > { %20649 = vst [vmem:[#allocation150_spill] sm:$0xff] %v18142_v33  ;;  %v11029_v4 = vunpack.i.h.bf16 %v17912_v37  ;;  %v4732_v62 = vld [vmem:[#allocation2 + $0xfa] sm:$0xff]  ;;  %v11074_v48 = vunpack.i.h.bf16 %v18087_v49  ;;  %v11073_v29 = vunpack.i.l.bf16 %v18087_v49  ;;  %v7438_v17 = vsel %vm7405_vm14, %v17658_v43, %v11028_v60  ;;  %v20655_v33 = vld [vmem:[#allocation253_spill] sm:$0xff] }
 0x713   : > { %20650 = vst [vmem:[#allocation86_spill] sm:$0xff] %v18145_v59  ;;  %v18160_v38 = vpop.permute.xlu2 %11101  ;;  %v20653_v59 = vld [vmem:[#allocation168_spill] sm:$0xff] }
 0x714   : > { %v7439_v7 = vsel %vm7405_vm14, %v17661_v8, %v11029_v4 }
 0x715   : > { %11266 = vrot.lane.b32.xlu2 %v11265_v44, %s11558_s23  ;;  %v4736_v44 = vld [vmem:[#allocation2 + $0x12a] sm:$0xff] }
 0x716   : > { %11276 = vrot.lane.b32.xlu1 %v11275_v10, %s11557_s22  ;;  %v11017_v6 = vpop.permute.xlu0 %11016  ;;  %v11067_v61 = vpop.permute.xlu1 %11066  ;;  %v11240_v10 = vpack.i.bf16 %v4732_v62, %v4731_v42  ;;  %v11290_v43 = vpack.i.bf16 %v4736_v44, %v4735_v19  ;;  %v4769_v62 = vld [vmem:[#allocation2 + $0x2ea] sm:$0xff]  ;;  %v11103_v19 = vunpack.i.l.bf16 %v18160_v38 }
 0x717   : > { %11226 = vrot.lane.b32.xlu0 %v11225_v11, %s11557_s22  ;;  %v11019_v54 = vunpack.i.h.bf16 %v11017_v6  ;;  %v11018_v37 = vunpack.i.l.bf16 %v11017_v6  ;;  %v11069_v21 = vunpack.i.h.bf16 %v11067_v61  ;;  %v11068_v58 = vunpack.i.l.bf16 %v11067_v61 }
 0x718   : > { %v11280_v11 = vpack.i.bf16 %v4768_v32, %v4767_v36  ;;  %v4765_v36 = vld [vmem:[#allocation2 + $0x2ba] sm:$0xff]  ;;  %v4766_v32 = vld [vmem:[#allocation2 + $0x2c2] sm:$0xff] }
 0x719   : > { %v18170_v49 = vsel %vm7405_vm14, %v20653_v59, %v11018_v37  ;;  %v18174_v63 = vsel %vm7405_vm14, %v20655_v33, %v11019_v54  ;;  %v7503_v6 = vsel %vm7470_vm0, %v7438_v17, %v11068_v58  ;;  %v7504_v61 = vsel %vm7470_vm0, %v7439_v7, %v11069_v21 }
 0x71a   : > { %20654 = vst [vmem:[#allocation221_spill] sm:$0xff] %v18170_v49  ;;  %v7568_v60 = vsel %vm7535_vm2, %v7503_v6, %v11073_v29  ;;  %v7569_v8 = vsel %vm7535_vm2, %v7504_v61, %v11074_v48  ;;  %v4770_v29 = vld [vmem:[#allocation2 + $0x2f2] sm:$0xff]  ;;  %v11255_v54 = vpack.i.bf16 %v4766_v32, %v4765_v36  ;;  %v11104_v58 = vunpack.i.h.bf16 %v18160_v38 }
 0x71b   : > { %20656 = vst [vmem:[#allocation220_spill] sm:$0xff] %v18174_v63  ;;  %v7616_v4 = vpack.c.bf16 %v7569_v8, %v7568_v60  ;;  %v18183_v59 = vpop.permute.xlu2 %11116  ;;  %v20657_v48 = vld [vmem:[#allocation30_spill] sm:$0xff]  ;;  %v11305_v37 = vpack.i.bf16 %v4770_v29, %v4769_v62  ;;  %v20658_v8 = vld [vmem:[#allocation67_spill] sm:$0xff] }
 0x71c   : > { %v4708_v62 = vld [vmem:[#allocation2 + $0x309] sm:$0xff] }
 0x71d   : > { %11281 = vrot.lane.b32.xlu2 %v11280_v11, %s11558_s23  ;;  %8648 = vmatmul.msk.bf16.vlgmr.msra.gmra.mxu2 %vm7671_vm3, %v7616_v4 }
 0x71e   : > { %11291 = vrot.lane.b32.xlu1 %v11290_v43, %s11558_s23  ;;  %v18186_v33 = vpop.permute.xlu0 %11031  ;;  %v18188_v42 = vpop.permute.xlu1 %11081 }
 0x71f   : > { %11241 = vrot.lane.b32.xlu0 %v11240_v10, %s11558_s23 }
 0x723   : > { %v18194_v21 = vpop.permute.xlu2 %11131 }
 0x725   : > { %11296 = vrot.lane.b32.xlu2 %v20657_v48, %s11559_s24 }
 0x726   : > { %11306 = vrot.lane.b32.xlu1 %v11305_v37, %s11558_s23  ;;  %v11047_v44 = vpop.permute.xlu0 %11046  ;;  %v11097_v17 = vpop.permute.xlu1 %11096 }
 0x727   : > { %11256 = vrot.lane.b32.xlu0 %v11255_v54, %s11558_s23  ;;  %v11049_v7 = vunpack.i.h.bf16 %v11047_v44  ;;  %v11048_v11 = vunpack.i.l.bf16 %v11047_v44  ;;  %v11099_v10 = vunpack.i.h.bf16 %v11097_v17  ;;  %v11098_v6 = vunpack.i.l.bf16 %v11097_v17  ;;  %v20661_v17 = vld [vmem:[#allocation59_spill] sm:$0xff] }
 0x729   : > { %v18200_v61 = vsel %vm7405_vm14, %v17559_v5, %v11048_v11  ;;  %v18204_v43 = vsel %vm7405_vm14, %v17562_v14, %v11049_v7  ;;  %v7473_v60 = vsel %vm7470_vm0, %v17646_v23, %v11098_v6  ;;  %v7474_v38 = vsel %vm7470_vm0, %v17649_v35, %v11099_v10  ;;  %v20659_v14 = vld [vmem:[#allocation31_spill] sm:$0xff]  ;;  %v20660_v23 = vld [vmem:[#allocation29_spill] sm:$0xff]  ;;  %v20662_v7 = vld [vmem:[#allocation66_spill] sm:$0xff] }
 0x72a   : > { %v18213_v4 = vsel %vm7535_vm2, %v7473_v60, %v11103_v19  ;;  %v18216_v36 = vsel %vm7535_vm2, %v7474_v38, %v11104_v58  ;;  %v4707_v35 = vld [vmem:[#allocation2 + $0x301] sm:$0xff]  ;;  %v4739_v10 = vld [vmem:[#allocation2 + $0x152] sm:$0xff]  ;;  %v4705_v60 = vld [vmem:[#allocation2 + $0x2e9] sm:$0xff]  ;;  %v11033_v5 = vunpack.i.l.bf16 %v18186_v33 }
 0x72b   : > { %v18224_v32 = vpop.permute.xlu2 %11146  ;;  %v11325_v58 = vpack.i.bf16 %v4708_v62, %v4707_v35  ;;  %v4740_v6 = vld [vmem:[#allocation2 + $0x15a] sm:$0xff]  ;;  %v4706_v38 = vld [vmem:[#allocation2 + $0x2f1] sm:$0xff] }
 0x72c   : > { %v11340_v63 = vpack.i.bf16 %v4740_v6, %v4739_v10  ;;  %v11300_v49 = vpack.i.bf16 %v4706_v38, %v4705_v60  ;;  %v11089_v60 = vunpack.i.h.bf16 %v18133_v45 }
 0x72d   : > { %11311 = vrot.lane.b32.xlu2 %v20658_v8, %s11559_s24  ;;  %v11083_v8 = vunpack.i.l.bf16 %v18188_v42 }
 0x72e   : > { %11321 = vrot.lane.b32.xlu1 %v20660_v23, %s11559_s24  ;;  %v11062_v29 = vpop.permute.xlu0 %11061  ;;  %v18226_v48 = vpop.permute.xlu1 %11111 }
 0x72f   : > { %11271 = vrot.lane.b32.xlu0 %v20659_v14, %s11559_s24  ;;  %v11064_v54 = vunpack.i.h.bf16 %v11062_v29  ;;  %v11063_v37 = vunpack.i.l.bf16 %v11062_v29  ;;  %v11133_v14 = vunpack.i.l.bf16 %v18194_v21 }
 0x731   : > { %v18230_v19 = vsel %vm7405_vm14, %v17612_v30, %v11063_v37  ;;  %v18234_v44 = vsel %vm7405_vm14, %v17615_v1, %v11064_v54  ;;  %v11084_v30 = vunpack.i.h.bf16 %v18188_v42  ;;  %v11134_v1 = vunpack.i.h.bf16 %v18194_v21 }
 0x733   : > { %v18241_v11 = vpop.permute.xlu2 %11161 }
 0x735   : > { %11326 = vrot.lane.b32.xlu2 %v11325_v58, %s11557_s22  ;;  %v4709_v58 = vld [vmem:[#allocation2 + $0x319] sm:$0xff] }
 0x736   : > { %11336 = vrot.lane.b32.xlu1 %v20662_v7, %s11559_s24  ;;  %v11077_v23 = vpop.permute.xlu0 %11076  ;;  %v11127_v35 = vpop.permute.xlu1 %11126  ;;  %v11034_v7 = vunpack.i.h.bf16 %v18186_v33 }
 0x737   : > { %11286 = vrot.lane.b32.xlu0 %v20661_v17, %s11559_s24  ;;  %v11079_v62 = vunpack.i.h.bf16 %v11077_v23  ;;  %v11078_v29 = vunpack.i.l.bf16 %v11077_v23  ;;  %v11129_v54 = vunpack.i.h.bf16 %v11127_v35  ;;  %v11128_v37 = vunpack.i.l.bf16 %v11127_v35  ;;  %v4710_v17 = vld [vmem:[#allocation2 + $0x321] sm:$0xff] }
 0x738   : > { %v11350_v35 = vpack.i.bf16 %v4710_v17, %v4709_v58 }
 0x739   : > { %v7471_v42 = vsel %vm7470_vm0, %v17772_v46, %v11078_v29  ;;  %v7472_v21 = vsel %vm7470_vm0, %v17775_v50, %v11079_v62  ;;  %v7509_v22 = vsel %vm7470_vm0, %v17984_v39, %v11128_v37  ;;  %v7510_v23 = vsel %vm7470_vm0, %v17988_v24, %v11129_v54  ;;  %v4774_v24 = vld [vmem:[#allocation2 + $0x322] sm:$0xff]  ;;  %v4741_v29 = vld [vmem:[#allocation2 + $0x16a] sm:$0xff] }
 0x73a   : > { %v7536_v0 = vsel %vm7535_vm2, %v7471_v42, %v11083_v8  ;;  %v7537_v33 = vsel %vm7535_vm2, %v7472_v21, %v11084_v30  ;;  %v18261_v10 = vsel %vm7535_vm2, %v7509_v22, %v11133_v14  ;;  %v18264_v6 = vsel %vm7535_vm2, %v7510_v23, %v11134_v1  ;;  %v4737_v8 = vld [vmem:[#allocation2 + $0x13a] sm:$0xff]  ;;  %v4738_v62 = vld [vmem:[#allocation2 + $0x142] sm:$0xff]  ;;  %v4772_v23 = vld [vmem:[#allocation2 + $0x30a] sm:$0xff] }
 0x73b   : > { %v7600_v46 = vpack.c.bf16 %v7537_v33, %v7536_v0  ;;  %v18268_v50 = vpop.permute.xlu2 %11176  ;;  %v7440_v39 = vsel %vm7405_vm14, %v17493_v3, %v11033_v5  ;;  %v7441_v22 = vsel %vm7405_vm14, %v17496_v41, %v11034_v7  ;;  %v4773_v0 = vld [vmem:[#allocation2 + $0x31a] sm:$0xff]  ;;  %v4742_v3 = vld [vmem:[#allocation2 + $0x172] sm:$0xff]  ;;  %v4771_v21 = vld [vmem:[#allocation2 + $0x302] sm:$0xff] }
 0x73c   : > { %v11355_v5 = vpack.i.bf16 %v4774_v24, %v4773_v0  ;;  %v7506_v54 = vsel %vm7470_vm0, %v7441_v22, %v11089_v60  ;;  %v11365_v17 = vpack.i.bf16 %v4742_v3, %v4741_v29  ;;  %v4776_v33 = vld [vmem:[#allocation2 + $0x33a] sm:$0xff]  ;;  %v11164_v22 = vunpack.i.h.bf16 %v18241_v11 }
 0x73d   : > { %11341 = vrot.lane.b32.xlu2 %v11340_v63, %s11558_s23  ;;  %v7619_v63 = vpack.c.bf16 %v18264_v6, %v18261_v10  ;;  %8632 = vmatmul.msk.bf16.vlgmr.msra.gmra.mxu1 %vm7671_vm3, %v7600_v46  ;;  %v11114_v46 = vunpack.i.h.bf16 %v18226_v48  ;;  %v11163_v0 = vunpack.i.l.bf16 %v18241_v11 }
 0x73e   : > { %11351 = vrot.lane.b32.xlu1 %v11350_v35, %s11557_s22  ;;  %v11092_v38 = vpop.permute.xlu0 %11091  ;;  %v18279_v30 = vpop.permute.xlu1 %11141  ;;  %v4775_v35 = vld [vmem:[#allocation2 + $0x332] sm:$0xff] }
 0x73f   : > { %11301 = vrot.lane.b32.xlu0 %v11300_v49, %s11557_s22  ;;  %v11088_v49 = vunpack.i.l.bf16 %v18133_v45  ;;  %v11094_v1 = vunpack.i.h.bf16 %v11092_v38  ;;  %v11093_v14 = vunpack.i.l.bf16 %v11092_v38  ;;  %v11315_v45 = vpack.i.bf16 %v4738_v62, %v4737_v8 }
 0x740   : > { %v11380_v62 = vpack.i.bf16 %v4776_v33, %v4775_v35 }
 0x741   : > { %v7505_v41 = vsel %vm7470_vm0, %v7440_v39, %v11088_v49  ;;  %v7571_v58 = vsel %vm7535_vm2, %v7506_v54, %v11094_v1  ;;  %v11113_v39 = vunpack.i.l.bf16 %v18226_v48 }
 0x742   : > { %v7570_v37 = vsel %vm7535_vm2, %v7505_v41, %v11093_v14  ;;  %v11330_v14 = vpack.i.bf16 %v4772_v23, %v4771_v21 }
 0x743   : > { %v7617_v7 = vpack.c.bf16 %v7571_v58, %v7570_v37  ;;  %v18288_v42 = vpop.permute.xlu2 %11191  ;;  %v11119_v58 = vunpack.i.h.bf16 %v18183_v59 }
 0x745   : > { %11356 = vrot.lane.b32.xlu2 %v11355_v5, %s11558_s23  ;;  %8649 = vmatmul.msk.bf16.gmra.mxu2 %vm7671_vm3, %v7617_v7  ;;  %v20663_v5 = vld [vmem:[#allocation36_spill] sm:$0xff] }
 0x746   : > { %11366 = vrot.lane.b32.xlu1 %v11365_v17, %s11558_s23  ;;  %v11107_v24 = vpop.permute.xlu0 %11106  ;;  %v11157_v60 = vpop.permute.xlu1 %11156  ;;  %v20664_v17 = vpack.c.bf16 %v18216_v36, %v18213_v4  ;;  %v4713_v4 = vld [vmem:[#allocation2 + $0x349] sm:$0xff]  ;;  %v4714_v36 = vld [vmem:[#allocation2 + $0x351] sm:$0xff] }
 0x747   : > { %11316 = vrot.lane.b32.xlu0 %v11315_v45, %s11558_s23  ;;  %v11109_v49 = vunpack.i.h.bf16 %v11107_v24  ;;  %v11108_v38 = vunpack.i.l.bf16 %v11107_v24  ;;  %v11159_v8 = vunpack.i.h.bf16 %v11157_v60  ;;  %v11158_v1 = vunpack.i.l.bf16 %v11157_v60  ;;  %v20666_v24 = vld [vmem:[#allocation37_spill] sm:$0xff] }
 0x749   : > { %v7507_v29 = vsel %vm7470_vm0, %v18109_v9, %v11108_v38  ;;  %v7508_v3 = vsel %vm7470_vm0, %v18113_v34, %v11109_v49  ;;  %v7479_v48 = vsel %vm7470_vm0, %v17696_v52, %v11158_v1  ;;  %v7480_v11 = vsel %vm7470_vm0, %v17699_v28, %v11159_v8 }
 0x74a   : > { %v7572_v41 = vsel %vm7535_vm2, %v7507_v29, %v11113_v39  ;;  %v7573_v54 = vsel %vm7535_vm2, %v7508_v3, %v11114_v46  ;;  %v18308_v37 = vsel %vm7535_vm2, %v7479_v48, %v11163_v0  ;;  %v18311_v9 = vsel %vm7535_vm2, %v7480_v11, %v11164_v22  ;;  %v20665_v22 = vld [vmem:[#allocation72_spill] sm:$0xff] }
 0x74b   : > { %v7618_v34 = vpack.c.bf16 %v7573_v54, %v7572_v41  ;;  %v7604_v52 = vpack.c.bf16 %v18311_v9, %v18308_v37  ;;  %v11118_v28 = vunpack.i.l.bf16 %v18183_v59  ;;  %v7476_v59 = vsel %vm7470_vm0, %v17998_v27, %v11119_v58 }
 0x74c   : > { %v18319_v45 = vpop.permute.xlu2 %11206  ;;  %v11400_v27 = vpack.i.bf16 %v4714_v36, %v4713_v4  ;;  %v11144_v49 = vunpack.i.h.bf16 %v18279_v30  ;;  %v11143_v38 = vunpack.i.l.bf16 %v18279_v30  ;;  %v11194_v8 = vunpack.i.h.bf16 %v18288_v42  ;;  %v4711_v36 = vld [vmem:[#allocation2 + $0x331] sm:$0xff] }
 0x74d   : > { %11371 = vrot.lane.b32.xlu2 %v20663_v5, %s11559_s24  ;;  %8633 = vmatmul.msk.bf16.gmra.mxu1 %vm7671_vm3, %v20664_v17  ;;  %v7475_v33 = vsel %vm7470_vm0, %v17995_v15, %v11118_v28  ;;  %v20667_v15 = vld [vmem:[#allocation35_spill] sm:$0xff]  ;;  %v11193_v1 = vunpack.i.l.bf16 %v18288_v42 }
 0x74e   : > { %11381 = vrot.lane.b32.xlu1 %v11380_v62, %s11558_s23  ;;  %v11122_v7 = vpop.permute.xlu0 %11121  ;;  %v18325_v21 = vpop.permute.xlu1 %11171  ;;  %v4745_v28 = vld [vmem:[#allocation2 + $0x19a] sm:$0xff] }
 0x74f   : > { %11331 = vrot.lane.b32.xlu0 %v11330_v14, %s11558_s23  ;;  %v11124_v23 = vunpack.i.h.bf16 %v11122_v7  ;;  %v11123_v35 = vunpack.i.l.bf16 %v11122_v7  ;;  %v11148_v7 = vunpack.i.l.bf16 %v18224_v32 }
 0x751   : > { %v7540_v46 = vsel %vm7535_vm2, %v7475_v33, %v11123_v35  ;;  %v7541_v39 = vsel %vm7535_vm2, %v7476_v59, %v11124_v23  ;;  %v20668_v23 = vld [vmem:[#allocation65_spill] sm:$0xff]  ;;  %v20669_v33 = vld [vmem:[#allocation71_spill] sm:$0xff] }
 0x752   : > { %v7602_v0 = vpack.c.bf16 %v7541_v39, %v7540_v46 }
 0x754   : > { %v18337_v60 = vpop.permute.xlu2 %11221 }
 0x755   : > { %11386 = vrot.lane.b32.xlu2 %v20665_v22, %s11559_s24  ;;  %8650 = vmatmul.msk.bf16.gmra.mxu2 %vm7671_vm3, %v7618_v34 }
 0x756   : > { %11396 = vrot.lane.b32.xlu1 %v20667_v15, %s11559_s24  ;;  %v11137_v14 = vpop.permute.xlu0 %11136  ;;  %v11187_v62 = vpop.permute.xlu1 %11186 }
 0x757   : > { %11346 = vrot.lane.b32.xlu0 %v20666_v24, %s11559_s24  ;;  %v11139_v29 = vunpack.i.h.bf16 %v11137_v14  ;;  %v11138_v3 = vunpack.i.l.bf16 %v11137_v14  ;;  %v11189_v48 = vunpack.i.h.bf16 %v11187_v62  ;;  %v11188_v11 = vunpack.i.l.bf16 %v11187_v62  ;;  %v4712_v24 = vld [vmem:[#allocation2 + $0x339] sm:$0xff]  ;;  %v4743_v62 = vld [vmem:[#allocation2 + $0x182] sm:$0xff] }
 0x759   : > { %v7477_v5 = vsel %vm7470_vm0, %v17824_v18, %v11138_v3  ;;  %v7478_v41 = vsel %vm7470_vm0, %v17827_v40, %v11139_v29  ;;  %v7515_v54 = vsel %vm7470_vm0, %v18043_v56, %v11188_v11  ;;  %v7516_v30 = vsel %vm7470_vm0, %v18047_v26, %v11189_v48  ;;  %v4746_v40 = vld [vmem:[#allocation2 + $0x1a2] sm:$0xff]  ;;  %v4744_v29 = vld [vmem:[#allocation2 + $0x18a] sm:$0xff] }
 0x75a   : > { %v7542_v42 = vsel %vm7535_vm2, %v7477_v5, %v11143_v38  ;;  %v7543_v34 = vsel %vm7535_vm2, %v7478_v41, %v11144_v49  ;;  %v18358_v58 = vsel %vm7535_vm2, %v7515_v54, %v11193_v1  ;;  %v18361_v18 = vsel %vm7535_vm2, %v7516_v30, %v11194_v8 }
 0x75b   : > { %v7603_v17 = vpack.c.bf16 %v7543_v34, %v7542_v42  ;;  %v7622_v56 = vpack.c.bf16 %v18361_v18, %v18358_v58  ;;  %v11149_v26 = vunpack.i.h.bf16 %v18224_v32  ;;  %v11415_v39 = vpack.i.bf16 %v4746_v40, %v4745_v28 }
 0x75c   : > { %v18369_v35 = vpop.permute.xlu2 %11236  ;;  %v7511_v32 = vsel %vm7470_vm0, %v18200_v61, %v11148_v7  ;;  %v11174_v61 = vunpack.i.h.bf16 %v18325_v21  ;;  %v11224_v3 = vunpack.i.h.bf16 %v18337_v60  ;;  %v11223_v48 = vunpack.i.l.bf16 %v18337_v60 }
 0x75d   : > { %11401 = vrot.lane.b32.xlu2 %v11400_v27, %s11557_s22  ;;  %8634 = vmatmul.msk.bf16.gmra.mxu1 %vm7671_vm3, %v7602_v0  ;;  %v7512_v15 = vsel %vm7470_vm0, %v18204_v43, %v11149_v26  ;;  %v11375_v0 = vpack.i.bf16 %v4712_v24, %v4711_v36  ;;  %v11173_v43 = vunpack.i.l.bf16 %v18325_v21  ;;  %v11178_v40 = vunpack.i.l.bf16 %v18268_v50  ;;  %v4778_v26 = vld [vmem:[#allocation2 + $0x352] sm:$0xff] }
 0x75e   : > { %11411 = vrot.lane.b32.xlu1 %v20669_v33, %s11559_s24  ;;  %v11152_v59 = vpop.permute.xlu0 %11151  ;;  %v18374_v46 = vpop.permute.xlu1 %11201 }
 0x75f   : > { %11361 = vrot.lane.b32.xlu0 %v20668_v23, %s11559_s24  ;;  %v11154_v22 = vunpack.i.h.bf16 %v11152_v59  ;;  %v11153_v4 = vunpack.i.l.bf16 %v11152_v59 }
 0x761   : > { %v7576_v27 = vsel %vm7535_vm2, %v7511_v32, %v11153_v4  ;;  %v7577_v49 = vsel %vm7535_vm2, %v7512_v15, %v11154_v22  ;;  %v7481_v22 = vsel %vm7470_vm0, %v18054_v25, %v11178_v40  ;;  %v11204_v32 = vunpack.i.h.bf16 %v18374_v46 }
 0x762   : > { %v7620_v38 = vpack.c.bf16 %v7577_v49, %v7576_v27  ;;  %v11203_v15 = vunpack.i.l.bf16 %v18374_v46 }
 0x765   : > { %11416 = vrot.lane.b32.xlu2 %v11415_v39, %s11558_s23  ;;  %8651 = vmatmul.msk.bf16.gmra.mxu2 %vm7671_vm3, %v7619_v63  ;;  %v11390_v63 = vpack.i.bf16 %v4744_v29, %v4743_v62  ;;  %v11208_v62 = vunpack.i.l.bf16 %v18319_v45  ;;  %v20670_v29 = vld [vmem:[#allocation43_spill] sm:$0xff] }
 0x766   : > { %v11217_v14 = vpop.permute.xlu1 %11216 }
 0x767   : > { %11376 = vrot.lane.b32.xlu0 %v11375_v0, %s11557_s22  ;;  %v18384_v8 = vpop.permute.xlu2 %11251  ;;  %v11219_v41 = vunpack.i.h.bf16 %v11217_v14  ;;  %v11218_v54 = vunpack.i.l.bf16 %v11217_v14  ;;  %v11209_v14 = vunpack.i.h.bf16 %v18319_v45 }
 0x768   : > { %v11167_v1 = vpop.permute.xlu0 %11166 }
 0x769   : > { %v11169_v11 = vunpack.i.h.bf16 %v11167_v1  ;;  %v11168_v5 = vunpack.i.l.bf16 %v11167_v1  ;;  %v7485_v21 = vsel %vm7470_vm0, %v17752_v53, %v11218_v54  ;;  %v7486_v30 = vsel %vm7470_vm0, %v17755_v47, %v11219_v41  ;;  %v4777_v47 = vld [vmem:[#allocation2 + $0x34a] sm:$0xff] }
 0x76a   : > { %v18405_v28 = vsel %vm7535_vm2, %v7485_v21, %v11223_v48  ;;  %v11405_v4 = vpack.i.bf16 %v4778_v26, %v4777_v47 }
 0x76b   : > { %v7513_v10 = vsel %vm7470_vm0, %v18149_v12, %v11168_v5  ;;  %v7514_v6 = vsel %vm7470_vm0, %v18153_v57, %v11169_v11  ;;  %v18408_v12 = vsel %vm7535_vm2, %v7486_v30, %v11224_v3  ;;  %v11179_v57 = vunpack.i.h.bf16 %v18268_v50  ;;  %v20671_v30 = vld [vmem:[#allocation189_spill] sm:$0xff] }
 0x76c   : > { %v7578_v42 = vsel %vm7535_vm2, %v7513_v10, %v11173_v43  ;;  %v7579_v60 = vsel %vm7535_vm2, %v7514_v6, %v11174_v61  ;;  %v7607_v53 = vpack.c.bf16 %v18408_v12, %v18405_v28  ;;  %v7517_v11 = vsel %vm7470_vm0, %v18230_v19, %v11208_v62 }
 0x76d   : > { %v7621_v34 = vpack.c.bf16 %v7579_v60, %v7578_v42  ;;  %8635 = vmatmul.msk.bf16.gmra.mxu1 %vm7671_vm3, %v7603_v17  ;;  %v7482_v50 = vsel %vm7470_vm0, %v18057_v51, %v11179_v57  ;;  %v7518_v5 = vsel %vm7470_vm0, %v18234_v44, %v11209_v14  ;;  %v11239_v19 = vunpack.i.h.bf16 %v18369_v35  ;;  %v20672_v60 = vld [vmem:[#allocation116_spill] sm:$0xff] }
 0x76e   : > { %v11238_v10 = vunpack.i.l.bf16 %v18369_v35  ;;  %v11253_v14 = vunpack.i.l.bf16 %v18384_v8 }
 0x76f   : > { %11391 = vrot.lane.b32.xlu0 %v11390_v63, %s11558_s23  ;;  %v18416_v33 = vpop.permute.xlu2 %11266 }
 0x770   : > { %v11182_v7 = vpop.permute.xlu0 %11181  ;;  %v11232_v23 = vpop.permute.xlu1 %11231 }
 0x771   : > { %v11184_v59 = vunpack.i.h.bf16 %v11182_v7  ;;  %v11183_v39 = vunpack.i.l.bf16 %v11182_v7  ;;  %v11234_v63 = vunpack.i.h.bf16 %v11232_v23  ;;  %v11233_v21 = vunpack.i.l.bf16 %v11232_v23 }
 0x773   : > { %v7546_v36 = vsel %vm7535_vm2, %v7481_v22, %v11183_v39  ;;  %v7547_v24 = vsel %vm7535_vm2, %v7482_v50, %v11184_v59 }
 0x774   : > { %v7605_v17 = vpack.c.bf16 %v7547_v24, %v7546_v36 }
 0x775   : > { %8652 = vmatmul.msk.bf16.gmra.mxu2 %vm7671_vm3, %v7620_v38 }
 0x777   : > { %11406 = vrot.lane.b32.xlu0 %v11405_v4, %s11558_s23  ;;  %v18428_v61 = vpop.permute.xlu2 %11281 }
 0x778   : > { %v11247_v49 = vpop.permute.xlu1 %11246 }
 0x779   : > { %v11197_v27 = vpop.permute.xlu0 %11196  ;;  %v11249_v23 = vunpack.i.h.bf16 %v11247_v49  ;;  %v11248_v59 = vunpack.i.l.bf16 %v11247_v49 }
 0x77a   : > { %v11199_v25 = vunpack.i.h.bf16 %v11197_v27  ;;  %v11198_v0 = vunpack.i.l.bf16 %v11197_v27 }
 0x77c   : > { %v7483_v51 = vsel %vm7470_vm0, %v17893_v16, %v11198_v0  ;;  %v7484_v43 = vsel %vm7470_vm0, %v17896_v2, %v11199_v25 }
 0x77d   : > { %v18435_v1 = vsel %vm7535_vm2, %v7483_v51, %v11203_v15  ;;  %v18438_v38 = vsel %vm7535_vm2, %v7484_v43, %v11204_v32  ;;  %8636 = vmatmul.msk.bf16.gmra.mxu1 %vm7671_vm3, %v7604_v52 }
 0x77e   : > { %v7606_v46 = vpack.c.bf16 %v18438_v38, %v18435_v1 }
 0x77f   : > { %11421 = vrot.lane.b32.xlu0 %v20670_v29, %s11559_s24  ;;  %v11297_v9 = vpop.permute.xlu2 %11296 }
 0x780   : > { %v18450_v2 = vpop.permute.xlu1 %11261  ;;  %v11299_v50 = vunpack.i.h.bf16 %v11297_v9  ;;  %v11298_v4 = vunpack.i.l.bf16 %v11297_v9  ;;  %v20673_v9 = vld [vmem:[#allocation156_spill] sm:$0xff] }
 0x781   : > { %v11212_v16 = vpop.permute.xlu0 %11211  ;;  %v11264_v62 = vunpack.i.h.bf16 %v18450_v2  ;;  %v11263_v29 = vunpack.i.l.bf16 %v18450_v2 }
 0x782   : > { %v11214_v3 = vunpack.i.h.bf16 %v11212_v16  ;;  %v11213_v48 = vunpack.i.l.bf16 %v11212_v16 }
 0x784   : > { %v18457_v45 = vsel %vm7535_vm2, %v7517_v11, %v11213_v48  ;;  %v18460_v41 = vsel %vm7535_vm2, %v7518_v5, %v11214_v3 }
 0x785   : > { %v7623_v37 = vpack.c.bf16 %v18460_v41, %v18457_v45  ;;  %8653 = vmatmul.msk.bf16.gmra.mxu2 %vm7671_vm3, %v7621_v34 }
 0x787   : > { %v18483_v7 = vpop.permute.xlu2 %11311 }
 0x788   : > { %v18465_v54 = vpop.permute.xlu1 %11276 }
 0x789   : > { %v11227_v52 = vpop.permute.xlu0 %11226 }
 0x78a   : > { %v11229_v44 = vunpack.i.h.bf16 %v11227_v52  ;;  %v11228_v6 = vunpack.i.l.bf16 %v11227_v52  ;;  %v20674_v52 = vld [vmem:[#allocation145_spill] sm:$0xff] }
 0x78c   : > { %v7454_v42 = vsel %vm7405_vm14, %v20671_v30, %v11228_v6  ;;  %v7455_v57 = vsel %vm7405_vm14, %v20672_v60, %v11229_v44  ;;  %v11269_v44 = vunpack.i.h.bf16 %v18416_v33  ;;  %v11268_v6 = vunpack.i.l.bf16 %v18416_v33  ;;  %v20675_v60 = vld [vmem:[#allocation158_spill] sm:$0xff] }
 0x78d   : > { %v7519_v40 = vsel %vm7470_vm0, %v7454_v42, %v11233_v21  ;;  %v7520_v34 = vsel %vm7470_vm0, %v7455_v57, %v11234_v63  ;;  %8637 = vmatmul.msk.bf16.gmra.mxu1 %vm7671_vm3, %v7605_v17  ;;  %v11278_v33 = vunpack.i.l.bf16 %v18465_v54 }
 0x78e   : > { %v18476_v47 = vsel %vm7535_vm2, %v7519_v40, %v11238_v10  ;;  %v18479_v26 = vsel %vm7535_vm2, %v7520_v34, %v11239_v19  ;;  %v7489_v57 = vsel %vm7470_vm0, %v20675_v60, %v11268_v6  ;;  %v20676_v40 = vld [vmem:[#allocation122_spill] sm:$0xff] }
 0x78f   : > { %v7624_v35 = vpack.c.bf16 %v18479_v26, %v18476_v47  ;;  %v18518_v48 = vpop.permute.xlu2 %11326  ;;  %v7490_v34 = vsel %vm7470_vm0, %v20676_v40, %v11269_v44  ;;  %v20683_v26 = vld [vmem:[#allocation256_spill] sm:$0xff] }
 0x790   : > { %v11292_v22 = vpop.permute.xlu1 %11291 }
 0x791   : > { %v11242_v39 = vpop.permute.xlu0 %11241  ;;  %v11294_v32 = vunpack.i.h.bf16 %v11292_v22  ;;  %v11293_v15 = vunpack.i.l.bf16 %v11292_v22 }
 0x792   : > { %v11244_v36 = vunpack.i.h.bf16 %v11242_v39  ;;  %v11243_v24 = vunpack.i.l.bf16 %v11242_v39  ;;  %v20677_v39 = vld [vmem:[#allocation192_spill] sm:$0xff] }
 0x793   : > { %v7491_v0 = vsel %vm7470_vm0, %v17805_v55, %v11293_v15  ;;  %v7492_v17 = vsel %vm7470_vm0, %v17808_v13, %v11294_v32  ;;  %v11254_v55 = vunpack.i.h.bf16 %v18384_v8  ;;  %v7456_v8 = vsel %vm7405_vm14, %v20673_v9, %v11253_v14  ;;  %v20679_v9 = vld [vmem:[#allocation88_spill] sm:$0xff] }
 0x794   : > { %v7487_v27 = vsel %vm7470_vm0, %v18102_v31, %v11243_v24  ;;  %v7488_v25 = vsel %vm7470_vm0, %v18105_v20, %v11244_v36  ;;  %v18503_v31 = vsel %vm7535_vm2, %v7491_v0, %v11298_v4  ;;  %v18506_v20 = vsel %vm7535_vm2, %v7492_v17, %v11299_v50  ;;  %v20678_v50 = vld [vmem:[#allocation112_spill] sm:$0xff] }
 0x795   : > { %v18495_v49 = vsel %vm7535_vm2, %v7487_v27, %v11248_v59  ;;  %v18498_v51 = vsel %vm7535_vm2, %v7488_v25, %v11249_v23  ;;  %v7610_v13 = vpack.c.bf16 %v18506_v20, %v18503_v31  ;;  %8654 = vmatmul.msk.bf16.gmra.mxu2 %vm7671_vm3, %v7622_v56  ;;  %v7457_v19 = vsel %vm7405_vm14, %v20674_v52, %v11254_v55  ;;  %v20680_v52 = vld [vmem:[#allocation117_spill] sm:$0xff] }
 0x796   : > { %v7608_v43 = vpack.c.bf16 %v18498_v51, %v18495_v49  ;;  %v11279_v23 = vunpack.i.h.bf16 %v18465_v54  ;;  %v7458_v22 = vsel %vm7405_vm14, %v20677_v39, %v11278_v33  ;;  %v11284_v54 = vunpack.i.h.bf16 %v18428_v61  ;;  %v20681_v33 = vld [vmem:[#allocation150_spill] sm:$0xff]  ;;  %v20693_v20 = vld [vmem:[#allocation221_spill] sm:$0xff] }
 0x797   : > { %v18548_v59 = vpop.permute.xlu2 %11341  ;;  %v11283_v36 = vunpack.i.l.bf16 %v18428_v61  ;;  %v11314_v14 = vunpack.i.h.bf16 %v18483_v7 }
 0x798   : > { %v11307_v3 = vpop.permute.xlu1 %11306  ;;  %v7459_v4 = vsel %vm7405_vm14, %v20678_v50, %v11279_v23  ;;  %v20684_v50 = vld [vmem:[#allocation146_spill] sm:$0xff] }
 0x799   : > { %v11257_v16 = vpop.permute.xlu0 %11256  ;;  %v7523_v25 = vsel %vm7470_vm0, %v7458_v22, %v11283_v36  ;;  %v7524_v0 = vsel %vm7470_vm0, %v7459_v4, %v11284_v54  ;;  %v20682_v22 = vld [vmem:[#allocation86_spill] sm:$0xff] }
 0x79a   : > { %v11259_v11 = vunpack.i.h.bf16 %v11257_v16  ;;  %v11258_v5 = vunpack.i.l.bf16 %v11257_v16 }
 0x79c   : > { %v7521_v58 = vsel %vm7470_vm0, %v7456_v8, %v11258_v5  ;;  %v7522_v18 = vsel %vm7470_vm0, %v7457_v19, %v11259_v11  ;;  %v11309_v11 = vunpack.i.h.bf16 %v11307_v3  ;;  %v11308_v5 = vunpack.i.l.bf16 %v11307_v3 }
 0x79d   : > { %v18527_v56 = vsel %vm7535_vm2, %v7521_v58, %v11263_v29  ;;  %v18530_v2 = vsel %vm7535_vm2, %v7522_v18, %v11264_v62  ;;  %8638 = vmatmul.msk.bf16.gmra.mxu1 %vm7671_vm3, %v7606_v46  ;;  %v11313_v62 = vunpack.i.l.bf16 %v18483_v7 }
 0x79e   : > { %v7625_v10 = vpack.c.bf16 %v18530_v2, %v18527_v56 }
 0x7a0   : > { %v18540_v21 = vpop.permute.xlu1 %11321  ;;  %v7861_v3 = vpop.f32.mrf.mxu2 }
 0x7a1   : > { %v11272_v63 = vpop.permute.xlu0 %11271  ;;  %v11324_v44 = vunpack.i.h.bf16 %v18540_v21  ;;  %v11323_v6 = vunpack.i.l.bf16 %v18540_v21 }
 0x7a2   : > { %v11274_v30 = vunpack.i.h.bf16 %v11272_v63  ;;  %v11273_v42 = vunpack.i.l.bf16 %v11272_v63 }
 0x7a4   : > { %v18551_v1 = vsel %vm7535_vm2, %v7489_v57, %v11273_v42  ;;  %v18554_v38 = vsel %vm7535_vm2, %v7490_v34, %v11274_v30 }
 0x7a5   : > { %v7609_v46 = vpack.c.bf16 %v18554_v38, %v18551_v1  ;;  %8655 = vmatmul.msk.bf16.gmra.mxu2 %vm7671_vm3, %v7623_v37  ;;  %v18580_v37 = vpop.permute.xlu2 %11356 }
 0x7a8   : > { %v18568_v32 = vpop.permute.xlu1 %11336 }
 0x7a9   : > { %v11287_v24 = vpop.permute.xlu0 %11286 }
 0x7aa   : > { %v11289_v15 = vunpack.i.h.bf16 %v11287_v24  ;;  %v11288_v27 = vunpack.i.l.bf16 %v11287_v24 }
 0x7ac   : > { %v18573_v17 = vsel %vm7535_vm2, %v7523_v25, %v11288_v27  ;;  %v18576_v45 = vsel %vm7535_vm2, %v7524_v0, %v11289_v15  ;;  %v11329_v25 = vunpack.i.h.bf16 %v18518_v48  ;;  %v11328_v0 = vunpack.i.l.bf16 %v18518_v48 }
 0x7ad   : > { %v7626_v41 = vpack.c.bf16 %v18576_v45, %v18573_v17  ;;  %8639 = vmatmul.msk.bf16.gmra.mxu1 %vm7671_vm3, %v7607_v53  ;;  %v11372_v18 = vpop.permute.xlu2 %11371 }
 0x7ae   : > { %v11374_v42 = vunpack.i.h.bf16 %v11372_v18  ;;  %v11373_v60 = vunpack.i.l.bf16 %v11372_v18  ;;  %v11343_v18 = vunpack.i.l.bf16 %v18548_v59 }
 0x7b0   : > { %v18586_v55 = vpop.permute.xlu1 %11351 }
 0x7b1   : > { %v11302_v61 = vpop.permute.xlu0 %11301 }
 0x7b2   : > { %v11304_v29 = vunpack.i.h.bf16 %v11302_v61  ;;  %v11303_v16 = vunpack.i.l.bf16 %v11302_v61 }
 0x7b4   : > { %v7460_v8 = vsel %vm7405_vm14, %v20679_v9, %v11303_v16  ;;  %v7461_v19 = vsel %vm7405_vm14, %v20680_v52, %v11304_v29  ;;  %v7863_v52 = vpop.f32.mrf.mxu2 }
 0x7b5   : > { %v7525_v28 = vsel %vm7470_vm0, %v7460_v8, %v11308_v5  ;;  %v7526_v12 = vsel %vm7470_vm0, %v7461_v19, %v11309_v11  ;;  %8656 = vmatmul.msk.bf16.gmra.mxu2 %vm7671_vm3, %v7624_v35  ;;  %v20685_v5 = vld [vmem:[#allocation149_spill] sm:$0xff]  ;;  %v20686_v8 = vld [vmem:[#allocation214_spill] sm:$0xff] }
 0x7b6   : > { %v18597_v53 = vsel %vm7535_vm2, %v7525_v28, %v11313_v62  ;;  %v18600_v58 = vsel %vm7535_vm2, %v7526_v12, %v11314_v14  ;;  %v11339_v14 = vunpack.i.h.bf16 %v18568_v32  ;;  %v11338_v62 = vunpack.i.l.bf16 %v18568_v32 }
 0x7b7   : > { %v7627_v7 = vpack.c.bf16 %v18600_v58, %v18597_v53  ;;  %v7462_v9 = vsel %vm7405_vm14, %v20685_v5, %v11328_v0  ;;  %v7463_v48 = vsel %vm7405_vm14, %v20686_v8, %v11329_v25  ;;  %v11344_v12 = vunpack.i.h.bf16 %v18548_v59 }
 0x7b8   : > { %v11367_v30 = vpop.permute.xlu1 %11366 }
 0x7b9   : > { %v11317_v63 = vpop.permute.xlu0 %11316  ;;  %v11369_v34 = vunpack.i.h.bf16 %v11367_v30  ;;  %v11368_v23 = vunpack.i.l.bf16 %v11367_v30  ;;  %v20687_v30 = vld [vmem:[#allocation80_spill] sm:$0xff] }
 0x7ba   : > { %v11319_v57 = vunpack.i.h.bf16 %v11317_v63  ;;  %v11318_v40 = vunpack.i.l.bf16 %v11317_v63  ;;  %v7781_v4 = vpop.f32.mrf.mxu1 }
 0x7bb   : > { %v7497_v35 = vsel %vm7470_vm0, %v20683_v26, %v11368_v23  ;;  %v7498_v21 = vsel %vm7470_vm0, %v20684_v50, %v11369_v34  ;;  %v11353_v23 = vunpack.i.l.bf16 %v18586_v55  ;;  %v20690_v26 = vld [vmem:[#allocation119_spill] sm:$0xff] }
 0x7bc   : > { %v7493_v39 = vsel %vm7470_vm0, %v20681_v33, %v11318_v40  ;;  %v7494_v47 = vsel %vm7470_vm0, %v20682_v22, %v11319_v57  ;;  %v18627_v15 = vsel %vm7535_vm2, %v7497_v35, %v11373_v60  ;;  %v18630_v27 = vsel %vm7535_vm2, %v7498_v21, %v11374_v42  ;;  %v20688_v60 = vld [vmem:[#allocation123_spill] sm:$0xff]  ;;  %v20689_v22 = vld [vmem:[#allocation98_spill] sm:$0xff] }
 0x7bd   : > { %v18619_v54 = vsel %vm7535_vm2, %v7493_v39, %v11323_v6  ;;  %v18622_v36 = vsel %vm7535_vm2, %v7494_v47, %v11324_v44  ;;  %v7613_v61 = vpack.c.bf16 %v18630_v27, %v18627_v15  ;;  %8640 = vmatmul.msk.bf16.gmra.mxu1 %vm7671_vm3, %v7608_v43  ;;  %v7495_v42 = vsel %vm7470_vm0, %v20687_v30, %v11343_v18  ;;  %v20691_v18 = vld [vmem:[#allocation75_spill] sm:$0xff] }
 0x7be   : > { %v7611_v24 = vpack.c.bf16 %v18622_v36, %v18619_v54  ;;  %v7496_v57 = vsel %vm7470_vm0, %v20688_v60, %v11344_v12  ;;  %v11354_v40 = vunpack.i.h.bf16 %v18586_v55  ;;  %v7464_v47 = vsel %vm7405_vm14, %v20689_v22, %v11353_v23 }
 0x7bf   : > { %v11358_v35 = vunpack.i.l.bf16 %v18580_v37 }
 0x7c0   : > { %v7465_v55 = vsel %vm7405_vm14, %v20690_v26, %v11354_v40 }
 0x7c1   : > { %v11332_v29 = vpop.permute.xlu0 %11331  ;;  %v7529_v25 = vsel %vm7470_vm0, %v7464_v47, %v11358_v35 }
 0x7c2   : > { %v11334_v16 = vunpack.i.h.bf16 %v11332_v29  ;;  %v11333_v11 = vunpack.i.l.bf16 %v11332_v29  ;;  %v7783_v51 = vpop.f32.mrf.mxu1 }
 0x7c4   : > { %v7527_v19 = vsel %vm7470_vm0, %v7462_v9, %v11333_v11  ;;  %v7528_v49 = vsel %vm7470_vm0, %v7463_v48, %v11334_v16  ;;  %v11387_v11 = vpop.permute.xlu2 %11386 }
 0x7c5   : > { %v18649_v43 = vsel %vm7535_vm2, %v7527_v19, %v11338_v62  ;;  %v18652_v32 = vsel %vm7535_vm2, %v7528_v49, %v11339_v14  ;;  %8657 = vmatmul.msk.bf16.gmra.mxu2 %vm7671_vm3, %v7625_v10  ;;  %v11382_v62 = vpop.permute.xlu1 %11381  ;;  %v11389_v9 = vunpack.i.h.bf16 %v11387_v11  ;;  %v11388_v8 = vunpack.i.l.bf16 %v11387_v11 }
 0x7c6   : > { %v7628_v28 = vpack.c.bf16 %v18652_v32, %v18649_v43  ;;  %v11384_v19 = vunpack.i.h.bf16 %v11382_v62  ;;  %v11383_v49 = vunpack.i.l.bf16 %v11382_v62 }
 0x7c8   : > { %v7866_v34 = vpop.f32.mrf.mxu2 }
 0x7c9   : > { %v11347_v44 = vpop.permute.xlu0 %11346  ;;  %v7957_v2 = vadd.f32 %v7866_v34, %v7861_v3  ;;  %v11359_v3 = vunpack.i.h.bf16 %v18580_v37  ;;  %v18720_v34 = vld [vmem:[%s18885_s4] ss:$0 sm:$0xff] }
 0x7ca   : > { %v11349_v6 = vunpack.i.h.bf16 %v11347_v44  ;;  %v11348_v63 = vunpack.i.l.bf16 %v11347_v44  ;;  %v7786_v33 = vpop.f32.mrf.mxu1  ;;  %v20692_v44 = vld [vmem:[#allocation118_spill] sm:$0xff] }
 0x7cb   : > { %7989 = vst.msk [vmem:[#allocation3 + $0x80] sm:$0xff] %vm2925_vm1, %v7957_v2  ;;  %v7941_v39 = vadd.f32 %v7786_v33, %v7781_v4  ;;  %v7530_v0 = vsel %vm7470_vm0, %v7465_v55, %v11359_v3 }
 0x7cc   : > { %v18669_v59 = vsel %vm7535_vm2, %v7495_v42, %v11348_v63  ;;  %v18672_v56 = vsel %vm7535_vm2, %v7496_v57, %v11349_v6  ;;  %v11402_v55 = vpop.permute.xlu2 %11401 }
 0x7cd   : > { %v7612_v10 = vpack.c.bf16 %v18672_v56, %v18669_v59  ;;  %7973 = vst.msk [vmem:[#allocation3] sm:$0xff] %vm2925_vm1, %v7941_v39  ;;  %8641 = vmatmul.msk.bf16.gmra.mxu1 %vm7671_vm3, %v7609_v46  ;;  %v11397_v63 = vpop.permute.xlu1 %11396  ;;  %v11403_v11 = vunpack.i.l.bf16 %v11402_v55 }
 0x7ce   : > { %v11399_v47 = vunpack.i.h.bf16 %v11397_v63  ;;  %v11398_v26 = vunpack.i.l.bf16 %v11397_v63 }
 0x7d0   : > { %v7868_v14 = vpop.f32.mrf.mxu2 }
 0x7d1   : > { %v11362_v50 = vpop.permute.xlu0 %11361  ;;  %v7958_v38 = vadd.f32 %v7868_v14, %v7863_v52 }
 0x7d2   : > { %v11364_v21 = vunpack.i.h.bf16 %v11362_v50  ;;  %v11363_v4 = vunpack.i.l.bf16 %v11362_v50  ;;  %v7788_v37 = vpop.f32.mrf.mxu1 }
 0x7d3   : > { %7990 = vst.msk [vmem:[#allocation3 + $0x88] sm:$0xff] %vm2925_vm1, %v7958_v38  ;;  %v7942_v16 = vadd.f32 %v7788_v37, %v7783_v51 }
 0x7d4   : > { %v18691_v29 = vsel %vm7535_vm2, %v7529_v25, %v11363_v4  ;;  %v18694_v1 = vsel %vm7535_vm2, %v7530_v0, %v11364_v21  ;;  %v20694_v4 = vld [vmem:[#allocation220_spill] sm:$0xff] }
 0x7d5   : > { %v7629_v46 = vpack.c.bf16 %v18694_v1, %v18691_v29  ;;  %7974 = vst.msk [vmem:[#allocation3 + $0x8] sm:$0xff] %vm2925_vm1, %v7942_v16  ;;  %8658 = vmatmul.msk.bf16.gmra.mxu2 %vm7671_vm3, %v7626_v41  ;;  %v11412_v37 = vpop.permute.xlu1 %11411  ;;  %v11404_v16 = vunpack.i.h.bf16 %v11402_v55 }
 0x7d8   : > { %v7871_v12 = vpop.f32.mrf.mxu2 }
 0x7d9   : > { %v11377_v5 = vpop.permute.xlu0 %11376 }
 0x7da   : > { %v11379_v48 = vunpack.i.h.bf16 %v11377_v5  ;;  %v11378_v52 = vunpack.i.l.bf16 %v11377_v5  ;;  %v8021_v30 = vld [vmem:[#allocation3 + $0x80] ss:$2 sm:$0xff]  ;;  %v8053_v17 = vld [vmem:[#allocation3 + $0x81] ss:$2 sm:$0xff]  ;;  %v7791_v42 = vpop.f32.mrf.mxu1 }
 0x7db   : > { %v8076_v40 = vadd.f32 %v8053_v17, %v8021_v30 }
 0x7dc   : > { %v7466_v51 = vsel %vm7405_vm14, %v20691_v18, %v11378_v52  ;;  %v7467_v6 = vsel %vm7405_vm14, %v20692_v44, %v11379_v48  ;;  %v8005_v23 = vld [vmem:[#allocation3] ss:$2 sm:$0xff]  ;;  %v8037_v2 = vld [vmem:[#allocation3 + $0x1] ss:$2 sm:$0xff]  ;;  %v20696_v18 = vld [vmem:[#allocation179_spill] sm:$0xff] }
 0x7dd   : > { %v7531_v45 = vsel %vm7470_vm0, %v7466_v51, %v11383_v49  ;;  %v7532_v41 = vsel %vm7470_vm0, %v7467_v6, %v11384_v19  ;;  %v8068_v39 = vadd.f32 %v8037_v2, %v8005_v23  ;;  %8642 = vmatmul.msk.bf16.gmra.mxu1 %vm7671_vm3, %v7610_v13  ;;  %v8096_v21 = vadd.f32 %v18720_v34, %v8076_v40  ;;  %v20695_v19 = vld [vmem:[#allocation213_spill] sm:$0xff]  ;;  %v11417_v6 = vpop.permute.xlu2 %11416 }
 0x7de   : > { %v18712_v60 = vsel %vm7535_vm2, %v7531_v45, %v11388_v8  ;;  %v18715_v57 = vsel %vm7535_vm2, %v7532_v41, %v11389_v9  ;;  %v11414_v9 = vunpack.i.h.bf16 %v11412_v37  ;;  %v11413_v8 = vunpack.i.l.bf16 %v11412_v37 }
 0x7df   : > { %v7630_v33 = vpack.c.bf16 %v18715_v57, %v18712_v60  ;;  %v8088_v3 = vadd.f32 %v18720_v34, %v8068_v39  ;;  %8112 = vst.msk [vmem:[%s18731_s16 + $0x40] sm:$0xff] %vm2925_vm1, %v8096_v21  ;;  %v7468_v49 = vsel %vm7405_vm14, %v20695_v19, %v11403_v11  ;;  %v7469_v51 = vsel %vm7405_vm14, %v20696_v18, %v11404_v16 }
 0x7e0   : > { %v7873_v31 = vpop.f32.mrf.mxu2  ;;  %v11419_v40 = vunpack.i.h.bf16 %v11417_v6  ;;  %v11418_v23 = vunpack.i.l.bf16 %v11417_v6 }
 0x7e1   : > { %v11392_v22 = vpop.permute.xlu0 %11391  ;;  %8104 = vst.msk [vmem:[%s18731_s16] sm:$0xff] %vm2925_vm1, %v8088_v3 }
 0x7e2   : > { %v11394_v35 = vunpack.i.h.bf16 %v11392_v22  ;;  %v11393_v50 = vunpack.i.l.bf16 %v11392_v22  ;;  %v7793_v62 = vpop.f32.mrf.mxu1  ;;  %v20697_v22 = vld [vmem:[#allocation124_spill] sm:$0xff] }
 0x7e4   : > { %v7499_v13 = vsel %vm7470_vm0, %v20693_v20, %v11393_v50  ;;  %v7500_v25 = vsel %vm7470_vm0, %v20694_v4, %v11394_v35 }
 0x7e5   : > { %v18744_v0 = vsel %vm7535_vm2, %v7499_v13, %v11398_v26  ;;  %v18747_v14 = vsel %vm7535_vm2, %v7500_v25, %v11399_v47  ;;  %8659 = vmatmul.msk.bf16.gmra.mxu2 %vm7671_vm3, %v7627_v7  ;;  %v7501_v47 = vsel %vm7470_vm0, %v20697_v22, %v11418_v23  ;;  %v20698_v26 = vld [vmem:[#allocation82_spill] sm:$0xff] }
 0x7e6   : > { %v7614_v38 = vpack.c.bf16 %v18747_v14, %v18744_v0  ;;  %v7502_v55 = vsel %vm7470_vm0, %v20698_v26, %v11419_v40 }
 0x7e8   : > { %v7876_v44 = vpop.f32.mrf.mxu2 }
 0x7e9   : > { %v11407_v5 = vpop.permute.xlu0 %11406  ;;  %v7959_v53 = vadd.f32 %v7876_v44, %v7871_v12 }
 0x7ea   : > { %v11409_v48 = vunpack.i.h.bf16 %v11407_v5  ;;  %v11408_v52 = vunpack.i.l.bf16 %v11407_v5  ;;  %v7796_v17 = vpop.f32.mrf.mxu1 }
 0x7eb   : > { %7991 = vst.msk [vmem:[#allocation3 + $0x90] sm:$0xff] %vm2925_vm1, %v7959_v53  ;;  %v7943_v41 = vadd.f32 %v7796_v17, %v7791_v42 }
 0x7ec   : > { %v7533_v63 = vsel %vm7470_vm0, %v7468_v49, %v11408_v52  ;;  %v7534_v30 = vsel %vm7470_vm0, %v7469_v51, %v11409_v48 }
 0x7ed   : > { %v18762_v58 = vsel %vm7535_vm2, %v7533_v63, %v11413_v8  ;;  %v18765_v7 = vsel %vm7535_vm2, %v7534_v30, %v11414_v9  ;;  %7975 = vst.msk [vmem:[#allocation3 + $0x10] sm:$0xff] %vm2925_vm1, %v7943_v41  ;;  %8643 = vmatmul.msk.bf16.gmra.mxu1 %vm7671_vm3, %v7611_v24 }
 0x7ee   : > { %v7631_v45 = vpack.c.bf16 %v18765_v7, %v18762_v58 }
 0x7f0   : > { %v7878_v3 = vpop.f32.mrf.mxu2 }
 0x7f1   : > { %v11422_v12 = vpop.permute.xlu0 %11421  ;;  %v7960_v50 = vadd.f32 %v7878_v3, %v7873_v31 }
 0x7f2   : > { %v11424_v2 = vunpack.i.h.bf16 %v11422_v12  ;;  %v11423_v39 = vunpack.i.l.bf16 %v11422_v12  ;;  %v7798_v20 = vpop.f32.mrf.mxu1 }
 0x7f3   : > { %7992 = vst.msk [vmem:[#allocation3 + $0x98] sm:$0xff] %vm2925_vm1, %v7960_v50  ;;  %v7944_v54 = vadd.f32 %v7798_v20, %v7793_v62 }
 0x7f4   : > { %v7566_v42 = vsel %vm7535_vm2, %v7501_v47, %v11423_v39  ;;  %v7567_v35 = vsel %vm7535_vm2, %v7502_v55, %v11424_v2 }
 0x7f5   : > { %v7615_v21 = vpack.c.bf16 %v7567_v35, %v7566_v42  ;;  %7976 = vst.msk [vmem:[#allocation3 + $0x18] sm:$0xff] %vm2925_vm1, %v7944_v54  ;;  %8660 = vmatmul.msk.bf16.gmra.mxu2 %vm7671_vm3, %v7628_v28 }
 0x7f8   : > { %v7881_v36 = vpop.f32.mrf.mxu2 }
 0x7fa   : > { %v8023_v24 = vld [vmem:[#allocation3 + $0x90] ss:$2 sm:$0xff]  ;;  %v8055_v13 = vld [vmem:[#allocation3 + $0x91] ss:$2 sm:$0xff]  ;;  %v7801_v4 = vpop.f32.mrf.mxu1 }
 0x7fb   : > { %v8077_v25 = vadd.f32 %v8055_v13, %v8023_v24 }
 0x7fc   : > { %v8007_v31 = vld [vmem:[#allocation3 + $0x10] ss:$2 sm:$0xff]  ;;  %v8039_v37 = vld [vmem:[#allocation3 + $0x11] ss:$2 sm:$0xff] }
 0x7fd   : > { %v8069_v16 = vadd.f32 %v8039_v37, %v8007_v31  ;;  %8644 = vmatmul.msk.bf16.gmra.mxu1 %vm7671_vm3, %v7612_v10  ;;  %v8097_v11 = vadd.f32 %v18720_v34, %v8077_v25 }
 0x7ff   : > { %v8089_v62 = vadd.f32 %v18720_v34, %v8069_v16  ;;  %8113 = vst.msk [vmem:[%s18731_s16 + $0x48] sm:$0xff] %vm2925_vm1, %v8097_v11 }
 0x800   : > { %v7883_v43 = vpop.f32.mrf.mxu2 }
 0x801   : > { %8105 = vst.msk [vmem:[%s18731_s16 + $0x8] sm:$0xff] %vm2925_vm1, %v8089_v62 }
 0x802   : > { %v7803_v32 = vpop.f32.mrf.mxu1 }
 0x805   : > { %8661 = vmatmul.msk.bf16.gmra.mxu2 %vm7671_vm3, %v7629_v46 }
 0x808   : > { %v7886_v28 = vpop.f32.mrf.mxu2 }
 0x809   : > { %v7961_v5 = vadd.f32 %v7886_v28, %v7881_v36 }
 0x80a   : > { %v7806_v59 = vpop.f32.mrf.mxu1 }
 0x80b   : > { %7993 = vst.msk [vmem:[#allocation3 + $0xa0] sm:$0xff] %vm2925_vm1, %v7961_v5  ;;  %v7945_v56 = vadd.f32 %v7806_v59, %v7801_v4 }
 0x80d   : > { %7977 = vst.msk [vmem:[#allocation3 + $0x20] sm:$0xff] %vm2925_vm1, %v7945_v56  ;;  %8645 = vmatmul.msk.bf16.gmra.mxu1 %vm7671_vm3, %v7613_v61 }
 0x810   : > { %v7888_v10 = vpop.f32.mrf.mxu2 }
 0x811   : > { %v7962_v9 = vadd.f32 %v7888_v10, %v7883_v43 }
 0x812   : > { %v7808_v8 = vpop.f32.mrf.mxu1 }
 0x813   : > { %7994 = vst.msk [vmem:[#allocation3 + $0xa8] sm:$0xff] %vm2925_vm1, %v7962_v9  ;;  %v7946_v29 = vadd.f32 %v7808_v8, %v7803_v32 }
 0x815   : > { %7978 = vst.msk [vmem:[#allocation3 + $0x28] sm:$0xff] %vm2925_vm1, %v7946_v29  ;;  %8662 = vmatmul.msk.bf16.gmra.mxu2 %vm7671_vm3, %v7630_v33 }
 0x818   : > { %v7891_v1 = vpop.f32.mrf.mxu2 }
 0x81a   : > { %v8025_v46 = vld [vmem:[#allocation3 + $0xa0] ss:$2 sm:$0xff]  ;;  %v8057_v15 = vld [vmem:[#allocation3 + $0xa1] ss:$2 sm:$0xff]  ;;  %v7811_v27 = vpop.f32.mrf.mxu1 }
 0x81b   : > { %v8078_v61 = vadd.f32 %v8057_v15, %v8025_v46 }
 0x81c   : > { %v8009_v48 = vld [vmem:[#allocation3 + $0x20] ss:$2 sm:$0xff]  ;;  %v8041_v52 = vld [vmem:[#allocation3 + $0x21] ss:$2 sm:$0xff] }
 0x81d   : > { %v8070_v19 = vadd.f32 %v8041_v52, %v8009_v48  ;;  %8646 = vmatmul.msk.bf16.gmra.mxu1 %vm7671_vm3, %v7614_v38  ;;  %v8098_v18 = vadd.f32 %v18720_v34, %v8078_v61 }
 0x81f   : > { %v8090_v49 = vadd.f32 %v18720_v34, %v8070_v19  ;;  %8114 = vst.msk [vmem:[%s18731_s16 + $0x50] sm:$0xff] %vm2925_vm1, %v8098_v18 }
 0x820   : > { %v7893_v60 = vpop.f32.mrf.mxu2 }
 0x821   : > { %8106 = vst.msk [vmem:[%s18731_s16 + $0x10] sm:$0xff] %vm2925_vm1, %v8090_v49 }
 0x822   : > { %v7813_v57 = vpop.f32.mrf.mxu1 }
 0x825   : > { %8663 = vmatmul.msk.bf16.gmra.mxu2 %vm7671_vm3, %v7631_v45 }
 0x828   : > { %v7896_v33 = vpop.f32.mrf.mxu2 }
 0x829   : > { %v7963_v51 = vadd.f32 %v7896_v33, %v7891_v1 }
 0x82a   : > { %v7816_v0 = vpop.f32.mrf.mxu1 }
 0x82b   : > { %7995 = vst.msk [vmem:[#allocation3 + $0xb0] sm:$0xff] %vm2925_vm1, %v7963_v51  ;;  %v7947_v14 = vadd.f32 %v7816_v0, %v7811_v27 }
 0x82d   : > { %7979 = vst.msk [vmem:[#allocation3 + $0x30] sm:$0xff] %vm2925_vm1, %v7947_v14  ;;  %8647 = vmatmul.msk.bf16.gmra.mxu1 %vm7671_vm3, %v7615_v21 }
 0x830   : > { %v7898_v38 = vpop.f32.mrf.mxu2 }
 0x831   : > { %v7964_v44 = vadd.f32 %v7898_v38, %v7893_v60 }
 0x832   : > { %v7818_v6 = vpop.f32.mrf.mxu1 }
 0x833   : > { %7996 = vst.msk [vmem:[#allocation3 + $0xb8] sm:$0xff] %vm2925_vm1, %v7964_v44  ;;  %v7948_v63 = vadd.f32 %v7818_v6, %v7813_v57 }
 0x835   : > { %7980 = vst.msk [vmem:[#allocation3 + $0x38] sm:$0xff] %vm2925_vm1, %v7948_v63 }
 0x838   : > { %v7901_v30 = vpop.f32.mrf.mxu2 }
 0x83a   : > { %v8027_v53 = vld [vmem:[#allocation3 + $0xb0] ss:$2 sm:$0xff]  ;;  %v8059_v58 = vld [vmem:[#allocation3 + $0xb1] ss:$2 sm:$0xff]  ;;  %v7821_v7 = vpop.f32.mrf.mxu1 }
 0x83b   : > { %v8079_v17 = vadd.f32 %v8059_v58, %v8027_v53 }
 0x83c   : > { %v8011_v45 = vld [vmem:[#allocation3 + $0x30] ss:$2 sm:$0xff]  ;;  %v8043_v41 = vld [vmem:[#allocation3 + $0x31] ss:$2 sm:$0xff] }
 0x83d   : > { %v8071_v40 = vadd.f32 %v8043_v41, %v8011_v45  ;;  %v8099_v12 = vadd.f32 %v18720_v34, %v8079_v17 }
 0x83f   : > { %v8091_v23 = vadd.f32 %v18720_v34, %v8071_v40  ;;  %8115 = vst.msk [vmem:[%s18731_s16 + $0x58] sm:$0xff] %vm2925_vm1, %v8099_v12 }
 0x840   : > { %v7903_v2 = vpop.f32.mrf.mxu2 }
 0x841   : > { %8107 = vst.msk [vmem:[%s18731_s16 + $0x18] sm:$0xff] %vm2925_vm1, %v8091_v23 }
 0x842   : > { %v7823_v39 = vpop.f32.mrf.mxu1 }
 0x848   : > { %v7906_v22 = vpop.f32.mrf.mxu2 }
 0x849   : > { %v7965_v47 = vadd.f32 %v7906_v22, %v7901_v30 }
 0x84a   : > { %v7826_v26 = vpop.f32.mrf.mxu1 }
 0x84b   : > { %7997 = vst.msk [vmem:[#allocation3 + $0xc0] sm:$0xff] %vm2925_vm1, %v7965_v47  ;;  %v7949_v55 = vadd.f32 %v7826_v26, %v7821_v7 }
 0x84d   : > { %7981 = vst.msk [vmem:[#allocation3 + $0x40] sm:$0xff] %vm2925_vm1, %v7949_v55 }
 0x850   : > { %v7908_v3 = vpop.f32.mrf.mxu2 }
 0x851   : > { %v7966_v42 = vadd.f32 %v7908_v3, %v7903_v2 }
 0x852   : > { %v7828_v35 = vpop.f32.mrf.mxu1 }
 0x853   : > { %7998 = vst.msk [vmem:[#allocation3 + $0xc8] sm:$0xff] %vm2925_vm1, %v7966_v42  ;;  %v7950_v50 = vadd.f32 %v7828_v35, %v7823_v39 }
 0x855   : > { %7982 = vst.msk [vmem:[#allocation3 + $0x48] sm:$0xff] %vm2925_vm1, %v7950_v50 }
 0x858   : > { %v7911_v21 = vpop.f32.mrf.mxu2 }
 0x85a   : > { %v8029_v20 = vld [vmem:[#allocation3 + $0xc0] ss:$2 sm:$0xff]  ;;  %v8061_v54 = vld [vmem:[#allocation3 + $0xc1] ss:$2 sm:$0xff]  ;;  %v7831_v36 = vpop.f32.mrf.mxu1 }
 0x85b   : > { %v8080_v24 = vadd.f32 %v8061_v54, %v8029_v20 }
 0x85c   : > { %v8013_v13 = vld [vmem:[#allocation3 + $0x40] ss:$2 sm:$0xff]  ;;  %v8045_v4 = vld [vmem:[#allocation3 + $0x41] ss:$2 sm:$0xff] }
 0x85d   : > { %v8072_v25 = vadd.f32 %v8045_v4, %v8013_v13  ;;  %v8100_v37 = vadd.f32 %v18720_v34, %v8080_v24 }
 0x85f   : > { %v8092_v31 = vadd.f32 %v18720_v34, %v8072_v25  ;;  %8116 = vst.msk [vmem:[%s18731_s16 + $0x60] sm:$0xff] %vm2925_vm1, %v8100_v37 }
 0x860   : > { %v7913_v16 = vpop.f32.mrf.mxu2 }
 0x861   : > { %8108 = vst.msk [vmem:[%s18731_s16 + $0x20] sm:$0xff] %vm2925_vm1, %v8092_v31 }
 0x862   : > { %v7833_v62 = vpop.f32.mrf.mxu1 }
 0x868   : > { %v7916_v11 = vpop.f32.mrf.mxu2 }
 0x869   : > { %v7967_v43 = vadd.f32 %v7916_v11, %v7911_v21 }
 0x86a   : > { %v7836_v32 = vpop.f32.mrf.mxu1 }
 0x86b   : > { %7999 = vst.msk [vmem:[#allocation3 + $0xd0] sm:$0xff] %vm2925_vm1, %v7967_v43  ;;  %v7951_v28 = vadd.f32 %v7836_v32, %v7831_v36 }
 0x86d   : > { %7983 = vst.msk [vmem:[#allocation3 + $0x50] sm:$0xff] %vm2925_vm1, %v7951_v28 }
 0x870   : > { %v7918_v5 = vpop.f32.mrf.mxu2 }
 0x871   : > { %v7968_v59 = vadd.f32 %v7918_v5, %v7913_v16 }
 0x872   : > { %v7838_v56 = vpop.f32.mrf.mxu1 }
 0x873   : > { %8000 = vst.msk [vmem:[#allocation3 + $0xd8] sm:$0xff] %vm2925_vm1, %v7968_v59  ;;  %v7952_v10 = vadd.f32 %v7838_v56, %v7833_v62 }
 0x875   : > { %7984 = vst.msk [vmem:[#allocation3 + $0x58] sm:$0xff] %vm2925_vm1, %v7952_v10 }
 0x878   : > { %v7921_v9 = vpop.f32.mrf.mxu2 }
 0x87a   : > { %v8031_v8 = vld [vmem:[#allocation3 + $0xd0] ss:$2 sm:$0xff]  ;;  %v8063_v29 = vld [vmem:[#allocation3 + $0xd1] ss:$2 sm:$0xff]  ;;  %v7841_v1 = vpop.f32.mrf.mxu1 }
 0x87b   : > { %v8081_v46 = vadd.f32 %v8063_v29, %v8031_v8 }
 0x87c   : > { %v8015_v15 = vld [vmem:[#allocation3 + $0x50] ss:$2 sm:$0xff]  ;;  %v8047_v27 = vld [vmem:[#allocation3 + $0x51] ss:$2 sm:$0xff] }
 0x87d   : > { %v8073_v61 = vadd.f32 %v8047_v27, %v8015_v15  ;;  %v8101_v52 = vadd.f32 %v18720_v34, %v8081_v46 }
 0x87f   : > { %v8093_v48 = vadd.f32 %v18720_v34, %v8073_v61  ;;  %8117 = vst.msk [vmem:[%s18731_s16 + $0x68] sm:$0xff] %vm2925_vm1, %v8101_v52 }
 0x880   : > { %v7923_v19 = vpop.f32.mrf.mxu2 }
 0x881   : > { %8109 = vst.msk [vmem:[%s18731_s16 + $0x28] sm:$0xff] %vm2925_vm1, %v8093_v48 }
 0x882   : > { %v7843_v49 = vpop.f32.mrf.mxu1 }
 0x888   : > { %v7926_v18 = vpop.f32.mrf.mxu2 }
 0x889   : > { %v7969_v60 = vadd.f32 %v7926_v18, %v7921_v9 }
 0x88a   : > { %v7846_v57 = vpop.f32.mrf.mxu1 }
 0x88b   : > { %8001 = vst.msk [vmem:[#allocation3 + $0xe0] sm:$0xff] %vm2925_vm1, %v7969_v60  ;;  %v7953_v33 = vadd.f32 %v7846_v57, %v7841_v1 }
 0x88d   : > { %7985 = vst.msk [vmem:[#allocation3 + $0x60] sm:$0xff] %vm2925_vm1, %v7953_v33 }
 0x890   : > { %v7928_v51 = vpop.f32.mrf.mxu2 }
 0x891   : > { %v7970_v0 = vadd.f32 %v7928_v51, %v7923_v19 }
 0x892   : > { %v7848_v14 = vpop.f32.mrf.mxu1 }
 0x893   : > { %8002 = vst.msk [vmem:[#allocation3 + $0xe8] sm:$0xff] %vm2925_vm1, %v7970_v0  ;;  %v7954_v38 = vadd.f32 %v7848_v14, %v7843_v49 }
 0x895   : > { %7986 = vst.msk [vmem:[#allocation3 + $0x68] sm:$0xff] %vm2925_vm1, %v7954_v38 }
 0x898   : > { %v7931_v44 = vpop.f32.mrf.mxu2 }
 0x89a   : > { %v8033_v6 = vld [vmem:[#allocation3 + $0xe0] ss:$2 sm:$0xff]  ;;  %v8065_v63 = vld [vmem:[#allocation3 + $0xe1] ss:$2 sm:$0xff]  ;;  %v7851_v30 = vpop.f32.mrf.mxu1 }
 0x89b   : > { %v8082_v53 = vadd.f32 %v8065_v63, %v8033_v6 }
 0x89c   : > { %v8017_v58 = vld [vmem:[#allocation3 + $0x60] ss:$2 sm:$0xff]  ;;  %v8049_v7 = vld [vmem:[#allocation3 + $0x61] ss:$2 sm:$0xff] }
 0x89d   : > { %v8074_v17 = vadd.f32 %v8049_v7, %v8017_v58  ;;  %v8102_v41 = vadd.f32 %v18720_v34, %v8082_v53 }
 0x89f   : > { %v8094_v45 = vadd.f32 %v18720_v34, %v8074_v17  ;;  %8118 = vst.msk [vmem:[%s18731_s16 + $0x70] sm:$0xff] %vm2925_vm1, %v8102_v41 }
 0x8a0   : > { %v7933_v40 = vpop.f32.mrf.mxu2 }
 0x8a1   : > { %8110 = vst.msk [vmem:[%s18731_s16 + $0x30] sm:$0xff] %vm2925_vm1, %v8094_v45 }
 0x8a2   : > { %v7853_v23 = vpop.f32.mrf.mxu1 }
 0x8a8   : > { %v7936_v12 = vpop.f32.mrf.mxu2 }
 0x8a9   : > { %v7971_v2 = vadd.f32 %v7936_v12, %v7931_v44 }
 0x8aa   : > { %v7856_v39 = vpop.f32.mrf.mxu1 }
 0x8ab   : > { %8003 = vst.msk [vmem:[#allocation3 + $0xf0] sm:$0xff] %vm2925_vm1, %v7971_v2  ;;  %v7955_v22 = vadd.f32 %v7856_v39, %v7851_v30 }
 0x8ad   : > { %7987 = vst.msk [vmem:[#allocation3 + $0x70] sm:$0xff] %vm2925_vm1, %v7955_v22 }
 0x8b0   : > { %v7938_v47 = vpop.f32.mrf.mxu2 }
 0x8b1   : > { %v7972_v26 = vadd.f32 %v7938_v47, %v7933_v40 }
 0x8b2   : > { %v7858_v55 = vpop.f32.mrf.mxu1 }
 0x8b3   : > { %8004 = vst.msk [vmem:[#allocation3 + $0xf8] sm:$0xff] %vm2925_vm1, %v7972_v26  ;;  %v7956_v3 = vadd.f32 %v7858_v55, %v7853_v23 }
 0x8b5   : > { %7988 = vst.msk [vmem:[#allocation3 + $0x78] sm:$0xff] %vm2925_vm1, %v7956_v3 }
 0x8ba   : > { %v8035_v42 = vld [vmem:[#allocation3 + $0xf0] ss:$2 sm:$0xff]  ;;  %v8067_v35 = vld [vmem:[#allocation3 + $0xf1] ss:$2 sm:$0xff] }
 0x8bb   : > { %v8083_v50 = vadd.f32 %v8067_v35, %v8035_v42 }
 0x8bc   : > { %v8019_v21 = vld [vmem:[#allocation3 + $0x70] ss:$2 sm:$0xff]  ;;  %v8051_v20 = vld [vmem:[#allocation3 + $0x71] ss:$2 sm:$0xff] }
 0x8bd   : > { %v8075_v54 = vadd.f32 %v8051_v20, %v8019_v21  ;;  %v8103_v24 = vadd.f32 %v18720_v34, %v8083_v50 }
 0x8bf   : > { %v8095_v36 = vadd.f32 %v18720_v34, %v8075_v54  ;;  %8119 = vst.msk [vmem:[%s18731_s16 + $0x78] sm:$0xff] %vm2925_vm1, %v8103_v24 }
 0x8c1   : > { %8111 = vst.msk [vmem:[%s18731_s16 + $0x38] sm:$0xff] %vm2925_vm1, %v8095_v36 }
 0x8c2 PF: > { %s15_s18 = sadd.s32 1, %s11544_s18  }
 0x8c3   : > { %p12_p4 = scmp.ge.s32.totalorder %s15_s18, 4  }
 0x8c5   :  { %14 = sbr.rel (!%p12_p4) target bundleno = 1 (0x1), region = 106 }

</bundles_post_ra>
